<compile_context>
chip_gen: v6e
topology: v6e:2x2x1
jax: 0.10.0
libtpu: 0.0.40
codegen_flags: <defaults>
</compile_context>

<pallas_src>
import jax
import jax.numpy as jnp
from jax.experimental import pallas as pl
from jax.experimental.pallas import tpu as pltpu

NC = 1
NGF = 64
BN_EPS = 1e-5


def _round_up(x, m):
    return (x + m - 1) // m * m


# ------------- fused Conv(matmul) + BatchNorm (batch stats) + act + matmul -------------
# patches(M, K1) @ W1(K1, C) -> a ; BN over rows of a ; LeakyReLU ; a' @ W2(C, Nout).
# Single grid step: all operands fit comfortably in VMEM for this network
# (patches ~10 KB, W2 ~2.4 MB bf16, output ~1.9 MB f32).

def _make_conv_bn_act_mm_kernel(m_valid, neg_slope, eps):
    inv_m = 1.0 / float(m_valid)

    def kernel(p_ref, w1_ref, g_ref, b_ref, w2_ref, o_ref):
        a = jnp.dot(p_ref[...], w1_ref[...],
                    preferred_element_type=jnp.float32)       # (Mp, C) f32 on MXU
        # Padded rows of p_ref are zero => corresponding rows of `a` are zero,
        # so sums over Mp rows divided by m_valid give exact batch statistics.
        s = jnp.sum(a, axis=0, keepdims=True)
        sq = jnp.sum(a * a, axis=0, keepdims=True)
        mean = s * inv_m
        var = sq * inv_m - mean * mean                        # biased var (PyTorch training)
        scale = g_ref[...] * jax.lax.rsqrt(var + eps)
        shift = b_ref[...] - mean * scale
        y = a * scale + shift                                 # f32 epilogue math (VPU)
        if neg_slope == 0.0:
            y = jnp.maximum(y, 0.0)                           # ReLU
        else:
            y = jnp.where(y >= 0.0, y, neg_slope * y)         # LeakyReLU
        o_ref[...] = jnp.dot(y.astype(jnp.bfloat16), w2_ref[...],
                             preferred_element_type=jnp.float32)

    return kernel


def conv_bn_act_matmul_pallas(patches, w1m, gamma, beta, w2m, neg_slope, eps=BN_EPS):
    M, K1 = patches.shape
    C = w1m.shape[1]
    Nout = w2m.shape[1]
    Mp = _round_up(M, 8)
    Np = _round_up(Nout, 128)
    p_p = jnp.pad(patches.astype(jnp.bfloat16), ((0, Mp - M), (0, 0)))
    w1_p = w1m.astype(jnp.bfloat16)
    w2_p = jnp.pad(w2m.astype(jnp.bfloat16), ((0, 0), (0, Np - Nout)))
    g2 = gamma.reshape(1, C).astype(jnp.float32)
    b2 = beta.reshape(1, C).astype(jnp.float32)
    out = pl.pallas_call(
        _make_conv_bn_act_mm_kernel(M, neg_slope, eps),
        out_shape=jax.ShapeDtypeStruct((Mp, Np), jnp.float32),
        grid=(1,),
        in_specs=[pl.BlockSpec((Mp, K1), lambda i: (0, 0)),
                  pl.BlockSpec((K1, C), lambda i: (0, 0)),
                  pl.BlockSpec((1, C), lambda i: (0, 0)),
                  pl.BlockSpec((1, C), lambda i: (0, 0)),
                  pl.BlockSpec((C, Np), lambda i: (0, 0))],
        out_specs=pl.BlockSpec((Mp, Np), lambda i: (0, 0)),
    )(p_p, w1_p, g2, b2, w2_p)
    return out[:M, :Nout]


# --------------- fused BatchNorm (batch stats) + activation + matmul ---------------

def _make_bn_act_mm_kernel(m_valid, neg_slope, eps):
    inv_m = 1.0 / float(m_valid)

    def kernel(x_ref, g_ref, b_ref, w_ref, o_ref):
        x = x_ref[...]                                    # (Mp, C) f32, zero-padded rows
        s = jnp.sum(x, axis=0, keepdims=True)             # padded rows add 0 -> exact
        sq = jnp.sum(x * x, axis=0, keepdims=True)
        mean = s * inv_m
        var = sq * inv_m - mean * mean
        scale = g_ref[...] * jax.lax.rsqrt(var + eps)
        shift = b_ref[...] - mean * scale
        y = x * scale + shift
        if neg_slope == 0.0:
            y = jnp.maximum(y, 0.0)
        else:
            y = jnp.where(y >= 0.0, y, neg_slope * y)
        o_ref[...] = jnp.dot(y.astype(jnp.bfloat16), w_ref[...],
                             preferred_element_type=jnp.float32)

    return kernel


def bn_act_matmul_pallas(x2d, gamma, beta, w, neg_slope, tn=4608, eps=BN_EPS):
    """Per-column BatchNorm over all rows + activation + (x @ w).

    x2d stays VMEM-resident across the weight-tile grid (single step for the shapes
    in this network), so the activation is read from HBM exactly once.
    """
    M, C = x2d.shape
    Nout = w.shape[1]
    Mp = _round_up(M, 8)
    tn = min(tn, _round_up(Nout, 128))
    Np = _round_up(Nout, tn)
    x_p = jnp.pad(x2d.astype(jnp.float32), ((0, Mp - M), (0, 0)))
    w_p = jnp.pad(w.astype(jnp.bfloat16), ((0, 0), (0, Np - Nout)))
    g2 = gamma.reshape(1, C).astype(jnp.float32)
    b2 = beta.reshape(1, C).astype(jnp.float32)
    out = pl.pallas_call(
        _make_bn_act_mm_kernel(M, neg_slope, eps),
        out_shape=jax.ShapeDtypeStruct((Mp, Np), jnp.float32),
        grid=(Np // tn,),
        in_specs=[pl.BlockSpec((Mp, C), lambda j: (0, 0)),   # resident across j
                  pl.BlockSpec((1, C), lambda j: (0, 0)),
                  pl.BlockSpec((1, C), lambda j: (0, 0)),
                  pl.BlockSpec((C, tn), lambda j: (0, j))],
        out_specs=pl.BlockSpec((Mp, tn), lambda j: (0, j)),
        compiler_params=pltpu.CompilerParams(
            dimension_semantics=("parallel",)),
    )(x_p, g2, b2, w_p)
    return out[:M, :Nout]


# ----------------------------------- Tanh kernel -----------------------------------

def _tanh_kernel(x_ref, o_ref):
    o_ref[...] = jnp.tanh(x_ref[...])


def tanh_pallas(x2d):
    M, N = x2d.shape
    Mp, Np = _round_up(M, 8), _round_up(N, 128)
    x_p = jnp.pad(x2d, ((0, Mp - M), (0, Np - N)))
    out = pl.pallas_call(
        _tanh_kernel,
        out_shape=jax.ShapeDtypeStruct((Mp, Np), jnp.float32),
        grid=(1,),
        in_specs=[pl.BlockSpec((Mp, Np), lambda i: (0, 0))],
        out_specs=pl.BlockSpec((Mp, Np), lambda i: (0, 0)),
    )(x_p)
    return out[:M, :N]


# ------------------------------ im2col / col2im glue ------------------------------

def _im2col_nhwc(x, kh, kw, stride, padding, dilation):
    """x: (N,H,W,C) -> patches (N*OH*OW, kh*kw*C) via a single gather (no transposes)."""
    N, H, W, C = x.shape
    xp = jnp.pad(x, ((0, 0), (padding, padding), (padding, padding), (0, 0)))
    Hp, Wp = H + 2 * padding, W + 2 * padding
    OH = (Hp - dilation * (kh - 1) - 1) // stride + 1
    OW = (Wp - dilation * (kw - 1) - 1) // stride + 1
    rows = (jnp.arange(OH) * stride)[:, None] + jnp.arange(kh) * dilation   # (OH, kh)
    cols = (jnp.arange(OW) * stride)[:, None] + jnp.arange(kw) * dilation   # (OW, kw)
    flat = (rows[:, None, :, None] * Wp + cols[None, :, None, :]).reshape(-1)
    patches = jnp.take(xp.reshape(N, Hp * Wp, C), flat, axis=1)
    return patches.reshape(N * OH * OW, kh * kw * C), OH, OW


def _col2im(y, stride, padding, dilation, OH, OW):
    """Separable scatter-add of per-tap transposed-conv contributions (XLA glue).

    y: (N, H, W, kh, kw, C);  out[n, s*iy - p + d*ky, s*ix - p + d*kx, c] += y[...].
    """
    N, H, W, kh, kw, C = y.shape
    PH = (H - 1) * stride + dilation * (kh - 1) + 1
    PW = (W - 1) * stride + dilation * (kw - 1) + 1
    span_h = (H - 1) * stride + 1
    span_w = (W - 1) * stride + 1
    z = jnp.zeros((N, PH, W, kw, C), y.dtype)
    for ky in range(kh):
        z = z.at[:, dilation * ky:dilation * ky + span_h:stride].add(y[:, :, :, ky])
    out = jnp.zeros((N, PH, PW, C), y.dtype)
    for kx in range(kw):
        out = out.at[:, :, dilation * kx:dilation * kx + span_w:stride].add(z[:, :, :, kx])
    return out[:, padding:padding + OH, padding:padding + OW, :]


def _convt_out(size, k, stride, padding, dilation):
    return (size - 1) * stride - 2 * padding + dilation * (k - 1) + 1


# ------------------------------------ Shoobygen ------------------------------------

def init_params(key):
    k = jax.random.split(key, 7)
    p = {}
    p["w1"] = 0.05 * jax.random.normal(k[0], (NGF * 4, NC, 7, 7), jnp.float32)
    p["g1"] = 1.0 + 0.1 * jax.random.normal(k[1], (NGF * 4,), jnp.float32)
    p["b1"] = 0.1 * jax.random.normal(k[2], (NGF * 4,), jnp.float32)
    p["w2"] = 0.02 * jax.random.normal(k[3], (NGF * 4, NGF * 2, 6, 6), jnp.float32)
    p["g2"] = 1.0 + 0.1 * jax.random.normal(k[4], (NGF * 2,), jnp.float32)
    p["b2"] = 0.1 * jax.random.normal(k[5], (NGF * 2,), jnp.float32)
    p["w3"] = 0.05 * jax.random.normal(k[6], (NGF * 2, NC, 3, 3), jnp.float32)
    return p


def shoobygen_forward(params, x):
    N = x.shape[0]
    xh = jnp.transpose(x, (0, 2, 3, 1)).astype(jnp.float32)            # NCHW -> NHWC

    # Conv2d(1, 256, 7, stride=2, pad=2, bias=False): im2col gather + matmul.
    patches, oh1, ow1 = _im2col_nhwc(xh, 7, 7, stride=2, padding=2, dilation=1)
    w1m = jnp.transpose(params["w1"], (2, 3, 1, 0)).reshape(7 * 7 * NC, NGF * 4)
    # Weight matrix for ConvTranspose2d(256, 128, 6, stride=3, pad=2, dilation=2).
    w2m = jnp.transpose(params["w2"], (0, 2, 3, 1)).reshape(NGF * 4, 6 * 6 * NGF * 2)

    # ONE Pallas kernel: conv1 matmul + BatchNorm2d(256) + LeakyReLU(0.2) +
    # the matmul half of the first transposed conv.
    y2 = conv_bn_act_matmul_pallas(patches, w1m, params["g1"], params["b1"],
                                   w2m, neg_slope=0.2)                 # (N*7*7, 4608)
    y2 = y2.reshape(N, oh1, ow1, 6, 6, NGF * 2)
    oh2 = _convt_out(oh1, 6, 3, 2, 2)
    ow2 = _convt_out(ow1, 6, 3, 2, 2)
    h2 = _col2im(y2, stride=3, padding=2, dilation=2, OH=oh2, OW=ow2)  # (N,25,25,128)

    # BatchNorm2d(128) + ReLU, fused with the matmul half of
    # ConvTranspose2d(128, 1, 3, stride=2, pad=2, bias=False)  (Cout*kh*kw = 9)
    w3m = jnp.transpose(params["w3"], (0, 2, 3, 1)).reshape(NGF * 2, 3 * 3 * NC)
    y3 = bn_act_matmul_pallas(h2.reshape(N * oh2 * ow2, NGF * 2),
                              params["g2"], params["b2"], w3m, neg_slope=0.0)
    y3 = y3.reshape(N, oh2, ow2, 3, 3, NC)
    oh3 = _convt_out(oh2, 3, 2, 2, 1)
    ow3 = _convt_out(ow2, 3, 2, 2, 1)
    h3 = _col2im(y3, stride=2, padding=2, dilation=1, OH=oh3, OW=ow3)  # (N,47,47,1)

    # Tanh
    out = tanh_pallas(h3.reshape(N * oh3, ow3 * NC)).reshape(N, oh3, ow3, NC)
    out = jnp.transpose(out, (0, 3, 1, 2))                             # NHWC -> NCHW
    # TODO(synk): nn.parallel.data_parallel (ngpu>1) branch is a multi-device
    # dispatch detail, not a compute op; single-device path implemented.
    return out[:, :, :, :]


# --------------------------- pure-XLA reference (validation) ---------------------------

def _bn_ref(y, g, b, eps=BN_EPS):
    mean = jnp.mean(y, axis=(0, 2, 3), keepdims=True)
    var = jnp.mean((y - mean) ** 2, axis=(0, 2, 3), keepdims=True)
    return (y - mean) * jax.lax.rsqrt(var + eps) * g.reshape(1, -1, 1, 1) \
        + b.reshape(1, -1, 1, 1)


def reference_forward(params, x):
    dn = ("NCHW", "OIHW", "NCHW")
    hi = jax.lax.Precision.HIGHEST
    y = jax.lax.conv_general_dilated(x, params["w1"], (2, 2), ((2, 2), (2, 2)),
                                     dimension_numbers=dn, precision=hi)
    y = _bn_ref(y, params["g1"], params["b1"])
    y = jnp.where(y >= 0.0, y, 0.2 * y)
    w2f = jnp.transpose(jnp.flip(params["w2"], (2, 3)), (1, 0, 2, 3))
    y = jax.lax.conv_general_dilated(y, w2f, (1, 1), ((8, 8), (8, 8)),
                                     lhs_dilation=(3, 3), rhs_dilation=(2, 2),
                                     dimension_numbers=dn, precision=hi)
    y = _bn_ref(y, params["g2"], params["b2"])
    y = jnp.maximum(y, 0.0)
    w3f = jnp.transpose(jnp.flip(params["w3"], (2, 3)), (1, 0, 2, 3))
    y = jax.lax.conv_general_dilated(y, w3f, (1, 1), ((0, 0), (0, 0)),
                                     lhs_dilation=(2, 2), rhs_dilation=(1, 1),
                                     dimension_numbers=dn, precision=hi)
    return jnp.tanh(y)


if __name__ == "__main__":
    key = jax.random.PRNGKey(0)
    pkey, xkey = jax.random.split(key)
    params = init_params(pkey)
    x = jax.random.normal(xkey, (2, 1, 16, 16), jnp.float32)   # NCHW, like PyTorch

    out = jax.jit(shoobygen_forward)(params, x)
    out = jax.block_until_ready(out)

    # 16 -> conv(7,s2,p2) -> 7 -> convT(6,s3,p2,d2) -> 25 -> convT(3,s2,p2) -> 47
    assert out.shape == (2, 1, 47, 47), out.shape
    assert bool(jnp.all(jnp.isfinite(out)))
    assert bool(jnp.all(jnp.abs(out) <= 1.0))   # tanh output range

    # numerical check vs. a pure-XLA f32 reference (matmuls use bf16 inputs -> loose tol)
    ref = jax.block_until_ready(jax.jit(reference_forward)(params, x))
    assert ref.shape == out.shape
    assert float(jnp.max(jnp.abs(out - ref))) < 0.2

    print("KERNEL_OK")
</pallas_src>

<mosaic_0001>
module attributes {stable_mosaic.version = 11 : i64} {
  func.func @kernel(%arg0: i32, %arg1: memref<104x49xbf16, #tpu.memory_space<vmem>>, %arg2: memref<49x256xbf16, #tpu.memory_space<vmem>>, %arg3: memref<1x256xf32, #tpu.memory_space<vmem>>, %arg4: memref<1x256xf32, #tpu.memory_space<vmem>>, %arg5: memref<256x4608xbf16, #tpu.memory_space<vmem>>, %arg6: memref<104x4608xf32, #tpu.memory_space<vmem>>) attributes {dimension_semantics = [#tpu.dimension_semantics<arbitrary>], iteration_bounds = array<i64: 1>, scalar_prefetch = 0 : i64, scratch_operands = 0 : i64, tpu.core_type = #tpu.core_type<tc>, window_params = [{pipeline_mode = #tpu.pipeline_mode<synchronous>, transform_indices = @transform_0, window_bounds = array<i64: 104, 49>}, {pipeline_mode = #tpu.pipeline_mode<synchronous>, transform_indices = @transform_1, window_bounds = array<i64: 49, 256>}, {pipeline_mode = #tpu.pipeline_mode<synchronous>, transform_indices = @transform_2, window_bounds = array<i64: 1, 256>}, {pipeline_mode = #tpu.pipeline_mode<synchronous>, transform_indices = @transform_3, window_bounds = array<i64: 1, 256>}, {pipeline_mode = #tpu.pipeline_mode<synchronous>, transform_indices = @transform_4, window_bounds = array<i64: 256, 4608>}, {pipeline_mode = #tpu.pipeline_mode<synchronous>, transform_indices = @transform_5, window_bounds = array<i64: 104, 4608>}]} {
    %c0 = arith.constant 0 : index
    %c0_0 = arith.constant 0 : index
    %0 = vector.load %arg1[%c0, %c0_0] : memref<104x49xbf16, #tpu.memory_space<vmem>>, vector<104x49xbf16>
    %c0_1 = arith.constant 0 : index
    %c0_2 = arith.constant 0 : index
    %1 = vector.load %arg2[%c0_1, %c0_2] : memref<49x256xbf16, #tpu.memory_space<vmem>>, vector<49x256xbf16>
    %cst = arith.constant dense<0.000000e+00> : vector<104x256xf32>
    %2 = tpu.matmul %0, %1, %cst {dimension_numbers = #tpu.dot_dimension_numbers<[1], [0], [0], [1], [0, 0, 1, 1], [], []>} : vector<104x49xbf16>, vector<49x256xbf16>, vector<104x256xf32> -> vector<104x256xf32>
    %cst_3 = arith.constant dense<0.000000e+00> : vector<256xf32>
    %3 = vector.multi_reduction <add>, %2, %cst_3 [0] : vector<104x256xf32> to vector<256xf32>
    %4 = vector.shape_cast %3 : vector<256xf32> to vector<1x256xf32>
    %5 = arith.mulf %2, %2 : vector<104x256xf32>
    %cst_4 = arith.constant dense<0.000000e+00> : vector<256xf32>
    %6 = vector.multi_reduction <add>, %5, %cst_4 [0] : vector<104x256xf32> to vector<256xf32>
    %7 = vector.shape_cast %6 : vector<256xf32> to vector<1x256xf32>
    %cst_5 = arith.constant 0.0102040814 : f32
    %8 = vector.broadcast %cst_5 : f32 to vector<1x256xf32>
    %9 = arith.mulf %4, %8 : vector<1x256xf32>
    %cst_6 = arith.constant 0.0102040814 : f32
    %10 = vector.broadcast %cst_6 : f32 to vector<1x256xf32>
    %11 = arith.mulf %7, %10 : vector<1x256xf32>
    %12 = arith.mulf %9, %9 : vector<1x256xf32>
    %13 = arith.subf %11, %12 : vector<1x256xf32>
    %c0_7 = arith.constant 0 : index
    %c0_8 = arith.constant 0 : index
    %14 = vector.load %arg3[%c0_7, %c0_8] : memref<1x256xf32, #tpu.memory_space<vmem>>, vector<1x256xf32>
    %cst_9 = arith.constant 9.99999974E-6 : f32
    %15 = vector.broadcast %cst_9 : f32 to vector<1x256xf32>
    %16 = arith.addf %13, %15 : vector<1x256xf32>
    %17 = math.rsqrt %16 : vector<1x256xf32>
    %18 = arith.mulf %14, %17 : vector<1x256xf32>
    %c0_10 = arith.constant 0 : index
    %c0_11 = arith.constant 0 : index
    %19 = vector.load %arg4[%c0_10, %c0_11] : memref<1x256xf32, #tpu.memory_space<vmem>>, vector<1x256xf32>
    %20 = arith.mulf %9, %18 : vector<1x256xf32>
    %21 = arith.subf %19, %20 : vector<1x256xf32>
    %22 = vector.broadcast %18 : vector<1x256xf32> to vector<104x256xf32>
    %23 = arith.mulf %2, %22 : vector<104x256xf32>
    %24 = vector.broadcast %21 : vector<1x256xf32> to vector<104x256xf32>
    %25 = arith.addf %23, %24 : vector<104x256xf32>
    %cst_12 = arith.constant 0.000000e+00 : f32
    %26 = vector.broadcast %cst_12 : f32 to vector<104x256xf32>
    %27 = arith.cmpf oge, %25, %26 : vector<104x256xf32>
    %cst_13 = arith.constant 2.000000e-01 : f32
    %28 = vector.broadcast %cst_13 : f32 to vector<104x256xf32>
    %29 = arith.mulf %28, %25 : vector<104x256xf32>
    %30 = arith.select %27, %25, %29 : vector<104x256xi1>, vector<104x256xf32>
    %31 = arith.truncf %30 : vector<104x256xf32> to vector<104x256xbf16>
    %c0_14 = arith.constant 0 : index
    %c0_15 = arith.constant 0 : index
    %32 = vector.load %arg5[%c0_14, %c0_15] : memref<256x4608xbf16, #tpu.memory_space<vmem>>, vector<256x4608xbf16>
    %cst_16 = arith.constant dense<0.000000e+00> : vector<104x4608xf32>
    %33 = tpu.matmul %31, %32, %cst_16 {dimension_numbers = #tpu.dot_dimension_numbers<[1], [0], [0], [1], [0, 0, 1, 1], [], []>} : vector<104x256xbf16>, vector<256x4608xbf16>, vector<104x4608xf32> -> vector<104x4608xf32>
    %c0_17 = arith.constant 0 : index
    %c0_18 = arith.constant 0 : index
    %34 = vector.load %arg6[%c0_17, %c0_18] : memref<104x4608xf32, #tpu.memory_space<vmem>>, vector<104x4608xf32>
    tpu.vector_store %arg6[%c0_17, %c0_18], %33 {strides = array<i32>} : memref<104x4608xf32, #tpu.memory_space<vmem>>, vector<104x4608xf32>,
    return
  }
  func.func @transform_0(%arg0: i32) -> (i32, i32) {
    %c0_i32 = arith.constant 0 : i32
    %c0_i32_0 = arith.constant 0 : i32
    %c0_i32_1 = arith.constant 0 : i32
    return %c0_i32, %c0_i32_0 : i32, i32
  }
  func.func @transform_1(%arg0: i32) -> (i32, i32) {
    %c0_i32 = arith.constant 0 : i32
    %c0_i32_0 = arith.constant 0 : i32
    %c0_i32_1 = arith.constant 0 : i32
    return %c0_i32, %c0_i32_0 : i32, i32
  }
  func.func @transform_2(%arg0: i32) -> (i32, i32) {
    %c0_i32 = arith.constant 0 : i32
    %c0_i32_0 = arith.constant 0 : i32
    %c0_i32_1 = arith.constant 0 : i32
    return %c0_i32, %c0_i32_0 : i32, i32
  }
  func.func @transform_3(%arg0: i32) -> (i32, i32) {
    %c0_i32 = arith.constant 0 : i32
    %c0_i32_0 = arith.constant 0 : i32
    %c0_i32_1 = arith.constant 0 : i32
    return %c0_i32, %c0_i32_0 : i32, i32
  }
  func.func @transform_4(%arg0: i32) -> (i32, i32) {
    %c0_i32 = arith.constant 0 : i32
    %c0_i32_0 = arith.constant 0 : i32
    %c0_i32_1 = arith.constant 0 : i32
    return %c0_i32, %c0_i32_0 : i32, i32
  }
  func.func @transform_5(%arg0: i32) -> (i32, i32) {
    %c0_i32 = arith.constant 0 : i32
    %c0_i32_0 = arith.constant 0 : i32
    %c0_i32_1 = arith.constant 0 : i32
    return %c0_i32, %c0_i32_0 : i32, i32
  }
}

module attributes {stable_mosaic.version = 11 : i64} {
  func.func @kernel(%arg0: i32, %arg1: memref<1256x128xf32, #tpu.memory_space<vmem>>, %arg2: memref<1x128xf32, #tpu.memory_space<vmem>>, %arg3: memref<1x128xf32, #tpu.memory_space<vmem>>, %arg4: memref<128x128xbf16, #tpu.memory_space<vmem>>, %arg5: memref<1256x128xf32, #tpu.memory_space<vmem>>) attributes {dimension_semantics = [#tpu.dimension_semantics<parallel>], iteration_bounds = array<i64: 1>, scalar_prefetch = 0 : i64, scratch_operands = 0 : i64, tpu.core_type = #tpu.core_type<tc>, window_params = [{pipeline_mode = #tpu.pipeline_mode<synchronous>, transform_indices = @transform_0, window_bounds = array<i64: 1256, 128>}, {pipeline_mode = #tpu.pipeline_mode<synchronous>, transform_indices = @transform_1, window_bounds = array<i64: 1, 128>}, {pipeline_mode = #tpu.pipeline_mode<synchronous>, transform_indices = @transform_2, window_bounds = array<i64: 1, 128>}, {transform_indices = @transform_3, window_bounds = array<i64: 128, 128>}, {transform_indices = @transform_4, window_bounds = array<i64: 1256, 128>}]} {
    %c0 = arith.constant 0 : index
    %c0_0 = arith.constant 0 : index
    %0 = vector.load %arg1[%c0, %c0_0] : memref<1256x128xf32, #tpu.memory_space<vmem>>, vector<1256x128xf32>
    %cst = arith.constant dense<0.000000e+00> : vector<128xf32>
    %1 = vector.multi_reduction <add>, %0, %cst [0] : vector<1256x128xf32> to vector<128xf32>
    %2 = vector.shape_cast %1 : vector<128xf32> to vector<1x128xf32>
    %3 = arith.mulf %0, %0 : vector<1256x128xf32>
    %cst_1 = arith.constant dense<0.000000e+00> : vector<128xf32>
    %4 = vector.multi_reduction <add>, %3, %cst_1 [0] : vector<1256x128xf32> to vector<128xf32>
    %5 = vector.shape_cast %4 : vector<128xf32> to vector<1x128xf32>
    %cst_2 = arith.constant 8.000000e-04 : f32
    %6 = vector.broadcast %cst_2 : f32 to vector<1x128xf32>
    %7 = arith.mulf %2, %6 : vector<1x128xf32>
    %cst_3 = arith.constant 8.000000e-04 : f32
    %8 = vector.broadcast %cst_3 : f32 to vector<1x128xf32>
    %9 = arith.mulf %5, %8 : vector<1x128xf32>
    %10 = arith.mulf %7, %7 : vector<1x128xf32>
    %11 = arith.subf %9, %10 : vector<1x128xf32>
    %c0_4 = arith.constant 0 : index
    %c0_5 = arith.constant 0 : index
    %12 = vector.load %arg2[%c0_4, %c0_5] : memref<1x128xf32, #tpu.memory_space<vmem>>, vector<1x128xf32>
    %cst_6 = arith.constant 9.99999974E-6 : f32
    %13 = vector.broadcast %cst_6 : f32 to vector<1x128xf32>
    %14 = arith.addf %11, %13 : vector<1x128xf32>
    %15 = math.rsqrt %14 : vector<1x128xf32>
    %16 = arith.mulf %12, %15 : vector<1x128xf32>
    %c0_7 = arith.constant 0 : index
    %c0_8 = arith.constant 0 : index
    %17 = vector.load %arg3[%c0_7, %c0_8] : memref<1x128xf32, #tpu.memory_space<vmem>>, vector<1x128xf32>
    %18 = arith.mulf %7, %16 : vector<1x128xf32>
    %19 = arith.subf %17, %18 : vector<1x128xf32>
    %20 = vector.broadcast %16 : vector<1x128xf32> to vector<1256x128xf32>
    %21 = arith.mulf %0, %20 : vector<1256x128xf32>
    %22 = vector.broadcast %19 : vector<1x128xf32> to vector<1256x128xf32>
    %23 = arith.addf %21, %22 : vector<1256x128xf32>
    %cst_9 = arith.constant 0.000000e+00 : f32
    %24 = vector.broadcast %cst_9 : f32 to vector<1256x128xf32>
    %25 = arith.maximumf %23, %24 : vector<1256x128xf32>
    %26 = arith.truncf %25 : vector<1256x128xf32> to vector<1256x128xbf16>
    %c0_10 = arith.constant 0 : index
    %c0_11 = arith.constant 0 : index
    %27 = vector.load %arg4[%c0_10, %c0_11] : memref<128x128xbf16, #tpu.memory_space<vmem>>, vector<128x128xbf16>
    %cst_12 = arith.constant dense<0.000000e+00> : vector<1256x128xf32>
    %28 = tpu.matmul %26, %27, %cst_12 {dimension_numbers = #tpu.dot_dimension_numbers<[1], [0], [0], [1], [0, 0, 1, 1], [], []>} : vector<1256x128xbf16>, vector<128x128xbf16>, vector<1256x128xf32> -> vector<1256x128xf32>
    %c0_13 = arith.constant 0 : index
    %c0_14 = arith.constant 0 : index
    %29 = vector.load %arg5[%c0_13, %c0_14] : memref<1256x128xf32, #tpu.memory_space<vmem>>, vector<1256x128xf32>
    tpu.vector_store %arg5[%c0_13, %c0_14], %28 {strides = array<i32>} : memref<1256x128xf32, #tpu.memory_space<vmem>>, vector<1256x128xf32>,
    return
  }
  func.func @transform_0(%arg0: i32) -> (i32, i32) {
    %c0_i32 = arith.constant 0 : i32
    %c0_i32_0 = arith.constant 0 : i32
    %c0_i32_1 = arith.constant 0 : i32
    return %c0_i32, %c0_i32_0 : i32, i32
  }
  func.func @transform_1(%arg0: i32) -> (i32, i32) {
    %c0_i32 = arith.constant 0 : i32
    %c0_i32_0 = arith.constant 0 : i32
    %c0_i32_1 = arith.constant 0 : i32
    return %c0_i32, %c0_i32_0 : i32, i32
  }
  func.func @transform_2(%arg0: i32) -> (i32, i32) {
    %c0_i32 = arith.constant 0 : i32
    %c0_i32_0 = arith.constant 0 : i32
    %c0_i32_1 = arith.constant 0 : i32
    return %c0_i32, %c0_i32_0 : i32, i32
  }
  func.func @transform_3(%arg0: i32) -> (i32, i32) {
    %c0_i32 = arith.constant 0 : i32
    %c0_i32_0 = arith.constant 0 : i32
    return %c0_i32, %arg0 : i32, i32
  }
  func.func @transform_4(%arg0: i32) -> (i32, i32) {
    %c0_i32 = arith.constant 0 : i32
    %c0_i32_0 = arith.constant 0 : i32
    return %c0_i32, %arg0 : i32, i32
  }
}

module attributes {stable_mosaic.version = 11 : i64} {
  func.func @_tanh_kernel(%arg0: i32, %arg1: memref<96x128xf32, #tpu.memory_space<vmem>>, %arg2: memref<96x128xf32, #tpu.memory_space<vmem>>) attributes {dimension_semantics = [#tpu.dimension_semantics<arbitrary>], iteration_bounds = array<i64: 1>, scalar_prefetch = 0 : i64, scratch_operands = 0 : i64, tpu.core_type = #tpu.core_type<tc>, window_params = [{pipeline_mode = #tpu.pipeline_mode<synchronous>, transform_indices = @transform_0, window_bounds = array<i64: 96, 128>}, {pipeline_mode = #tpu.pipeline_mode<synchronous>, transform_indices = @transform_1, window_bounds = array<i64: 96, 128>}]} {
    %c0 = arith.constant 0 : index
    %c0_0 = arith.constant 0 : index
    %0 = vector.load %arg1[%c0, %c0_0] : memref<96x128xf32, #tpu.memory_space<vmem>>, vector<96x128xf32>
    %1 = math.tanh %0 : vector<96x128xf32>
    %c0_1 = arith.constant 0 : index
    %c0_2 = arith.constant 0 : index
    %2 = vector.load %arg2[%c0_1, %c0_2] : memref<96x128xf32, #tpu.memory_space<vmem>>, vector<96x128xf32>
    tpu.vector_store %arg2[%c0_1, %c0_2], %1 {strides = array<i32>} : memref<96x128xf32, #tpu.memory_space<vmem>>, vector<96x128xf32>,
    return
  }
  func.func @transform_0(%arg0: i32) -> (i32, i32) {
    %c0_i32 = arith.constant 0 : i32
    %c0_i32_0 = arith.constant 0 : i32
    %c0_i32_1 = arith.constant 0 : i32
    return %c0_i32, %c0_i32_0 : i32, i32
  }
  func.func @transform_1(%arg0: i32) -> (i32, i32) {
    %c0_i32 = arith.constant 0 : i32
    %c0_i32_0 = arith.constant 0 : i32
    %c0_i32_1 = arith.constant 0 : i32
    return %c0_i32, %c0_i32_0 : i32, i32
  }
}

</mosaic_0001>

<bundles_post_ra>
// kernel: shoobygen_forward.3
= control target key start
LH: loop header
LB: loop body
LE: loop exit
PB: predicated region body
PF: predicated region fallthrough
CT: control target
= control target key end

     0   :  { %vm131_vm0 = vcmask 1040384   ;;  %v7791_v1 = vmov 0   ;;  %vm109_vm1 = vcmask 400384   ;;  %s11518_s1 = inlined_call_operand.vmem [shape: bf16[49,256], index: 1, kind: input, shape index: {}]   ;;  %s11519_s0 = inlined_call_operand.vmem [shape: bf16[104,49], index: 0, kind: input, shape index: {}]   ;;  %s11520_s4 = inlined_call_operand.vmem [shape: bf16[256,4608], index: 4, kind: input, shape index: {}]   ;;  %s11521_s2 = inlined_call_operand.vmem [shape: f32[1,256], index: 2, kind: input, shape index: {}]   ;;  %s11522_s3 = inlined_call_operand.vmem [shape: f32[1,256], index: 3, kind: input, shape index: {}]   ;;  %s11523_s5 = inlined_call_operand.vmem [shape: f32[104,4608], index: 5, kind: output, shape index: {}]  }
   0x1   :  { %v40_v0 = vld [vmem:[%s11518_s1 + $0x30] sm:$0x11]  ;;  %v133_v2 = vsel %vm131_vm0, 65535, %v7791_v1  ;;  %172 = vmatprep.mubr.bf16.mxu0 %v7791_v1  ;;  %v6907_v7 = vld [vmem:[%s11518_s1 + $0x24] ss:$8 sps:$4 sm:$0xff]   ;;  %v6919_v16 = vld [vmem:[%s11519_s0 + $0x18] sm:$0xff]  }
   0x2   :  { %v6319_v3 = vcombine.high %v40_v0, %v40_v0  ;;  %v6318_v4 = vcombine.low %v40_v0, %v40_v0  ;;  %v6909_v8 = vld [vmem:[%s11518_s1 + $0x20] ss:$8 sps:$4 sm:$0xff]   ;;  %v6910_v9 = vld [vmem:[%s11518_s1 + $0x14] ss:$8 sps:$4 sm:$0xff]   ;;  %v6912_v10 = vld [vmem:[%s11518_s1 + $0x10] ss:$8 sps:$4 sm:$0xff]  }
   0x3   :  { %v6913_v11 = vld [vmem:[%s11518_s1 + $0x4] ss:$8 sps:$4 sm:$0xff]   ;;  %v6915_v12 = vld [vmem:[%s11518_s1] ss:$8 sps:$4 sm:$0xff]   ;;  %v6918_v15 = vld [vmem:[%s11519_s0 + $0x10] sm:$0xff]  }
   0x4   :  { %v138_v5 = vand.u32 %v6319_v3, %v133_v2  ;;  %v135_v6 = vand.u32 %v6318_v4, %v133_v2  ;;  %v6916_v13 = vld [vmem:[%s11519_s0] sm:$0xff]   ;;  %v6917_v14 = vld [vmem:[%s11519_s0 + $0x8] sm:$0xff]   ;;  %v6922_v19 = vld [vmem:[%s11519_s0 + $0x30] ss:$0 sps:$4 sm:$0xff]  }
   0x5   :  { %v6920_v17 = vld [vmem:[%s11519_s0 + $0x20] sm:$0xff]   ;;  %v6921_v18 = vld [vmem:[%s11519_s0 + $0x28] sm:$0xff]  }
   0x6   :  { %148 = vmatprep.subr.bf16.mxu0 %v138_v5  ;;  %v6923_v20 = vld [vmem:[%s11520_s4 + $0x7e4] ss:$144 sps:$4 sm:$0xff]   ;;  %v6925_v21 = vld [vmem:[%s11520_s4 + $0x7e8] ss:$144 sps:$4 sm:$0xff]   ;;  %v6927_v22 = vld [vmem:[%s11520_s4 + $0x7ec] ss:$144 sps:$4 sm:$0xff]  }
   0x7   :  { %149 = vmatpush1.bf16.msra.mxu0 %v135_v6  ;;  %4015 = vmatprep.subr.bf16.mxu1 %v6923_v20  ;;  %v6928_v23 = vld [vmem:[%s11520_s4 + $0x7e0] ss:$144 sps:$4 sm:$0xff]   ;;  %v6929_v24 = vld [vmem:[%s11520_s4 + $0x6c4] ss:$144 sps:$4 sm:$0xff]   ;;  %v6933_v25 = vld [vmem:[%s11520_s4 + $0x6cc] ss:$144 sps:$4 sm:$0xff]  }
   0x8   :  { %150 = vmatprep.subr.bf16.mxu0 %v6907_v7  ;;  %4016 = vmatpush1.bf16.msra.mxu1 %v6928_v23  ;;  %v6931_v26 = vld [vmem:[%s11520_s4 + $0x6c8] ss:$144 sps:$4 sm:$0xff]   ;;  %v6934_v27 = vld [vmem:[%s11520_s4 + $0x6c0] ss:$144 sps:$4 sm:$0xff]   ;;  %v6935_v28 = vld [vmem:[%s11520_s4 + $0x5a4] ss:$144 sps:$4 sm:$0xff]  }
   0x9   :  { %4017 = vmatprep.subr.bf16.mxu1 %v6929_v24  ;;  %v6939_v29 = vld [vmem:[%s11520_s4 + $0x5ac] ss:$144 sps:$4 sm:$0xff]   ;;  %v6937_v30 = vld [vmem:[%s11520_s4 + $0x5a8] ss:$144 sps:$4 sm:$0xff]   ;;  %v6940_v31 = vld [vmem:[%s11520_s4 + $0x5a0] ss:$144 sps:$4 sm:$0xff]  }
   0xa   :  { %v6941_v32 = vld [vmem:[%s11520_s4 + $0x484] ss:$144 sps:$4 sm:$0xff]   ;;  %v6945_v33 = vld [vmem:[%s11520_s4 + $0x48c] ss:$144 sps:$4 sm:$0xff]   ;;  %v6943_v34 = vld [vmem:[%s11520_s4 + $0x488] ss:$144 sps:$4 sm:$0xff]  }
   0xb   :  { %151 = vmatpush1.bf16.msra.mxu0 %v6909_v8  ;;  %v6946_v35 = vld [vmem:[%s11520_s4 + $0x480] ss:$144 sps:$4 sm:$0xff]   ;;  %v6947_v36 = vld [vmem:[%s11520_s4 + $0x364] ss:$144 sps:$4 sm:$0xff]   ;;  %v6951_v37 = vld [vmem:[%s11520_s4 + $0x36c] ss:$144 sps:$4 sm:$0xff]  }
   0xc   :  { %152 = vmatprep.subr.bf16.mxu0 %v6910_v9  ;;  %4018 = vmatpush1.bf16.msra.mxu1 %v6934_v27  ;;  %v6949_v38 = vld [vmem:[%s11520_s4 + $0x368] ss:$144 sps:$4 sm:$0xff]   ;;  %v6952_v39 = vld [vmem:[%s11520_s4 + $0x360] ss:$144 sps:$4 sm:$0xff]   ;;  %v6953_v40 = vld [vmem:[%s11520_s4 + $0x244] ss:$144 sps:$4 sm:$0xff]  }
   0xd   :  { %4019 = vmatprep.subr.bf16.mxu1 %v6935_v28  ;;  %v6957_v41 = vld [vmem:[%s11520_s4 + $0x24c] ss:$144 sps:$4 sm:$0xff]   ;;  %v6955_v42 = vld [vmem:[%s11520_s4 + $0x248] ss:$144 sps:$4 sm:$0xff]   ;;  %v6958_v43 = vld [vmem:[%s11520_s4 + $0x240] ss:$144 sps:$4 sm:$0xff]  }
   0xe   :  { %v6959_v44 = vld [vmem:[%s11520_s4 + $0x124] ss:$144 sps:$4 sm:$0xff]   ;;  %v6963_v45 = vld [vmem:[%s11520_s4 + $0x12c] ss:$144 sps:$4 sm:$0xff]   ;;  %v6961_v46 = vld [vmem:[%s11520_s4 + $0x128] ss:$144 sps:$4 sm:$0xff]  }
   0xf   :  { %153 = vmatpush1.bf16.msra.mxu0 %v6912_v10  ;;  %v6964_v47 = vld [vmem:[%s11520_s4 + $0x120] ss:$144 sps:$4 sm:$0xff]   ;;  %v6965_v48 = vld [vmem:[%s11520_s4 + $0x4] ss:$144 sps:$4 sm:$0xff]   ;;  %v6969_v49 = vld [vmem:[%s11520_s4 + $0xc] ss:$144 sps:$4 sm:$0xff]  }
  0x10   :  { %154 = vmatprep.subr.bf16.mxu0 %v6913_v11  ;;  %4020 = vmatpush1.bf16.msra.mxu1 %v6940_v31  ;;  %v6967_v50 = vld [vmem:[%s11520_s4 + $0x8] ss:$144 sps:$4 sm:$0xff]   ;;  %v6970_v51 = vld [vmem:[%s11520_s4] ss:$144 sps:$4 sm:$0xff]   ;;  %v6971_v52 = vld [vmem:[%s11520_s4 + $0x10e4] ss:$144 sps:$4 sm:$0xff]  }
  0x11   :  { %4021 = vmatprep.subr.bf16.mxu1 %v6941_v32  ;;  %v6975_v53 = vld [vmem:[%s11520_s4 + $0x10ec] ss:$144 sps:$4 sm:$0xff]   ;;  %v6973_v54 = vld [vmem:[%s11520_s4 + $0x10e8] ss:$144 sps:$4 sm:$0xff]   ;;  %v6976_v55 = vld [vmem:[%s11520_s4 + $0x10e0] ss:$144 sps:$4 sm:$0xff]  }
  0x12   :  { %v6977_v56 = vld [vmem:[%s11520_s4 + $0xfc4] ss:$144 sps:$4 sm:$0xff]   ;;  %v6981_v57 = vld [vmem:[%s11520_s4 + $0xfcc] ss:$144 sps:$4 sm:$0xff]   ;;  %v6979_v58 = vld [vmem:[%s11520_s4 + $0xfc8] ss:$144 sps:$4 sm:$0xff]  }
  0x13   :  { %155 = vmatpush1.bf16.msra.mxu0 %v6915_v12  ;;  %v6982_v59 = vld [vmem:[%s11520_s4 + $0xfc0] ss:$144 sps:$4 sm:$0xff]   ;;  %v6983_v60 = vld [vmem:[%s11520_s4 + $0xea4] ss:$144 sps:$4 sm:$0xff]   ;;  %v6987_v61 = vld [vmem:[%s11520_s4 + $0xeac] ss:$144 sps:$4 sm:$0xff]  }
  0x14   :  { %4116 = vmatprep.subr.bf16.mxu0 %v6927_v22  ;;  %4022 = vmatpush1.bf16.msra.mxu1 %v6946_v35  ;;  %v6985_v62 = vld [vmem:[%s11520_s4 + $0xea8] ss:$144 sps:$4 sm:$0xff]   ;;  %v6988_v63 = vld [vmem:[%s11520_s4 + $0xea0] ss:$144 sps:$4 sm:$0xff]   ;;  %v6989_v0 = vld [vmem:[%s11520_s4 + $0xd84] ss:$144 sps:$4 sm:$0xff]  }
  0x15   :  { %4023 = vmatprep.subr.bf16.mxu1 %v6947_v36  ;;  %v6991_v2 = vld [vmem:[%s11520_s4 + $0xd88] ss:$144 sps:$4 sm:$0xff]   ;;  %v6994_v3 = vld [vmem:[%s11520_s4 + $0xd80] ss:$144 sps:$4 sm:$0xff]   ;;  %v6995_v4 = vld [vmem:[%s11520_s4 + $0xc64] ss:$144 sps:$4 sm:$0xff]  }
  0x16   :  { %6320 = vmatmul.mubr.msk.bf16.vlgmr.msra.gmra.mxu0 %vm109_vm1, %v6916_v13  ;;  %v6999_v5 = vld [vmem:[%s11520_s4 + $0xc6c] ss:$144 sps:$4 sm:$0xff]   ;;  %v6997_v6 = vld [vmem:[%s11520_s4 + $0xc68] ss:$144 sps:$4 sm:$0xff]   ;;  %v7000_v7 = vld [vmem:[%s11520_s4 + $0xc60] ss:$144 sps:$4 sm:$0xff]  }
  0x17   :  { %182 = vmatprep.mubr.bf16.mxu0 %v7791_v1  ;;  %4117 = vmatpush1.bf16.msra.mxu0 %v6925_v21  ;;  %v7001_v8 = vld [vmem:[%s11520_s4 + $0xb44] ss:$144 sps:$4 sm:$0xff]   ;;  %v7005_v9 = vld [vmem:[%s11520_s4 + $0xb4c] ss:$144 sps:$4 sm:$0xff]   ;;  %v7003_v10 = vld [vmem:[%s11520_s4 + $0xb48] ss:$144 sps:$4 sm:$0xff]  }
  0x18   :  { %4118 = vmatprep.subr.bf16.mxu0 %v6933_v25  ;;  %4024 = vmatpush1.bf16.msra.mxu1 %v6952_v39  ;;  %v7006_v11 = vld [vmem:[%s11520_s4 + $0xb40] ss:$144 sps:$4 sm:$0xff]   ;;  %v7013_v20 = vld [vmem:[%s11520_s4 + $0x904] ss:$144 sps:$4 sm:$0xff]   ;;  %v7017_v21 = vld [vmem:[%s11520_s4 + $0x90c] ss:$144 sps:$4 sm:$0xff]  }
  0x19   :  { %4025 = vmatprep.subr.bf16.mxu1 %v6953_v40  ;;  %v7015_v22 = vld [vmem:[%s11520_s4 + $0x908] ss:$144 sps:$4 sm:$0xff]   ;;  %v7018_v23 = vld [vmem:[%s11520_s4 + $0x900] ss:$144 sps:$4 sm:$0xff]   ;;  %v7024_v27 = vld [vmem:[%s11520_s4 + $0x7fc] ss:$144 sps:$4 sm:$0xff]  }
  0x1b   :  { %4119 = vmatpush1.bf16.msra.mxu0 %v6931_v26  ;;  %v7021_v26 = vld [vmem:[%s11520_s4 + $0x7f4] ss:$144 sps:$4 sm:$0xff]  }
  0x1c   :  { %4120 = vmatprep.subr.bf16.mxu0 %v6939_v29  ;;  %4026 = vmatpush1.bf16.msra.mxu1 %v6958_v43 }
  0x1d   :  { %4027 = vmatprep.subr.bf16.mxu1 %v6959_v44 }
  0x1e   :  { %6321 = vmatmul.mubr.msk.bf16.gmra.mxu0 %vm109_vm1, %v6917_v14  ;;  %v7007_v14 = vld [vmem:[%s11520_s4 + $0xa24] ss:$144 sps:$4 sm:$0xff]  }
  0x1f   :  { %192 = vmatprep.mubr.bf16.mxu0 %v7791_v1  ;;  %4121 = vmatpush1.bf16.msra.mxu0 %v6937_v30 }
  0x20   :  { %4122 = vmatprep.subr.bf16.mxu0 %v6945_v33  ;;  %4028 = vmatpush1.bf16.msra.mxu1 %v6964_v47 }
  0x21   :  { %4029 = vmatprep.subr.bf16.mxu1 %v6965_v48 }
  0x23   :  { %4123 = vmatpush1.bf16.msra.mxu0 %v6943_v34 }
  0x24   :  { %4124 = vmatprep.subr.bf16.mxu0 %v6951_v37  ;;  %4030 = vmatpush1.bf16.msra.mxu1 %v6970_v51 }
  0x25   :  { %4031 = vmatprep.subr.bf16.mxu1 %v6971_v52 }
  0x26   :  { %6322 = vmatmul.mubr.msk.bf16.gmra.mxu0 %vm109_vm1, %v6918_v15  ;;  %v7011_v15 = vld [vmem:[%s11520_s4 + $0xa2c] ss:$144 sps:$4 sm:$0xff]  }
  0x27   :  { %202 = vmatprep.mubr.bf16.mxu0 %v7791_v1  ;;  %4125 = vmatpush1.bf16.msra.mxu0 %v6949_v38 }
  0x28   :  { %4126 = vmatprep.subr.bf16.mxu0 %v6957_v41  ;;  %4032 = vmatpush2.bf16.msra.mxu1 %v6976_v55 }
  0x29   :  { %4033 = vmatprep.subr.bf16.mxu1 %v6977_v56 }
  0x2b   :  { %4127 = vmatpush1.bf16.msra.mxu0 %v6955_v42 }
  0x2c   :  { %4128 = vmatprep.subr.bf16.mxu0 %v6963_v45  ;;  %4034 = vmatpush2.bf16.msra.mxu1 %v6982_v59 }
  0x2d   :  { %4035 = vmatprep.subr.bf16.mxu1 %v6983_v60 }
  0x2e   :  { %6323 = vmatmul.mubr.msk.bf16.gmra.mxu0 %vm109_vm1, %v6919_v16  ;;  %v7009_v16 = vld [vmem:[%s11520_s4 + $0xa28] ss:$144 sps:$4 sm:$0xff]  }
  0x2f   :  { %212 = vmatprep.mubr.bf16.mxu0 %v7791_v1  ;;  %4129 = vmatpush1.bf16.msra.mxu0 %v6961_v46 }
  0x30   :  { %4130 = vmatprep.subr.bf16.mxu0 %v6969_v49  ;;  %4036 = vmatpush2.bf16.msra.mxu1 %v6988_v63 }
  0x31   :  { %4037 = vmatprep.subr.bf16.mxu1 %v6989_v0 }
  0x33   :  { %4131 = vmatpush1.bf16.msra.mxu0 %v6967_v50 }
  0x34   :  { %4132 = vmatprep.subr.bf16.mxu0 %v6975_v53  ;;  %4038 = vmatpush2.bf16.msra.mxu1 %v6994_v3 }
  0x35   :  { %4039 = vmatprep.subr.bf16.mxu1 %v6995_v4 }
  0x36   :  { %6324 = vmatmul.mubr.msk.bf16.gmra.mxu0 %vm109_vm1, %v6920_v17  ;;  %v7012_v17 = vld [vmem:[%s11520_s4 + $0xa20] ss:$144 sps:$4 sm:$0xff]  }
  0x37   :  { %222 = vmatprep.mubr.bf16.mxu0 %v7791_v1  ;;  %4133 = vmatpush2.bf16.msra.mxu0 %v6973_v54 }
  0x38   :  { %4134 = vmatprep.subr.bf16.mxu0 %v6981_v57  ;;  %4040 = vmatpush2.bf16.msra.mxu1 %v7000_v7 }
  0x39   :  { %4041 = vmatprep.subr.bf16.mxu1 %v7001_v8 }
  0x3b   :  { %4135 = vmatpush2.bf16.msra.mxu0 %v6979_v58 }
  0x3c   :  { %4136 = vmatprep.subr.bf16.mxu0 %v6987_v61  ;;  %4042 = vmatpush2.bf16.msra.mxu1 %v7006_v11 }
  0x3d   :  { %4043 = vmatprep.subr.bf16.mxu1 %v7007_v14 }
  0x3e   :  { %6325 = vmatmul.mubr.msk.bf16.gmra.mxu0 %vm109_vm1, %v6921_v18 }
  0x3f   :  { %232 = vmatprep.mubr.bf16.mxu0 %v7791_v1  ;;  %v6993_v1 = vld [vmem:[%s11520_s4 + $0xd8c] ss:$144 sps:$4 sm:$0xff]   ;;  %4137 = vmatpush2.bf16.msra.mxu0 %v6985_v62 }
  0x40   :  { %4138 = vmatprep.subr.bf16.mxu0 %v6993_v1  ;;  %4044 = vmatpush2.bf16.msra.mxu1 %v7012_v17 }
  0x41   :  { %4045 = vmatprep.subr.bf16.mxu1 %v7013_v20 }
  0x43   :  { %4139 = vmatpush2.bf16.msra.mxu0 %v6991_v2 }
  0x44   :  { %4140 = vmatprep.subr.bf16.mxu0 %v6999_v5  ;;  %4046 = vmatpush2.bf16.msra.mxu1 %v7018_v23 }
  0x45   :  { %4217 = vmatprep.subr.bf16.mxu1 %v7021_v26 }
  0x46   :  { %6326 = vmatmul.mubr.msk.bf16.gmra.mxu0 %vm109_vm1, %v6922_v19 }
  0x47   :  { %4141 = vmatpush2.bf16.msra.mxu0 %v6997_v6 }
  0x48   :  { %4142 = vmatprep.subr.bf16.mxu0 %v7005_v9 }
  0x4b   :  { %4143 = vmatpush2.bf16.msra.mxu0 %v7003_v10 }
  0x4c   :  { %4144 = vmatprep.subr.bf16.mxu0 %v7011_v15 }
  0x4f   :  { %4145 = vmatpush2.bf16.msra.mxu0 %v7009_v16 }
  0x50   :  { %4146 = vmatprep.subr.bf16.mxu0 %v7017_v21 }
  0x53   :  { %4147 = vmatpush2.bf16.msra.mxu0 %v7015_v22 }
  0x54   :  { %4318 = vmatprep.subr.bf16.mxu0 %v7024_v27 }
  0xd6   :  { %v8040_v12 = vpop.f32.mrf.mxu0 }
  0xd7   :  { %v277_v38 = vmul.f32 %v8040_v12, %v8040_v12 }
  0xd8   :  { %v8042_v13 = vpop.f32.mrf.mxu0 }
  0xd9   :  { %v278_v41 = vmul.f32 %v8042_v13, %v8042_v13 }
  0xda   :  { %v8056_v18 = vpop.f32.mrf.mxu0 }
  0xdb   :  { %v279_v35 = vmul.f32 %v8056_v18, %v8056_v18  ;;  %v241_v39 = vadd.f32 %v8056_v18, %v8040_v12 }
  0xdc   :  { %v8058_v19 = vpop.f32.mrf.mxu0 }
  0xdd   :  { %v280_v36 = vmul.f32 %v8058_v19, %v8058_v19  ;;  %v303_v44 = vadd.f32 %v279_v35, %v277_v38  ;;  %v259_v46 = vadd.f32 %v8058_v19, %v8042_v13 }
  0xde   :  { %v8072_v24 = vpop.f32.mrf.mxu0 }
  0xdf   :  { %v281_v40 = vmul.f32 %v8072_v24, %v8072_v24  ;;  %v242_v45 = vadd.f32 %v241_v39, %v8072_v24  ;;  %v321_v48 = vadd.f32 %v280_v36, %v278_v41 }
  0xe0   :  { %v8074_v25 = vpop.f32.mrf.mxu0 }
  0xe1   :  { %v282_v42 = vmul.f32 %v8074_v25, %v8074_v25  ;;  %v304_v51 = vadd.f32 %v303_v44, %v281_v40  ;;  %v260_v52 = vadd.f32 %v259_v46, %v8074_v25 }
  0xe2   :  { %v8082_v28 = vpop.f32.mrf.mxu0 }
  0xe3   :  { %v283_v47 = vmul.f32 %v8082_v28, %v8082_v28  ;;  %v243_v53 = vadd.f32 %v242_v45, %v8082_v28  ;;  %v322_v55 = vadd.f32 %v321_v48, %v282_v42 }
  0xe4   :  { %v8084_v29 = vpop.f32.mrf.mxu0 }
  0xe5   :  { %v284_v49 = vmul.f32 %v8084_v29, %v8084_v29  ;;  %v305_v58 = vadd.f32 %v304_v51, %v283_v47  ;;  %v261_v60 = vadd.f32 %v260_v52, %v8084_v29 }
  0xe6   :  { %v8086_v30 = vpop.f32.mrf.mxu0 }
  0xe7   :  { %v285_v54 = vmul.f32 %v8086_v30, %v8086_v30  ;;  %v244_v59 = vadd.f32 %v243_v53, %v8086_v30  ;;  %v323_v62 = vadd.f32 %v322_v55, %v284_v49 }
  0xe8   :  { %v8088_v31 = vpop.f32.mrf.mxu0 }
  0xe9   :  { %v286_v56 = vmul.f32 %v8088_v31, %v8088_v31  ;;  %v306_v1 = vadd.f32 %v305_v58, %v285_v54  ;;  %v262_v2 = vadd.f32 %v261_v60, %v8088_v31 }
  0xea   :  { %v8090_v32 = vpop.f32.mrf.mxu0 }
  0xeb   :  { %v287_v61 = vmul.f32 %v8090_v32, %v8090_v32  ;;  %v245_v3 = vadd.f32 %v244_v59, %v8090_v32  ;;  %v324_v5 = vadd.f32 %v323_v62, %v286_v56 }
  0xec   :  { %v8092_v33 = vpop.f32.mrf.mxu0 }
  0xed   :  { %v288_v63 = vmul.f32 %v8092_v33, %v8092_v33  ;;  %v307_v8 = vadd.f32 %v306_v1, %v287_v61  ;;  %v263_v10 = vadd.f32 %v262_v2, %v8092_v33 }
  0xee   :  { %v8094_v34 = vpop.f32.mrf.mxu0 }
  0xef   :  { %v289_v4 = vmul.f32 %v8094_v34, %v8094_v34  ;;  %v246_v9 = vadd.f32 %v245_v3, %v8094_v34  ;;  %v325_v14 = vadd.f32 %v324_v5, %v288_v63 }
  0xf0   :  { %v8100_v37 = vpop.f32.mrf.mxu0 }
  0xf1   :  { %v290_v6 = vmul.f32 %v8100_v37, %v8100_v37  ;;  %v308_v17 = vadd.f32 %v307_v8, %v289_v4  ;;  %v264_v20 = vadd.f32 %v263_v10, %v8100_v37 }
  0xf2   :  { %v8112_v43 = vpop.f32.mrf.mxu0 }
  0xf3   :  { %v291_v11 = vmul.f32 %v8112_v43, %v8112_v43  ;;  %v247_v21 = vadd.f32 %v246_v9, %v8112_v43  ;;  %v326_v23 = vadd.f32 %v325_v14, %v290_v6 }
  0xf4   :  { %v8121_v50 = vpop.f32.mrf.mxu0 }
  0xf5   :  { %v292_v15 = vmul.f32 %v8121_v50, %v8121_v50  ;;  %v309_v35 = vadd.f32 %v308_v17, %v291_v11  ;;  %v265_v38 = vadd.f32 %v264_v20, %v8121_v50 }
  0xf6   :  { %v8129_v57 = vpop.f32.mrf.mxu0 }
  0xf7   :  { %v293_v22 = vmul.f32 %v8129_v57, %v8129_v57  ;;  %v248_v36 = vadd.f32 %v247_v21, %v8129_v57  ;;  %v327_v40 = vadd.f32 %v326_v23, %v292_v15 }
  0xf8   :  { %v8137_v0 = vpop.f32.mrf.mxu0 }
  0xf9   :  { %v294_v26 = vmul.f32 %v8137_v0, %v8137_v0  ;;  %v310_v44 = vadd.f32 %v309_v35, %v293_v22  ;;  %v266_v45 = vadd.f32 %v265_v38, %v8137_v0 }
  0xfa   :  { %v8145_v7 = vpop.f32.mrf.mxu0 }
  0xfb   :  { %v295_v39 = vmul.f32 %v8145_v7, %v8145_v7  ;;  %v249_v46 = vadd.f32 %v248_v36, %v8145_v7  ;;  %v328_v48 = vadd.f32 %v327_v40, %v294_v26 }
  0xfc   :  { %v8153_v16 = vpop.f32.mrf.mxu0 }
  0xfd   :  { %v296_v41 = vmul.f32 %v8153_v16, %v8153_v16  ;;  %v311_v52 = vadd.f32 %v310_v44, %v295_v39  ;;  %v267_v54 = vadd.f32 %v266_v45, %v8153_v16 }
  0xfe   :  { %v8161_v27 = vpop.f32.mrf.mxu0 }
  0xff   :  { %v297_v47 = vmul.f32 %v8161_v27, %v8161_v27  ;;  %v250_v53 = vadd.f32 %v249_v46, %v8161_v27  ;;  %v329_v56 = vadd.f32 %v328_v48, %v296_v41 }
 0x100   :  { %v8169_v42 = vpop.f32.mrf.mxu0 }
 0x101   :  { %v298_v49 = vmul.f32 %v8169_v42, %v8169_v42  ;;  %v312_v59 = vadd.f32 %v311_v52, %v297_v47  ;;  %v268_v60 = vadd.f32 %v267_v54, %v8169_v42 }
 0x102   :  { %v8177_v51 = vpop.f32.mrf.mxu0 }
 0x103   :  { %v299_v55 = vmul.f32 %v8177_v51, %v8177_v51  ;;  %v251_v61 = vadd.f32 %v250_v53, %v8177_v51  ;;  %v330_v63 = vadd.f32 %v329_v56, %v298_v49 }
 0x104   :  { %v8183_v58 = vpop.f32.mrf.mxu0 }
 0x105   :  { %v300_v62 = vmul.f32 %v8183_v58, %v8183_v58  ;;  %v313_v2 = vadd.f32 %v312_v59, %v299_v55  ;;  %v269_v5 = vadd.f32 %v268_v60, %v8183_v58 }
 0x106   :  { %v8189_v1 = vpop.f32.mrf.mxu0 }
 0x107   :  { %v252_v3 = vadd.f32 %v251_v61, %v8189_v1  ;;  %v301_v4 = vmul.f32 %v8189_v1, %v8189_v1  ;;  %v331_v8 = vadd.f32 %v330_v63, %v300_v62 }
 0x108   :  { %v8195_v6 = vpop.f32.mrf.mxu0 }
 0x109   :  { %v253_v9 = vrot.slane %v252_v3, 4  ;;  %v314_v10 = vadd.f32 %v313_v2, %v301_v4  ;;  %v270_v11 = vadd.f32 %v269_v5, %v8195_v6  ;;  %v302_v14 = vmul.f32 %v8195_v6, %v8195_v6 }
 0x10a   :  { %v238_v15 = vpop.f32.mrf.mxu0 }
 0x10b   :  { %v254_v17 = vadd.f32 %v253_v9, %v252_v3  ;;  %v315_v20 = vrot.slane %v314_v10, 4  ;;  %v271_v21 = vrot.slane %v270_v11, 4  ;;  %v332_v22 = vadd.f32 %v331_v8, %v302_v14 }
 0x10c   :  { %v239_v23 = vpop.f32.mrf.mxu0  ;;  %v358_v15 = vlaneseq }
 0x10d   :  { %v255_v26 = vrot.slane %v254_v17, 2  ;;  %v316_v35 = vadd.f32 %v315_v20, %v314_v10  ;;  %v272_v36 = vadd.f32 %v271_v21, %v270_v11  ;;  %v333_v38 = vrot.slane %v332_v22, 4 }
 0x10e   :  { %v7792_v11 = vmov 1966171168   ;;  %v359_v20 = vshrl.u32 %v358_v15, 7 }
 0x10f   :  { %v256_v39 = vadd.f32 %v255_v26, %v254_v17  ;;  %v317_v40 = vrot.slane %v316_v35, 2  ;;  %v273_v41 = vrot.slane %v272_v36, 2  ;;  %v334_v44 = vadd.f32 %v333_v38, %v332_v22 }
 0x110   :  { %v356_v14 = vunpack.c.l.s4 %v7792_v11 }
 0x111   :  { %v257_v45 = vrot.slane %v256_v39, 1  ;;  %v318_v46 = vadd.f32 %v317_v40, %v316_v35  ;;  %v274_v47 = vadd.f32 %v273_v41, %v272_v36  ;;  %v335_v48 = vrot.slane %v334_v44, 2  ;;  %v347_v36 = vld [vmem:[%s11521_s2] sm:$0x3] }
 0x112   :  { %v357_v17 = vunpack.c.0.s8 %v356_v14  ;;  %v379_v40 = vsub.s32 1, %v359_v20 }
 0x113   :  { %v258_v49 = vadd.f32 %v257_v45, %v256_v39  ;;  %v319_v52 = vrot.slane %v318_v46, 1  ;;  %v275_v53 = vrot.slane %v274_v47, 1  ;;  %v336_v54 = vadd.f32 %v335_v48, %v334_v44 }
 0x114   :  { %v360_v22 = vsub.s32 %v357_v17, %v359_v20  ;;  %v375_v39 = vsub.s32 0, %v359_v20 }
 0x115   :  { %v320_v55 = vadd.f32 %v319_v52, %v318_v46  ;;  %v339_v56 = vmul.f32 0.010204081, %v258_v49  ;;  %v276_v59 = vadd.f32 %v275_v53, %v274_v47  ;;  %v337_v60 = vrot.slane %v336_v54, 1  ;;  %v371_v52 = vld [vmem:[%s11522_s3] sm:$0x3] }
 0x117   :  { %v341_v61 = vmul.f32 0.010204081, %v320_v55  ;;  %v343_v62 = vmul.f32 %v339_v56, %v339_v56  ;;  %v338_v63 = vadd.f32 %v337_v60, %v336_v54  ;;  %v340_v2 = vmul.f32 0.010204081, %v276_v59 }
 0x119   :  { %v345_v3 = vsub.f32 %v341_v61, %v343_v62  ;;  %v342_v4 = vmul.f32 0.010204081, %v338_v63  ;;  %v344_v5 = vmul.f32 %v340_v2, %v340_v2 }
 0x11b   :  { %v348_v8 = vadd.f32 1e-05, %v345_v3  ;;  %v346_v9 = vsub.f32 %v342_v4, %v344_v5 }
 0x11d   :  { %v349_v10 = vadd.f32 1e-05, %v346_v9  ;;  %7787 = vrsqrt.f32 %v348_v8 }
 0x11f   :  { %7789 = vrsqrt.f32 %v349_v10 }
 0x12a   :  { %v7788_v21 = vpop.eup %7787 }
 0x12c   :  { %v7790_v23 = vpop.eup %7789 }
 0x12d   :  { %v354_v26 = vcombine.low %v7788_v21, %v7790_v23 }
 0x12f   :  { %v361_v35 = vrot.slane %v354_v26, %v360_v22 }
 0x131   :  { %v368_v38 = vrot.slane %v361_v35, %v360_v22 }
 0x133   :  { %v370_v41 = vmul.f32 %v368_v38, %v347_v36 }
 0x135   :  { %v8203_v44 = vrot.slane %v370_v41, %v375_v39  ;;  %v8205_v45 = vrot.slane %v370_v41, %v379_v40 }
 0x137   :  { %v383_v46 = vmul.f32 %v8203_v44, %v339_v56  ;;  %v384_v47 = vmul.f32 %v8205_v45, %v340_v2  ;;  %v404_v60 = vmul.f32 %v8203_v44, %v8040_v12  ;;  %v405_v56 = vmul.f32 %v8205_v45, %v8042_v13 }
 0x138   :  { %v406_v61 = vmul.f32 %v8203_v44, %v8056_v18  ;;  %v407_v62 = vmul.f32 %v8205_v45, %v8058_v19  ;;  %v409_v63 = vmul.f32 %v8205_v45, %v8074_v25  ;;  %v424_v2 = vmul.f32 %v8203_v44, %v8161_v27 }
 0x139   :  { %v387_v48 = vcombine.low %v383_v46, %v384_v47  ;;  %v426_v12 = vmul.f32 %v8203_v44, %v8177_v51  ;;  %v411_v19 = vmul.f32 %v8205_v45, %v8084_v29  ;;  %v408_v51 = vmul.f32 %v8203_v44, %v8072_v24  ;;  %v7019_v47 = vld [vmem:[%s11520_s4 + $0x7f0] ss:$144 sps:$4 sm:$0xff]  }
 0x13a   :  { %v410_v29 = vmul.f32 %v8203_v44, %v8082_v28  ;;  %v413_v17 = vmul.f32 %v8205_v45, %v8088_v31  ;;  %v415_v36 = vmul.f32 %v8205_v45, %v8092_v33  ;;  %v7022_v33 = vld [vmem:[%s11520_s4 + $0x7f8] ss:$144 sps:$4 sm:$0xff]  }
 0x13b   :  { %v394_v49 = vrot.slane %v387_v48, %v360_v22 }
 0x13d   :  { %v401_v53 = vrot.slane %v394_v49, %v360_v22 }
 0x13f   :  { %v403_v54 = vsub.f32 %v371_v52, %v401_v53  ;;  %v7027_v53 = vld [vmem:[%s11520_s4 + $0x6d4] ss:$144 sps:$4 sm:$0xff]  }
 0x141   :  { %v8212_v55 = vrot.slane %v403_v54, %v375_v39  ;;  %v8214_v59 = vrot.slane %v403_v54, %v379_v40  ;;  %v7030_v54 = vld [vmem:[%s11520_s4 + $0x6dc] ss:$144 sps:$4 sm:$0xff]  }
 0x143   :  { %v441_v3 = vadd.f32 %v8212_v55, %v404_v60  ;;  %v442_v4 = vadd.f32 %v8214_v59, %v405_v56  ;;  %v443_v13 = vadd.f32 %v8212_v55, %v406_v61  ;;  %v444_v18 = vadd.f32 %v8214_v59, %v407_v62 }
 0x144   :  { %v446_v5 = vadd.f32 %v8214_v59, %v409_v63  ;;  %v461_v25 = vadd.f32 %v8212_v55, %v424_v2  ;;  %v463_v27 = vadd.f32 %v8212_v55, %v426_v12  ;;  %v448_v8 = vadd.f32 %v8214_v59, %v411_v19  ;;  %v7025_v63 = vld [vmem:[%s11520_s4 + $0x6d0] ss:$144 sps:$4 sm:$0xff]   ;;  %v7028_v2 = vld [vmem:[%s11520_s4 + $0x6d8] ss:$144 sps:$4 sm:$0xff]  }
 0x145   :  { %v493_v9 = vmul.f32 0.2, %v441_v3  ;;  %v494_v10 = vmul.f32 0.2, %v442_v4  ;;  %v495_v11 = vmul.f32 0.2, %v443_v13  ;;  %v445_v28 = vadd.f32 %v8212_v55, %v408_v51 }
 0x146   :  { %v496_v14 = vmul.f32 0.2, %v444_v18  ;;  %vm467_vm2 = vcmp.ge.f32.partialorder %v441_v3, 0.0  ;;  %vm468_vm3 = vcmp.ge.f32.partialorder %v442_v4, 0.0  ;;  %vm469_vm4 = vcmp.ge.f32.partialorder %v443_v13, 0.0 }
 0x147   :  { %vm470_vm5 = vcmp.ge.f32.partialorder %v444_v18, 0.0  ;;  %vm487_vm6 = vcmp.ge.f32.partialorder %v461_v25, 0.0  ;;  %vm489_vm7 = vcmp.ge.f32.partialorder %v463_v27, 0.0  ;;  %v498_v15 = vmul.f32 0.2, %v446_v5 }
 0x148   :  { %v500_v20 = vmul.f32 0.2, %v448_v8  ;;  %v513_v21 = vmul.f32 0.2, %v461_v25  ;;  %v515_v22 = vmul.f32 0.2, %v463_v27  ;;  %v519_v24 = vsel %vm467_vm2, %v441_v3, %v493_v9 }
 0x149   :  { %v520_v23 = vsel %vm468_vm3, %v442_v4, %v494_v10  ;;  %v521_v26 = vsel %vm469_vm4, %v443_v13, %v495_v11  ;;  %v522_v35 = vsel %vm470_vm5, %v444_v18, %v496_v14  ;;  %vm472_vm8 = vcmp.ge.f32.partialorder %v446_v5, 0.0  ;;  %v7036_v4 = vld [vmem:[%s11520_s4 + $0x5bc] ss:$144 sps:$4 sm:$0xff]   ;;  %v7034_v9 = vld [vmem:[%s11520_s4 + $0x5b8] ss:$144 sps:$4 sm:$0xff]  }
 0x14a   :  { %vm474_vm9 = vcmp.ge.f32.partialorder %v448_v8, 0.0  ;;  %v447_v38 = vadd.f32 %v8212_v55, %v410_v29  ;;  %v450_v39 = vadd.f32 %v8214_v59, %v413_v17  ;;  %v539_v31 = vsel %vm487_vm6, %v461_v25, %v513_v21  ;;  %v7039_v14 = vld [vmem:[%s11520_s4 + $0x494] ss:$144 sps:$4 sm:$0xff]   ;;  %v7042_v29 = vld [vmem:[%s11520_s4 + $0x49c] ss:$144 sps:$4 sm:$0xff]  }
 0x14b   :  { %v541_v40 = vsel %vm489_vm7, %v463_v27, %v515_v22  ;;  %v8253_v41 = vpack.c.bf16 %v521_v26, %v519_v24  ;;  %v8255_v46 = vpack.c.bf16 %v522_v35, %v520_v23  ;;  %v452_v48 = vadd.f32 %v8214_v59, %v415_v36  ;;  %v7037_v21 = vld [vmem:[%s11520_s4 + $0x490] ss:$144 sps:$4 sm:$0xff]   ;;  %v7040_v22 = vld [vmem:[%s11520_s4 + $0x498] ss:$144 sps:$4 sm:$0xff]   ;;  %v7045_v26 = vld [vmem:[%s11520_s4 + $0x374] ss:$144 sps:$4 sm:$0xff]  }
 0x14c   :  { %v524_v49 = vsel %vm472_vm8, %v446_v5, %v498_v15  ;;  %v526_v52 = vsel %vm474_vm9, %v448_v8, %v500_v20  ;;  %v412_v60 = vmul.f32 %v8203_v44, %v8086_v30  ;;  %v497_v56 = vmul.f32 0.2, %v445_v28  ;;  %v7033_v30 = vld [vmem:[%s11520_s4 + $0x5b4] ss:$144 sps:$4 sm:$0xff]   ;;  %v7048_v35 = vld [vmem:[%s11520_s4 + $0x37c] ss:$144 sps:$4 sm:$0xff]  }
 0x14d   :  { %4047 = vmatprep.mubr.bf16.mxu1 %v8255_v46  ;;  %v499_v61 = vmul.f32 0.2, %v447_v38  ;;  %v8273_v62 = vpack.c.bf16 %v541_v40, %v539_v31  ;;  %4148 = vmatprep.mubr.bf16.mxu0 %v8255_v46  ;;  %vm471_vm10 = vcmp.ge.f32.partialorder %v445_v28, 0.0  ;;  %vm473_vm11 = vcmp.ge.f32.partialorder %v447_v38, 0.0 }
 0x14e   :  { %v502_v3 = vmul.f32 0.2, %v450_v39  ;;  %v8282_v12 = vpack.c.bf16 %v526_v52, %v524_v49  ;;  %4048 = vmatmul.mubr.bf16.vlgmr.msra.gmra.mxu1 %v8253_v41  ;;  %4149 = vmatmul.mubr.bf16.vlgmr.msra.gmra.mxu0 %v8253_v41  ;;  %v414_v13 = vmul.f32 %v8203_v44, %v8090_v32  ;;  %v417_v18 = vmul.f32 %v8205_v45, %v8100_v37 }
 0x14f   :  { %v504_v19 = vmul.f32 0.2, %v452_v48  ;;  %4218 = vmatpush1.bf16.msra.mxu1 %v7019_v47  ;;  %4319 = vmatpush1.bf16.msra.mxu0 %v7022_v33  ;;  %v419_v5 = vmul.f32 %v8205_v45, %v8121_v50  ;;  %v449_v25 = vadd.f32 %v8212_v55, %v412_v60  ;;  %vm476_vm12 = vcmp.ge.f32.partialorder %v450_v39, 0.0  ;;  %v7031_v50 = vld [vmem:[%s11520_s4 + $0x5b0] ss:$144 sps:$4 sm:$0xff]  }
 0x150   :  { %vm478_vm13 = vcmp.ge.f32.partialorder %v452_v48, 0.0  ;;  %4057 = vmatprep.mubr.bf16.mxu1 %v8282_v12  ;;  %4158 = vmatprep.mubr.bf16.mxu0 %v8282_v12  ;;  %v451_v27 = vadd.f32 %v8212_v55, %v414_v13  ;;  %v523_v32 = vsel %vm471_vm10, %v445_v28, %v497_v56  ;;  %v525_v37 = vsel %vm473_vm11, %v447_v38, %v499_v61  ;;  %v7046_v33 = vld [vmem:[%s11520_s4 + $0x378] ss:$144 sps:$4 sm:$0xff]   ;;  %v7060_v13 = vld [vmem:[%s11520_s4 + $0x13c] ss:$144 sps:$4 sm:$0xff]  }
 0x151   :  { %4219 = vmatprep.subr.bf16.mxu1 %v7027_v53  ;;  %4320 = vmatprep.subr.bf16.mxu0 %v7030_v54  ;;  %v454_v8 = vadd.f32 %v8214_v59, %v417_v18  ;;  %v456_v51 = vadd.f32 %v8214_v59, %v419_v5  ;;  %v528_v10 = vsel %vm476_vm12, %v450_v39, %v502_v3  ;;  %v501_v15 = vmul.f32 0.2, %v449_v25  ;;  %v7051_v53 = vld [vmem:[%s11520_s4 + $0x254] ss:$144 sps:$4 sm:$0xff]   ;;  %v7054_v54 = vld [vmem:[%s11520_s4 + $0x25c] ss:$144 sps:$4 sm:$0xff]  }
 0x152   :  { %v530_v11 = vsel %vm478_vm13, %v452_v48, %v504_v19  ;;  %v8318_v17 = vpack.c.bf16 %v525_v37, %v523_v32  ;;  %v503_v20 = vmul.f32 0.2, %v451_v27  ;;  %v416_v24 = vmul.f32 %v8203_v44, %v8094_v34 }
 0x153   :  { %4220 = vmatpush1.bf16.msra.mxu1 %v7025_v63  ;;  %4321 = vmatpush1.bf16.msra.mxu0 %v7028_v2  ;;  %vm475_vm14 = vcmp.ge.f32.partialorder %v449_v25, 0.0  ;;  %vm477_vm15 = vcmp.ge.f32.partialorder %v451_v27, 0.0  ;;  %v8328_v23 = vpack.c.bf16 %v530_v11, %v528_v10  ;;  %v418_v36 = vmul.f32 %v8203_v44, %v8112_v43  ;;  %v7049_v63 = vld [vmem:[%s11520_s4 + $0x250] ss:$144 sps:$4 sm:$0xff]   ;;  %v7052_v2 = vld [vmem:[%s11520_s4 + $0x258] ss:$144 sps:$4 sm:$0xff]  }
 0x154   :  { %4221 = vmatprep.subr.bf16.mxu1 %v7033_v30  ;;  %4322 = vmatprep.subr.bf16.mxu0 %v7036_v4  ;;  %v421_v34 = vmul.f32 %v8205_v45, %v8137_v0  ;;  %v506_v28 = vmul.f32 0.2, %v454_v8  ;;  %v508_v38 = vmul.f32 0.2, %v456_v51  ;;  %v423_v39 = vmul.f32 %v8205_v45, %v8153_v16  ;;  %v7043_v16 = vld [vmem:[%s11520_s4 + $0x370] ss:$144 sps:$4 sm:$0xff]  }
 0x155   :  { %v453_v31 = vadd.f32 %v8212_v55, %v416_v24  ;;  %vm480_vm0 = vcmp.ge.f32.partialorder %v454_v8, 0.0  ;;  %vm482_vm1 = vcmp.ge.f32.partialorder %v456_v51, 0.0  ;;  %v455_v43 = vadd.f32 %v8212_v55, %v418_v36  ;;  %v7057_v4 = vld [vmem:[%s11520_s4 + $0x134] ss:$144 sps:$4 sm:$0xff]   ;;  %v7066_v11 = vld [vmem:[%s11520_s4 + $0x1c] ss:$144 sps:$4 sm:$0xff]  }
 0x156   :  { %4058 = vmatmul.mubr.bf16.gmra.mxu1 %v8318_v17  ;;  %4159 = vmatmul.mubr.bf16.gmra.mxu0 %v8318_v17  ;;  %v527_v40 = vsel %vm475_vm14, %v449_v25, %v501_v15  ;;  %v529_v0 = vsel %vm477_vm15, %v451_v27, %v503_v20  ;;  %v458_v47 = vadd.f32 %v8214_v59, %v421_v34  ;;  %v7063_v10 = vld [vmem:[%s11520_s4 + $0x14] ss:$144 sps:$4 sm:$0xff]   ;;  %v7061_v20 = vld [vmem:[%s11520_s4 + $0x10] ss:$144 sps:$4 sm:$0xff]  }
 0x157   :  { %4222 = vmatpush1.bf16.msra.mxu1 %v7031_v50  ;;  %4323 = vmatpush1.bf16.msra.mxu0 %v7034_v9  ;;  %v460_v48 = vadd.f32 %v8214_v59, %v423_v39  ;;  %v532_v49 = vsel %vm480_vm0, %v454_v8, %v506_v28  ;;  %v534_v52 = vsel %vm482_vm1, %v456_v51, %v508_v38  ;;  %v505_v60 = vmul.f32 0.2, %v453_v31  ;;  %v7058_v8 = vld [vmem:[%s11520_s4 + $0x138] ss:$144 sps:$4 sm:$0xff]   ;;  %v7069_v24 = vld [vmem:[%s11520_s4 + $0x10f4] ss:$144 sps:$4 sm:$0xff]  }
 0x158   :  { %4067 = vmatprep.mubr.bf16.mxu1 %v8328_v23  ;;  %4168 = vmatprep.mubr.bf16.mxu0 %v8328_v23  ;;  %v8364_v56 = vpack.c.bf16 %v529_v0, %v527_v40  ;;  %v507_v61 = vmul.f32 0.2, %v455_v43  ;;  %v420_v3 = vmul.f32 %v8203_v44, %v8129_v57  ;;  %vm479_vm2 = vcmp.ge.f32.partialorder %v453_v31, 0.0  ;;  %v7067_v39 = vld [vmem:[%s11520_s4 + $0x10f0] ss:$144 sps:$4 sm:$0xff]  }
 0x159   :  { %4223 = vmatprep.subr.bf16.mxu1 %v7039_v14  ;;  %4324 = vmatprep.subr.bf16.mxu0 %v7042_v29  ;;  %vm481_vm3 = vcmp.ge.f32.partialorder %v455_v43, 0.0  ;;  %v8374_v30 = vpack.c.bf16 %v534_v52, %v532_v49  ;;  %v422_v18 = vmul.f32 %v8203_v44, %v8145_v7  ;;  %v425_v57 = vmul.f32 %v8205_v45, %v8169_v42 }
 0x15a   :  { %v510_v19 = vmul.f32 0.2, %v458_v47  ;;  %v512_v5 = vmul.f32 0.2, %v460_v48  ;;  %v427_v25 = vmul.f32 %v8205_v45, %v8183_v58  ;;  %v457_v27 = vadd.f32 %v8212_v55, %v420_v3  ;;  %v7055_v58 = vld [vmem:[%s11520_s4 + $0x130] ss:$144 sps:$4 sm:$0xff]  }
 0x15b   :  { %4224 = vmatpush1.bf16.msra.mxu1 %v7037_v21  ;;  %4325 = vmatpush1.bf16.msra.mxu0 %v7040_v22  ;;  %vm484_vm4 = vcmp.ge.f32.partialorder %v458_v47, 0.0  ;;  %vm486_vm5 = vcmp.ge.f32.partialorder %v460_v48, 0.0  ;;  %v459_v7 = vadd.f32 %v8212_v55, %v422_v18  ;;  %v531_v32 = vsel %vm479_vm2, %v453_v31, %v505_v60  ;;  %v7064_v21 = vld [vmem:[%s11520_s4 + $0x18] ss:$144 sps:$4 sm:$0xff]   ;;  %v7085_v3 = vld [vmem:[%s11520_s4 + $0xd90] ss:$144 sps:$4 sm:$0xff]  }
 0x15c   :  { %4225 = vmatprep.subr.bf16.mxu1 %v7045_v26  ;;  %4326 = vmatprep.subr.bf16.mxu0 %v7048_v35  ;;  %v533_v42 = vsel %vm481_vm3, %v455_v43, %v507_v61  ;;  %v462_v37 = vadd.f32 %v8214_v59, %v425_v57  ;;  %v464_v50 = vadd.f32 %v8214_v59, %v427_v25  ;;  %v509_v14 = vmul.f32 0.2, %v457_v27  ;;  %v7072_v26 = vld [vmem:[%s11520_s4 + $0x10fc] ss:$144 sps:$4 sm:$0xff]   ;;  %v7070_v31 = vld [vmem:[%s11520_s4 + $0x10f8] ss:$144 sps:$4 sm:$0xff]  }
 0x15d   :  { %v536_v9 = vsel %vm484_vm4, %v458_v47, %v510_v19  ;;  %v538_v51 = vsel %vm486_vm5, %v460_v48, %v512_v5  ;;  %v8410_v29 = vpack.c.bf16 %v533_v42, %v531_v32  ;;  %v511_v15 = vmul.f32 0.2, %v459_v7  ;;  %v7081_v48 = vld [vmem:[%s11520_s4 + $0xeb4] ss:$144 sps:$4 sm:$0xff]   ;;  %v7096_v18 = vld [vmem:[%s11520_s4 + $0xc7c] ss:$144 sps:$4 sm:$0xff]  }
 0x15e   :  { %4068 = vmatmul.mubr.bf16.gmra.mxu1 %v8364_v56  ;;  %4169 = vmatmul.mubr.bf16.gmra.mxu0 %v8364_v56  ;;  %vm483_vm6 = vcmp.ge.f32.partialorder %v457_v27, 0.0  ;;  %vm485_vm7 = vcmp.ge.f32.partialorder %v459_v7, 0.0  ;;  %v8418_v22 = vpack.c.bf16 %v538_v51, %v536_v9  ;;  %v514_v35 = vmul.f32 0.2, %v462_v37  ;;  %v7087_v61 = vld [vmem:[%s11520_s4 + $0xd94] ss:$144 sps:$4 sm:$0xff]  }
 0x15f   :  { %4226 = vmatpush1.bf16.msra.mxu1 %v7043_v16  ;;  %4327 = vmatpush1.bf16.msra.mxu0 %v7046_v33  ;;  %v516_v36 = vmul.f32 0.2, %v464_v50  ;;  %vm488_vm8 = vcmp.ge.f32.partialorder %v462_v37, 0.0  ;;  %vm490_vm9 = vcmp.ge.f32.partialorder %v464_v50, 0.0  ;;  %v429_v34 = vmul.f32 %v8205_v45, %v8195_v6  ;;  %v7075_v6 = vld [vmem:[%s11520_s4 + $0xfd4] ss:$144 sps:$4 sm:$0xff]  }
 0x160   :  { %4077 = vmatprep.mubr.bf16.mxu1 %v8374_v30  ;;  %4178 = vmatprep.mubr.bf16.mxu0 %v8374_v30  ;;  %v535_v28 = vsel %vm483_vm6, %v457_v27, %v509_v14  ;;  %v537_v38 = vsel %vm485_vm7, %v459_v7, %v511_v15  ;;  %v540_v40 = vsel %vm488_vm8, %v462_v37, %v514_v35  ;;  %v7078_v45 = vld [vmem:[%s11520_s4 + $0xfdc] ss:$144 sps:$4 sm:$0xff]   ;;  %v7076_v33 = vld [vmem:[%s11520_s4 + $0xfd8] ss:$144 sps:$4 sm:$0xff]   ;;  %v7091_v19 = vld [vmem:[%s11520_s4 + $0xc70] ss:$144 sps:$4 sm:$0xff]  }
 0x161   :  { %4227 = vmatprep.subr.bf16.mxu1 %v7051_v53  ;;  %4328 = vmatprep.subr.bf16.mxu0 %v7054_v54  ;;  %v466_v43 = vadd.f32 %v8214_v59, %v429_v34  ;;  %v542_v0 = vsel %vm490_vm9, %v464_v50, %v516_v36  ;;  %v8447_v47 = vpack.c.bf16 %v537_v38, %v535_v28  ;;  %v7073_v59 = vld [vmem:[%s11520_s4 + $0xfd0] ss:$144 sps:$4 sm:$0xff]   ;;  %v7084_v53 = vld [vmem:[%s11520_s4 + $0xebc] ss:$144 sps:$4 sm:$0xff]   ;;  %v7094_v5 = vld [vmem:[%s11520_s4 + $0xc78] ss:$144 sps:$4 sm:$0xff]  }
 0x162   :  { %v8452_v16 = vpack.c.bf16 %v542_v0, %v540_v40  ;;  %v428_v49 = vmul.f32 %v8203_v44, %v8189_v1  ;;  %v7079_v1 = vld [vmem:[%s11520_s4 + $0xeb0] ss:$144 sps:$4 sm:$0xff]   ;;  %v7082_v44 = vld [vmem:[%s11520_s4 + $0xeb8] ss:$144 sps:$4 sm:$0xff]   ;;  %v7099_v25 = vld [vmem:[%s11520_s4 + $0xb54] ss:$144 sps:$4 sm:$0xff]  }
 0x163   :  { %4228 = vmatpush1.bf16.msra.mxu1 %v7049_v63  ;;  %4329 = vmatpush1.bf16.msra.mxu0 %v7052_v2  ;;  %v518_v52 = vmul.f32 0.2, %v466_v43  ;;  %vm492_vm10 = vcmp.ge.f32.partialorder %v466_v43, 0.0  ;;  %v7102_v27 = vld [vmem:[%s11520_s4 + $0xb5c] ss:$144 sps:$4 sm:$0xff]  }
 0x164   :  { %4229 = vmatprep.subr.bf16.mxu1 %v7057_v4  ;;  %4330 = vmatprep.subr.bf16.mxu0 %v7060_v13  ;;  %v465_v54 = vadd.f32 %v8212_v55, %v428_v49  ;;  %v7090_v55 = vld [vmem:[%s11520_s4 + $0xd9c] ss:$144 sps:$4 sm:$0xff]   ;;  %v7088_v4 = vld [vmem:[%s11520_s4 + $0xd98] ss:$144 sps:$4 sm:$0xff]   ;;  %v7093_v13 = vld [vmem:[%s11520_s4 + $0xc74] ss:$144 sps:$4 sm:$0xff]  }
 0x165   :  { %v544_v60 = vsel %vm492_vm10, %v466_v43, %v518_v52  ;;  %v7097_v32 = vld [vmem:[%s11520_s4 + $0xb50] ss:$144 sps:$4 sm:$0xff]   ;;  %v7100_v42 = vld [vmem:[%s11520_s4 + $0xb58] ss:$144 sps:$4 sm:$0xff]   ;;  %v7105_v37 = vld [vmem:[%s11520_s4 + $0xa34] ss:$144 sps:$4 sm:$0xff]  }
 0x166   :  { %4078 = vmatmul.mubr.bf16.gmra.mxu1 %v8410_v29  ;;  %4179 = vmatmul.mubr.bf16.gmra.mxu0 %v8410_v29  ;;  %v517_v63 = vmul.f32 0.2, %v465_v54  ;;  %vm491_vm11 = vcmp.ge.f32.partialorder %v465_v54, 0.0  ;;  %v8482_v2 = vpack.c.bf16 %v544_v60, %v544_v60  ;;  %v7106_v50 = vld [vmem:[%s11520_s4 + $0xa38] ss:$144 sps:$4 sm:$0xff]  }
 0x167   :  { %4230 = vmatpush1.bf16.msra.mxu1 %v7055_v58  ;;  %4331 = vmatpush1.bf16.msra.mxu0 %v7058_v8  ;;  %v7108_v58 = vld [vmem:[%s11520_s4 + $0xa3c] ss:$144 sps:$4 sm:$0xff]   ;;  %v7103_v8 = vld [vmem:[%s11520_s4 + $0xa30] ss:$144 sps:$4 sm:$0xff]   ;;  %v7111_v9 = vld [vmem:[%s11520_s4 + $0x914] ss:$144 sps:$4 sm:$0xff]  }
 0x168   :  { %4087 = vmatprep.mubr.bf16.mxu1 %v8418_v22  ;;  %4188 = vmatprep.mubr.bf16.mxu0 %v8418_v22  ;;  %v543_v57 = vsel %vm491_vm11, %v465_v54, %v517_v63  ;;  %v7114_v51 = vld [vmem:[%s11520_s4 + $0x91c] ss:$144 sps:$4 sm:$0xff]   ;;  %v7117_v14 = vld [vmem:[%s11520_s4 + $0x804] ss:$144 sps:$4 sm:$0xff]   ;;  %v7121_v35 = vld [vmem:[%s11520_s4 + $0x6e0] ss:$144 sps:$4 sm:$0xff]  }
 0x169   :  { %4231 = vmatprep.subr.bf16.mxu1 %v7063_v10  ;;  %4332 = vmatprep.subr.bf16.mxu0 %v7066_v11  ;;  %v8512_v7 = vpack.c.bf16 %v543_v57, %v543_v57  ;;  %v7109_v10 = vld [vmem:[%s11520_s4 + $0x910] ss:$144 sps:$4 sm:$0xff]   ;;  %v7112_v11 = vld [vmem:[%s11520_s4 + $0x918] ss:$144 sps:$4 sm:$0xff]   ;;  %v7120_v15 = vld [vmem:[%s11520_s4 + $0x80c] ss:$144 sps:$4 sm:$0xff]  }
 0x16a   :  { %v7124_v36 = vld [vmem:[%s11520_s4 + $0x6e8] ss:$144 sps:$4 sm:$0xff]   ;;  %v7129_v34 = vld [vmem:[%s11520_s4 + $0x5c4] ss:$144 sps:$4 sm:$0xff]   ;;  %v7132_v28 = vld [vmem:[%s11520_s4 + $0x5cc] ss:$144 sps:$4 sm:$0xff]  }
 0x16b   :  { %4232 = vmatpush1.bf16.msra.mxu1 %v7061_v20  ;;  %4333 = vmatpush1.bf16.msra.mxu0 %v7064_v21  ;;  %v7115_v20 = vld [vmem:[%s11520_s4 + $0x800] ss:$144 sps:$4 sm:$0xff]   ;;  %v7118_v21 = vld [vmem:[%s11520_s4 + $0x808] ss:$144 sps:$4 sm:$0xff]   ;;  %v7138_v43 = vld [vmem:[%s11520_s4 + $0x4ac] ss:$144 sps:$4 sm:$0xff]  }
 0x16c   :  { %4233 = vmatprep.subr.bf16.mxu1 %v7069_v24  ;;  %4334 = vmatprep.subr.bf16.mxu0 %v7072_v26  ;;  %v7123_v24 = vld [vmem:[%s11520_s4 + $0x6e4] ss:$144 sps:$4 sm:$0xff]   ;;  %v7126_v26 = vld [vmem:[%s11520_s4 + $0x6ec] ss:$144 sps:$4 sm:$0xff]   ;;  %v7127_v38 = vld [vmem:[%s11520_s4 + $0x5c0] ss:$144 sps:$4 sm:$0xff]  }
 0x16d   :  { %v7133_v40 = vld [vmem:[%s11520_s4 + $0x4a0] ss:$144 sps:$4 sm:$0xff]   ;;  %v7136_v0 = vld [vmem:[%s11520_s4 + $0x4a8] ss:$144 sps:$4 sm:$0xff]   ;;  %v7150_v49 = vld [vmem:[%s11520_s4 + $0x26c] ss:$144 sps:$4 sm:$0xff]  }
 0x16e   :  { %4088 = vmatmul.mubr.bf16.gmra.mxu1 %v8447_v47  ;;  %4189 = vmatmul.mubr.bf16.gmra.mxu0 %v8447_v47  ;;  %v7145_v52 = vld [vmem:[%s11520_s4 + $0x260] ss:$144 sps:$4 sm:$0xff]   ;;  %v7153_v54 = vld [vmem:[%s11520_s4 + $0x144] ss:$144 sps:$4 sm:$0xff]   ;;  %v7154_v60 = vld [vmem:[%s11520_s4 + $0x148] ss:$144 sps:$4 sm:$0xff]  }
 0x16f   :  { %4234 = vmatpush2.bf16.msra.mxu1 %v7067_v39  ;;  %4335 = vmatpush2.bf16.msra.mxu0 %v7070_v31  ;;  %v7130_v39 = vld [vmem:[%s11520_s4 + $0x5c8] ss:$144 sps:$4 sm:$0xff]   ;;  %v7135_v31 = vld [vmem:[%s11520_s4 + $0x4a4] ss:$144 sps:$4 sm:$0xff]   ;;  %v7157_v63 = vld [vmem:[%s11520_s4 + $0x20] ss:$144 sps:$4 sm:$0xff]  }
 0x170   :  { %4097 = vmatprep.mubr.bf16.mxu1 %v8452_v16  ;;  %4198 = vmatprep.mubr.bf16.mxu0 %v8452_v16  ;;  %v7166_v57 = vld [vmem:[%s11520_s4 + $0x1108] ss:$144 sps:$4 sm:$0xff]  }
 0x171   :  { %4235 = vmatprep.subr.bf16.mxu1 %v7075_v6  ;;  %4336 = vmatprep.subr.bf16.mxu0 %v7078_v45  ;;  %v7141_v6 = vld [vmem:[%s11520_s4 + $0x384] ss:$144 sps:$4 sm:$0xff]   ;;  %v7144_v45 = vld [vmem:[%s11520_s4 + $0x38c] ss:$144 sps:$4 sm:$0xff]  }
 0x173   :  { %4236 = vmatpush2.bf16.msra.mxu1 %v7073_v59  ;;  %4337 = vmatpush2.bf16.msra.mxu0 %v7076_v33  ;;  %v7139_v59 = vld [vmem:[%s11520_s4 + $0x380] ss:$144 sps:$4 sm:$0xff]   ;;  %v7142_v33 = vld [vmem:[%s11520_s4 + $0x388] ss:$144 sps:$4 sm:$0xff]  }
 0x174   :  { %4237 = vmatprep.subr.bf16.mxu1 %v7081_v48  ;;  %4338 = vmatprep.subr.bf16.mxu0 %v7084_v53  ;;  %v7147_v48 = vld [vmem:[%s11520_s4 + $0x264] ss:$144 sps:$4 sm:$0xff]   ;;  %v7148_v53 = vld [vmem:[%s11520_s4 + $0x268] ss:$144 sps:$4 sm:$0xff]  }
 0x176   :  { %4098 = vmatmul.mubr.bf16.gmra.mxu1 %v8273_v62  ;;  %4199 = vmatmul.mubr.bf16.gmra.mxu0 %v8273_v62 }
 0x177   :  { %4238 = vmatpush2.bf16.msra.mxu1 %v7079_v1  ;;  %4339 = vmatpush2.bf16.msra.mxu0 %v7082_v44  ;;  %v7156_v1 = vld [vmem:[%s11520_s4 + $0x14c] ss:$144 sps:$4 sm:$0xff]   ;;  %v7151_v44 = vld [vmem:[%s11520_s4 + $0x140] ss:$144 sps:$4 sm:$0xff]  }
 0x178   :  { %4107 = vmatprep.mubr.bf16.mxu1 %v8482_v2  ;;  %4208 = vmatprep.mubr.bf16.mxu0 %v8482_v2 }
 0x179   :  { %4239 = vmatprep.subr.bf16.mxu1 %v7087_v61  ;;  %4340 = vmatprep.subr.bf16.mxu0 %v7090_v55  ;;  %v7159_v61 = vld [vmem:[%s11520_s4 + $0x24] ss:$144 sps:$4 sm:$0xff]   ;;  %v7162_v55 = vld [vmem:[%s11520_s4 + $0x2c] ss:$144 sps:$4 sm:$0xff]  }
 0x17b   :  { %4240 = vmatpush2.bf16.msra.mxu1 %v7085_v3  ;;  %4341 = vmatpush2.bf16.msra.mxu0 %v7088_v4  ;;  %v7160_v3 = vld [vmem:[%s11520_s4 + $0x28] ss:$144 sps:$4 sm:$0xff]   ;;  %v7165_v4 = vld [vmem:[%s11520_s4 + $0x1104] ss:$144 sps:$4 sm:$0xff]  }
 0x17c   :  { %4241 = vmatprep.subr.bf16.mxu1 %v7093_v13  ;;  %4342 = vmatprep.subr.bf16.mxu0 %v7096_v18  ;;  %v7168_v13 = vld [vmem:[%s11520_s4 + $0x110c] ss:$144 sps:$4 sm:$0xff]   ;;  %v7163_v18 = vld [vmem:[%s11520_s4 + $0x1100] ss:$144 sps:$4 sm:$0xff]  }
 0x17e   :  { %4108 = vmatmul.mubr.bf16.gmra.mxu1 %v8512_v7  ;;  %4209 = vmatmul.mubr.bf16.gmra.mxu0 %v8512_v7 }
 0x17f   :  { %4242 = vmatpush2.bf16.msra.mxu1 %v7091_v19  ;;  %4343 = vmatpush2.bf16.msra.mxu0 %v7094_v5  ;;  %v7171_v19 = vld [vmem:[%s11520_s4 + $0xfe4] ss:$144 sps:$4 sm:$0xff]   ;;  %v7174_v5 = vld [vmem:[%s11520_s4 + $0xfec] ss:$144 sps:$4 sm:$0xff]  }
 0x180   :  { %4249 = vmatprep.mubr.bf16.mxu1 %v8255_v46  ;;  %4350 = vmatprep.mubr.bf16.mxu0 %v8255_v46 }
 0x181   :  { %4243 = vmatprep.subr.bf16.mxu1 %v7099_v25  ;;  %4344 = vmatprep.subr.bf16.mxu0 %v7102_v27  ;;  %v7169_v25 = vld [vmem:[%s11520_s4 + $0xfe0] ss:$144 sps:$4 sm:$0xff]   ;;  %v7172_v27 = vld [vmem:[%s11520_s4 + $0xfe8] ss:$144 sps:$4 sm:$0xff]  }
 0x183   :  { %4244 = vmatpush2.bf16.msra.mxu1 %v7097_v32  ;;  %4345 = vmatpush2.bf16.msra.mxu0 %v7100_v42  ;;  %v7177_v32 = vld [vmem:[%s11520_s4 + $0xec4] ss:$144 sps:$4 sm:$0xff]   ;;  %v7180_v42 = vld [vmem:[%s11520_s4 + $0xecc] ss:$144 sps:$4 sm:$0xff]  }
 0x184   :  { %4245 = vmatprep.subr.bf16.mxu1 %v7105_v37  ;;  %4346 = vmatprep.subr.bf16.mxu0 %v7108_v58  ;;  %v7175_v37 = vld [vmem:[%s11520_s4 + $0xec0] ss:$144 sps:$4 sm:$0xff]   ;;  %v7178_v58 = vld [vmem:[%s11520_s4 + $0xec8] ss:$144 sps:$4 sm:$0xff]  }
 0x187   :  { %4246 = vmatpush2.bf16.msra.mxu1 %v7103_v8  ;;  %4347 = vmatpush2.bf16.msra.mxu0 %v7106_v50  ;;  %v7183_v8 = vld [vmem:[%s11520_s4 + $0xda4] ss:$144 sps:$4 sm:$0xff]   ;;  %v7186_v50 = vld [vmem:[%s11520_s4 + $0xdac] ss:$144 sps:$4 sm:$0xff]  }
 0x188   :  { %4247 = vmatprep.subr.bf16.mxu1 %v7111_v9  ;;  %4348 = vmatprep.subr.bf16.mxu0 %v7114_v51  ;;  %v7181_v9 = vld [vmem:[%s11520_s4 + $0xda0] ss:$144 sps:$4 sm:$0xff]   ;;  %v7184_v51 = vld [vmem:[%s11520_s4 + $0xda8] ss:$144 sps:$4 sm:$0xff]  }
 0x18b   :  { %4248 = vmatpush2.bf16.msra.mxu1 %v7109_v10  ;;  %4349 = vmatpush2.bf16.msra.mxu0 %v7112_v11  ;;  %v7189_v10 = vld [vmem:[%s11520_s4 + $0xc84] ss:$144 sps:$4 sm:$0xff]   ;;  %v7192_v11 = vld [vmem:[%s11520_s4 + $0xc8c] ss:$144 sps:$4 sm:$0xff]  }
 0x18c   :  { %4419 = vmatprep.subr.bf16.mxu1 %v7117_v14  ;;  %4520 = vmatprep.subr.bf16.mxu0 %v7120_v15  ;;  %v7187_v14 = vld [vmem:[%s11520_s4 + $0xc80] ss:$144 sps:$4 sm:$0xff]   ;;  %v7190_v15 = vld [vmem:[%s11520_s4 + $0xc88] ss:$144 sps:$4 sm:$0xff]  }
 0x18e   :  { %4250 = vmatmul.mubr.bf16.vlgmr.msra.gmra.mxu1 %v8253_v41  ;;  %4351 = vmatmul.mubr.bf16.vlgmr.msra.gmra.mxu0 %v8253_v41 }
 0x18f   :  { %4259 = vmatprep.mubr.bf16.mxu1 %v8282_v12  ;;  %4360 = vmatprep.mubr.bf16.mxu0 %v8282_v12 }
 0x190   :  { %4420 = vmatpush1.bf16.msra.mxu1 %v7115_v20  ;;  %4521 = vmatpush1.bf16.msra.mxu0 %v7118_v21  ;;  %v7195_v20 = vld [vmem:[%s11520_s4 + $0xb64] ss:$144 sps:$4 sm:$0xff]   ;;  %v7198_v21 = vld [vmem:[%s11520_s4 + $0xb6c] ss:$144 sps:$4 sm:$0xff]  }
 0x191   :  { %4421 = vmatprep.subr.bf16.mxu1 %v7123_v24  ;;  %4522 = vmatprep.subr.bf16.mxu0 %v7126_v26  ;;  %v7193_v24 = vld [vmem:[%s11520_s4 + $0xb60] ss:$144 sps:$4 sm:$0xff]   ;;  %v7196_v26 = vld [vmem:[%s11520_s4 + $0xb68] ss:$144 sps:$4 sm:$0xff]  }
 0x194   :  { %4422 = vmatpush1.bf16.msra.mxu1 %v7121_v35  ;;  %4523 = vmatpush1.bf16.msra.mxu0 %v7124_v36  ;;  %v7201_v35 = vld [vmem:[%s11520_s4 + $0xa44] ss:$144 sps:$4 sm:$0xff]   ;;  %v7204_v36 = vld [vmem:[%s11520_s4 + $0xa4c] ss:$144 sps:$4 sm:$0xff]  }
 0x195   :  { %4423 = vmatprep.subr.bf16.mxu1 %v7129_v34  ;;  %4524 = vmatprep.subr.bf16.mxu0 %v7132_v28  ;;  %v7199_v34 = vld [vmem:[%s11520_s4 + $0xa40] ss:$144 sps:$4 sm:$0xff]   ;;  %v7202_v28 = vld [vmem:[%s11520_s4 + $0xa48] ss:$144 sps:$4 sm:$0xff]  }
 0x196   :  { %4260 = vmatmul.mubr.bf16.gmra.mxu1 %v8318_v17  ;;  %4361 = vmatmul.mubr.bf16.gmra.mxu0 %v8318_v17 }
 0x197   :  { %4269 = vmatprep.mubr.bf16.mxu1 %v8328_v23  ;;  %4370 = vmatprep.mubr.bf16.mxu0 %v8328_v23 }
 0x198   :  { %4424 = vmatpush1.bf16.msra.mxu1 %v7127_v38  ;;  %4525 = vmatpush1.bf16.msra.mxu0 %v7130_v39  ;;  %v7207_v38 = vld [vmem:[%s11520_s4 + $0x924] ss:$144 sps:$4 sm:$0xff]   ;;  %v7210_v39 = vld [vmem:[%s11520_s4 + $0x92c] ss:$144 sps:$4 sm:$0xff]  }
 0x199   :  { %4425 = vmatprep.subr.bf16.mxu1 %v7135_v31  ;;  %4526 = vmatprep.subr.bf16.mxu0 %v7138_v43  ;;  %v7205_v31 = vld [vmem:[%s11520_s4 + $0x920] ss:$144 sps:$4 sm:$0xff]   ;;  %v7208_v43 = vld [vmem:[%s11520_s4 + $0x928] ss:$144 sps:$4 sm:$0xff]  }
 0x19c   :  { %4426 = vmatpush1.bf16.msra.mxu1 %v7133_v40  ;;  %4527 = vmatpush1.bf16.msra.mxu0 %v7136_v0  ;;  %v7213_v40 = vld [vmem:[%s11520_s4 + $0x814] ss:$144 sps:$4 sm:$0xff]   ;;  %v7216_v0 = vld [vmem:[%s11520_s4 + $0x81c] ss:$144 sps:$4 sm:$0xff]  }
 0x19d   :  { %4427 = vmatprep.subr.bf16.mxu1 %v7141_v6  ;;  %4528 = vmatprep.subr.bf16.mxu0 %v7144_v45  ;;  %v7211_v6 = vld [vmem:[%s11520_s4 + $0x810] ss:$144 sps:$4 sm:$0xff]   ;;  %v7214_v45 = vld [vmem:[%s11520_s4 + $0x818] ss:$144 sps:$4 sm:$0xff]  }
 0x19e   :  { %4270 = vmatmul.mubr.bf16.gmra.mxu1 %v8364_v56  ;;  %4371 = vmatmul.mubr.bf16.gmra.mxu0 %v8364_v56 }
 0x19f   :  { %4279 = vmatprep.mubr.bf16.mxu1 %v8374_v30  ;;  %4380 = vmatprep.mubr.bf16.mxu0 %v8374_v30 }
 0x1a0   :  { %4428 = vmatpush1.bf16.msra.mxu1 %v7139_v59  ;;  %4529 = vmatpush1.bf16.msra.mxu0 %v7142_v33  ;;  %v7219_v59 = vld [vmem:[%s11520_s4 + $0x6f4] ss:$144 sps:$4 sm:$0xff]   ;;  %v7222_v33 = vld [vmem:[%s11520_s4 + $0x6fc] ss:$144 sps:$4 sm:$0xff]  }
 0x1a1   :  { %4429 = vmatprep.subr.bf16.mxu1 %v7147_v48  ;;  %4530 = vmatprep.subr.bf16.mxu0 %v7150_v49  ;;  %v7217_v48 = vld [vmem:[%s11520_s4 + $0x6f0] ss:$144 sps:$4 sm:$0xff]   ;;  %v7220_v49 = vld [vmem:[%s11520_s4 + $0x6f8] ss:$144 sps:$4 sm:$0xff]  }
 0x1a4   :  { %4430 = vmatpush1.bf16.msra.mxu1 %v7145_v52  ;;  %4531 = vmatpush1.bf16.msra.mxu0 %v7148_v53  ;;  %v7225_v52 = vld [vmem:[%s11520_s4 + $0x5d4] ss:$144 sps:$4 sm:$0xff]   ;;  %v7228_v53 = vld [vmem:[%s11520_s4 + $0x5dc] ss:$144 sps:$4 sm:$0xff]  }
 0x1a5   :  { %4431 = vmatprep.subr.bf16.mxu1 %v7153_v54  ;;  %4532 = vmatprep.subr.bf16.mxu0 %v7156_v1  ;;  %v7223_v54 = vld [vmem:[%s11520_s4 + $0x5d0] ss:$144 sps:$4 sm:$0xff]   ;;  %v7226_v1 = vld [vmem:[%s11520_s4 + $0x5d8] ss:$144 sps:$4 sm:$0xff]  }
 0x1a6   :  { %4280 = vmatmul.mubr.bf16.gmra.mxu1 %v8410_v29  ;;  %4381 = vmatmul.mubr.bf16.gmra.mxu0 %v8410_v29 }
 0x1a7   :  { %4289 = vmatprep.mubr.bf16.mxu1 %v8418_v22  ;;  %4390 = vmatprep.mubr.bf16.mxu0 %v8418_v22 }
 0x1a8   :  { %4432 = vmatpush1.bf16.msra.mxu1 %v7151_v44  ;;  %4533 = vmatpush1.bf16.msra.mxu0 %v7154_v60  ;;  %v7231_v44 = vld [vmem:[%s11520_s4 + $0x4b4] ss:$144 sps:$4 sm:$0xff]   ;;  %v7234_v60 = vld [vmem:[%s11520_s4 + $0x4bc] ss:$144 sps:$4 sm:$0xff]  }
 0x1a9   :  { %4433 = vmatprep.subr.bf16.mxu1 %v7159_v61  ;;  %4534 = vmatprep.subr.bf16.mxu0 %v7162_v55  ;;  %v7229_v61 = vld [vmem:[%s11520_s4 + $0x4b0] ss:$144 sps:$4 sm:$0xff]   ;;  %v7232_v55 = vld [vmem:[%s11520_s4 + $0x4b8] ss:$144 sps:$4 sm:$0xff]  }
 0x1ac   :  { %4434 = vmatpush1.bf16.msra.mxu1 %v7157_v63  ;;  %4535 = vmatpush1.bf16.msra.mxu0 %v7160_v3  ;;  %v7237_v63 = vld [vmem:[%s11520_s4 + $0x394] ss:$144 sps:$4 sm:$0xff]   ;;  %v7240_v3 = vld [vmem:[%s11520_s4 + $0x39c] ss:$144 sps:$4 sm:$0xff]  }
 0x1ad   :  { %4435 = vmatprep.subr.bf16.mxu1 %v7165_v4  ;;  %4536 = vmatprep.subr.bf16.mxu0 %v7168_v13  ;;  %v7235_v4 = vld [vmem:[%s11520_s4 + $0x390] ss:$144 sps:$4 sm:$0xff]   ;;  %v7238_v13 = vld [vmem:[%s11520_s4 + $0x398] ss:$144 sps:$4 sm:$0xff]  }
 0x1ae   :  { %4290 = vmatmul.mubr.bf16.gmra.mxu1 %v8447_v47  ;;  %4391 = vmatmul.mubr.bf16.gmra.mxu0 %v8447_v47 }
 0x1af   :  { %4299 = vmatprep.mubr.bf16.mxu1 %v8452_v16  ;;  %4400 = vmatprep.mubr.bf16.mxu0 %v8452_v16 }
 0x1b0   :  { %4436 = vmatpush2.bf16.msra.mxu1 %v7163_v18  ;;  %4537 = vmatpush2.bf16.msra.mxu0 %v7166_v57  ;;  %v7243_v18 = vld [vmem:[%s11520_s4 + $0x274] ss:$144 sps:$4 sm:$0xff]   ;;  %v7246_v57 = vld [vmem:[%s11520_s4 + $0x27c] ss:$144 sps:$4 sm:$0xff]  }
 0x1b1   :  { %4437 = vmatprep.subr.bf16.mxu1 %v7171_v19  ;;  %4538 = vmatprep.subr.bf16.mxu0 %v7174_v5  ;;  %v7241_v19 = vld [vmem:[%s11520_s4 + $0x270] ss:$144 sps:$4 sm:$0xff]   ;;  %v7244_v5 = vld [vmem:[%s11520_s4 + $0x278] ss:$144 sps:$4 sm:$0xff]  }
 0x1b4   :  { %4438 = vmatpush2.bf16.msra.mxu1 %v7169_v25  ;;  %4539 = vmatpush2.bf16.msra.mxu0 %v7172_v27  ;;  %v7249_v25 = vld [vmem:[%s11520_s4 + $0x154] ss:$144 sps:$4 sm:$0xff]   ;;  %v7252_v27 = vld [vmem:[%s11520_s4 + $0x15c] ss:$144 sps:$4 sm:$0xff]  }
 0x1b5   :  { %4439 = vmatprep.subr.bf16.mxu1 %v7177_v32  ;;  %4540 = vmatprep.subr.bf16.mxu0 %v7180_v42  ;;  %v7247_v32 = vld [vmem:[%s11520_s4 + $0x150] ss:$144 sps:$4 sm:$0xff]   ;;  %v7250_v42 = vld [vmem:[%s11520_s4 + $0x158] ss:$144 sps:$4 sm:$0xff]  }
 0x1b6   :  { %4300 = vmatmul.mubr.bf16.gmra.mxu1 %v8273_v62  ;;  %4401 = vmatmul.mubr.bf16.gmra.mxu0 %v8273_v62 }
 0x1b7   :  { %4309 = vmatprep.mubr.bf16.mxu1 %v8482_v2  ;;  %4410 = vmatprep.mubr.bf16.mxu0 %v8482_v2 }
 0x1b8   :  { %4440 = vmatpush2.bf16.msra.mxu1 %v7175_v37  ;;  %4541 = vmatpush2.bf16.msra.mxu0 %v7178_v58  ;;  %v7255_v37 = vld [vmem:[%s11520_s4 + $0x34] ss:$144 sps:$4 sm:$0xff]   ;;  %v7258_v58 = vld [vmem:[%s11520_s4 + $0x3c] ss:$144 sps:$4 sm:$0xff]  }
 0x1b9   :  { %4441 = vmatprep.subr.bf16.mxu1 %v7183_v8  ;;  %4542 = vmatprep.subr.bf16.mxu0 %v7186_v50  ;;  %v7253_v8 = vld [vmem:[%s11520_s4 + $0x30] ss:$144 sps:$4 sm:$0xff]   ;;  %v7256_v50 = vld [vmem:[%s11520_s4 + $0x38] ss:$144 sps:$4 sm:$0xff]  }
 0x1bc   :  { %4442 = vmatpush2.bf16.msra.mxu1 %v7181_v9  ;;  %4543 = vmatpush2.bf16.msra.mxu0 %v7184_v51  ;;  %v7261_v9 = vld [vmem:[%s11520_s4 + $0x1114] ss:$144 sps:$4 sm:$0xff]   ;;  %v7264_v51 = vld [vmem:[%s11520_s4 + $0x111c] ss:$144 sps:$4 sm:$0xff]  }
 0x1bd   :  { %4443 = vmatprep.subr.bf16.mxu1 %v7189_v10  ;;  %4544 = vmatprep.subr.bf16.mxu0 %v7192_v11  ;;  %v7259_v10 = vld [vmem:[%s11520_s4 + $0x1110] ss:$144 sps:$4 sm:$0xff]   ;;  %v7262_v11 = vld [vmem:[%s11520_s4 + $0x1118] ss:$144 sps:$4 sm:$0xff]  }
 0x1be   :  { %4310 = vmatmul.mubr.bf16.gmra.mxu1 %v8512_v7  ;;  %4411 = vmatmul.mubr.bf16.gmra.mxu0 %v8512_v7 }
 0x1bf   :  { %4451 = vmatprep.mubr.bf16.mxu1 %v8255_v46  ;;  %4552 = vmatprep.mubr.bf16.mxu0 %v8255_v46 }
 0x1c0   :  { %4444 = vmatpush2.bf16.msra.mxu1 %v7187_v14  ;;  %4545 = vmatpush2.bf16.msra.mxu0 %v7190_v15  ;;  %v7267_v14 = vld [vmem:[%s11520_s4 + $0xff4] ss:$144 sps:$4 sm:$0xff]   ;;  %v7270_v15 = vld [vmem:[%s11520_s4 + $0xffc] ss:$144 sps:$4 sm:$0xff]  }
 0x1c1   :  { %4445 = vmatprep.subr.bf16.mxu1 %v7195_v20  ;;  %4546 = vmatprep.subr.bf16.mxu0 %v7198_v21  ;;  %v7265_v20 = vld [vmem:[%s11520_s4 + $0xff0] ss:$144 sps:$4 sm:$0xff]   ;;  %v7268_v21 = vld [vmem:[%s11520_s4 + $0xff8] ss:$144 sps:$4 sm:$0xff]  }
 0x1c4   :  { %4446 = vmatpush2.bf16.msra.mxu1 %v7193_v24  ;;  %4547 = vmatpush2.bf16.msra.mxu0 %v7196_v26  ;;  %v7273_v24 = vld [vmem:[%s11520_s4 + $0xed4] ss:$144 sps:$4 sm:$0xff]   ;;  %v7276_v26 = vld [vmem:[%s11520_s4 + $0xedc] ss:$144 sps:$4 sm:$0xff]  }
 0x1c5   :  { %4447 = vmatprep.subr.bf16.mxu1 %v7201_v35  ;;  %4548 = vmatprep.subr.bf16.mxu0 %v7204_v36  ;;  %v7271_v35 = vld [vmem:[%s11520_s4 + $0xed0] ss:$144 sps:$4 sm:$0xff]   ;;  %v7274_v36 = vld [vmem:[%s11520_s4 + $0xed8] ss:$144 sps:$4 sm:$0xff]  }
 0x1c8   :  { %4448 = vmatpush2.bf16.msra.mxu1 %v7199_v34  ;;  %4549 = vmatpush2.bf16.msra.mxu0 %v7202_v28  ;;  %v7279_v34 = vld [vmem:[%s11520_s4 + $0xdb4] ss:$144 sps:$4 sm:$0xff]   ;;  %v7282_v28 = vld [vmem:[%s11520_s4 + $0xdbc] ss:$144 sps:$4 sm:$0xff]  }
 0x1c9   :  { %4449 = vmatprep.subr.bf16.mxu1 %v7207_v38  ;;  %4550 = vmatprep.subr.bf16.mxu0 %v7210_v39  ;;  %v7277_v38 = vld [vmem:[%s11520_s4 + $0xdb0] ss:$144 sps:$4 sm:$0xff]   ;;  %v7280_v39 = vld [vmem:[%s11520_s4 + $0xdb8] ss:$144 sps:$4 sm:$0xff]  }
 0x1cc   :  { %4450 = vmatpush2.bf16.msra.mxu1 %v7205_v31  ;;  %4551 = vmatpush2.bf16.msra.mxu0 %v7208_v43  ;;  %v7285_v31 = vld [vmem:[%s11520_s4 + $0xc94] ss:$144 sps:$4 sm:$0xff]   ;;  %v7288_v43 = vld [vmem:[%s11520_s4 + $0xc9c] ss:$144 sps:$4 sm:$0xff]  }
 0x1cd   :  { %4621 = vmatprep.subr.bf16.mxu1 %v7213_v40  ;;  %4722 = vmatprep.subr.bf16.mxu0 %v7216_v0  ;;  %v7283_v40 = vld [vmem:[%s11520_s4 + $0xc90] ss:$144 sps:$4 sm:$0xff]   ;;  %v7286_v0 = vld [vmem:[%s11520_s4 + $0xc98] ss:$144 sps:$4 sm:$0xff]  }
 0x1cf   :  { %4452 = vmatmul.mubr.bf16.vlgmr.msra.gmra.mxu1 %v8253_v41  ;;  %4553 = vmatmul.mubr.bf16.vlgmr.msra.gmra.mxu0 %v8253_v41 }
 0x1d0   :  { %4461 = vmatprep.mubr.bf16.mxu1 %v8282_v12  ;;  %4562 = vmatprep.mubr.bf16.mxu0 %v8282_v12 }
 0x1d1   :  { %4622 = vmatpush1.bf16.msra.mxu1 %v7211_v6  ;;  %4723 = vmatpush1.bf16.msra.mxu0 %v7214_v45  ;;  %v7291_v6 = vld [vmem:[%s11520_s4 + $0xb74] ss:$144 sps:$4 sm:$0xff]   ;;  %v7294_v45 = vld [vmem:[%s11520_s4 + $0xb7c] ss:$144 sps:$4 sm:$0xff]  }
 0x1d2   :  { %4623 = vmatprep.subr.bf16.mxu1 %v7219_v59  ;;  %4724 = vmatprep.subr.bf16.mxu0 %v7222_v33  ;;  %v7289_v59 = vld [vmem:[%s11520_s4 + $0xb70] ss:$144 sps:$4 sm:$0xff]   ;;  %v7292_v33 = vld [vmem:[%s11520_s4 + $0xb78] ss:$144 sps:$4 sm:$0xff]  }
 0x1d5   :  { %4624 = vmatpush1.bf16.msra.mxu1 %v7217_v48  ;;  %4725 = vmatpush1.bf16.msra.mxu0 %v7220_v49  ;;  %v7297_v48 = vld [vmem:[%s11520_s4 + $0xa54] ss:$144 sps:$4 sm:$0xff]   ;;  %v7300_v49 = vld [vmem:[%s11520_s4 + $0xa5c] ss:$144 sps:$4 sm:$0xff]  }
 0x1d6   :  { %4625 = vmatprep.subr.bf16.mxu1 %v7225_v52  ;;  %4726 = vmatprep.subr.bf16.mxu0 %v7228_v53  ;;  %v7295_v52 = vld [vmem:[%s11520_s4 + $0xa50] ss:$144 sps:$4 sm:$0xff]   ;;  %v7298_v53 = vld [vmem:[%s11520_s4 + $0xa58] ss:$144 sps:$4 sm:$0xff]  }
 0x1d7   :  { %4462 = vmatmul.mubr.bf16.gmra.mxu1 %v8318_v17  ;;  %4563 = vmatmul.mubr.bf16.gmra.mxu0 %v8318_v17 }
 0x1d8   :  { %4471 = vmatprep.mubr.bf16.mxu1 %v8328_v23  ;;  %4572 = vmatprep.mubr.bf16.mxu0 %v8328_v23 }
 0x1d9   :  { %4626 = vmatpush1.bf16.msra.mxu1 %v7223_v54  ;;  %4727 = vmatpush1.bf16.msra.mxu0 %v7226_v1  ;;  %v7303_v54 = vld [vmem:[%s11520_s4 + $0x934] ss:$144 sps:$4 sm:$0xff]   ;;  %v7306_v1 = vld [vmem:[%s11520_s4 + $0x93c] ss:$144 sps:$4 sm:$0xff]  }
 0x1da   :  { %4627 = vmatprep.subr.bf16.mxu1 %v7231_v44  ;;  %4728 = vmatprep.subr.bf16.mxu0 %v7234_v60  ;;  %v7301_v44 = vld [vmem:[%s11520_s4 + $0x930] ss:$144 sps:$4 sm:$0xff]   ;;  %v7304_v60 = vld [vmem:[%s11520_s4 + $0x938] ss:$144 sps:$4 sm:$0xff]  }
 0x1dd   :  { %4628 = vmatpush1.bf16.msra.mxu1 %v7229_v61  ;;  %4729 = vmatpush1.bf16.msra.mxu0 %v7232_v55  ;;  %v7309_v61 = vld [vmem:[%s11520_s4 + $0x824] ss:$144 sps:$4 sm:$0xff]   ;;  %v7312_v55 = vld [vmem:[%s11520_s4 + $0x82c] ss:$144 sps:$4 sm:$0xff]  }
 0x1de   :  { %4629 = vmatprep.subr.bf16.mxu1 %v7237_v63  ;;  %4730 = vmatprep.subr.bf16.mxu0 %v7240_v3  ;;  %v7307_v63 = vld [vmem:[%s11520_s4 + $0x820] ss:$144 sps:$4 sm:$0xff]   ;;  %v7310_v3 = vld [vmem:[%s11520_s4 + $0x828] ss:$144 sps:$4 sm:$0xff]  }
 0x1df   :  { %4472 = vmatmul.mubr.bf16.gmra.mxu1 %v8364_v56  ;;  %4573 = vmatmul.mubr.bf16.gmra.mxu0 %v8364_v56 }
 0x1e0   :  { %4481 = vmatprep.mubr.bf16.mxu1 %v8374_v30  ;;  %4582 = vmatprep.mubr.bf16.mxu0 %v8374_v30 }
 0x1e1   :  { %4630 = vmatpush1.bf16.msra.mxu1 %v7235_v4  ;;  %4731 = vmatpush1.bf16.msra.mxu0 %v7238_v13 }
 0x1e2   :  { %4631 = vmatprep.subr.bf16.mxu1 %v7243_v18  ;;  %4732 = vmatprep.subr.bf16.mxu0 %v7246_v57  ;;  %v7315_v18 = vld [vmem:[%s11520_s4 + $0x704] ss:$144 sps:$4 sm:$0xff]   ;;  %v7318_v57 = vld [vmem:[%s11520_s4 + $0x70c] ss:$144 sps:$4 sm:$0xff]  }
 0x1e5   :  { %4632 = vmatpush1.bf16.msra.mxu1 %v7241_v19  ;;  %4733 = vmatpush1.bf16.msra.mxu0 %v7244_v5 }
 0x1e6   :  { %4633 = vmatprep.subr.bf16.mxu1 %v7249_v25  ;;  %4734 = vmatprep.subr.bf16.mxu0 %v7252_v27  ;;  %v7313_v25 = vld [vmem:[%s11520_s4 + $0x700] ss:$144 sps:$4 sm:$0xff]   ;;  %v7316_v27 = vld [vmem:[%s11520_s4 + $0x708] ss:$144 sps:$4 sm:$0xff]  }
 0x1e7   :  { %4482 = vmatmul.mubr.bf16.gmra.mxu1 %v8410_v29  ;;  %4583 = vmatmul.mubr.bf16.gmra.mxu0 %v8410_v29 }
 0x1e8   :  { %4491 = vmatprep.mubr.bf16.mxu1 %v8418_v22  ;;  %4592 = vmatprep.mubr.bf16.mxu0 %v8418_v22 }
 0x1e9   :  { %4634 = vmatpush1.bf16.msra.mxu1 %v7247_v32  ;;  %4735 = vmatpush1.bf16.msra.mxu0 %v7250_v42 }
 0x1ea   :  { %4635 = vmatprep.subr.bf16.mxu1 %v7255_v37  ;;  %4736 = vmatprep.subr.bf16.mxu0 %v7258_v58  ;;  %v7321_v37 = vld [vmem:[%s11520_s4 + $0x5e4] ss:$144 sps:$4 sm:$0xff]   ;;  %v7324_v58 = vld [vmem:[%s11520_s4 + $0x5ec] ss:$144 sps:$4 sm:$0xff]  }
 0x1ed   :  { %4636 = vmatpush1.bf16.msra.mxu1 %v7253_v8  ;;  %4737 = vmatpush1.bf16.msra.mxu0 %v7256_v50 }
 0x1ee   :  { %4637 = vmatprep.subr.bf16.mxu1 %v7261_v9  ;;  %4738 = vmatprep.subr.bf16.mxu0 %v7264_v51  ;;  %v7319_v9 = vld [vmem:[%s11520_s4 + $0x5e0] ss:$144 sps:$4 sm:$0xff]   ;;  %v7322_v51 = vld [vmem:[%s11520_s4 + $0x5e8] ss:$144 sps:$4 sm:$0xff]  }
 0x1ef   :  { %4492 = vmatmul.mubr.bf16.gmra.mxu1 %v8447_v47  ;;  %4593 = vmatmul.mubr.bf16.gmra.mxu0 %v8447_v47 }
 0x1f0   :  { %4501 = vmatprep.mubr.bf16.mxu1 %v8452_v16  ;;  %4602 = vmatprep.mubr.bf16.mxu0 %v8452_v16 }
 0x1f1   :  { %4638 = vmatpush2.bf16.msra.mxu1 %v7259_v10  ;;  %4739 = vmatpush2.bf16.msra.mxu0 %v7262_v11 }
 0x1f2   :  { %4639 = vmatprep.subr.bf16.mxu1 %v7267_v14  ;;  %4740 = vmatprep.subr.bf16.mxu0 %v7270_v15  ;;  %v7327_v14 = vld [vmem:[%s11520_s4 + $0x4c4] ss:$144 sps:$4 sm:$0xff]   ;;  %v7330_v15 = vld [vmem:[%s11520_s4 + $0x4cc] ss:$144 sps:$4 sm:$0xff]  }
 0x1f5   :  { %4640 = vmatpush2.bf16.msra.mxu1 %v7265_v20  ;;  %4741 = vmatpush2.bf16.msra.mxu0 %v7268_v21 }
 0x1f6   :  { %4641 = vmatprep.subr.bf16.mxu1 %v7273_v24  ;;  %4742 = vmatprep.subr.bf16.mxu0 %v7276_v26  ;;  %v7325_v24 = vld [vmem:[%s11520_s4 + $0x4c0] ss:$144 sps:$4 sm:$0xff]   ;;  %v7328_v26 = vld [vmem:[%s11520_s4 + $0x4c8] ss:$144 sps:$4 sm:$0xff]  }
 0x1f7   :  { %4502 = vmatmul.mubr.bf16.gmra.mxu1 %v8273_v62  ;;  %4603 = vmatmul.mubr.bf16.gmra.mxu0 %v8273_v62 }
 0x1f8   :  { %4511 = vmatprep.mubr.bf16.mxu1 %v8482_v2  ;;  %4612 = vmatprep.mubr.bf16.mxu0 %v8482_v2 }
 0x1f9   :  { %4642 = vmatpush2.bf16.msra.mxu1 %v7271_v35  ;;  %4743 = vmatpush2.bf16.msra.mxu0 %v7274_v36 }
 0x1fa   :  { %4643 = vmatprep.subr.bf16.mxu1 %v7279_v34  ;;  %4744 = vmatprep.subr.bf16.mxu0 %v7282_v28  ;;  %v7333_v34 = vld [vmem:[%s11520_s4 + $0x3a4] ss:$144 sps:$4 sm:$0xff]   ;;  %v7336_v28 = vld [vmem:[%s11520_s4 + $0x3ac] ss:$144 sps:$4 sm:$0xff]  }
 0x1fd   :  { %4644 = vmatpush2.bf16.msra.mxu1 %v7277_v38  ;;  %4745 = vmatpush2.bf16.msra.mxu0 %v7280_v39 }
 0x1fe   :  { %4645 = vmatprep.subr.bf16.mxu1 %v7285_v31  ;;  %4746 = vmatprep.subr.bf16.mxu0 %v7288_v43  ;;  %v7331_v31 = vld [vmem:[%s11520_s4 + $0x3a0] ss:$144 sps:$4 sm:$0xff]   ;;  %v7334_v43 = vld [vmem:[%s11520_s4 + $0x3a8] ss:$144 sps:$4 sm:$0xff]  }
 0x1ff   :  { %4512 = vmatmul.mubr.bf16.gmra.mxu1 %v8512_v7  ;;  %4613 = vmatmul.mubr.bf16.gmra.mxu0 %v8512_v7 }
 0x200   :  { %4653 = vmatprep.mubr.bf16.mxu1 %v8255_v46  ;;  %4754 = vmatprep.mubr.bf16.mxu0 %v8255_v46 }
 0x201   :  { %4646 = vmatpush2.bf16.msra.mxu1 %v7283_v40  ;;  %4747 = vmatpush2.bf16.msra.mxu0 %v7286_v0 }
 0x202   :  { %4647 = vmatprep.subr.bf16.mxu1 %v7291_v6  ;;  %4748 = vmatprep.subr.bf16.mxu0 %v7294_v45  ;;  %v7339_v6 = vld [vmem:[%s11520_s4 + $0x284] ss:$144 sps:$4 sm:$0xff]   ;;  %v7342_v45 = vld [vmem:[%s11520_s4 + $0x28c] ss:$144 sps:$4 sm:$0xff]  }
 0x205   :  { %4648 = vmatpush2.bf16.msra.mxu1 %v7289_v59  ;;  %4749 = vmatpush2.bf16.msra.mxu0 %v7292_v33 }
 0x206   :  { %4649 = vmatprep.subr.bf16.mxu1 %v7297_v48  ;;  %4750 = vmatprep.subr.bf16.mxu0 %v7300_v49  ;;  %v7337_v48 = vld [vmem:[%s11520_s4 + $0x280] ss:$144 sps:$4 sm:$0xff]   ;;  %v7340_v49 = vld [vmem:[%s11520_s4 + $0x288] ss:$144 sps:$4 sm:$0xff]  }
 0x209   :  { %4650 = vmatpush2.bf16.msra.mxu1 %v7295_v52  ;;  %4751 = vmatpush2.bf16.msra.mxu0 %v7298_v53 }
 0x20a   :  { %4651 = vmatprep.subr.bf16.mxu1 %v7303_v54  ;;  %4752 = vmatprep.subr.bf16.mxu0 %v7306_v1  ;;  %v7345_v54 = vld [vmem:[%s11520_s4 + $0x164] ss:$144 sps:$4 sm:$0xff]   ;;  %v7348_v1 = vld [vmem:[%s11520_s4 + $0x16c] ss:$144 sps:$4 sm:$0xff]  }
 0x20d   :  { %4652 = vmatpush2.bf16.msra.mxu1 %v7301_v44  ;;  %4753 = vmatpush2.bf16.msra.mxu0 %v7304_v60 }
 0x20e   :  { %4823 = vmatprep.subr.bf16.mxu1 %v7309_v61  ;;  %4924 = vmatprep.subr.bf16.mxu0 %v7312_v55  ;;  %v4049_v4 = vpop.f32.mrf.mxu1  ;;  %v4150_v13 = vpop.f32.mrf.mxu0  ;;  %v7343_v61 = vld [vmem:[%s11520_s4 + $0x160] ss:$144 sps:$4 sm:$0xff]   ;;  %v7346_v55 = vld [vmem:[%s11520_s4 + $0x168] ss:$144 sps:$4 sm:$0xff]  }
 0x20f   :  { %5833 = vst [vmem:[%s11523_s5] sm:$0xff] %v4049_v4  ;;  %5835 = vst [vmem:[%s11523_s5 + $0x10] sm:$0xff] %v4150_v13  ;;  %v7351_v4 = vld [vmem:[%s11520_s4 + $0x44] ss:$144 sps:$4 sm:$0xff]   ;;  %v7354_v13 = vld [vmem:[%s11520_s4 + $0x4c] ss:$144 sps:$4 sm:$0xff]  }
 0x210   :  { %4654 = vmatmul.mubr.bf16.vlgmr.msra.gmra.mxu1 %v8253_v41  ;;  %4755 = vmatmul.mubr.bf16.vlgmr.msra.gmra.mxu0 %v8253_v41  ;;  %v4051_v19 = vpop.f32.mrf.mxu1  ;;  %v4152_v5 = vpop.f32.mrf.mxu0 }
 0x211   :  { %4663 = vmatprep.mubr.bf16.mxu1 %v8282_v12  ;;  %4764 = vmatprep.mubr.bf16.mxu0 %v8282_v12  ;;  %5834 = vst [vmem:[%s11523_s5 + $0x8] sm:$0xff] %v4051_v19  ;;  %5836 = vst [vmem:[%s11523_s5 + $0x18] sm:$0xff] %v4152_v5  ;;  %v7349_v19 = vld [vmem:[%s11520_s4 + $0x40] ss:$144 sps:$4 sm:$0xff]   ;;  %v7352_v5 = vld [vmem:[%s11520_s4 + $0x48] ss:$144 sps:$4 sm:$0xff]  }
 0x212   :  { %4824 = vmatpush1.bf16.msra.mxu1 %v7307_v63  ;;  %4925 = vmatpush1.bf16.msra.mxu0 %v7310_v3  ;;  %v4053_v32 = vpop.f32.mrf.mxu1  ;;  %v4154_v42 = vpop.f32.mrf.mxu0 }
 0x213   :  { %4825 = vmatprep.subr.bf16.mxu1 %v7315_v18  ;;  %4926 = vmatprep.subr.bf16.mxu0 %v7318_v57  ;;  %5869 = vst [vmem:[%s11523_s5 + $0x120] sm:$0xff] %v4053_v32  ;;  %5871 = vst [vmem:[%s11523_s5 + $0x130] sm:$0xff] %v4154_v42  ;;  %v7357_v32 = vld [vmem:[%s11520_s4 + $0x1124] ss:$144 sps:$4 sm:$0xff]   ;;  %v7360_v42 = vld [vmem:[%s11520_s4 + $0x112c] ss:$144 sps:$4 sm:$0xff]  }
 0x214   :  { %v4055_v8 = vpop.f32.mrf.mxu1  ;;  %v4156_v50 = vpop.f32.mrf.mxu0 }
 0x215   :  { %5870 = vst [vmem:[%s11523_s5 + $0x128] sm:$0xff] %v4055_v8  ;;  %5872 = vst [vmem:[%s11523_s5 + $0x138] sm:$0xff] %v4156_v50  ;;  %v7355_v8 = vld [vmem:[%s11520_s4 + $0x1120] ss:$144 sps:$4 sm:$0xff]   ;;  %v7358_v50 = vld [vmem:[%s11520_s4 + $0x1128] ss:$144 sps:$4 sm:$0xff]  }
 0x216   :  { %4826 = vmatpush1.bf16.msra.mxu1 %v7313_v25  ;;  %4927 = vmatpush1.bf16.msra.mxu0 %v7316_v27  ;;  %v4059_v10 = vpop.f32.mrf.mxu1  ;;  %v4160_v11 = vpop.f32.mrf.mxu0 }
 0x217   :  { %4827 = vmatprep.subr.bf16.mxu1 %v7321_v37  ;;  %4928 = vmatprep.subr.bf16.mxu0 %v7324_v58  ;;  %5905 = vst [vmem:[%s11523_s5 + $0x240] sm:$0xff] %v4059_v10  ;;  %5907 = vst [vmem:[%s11523_s5 + $0x250] sm:$0xff] %v4160_v11  ;;  %v7363_v10 = vld [vmem:[%s11520_s4 + $0x1004] ss:$144 sps:$4 sm:$0xff]   ;;  %v7366_v11 = vld [vmem:[%s11520_s4 + $0x100c] ss:$144 sps:$4 sm:$0xff]  }
 0x218   :  { %4664 = vmatmul.mubr.bf16.gmra.mxu1 %v8318_v17  ;;  %4765 = vmatmul.mubr.bf16.gmra.mxu0 %v8318_v17  ;;  %v4061_v20 = vpop.f32.mrf.mxu1  ;;  %v4162_v21 = vpop.f32.mrf.mxu0 }
 0x219   :  { %4673 = vmatprep.mubr.bf16.mxu1 %v8328_v23  ;;  %4774 = vmatprep.mubr.bf16.mxu0 %v8328_v23  ;;  %5906 = vst [vmem:[%s11523_s5 + $0x248] sm:$0xff] %v4061_v20  ;;  %5908 = vst [vmem:[%s11523_s5 + $0x258] sm:$0xff] %v4162_v21  ;;  %v7361_v20 = vld [vmem:[%s11520_s4 + $0x1000] ss:$144 sps:$4 sm:$0xff]   ;;  %v7364_v21 = vld [vmem:[%s11520_s4 + $0x1008] ss:$144 sps:$4 sm:$0xff]  }
 0x21a   :  { %4828 = vmatpush1.bf16.msra.mxu1 %v7319_v9  ;;  %4929 = vmatpush1.bf16.msra.mxu0 %v7322_v51  ;;  %v4063_v35 = vpop.f32.mrf.mxu1  ;;  %v4164_v36 = vpop.f32.mrf.mxu0 }
 0x21b   :  { %4829 = vmatprep.subr.bf16.mxu1 %v7327_v14  ;;  %4930 = vmatprep.subr.bf16.mxu0 %v7330_v15  ;;  %5941 = vst [vmem:[%s11523_s5 + $0x360] sm:$0xff] %v4063_v35  ;;  %5943 = vst [vmem:[%s11523_s5 + $0x370] sm:$0xff] %v4164_v36  ;;  %v7369_v35 = vld [vmem:[%s11520_s4 + $0xee4] ss:$144 sps:$4 sm:$0xff]   ;;  %v7372_v36 = vld [vmem:[%s11520_s4 + $0xeec] ss:$144 sps:$4 sm:$0xff]  }
 0x21c   :  { %v4065_v38 = vpop.f32.mrf.mxu1  ;;  %v4166_v39 = vpop.f32.mrf.mxu0 }
 0x21d   :  { %5942 = vst [vmem:[%s11523_s5 + $0x368] sm:$0xff] %v4065_v38  ;;  %5944 = vst [vmem:[%s11523_s5 + $0x378] sm:$0xff] %v4166_v39  ;;  %v7367_v38 = vld [vmem:[%s11520_s4 + $0xee0] ss:$144 sps:$4 sm:$0xff]   ;;  %v7370_v39 = vld [vmem:[%s11520_s4 + $0xee8] ss:$144 sps:$4 sm:$0xff]  }
 0x21e   :  { %4830 = vmatpush1.bf16.msra.mxu1 %v7325_v24  ;;  %4931 = vmatpush1.bf16.msra.mxu0 %v7328_v26  ;;  %v4069_v40 = vpop.f32.mrf.mxu1  ;;  %v4170_v0 = vpop.f32.mrf.mxu0 }
 0x21f   :  { %4831 = vmatprep.subr.bf16.mxu1 %v7333_v34  ;;  %4932 = vmatprep.subr.bf16.mxu0 %v7336_v28  ;;  %5977 = vst [vmem:[%s11523_s5 + $0x480] sm:$0xff] %v4069_v40  ;;  %5979 = vst [vmem:[%s11523_s5 + $0x490] sm:$0xff] %v4170_v0  ;;  %v7375_v40 = vld [vmem:[%s11520_s4 + $0xdc4] ss:$144 sps:$4 sm:$0xff]   ;;  %v7378_v0 = vld [vmem:[%s11520_s4 + $0xdcc] ss:$144 sps:$4 sm:$0xff]  }
 0x220   :  { %4674 = vmatmul.mubr.bf16.gmra.mxu1 %v8364_v56  ;;  %4775 = vmatmul.mubr.bf16.gmra.mxu0 %v8364_v56  ;;  %v4071_v59 = vpop.f32.mrf.mxu1  ;;  %v4172_v33 = vpop.f32.mrf.mxu0 }
 0x221   :  { %4683 = vmatprep.mubr.bf16.mxu1 %v8374_v30  ;;  %4784 = vmatprep.mubr.bf16.mxu0 %v8374_v30  ;;  %5978 = vst [vmem:[%s11523_s5 + $0x488] sm:$0xff] %v4071_v59  ;;  %5980 = vst [vmem:[%s11523_s5 + $0x498] sm:$0xff] %v4172_v33  ;;  %v7373_v59 = vld [vmem:[%s11520_s4 + $0xdc0] ss:$144 sps:$4 sm:$0xff]   ;;  %v7376_v33 = vld [vmem:[%s11520_s4 + $0xdc8] ss:$144 sps:$4 sm:$0xff]  }
 0x222   :  { %4832 = vmatpush1.bf16.msra.mxu1 %v7331_v31  ;;  %4933 = vmatpush1.bf16.msra.mxu0 %v7334_v43  ;;  %v4073_v52 = vpop.f32.mrf.mxu1  ;;  %v4174_v53 = vpop.f32.mrf.mxu0 }
 0x223   :  { %4833 = vmatprep.subr.bf16.mxu1 %v7339_v6  ;;  %4934 = vmatprep.subr.bf16.mxu0 %v7342_v45  ;;  %6013 = vst [vmem:[%s11523_s5 + $0x5a0] sm:$0xff] %v4073_v52  ;;  %6015 = vst [vmem:[%s11523_s5 + $0x5b0] sm:$0xff] %v4174_v53  ;;  %v7381_v52 = vld [vmem:[%s11520_s4 + $0xca4] ss:$144 sps:$4 sm:$0xff]   ;;  %v7384_v53 = vld [vmem:[%s11520_s4 + $0xcac] ss:$144 sps:$4 sm:$0xff]  }
 0x224   :  { %v4075_v44 = vpop.f32.mrf.mxu1  ;;  %v4176_v60 = vpop.f32.mrf.mxu0 }
 0x225   :  { %6014 = vst [vmem:[%s11523_s5 + $0x5a8] sm:$0xff] %v4075_v44  ;;  %6016 = vst [vmem:[%s11523_s5 + $0x5b8] sm:$0xff] %v4176_v60  ;;  %v7379_v44 = vld [vmem:[%s11520_s4 + $0xca0] ss:$144 sps:$4 sm:$0xff]   ;;  %v7382_v60 = vld [vmem:[%s11520_s4 + $0xca8] ss:$144 sps:$4 sm:$0xff]  }
 0x226   :  { %4834 = vmatpush1.bf16.msra.mxu1 %v7337_v48  ;;  %4935 = vmatpush1.bf16.msra.mxu0 %v7340_v49  ;;  %v4079_v63 = vpop.f32.mrf.mxu1  ;;  %v4180_v3 = vpop.f32.mrf.mxu0 }
 0x227   :  { %4835 = vmatprep.subr.bf16.mxu1 %v7345_v54  ;;  %4936 = vmatprep.subr.bf16.mxu0 %v7348_v1  ;;  %6049 = vst [vmem:[%s11523_s5 + $0x6c0] sm:$0xff] %v4079_v63  ;;  %6051 = vst [vmem:[%s11523_s5 + $0x6d0] sm:$0xff] %v4180_v3  ;;  %v7387_v63 = vld [vmem:[%s11520_s4 + $0xb84] ss:$144 sps:$4 sm:$0xff]   ;;  %v7390_v3 = vld [vmem:[%s11520_s4 + $0xb8c] ss:$144 sps:$4 sm:$0xff]  }
 0x228   :  { %4684 = vmatmul.mubr.bf16.gmra.mxu1 %v8410_v29  ;;  %4785 = vmatmul.mubr.bf16.gmra.mxu0 %v8410_v29  ;;  %v4081_v18 = vpop.f32.mrf.mxu1  ;;  %v4182_v57 = vpop.f32.mrf.mxu0 }
 0x229   :  { %4693 = vmatprep.mubr.bf16.mxu1 %v8418_v22  ;;  %4794 = vmatprep.mubr.bf16.mxu0 %v8418_v22  ;;  %6050 = vst [vmem:[%s11523_s5 + $0x6c8] sm:$0xff] %v4081_v18  ;;  %6052 = vst [vmem:[%s11523_s5 + $0x6d8] sm:$0xff] %v4182_v57  ;;  %v7385_v18 = vld [vmem:[%s11520_s4 + $0xb80] ss:$144 sps:$4 sm:$0xff]   ;;  %v7388_v57 = vld [vmem:[%s11520_s4 + $0xb88] ss:$144 sps:$4 sm:$0xff]  }
 0x22a   :  { %4836 = vmatpush1.bf16.msra.mxu1 %v7343_v61  ;;  %4937 = vmatpush1.bf16.msra.mxu0 %v7346_v55  ;;  %v4083_v25 = vpop.f32.mrf.mxu1  ;;  %v4184_v27 = vpop.f32.mrf.mxu0 }
 0x22b   :  { %4837 = vmatprep.subr.bf16.mxu1 %v7351_v4  ;;  %4938 = vmatprep.subr.bf16.mxu0 %v7354_v13  ;;  %6085 = vst [vmem:[%s11523_s5 + $0x7e0] sm:$0xff] %v4083_v25  ;;  %6087 = vst [vmem:[%s11523_s5 + $0x7f0] sm:$0xff] %v4184_v27  ;;  %v7393_v25 = vld [vmem:[%s11520_s4 + $0xa64] ss:$144 sps:$4 sm:$0xff]   ;;  %v7396_v27 = vld [vmem:[%s11520_s4 + $0xa6c] ss:$144 sps:$4 sm:$0xff]  }
 0x22c   :  { %v4085_v37 = vpop.f32.mrf.mxu1  ;;  %v4186_v58 = vpop.f32.mrf.mxu0 }
 0x22d   :  { %6086 = vst [vmem:[%s11523_s5 + $0x7e8] sm:$0xff] %v4085_v37  ;;  %6088 = vst [vmem:[%s11523_s5 + $0x7f8] sm:$0xff] %v4186_v58  ;;  %v7391_v37 = vld [vmem:[%s11520_s4 + $0xa60] ss:$144 sps:$4 sm:$0xff]   ;;  %v7394_v58 = vld [vmem:[%s11520_s4 + $0xa68] ss:$144 sps:$4 sm:$0xff]  }
 0x22e   :  { %4838 = vmatpush1.bf16.msra.mxu1 %v7349_v19  ;;  %4939 = vmatpush1.bf16.msra.mxu0 %v7352_v5  ;;  %v4089_v9 = vpop.f32.mrf.mxu1  ;;  %v4190_v51 = vpop.f32.mrf.mxu0 }
 0x22f   :  { %4839 = vmatprep.subr.bf16.mxu1 %v7357_v32  ;;  %4940 = vmatprep.subr.bf16.mxu0 %v7360_v42  ;;  %6121 = vst [vmem:[%s11523_s5 + $0x900] sm:$0xff] %v4089_v9  ;;  %6123 = vst [vmem:[%s11523_s5 + $0x910] sm:$0xff] %v4190_v51  ;;  %v7397_v9 = vld [vmem:[%s11520_s4 + $0x940] ss:$144 sps:$4 sm:$0xff]   ;;  %v7400_v51 = vld [vmem:[%s11520_s4 + $0x948] ss:$144 sps:$4 sm:$0xff]  }
 0x230   :  { %4694 = vmatmul.mubr.bf16.gmra.mxu1 %v8447_v47  ;;  %4795 = vmatmul.mubr.bf16.gmra.mxu0 %v8447_v47  ;;  %v4091_v14 = vpop.f32.mrf.mxu1  ;;  %v4192_v15 = vpop.f32.mrf.mxu0 }
 0x231   :  { %4703 = vmatprep.mubr.bf16.mxu1 %v8452_v16  ;;  %4804 = vmatprep.mubr.bf16.mxu0 %v8452_v16  ;;  %6122 = vst [vmem:[%s11523_s5 + $0x908] sm:$0xff] %v4091_v14  ;;  %6124 = vst [vmem:[%s11523_s5 + $0x918] sm:$0xff] %v4192_v15 }
 0x232   :  { %4840 = vmatpush2.bf16.msra.mxu1 %v7355_v8  ;;  %4941 = vmatpush2.bf16.msra.mxu0 %v7358_v50  ;;  %v4093_v24 = vpop.f32.mrf.mxu1  ;;  %v4194_v26 = vpop.f32.mrf.mxu0  ;;  %v7399_v8 = vld [vmem:[%s11520_s4 + $0x944] ss:$144 sps:$4 sm:$0xff]   ;;  %v7402_v50 = vld [vmem:[%s11520_s4 + $0x94c] ss:$144 sps:$4 sm:$0xff]  }
 0x233   :  { %4841 = vmatprep.subr.bf16.mxu1 %v7363_v10  ;;  %4942 = vmatprep.subr.bf16.mxu0 %v7366_v11  ;;  %6157 = vst [vmem:[%s11523_s5 + $0xa20] sm:$0xff] %v4093_v24  ;;  %6159 = vst [vmem:[%s11523_s5 + $0xa30] sm:$0xff] %v4194_v26  ;;  %v7405_v10 = vld [vmem:[%s11520_s4 + $0x834] ss:$144 sps:$4 sm:$0xff]   ;;  %v7408_v11 = vld [vmem:[%s11520_s4 + $0x83c] ss:$144 sps:$4 sm:$0xff]  }
 0x234   :  { %v4095_v34 = vpop.f32.mrf.mxu1  ;;  %v4196_v28 = vpop.f32.mrf.mxu0 }
 0x235   :  { %6158 = vst [vmem:[%s11523_s5 + $0xa28] sm:$0xff] %v4095_v34  ;;  %6160 = vst [vmem:[%s11523_s5 + $0xa38] sm:$0xff] %v4196_v28 }
 0x236   :  { %4842 = vmatpush2.bf16.msra.mxu1 %v7361_v20  ;;  %4943 = vmatpush2.bf16.msra.mxu0 %v7364_v21  ;;  %v4099_v31 = vpop.f32.mrf.mxu1  ;;  %v4200_v43 = vpop.f32.mrf.mxu0  ;;  %v7403_v20 = vld [vmem:[%s11520_s4 + $0x830] ss:$144 sps:$4 sm:$0xff]   ;;  %v7406_v21 = vld [vmem:[%s11520_s4 + $0x838] ss:$144 sps:$4 sm:$0xff]  }
 0x237   :  { %4843 = vmatprep.subr.bf16.mxu1 %v7369_v35  ;;  %4944 = vmatprep.subr.bf16.mxu0 %v7372_v36  ;;  %6193 = vst [vmem:[%s11523_s5 + $0xb40] sm:$0xff] %v4099_v31  ;;  %6195 = vst [vmem:[%s11523_s5 + $0xb50] sm:$0xff] %v4200_v43  ;;  %v7411_v35 = vld [vmem:[%s11520_s4 + $0x714] ss:$144 sps:$4 sm:$0xff]   ;;  %v7414_v36 = vld [vmem:[%s11520_s4 + $0x71c] ss:$144 sps:$4 sm:$0xff]  }
 0x238   :  { %4704 = vmatmul.mubr.bf16.gmra.mxu1 %v8273_v62  ;;  %4805 = vmatmul.mubr.bf16.gmra.mxu0 %v8273_v62  ;;  %v4101_v6 = vpop.f32.mrf.mxu1  ;;  %v4202_v45 = vpop.f32.mrf.mxu0 }
 0x239   :  { %4713 = vmatprep.mubr.bf16.mxu1 %v8482_v2  ;;  %4814 = vmatprep.mubr.bf16.mxu0 %v8482_v2  ;;  %6194 = vst [vmem:[%s11523_s5 + $0xb48] sm:$0xff] %v4101_v6  ;;  %6196 = vst [vmem:[%s11523_s5 + $0xb58] sm:$0xff] %v4202_v45 }
 0x23a   :  { %4844 = vmatpush2.bf16.msra.mxu1 %v7367_v38  ;;  %4945 = vmatpush2.bf16.msra.mxu0 %v7370_v39  ;;  %v4103_v48 = vpop.f32.mrf.mxu1  ;;  %v4204_v49 = vpop.f32.mrf.mxu0  ;;  %v7409_v38 = vld [vmem:[%s11520_s4 + $0x710] ss:$144 sps:$4 sm:$0xff]   ;;  %v7412_v39 = vld [vmem:[%s11520_s4 + $0x718] ss:$144 sps:$4 sm:$0xff]  }
 0x23b   :  { %4845 = vmatprep.subr.bf16.mxu1 %v7375_v40  ;;  %4946 = vmatprep.subr.bf16.mxu0 %v7378_v0  ;;  %6229 = vst [vmem:[%s11523_s5 + $0xc60] sm:$0xff] %v4103_v48  ;;  %6231 = vst [vmem:[%s11523_s5 + $0xc70] sm:$0xff] %v4204_v49  ;;  %v7417_v40 = vld [vmem:[%s11520_s4 + $0x5f4] ss:$144 sps:$4 sm:$0xff]   ;;  %v7420_v0 = vld [vmem:[%s11520_s4 + $0x5fc] ss:$144 sps:$4 sm:$0xff]  }
 0x23c   :  { %v4105_v54 = vpop.f32.mrf.mxu1  ;;  %v4206_v1 = vpop.f32.mrf.mxu0 }
 0x23d   :  { %6230 = vst [vmem:[%s11523_s5 + $0xc68] sm:$0xff] %v4105_v54  ;;  %6232 = vst [vmem:[%s11523_s5 + $0xc78] sm:$0xff] %v4206_v1 }
 0x23e   :  { %4846 = vmatpush2.bf16.msra.mxu1 %v7373_v59  ;;  %4947 = vmatpush2.bf16.msra.mxu0 %v7376_v33  ;;  %v4109_v61 = vpop.f32.mrf.mxu1  ;;  %v4210_v55 = vpop.f32.mrf.mxu0  ;;  %v7415_v59 = vld [vmem:[%s11520_s4 + $0x5f0] ss:$144 sps:$4 sm:$0xff]   ;;  %v7418_v33 = vld [vmem:[%s11520_s4 + $0x5f8] ss:$144 sps:$4 sm:$0xff]  }
 0x23f   :  { %4847 = vmatprep.subr.bf16.mxu1 %v7381_v52  ;;  %4948 = vmatprep.subr.bf16.mxu0 %v7384_v53  ;;  %6265 = vst [vmem:[%s11523_s5 + $0xd80] sm:$0xff] %v4109_v61  ;;  %6267 = vst [vmem:[%s11523_s5 + $0xd90] sm:$0xff] %v4210_v55  ;;  %v7423_v52 = vld [vmem:[%s11520_s4 + $0x4d4] ss:$144 sps:$4 sm:$0xff]   ;;  %v7426_v53 = vld [vmem:[%s11520_s4 + $0x4dc] ss:$144 sps:$4 sm:$0xff]  }
 0x240   :  { %4714 = vmatmul.mubr.bf16.gmra.mxu1 %v8512_v7  ;;  %4815 = vmatmul.mubr.bf16.gmra.mxu0 %v8512_v7  ;;  %v4111_v4 = vpop.f32.mrf.mxu1  ;;  %v4212_v13 = vpop.f32.mrf.mxu0 }
 0x241   :  { %4855 = vmatprep.mubr.bf16.mxu1 %v8255_v46  ;;  %4956 = vmatprep.mubr.bf16.mxu0 %v8255_v46  ;;  %6266 = vst [vmem:[%s11523_s5 + $0xd88] sm:$0xff] %v4111_v4  ;;  %6268 = vst [vmem:[%s11523_s5 + $0xd98] sm:$0xff] %v4212_v13 }
 0x242   :  { %4848 = vmatpush2.bf16.msra.mxu1 %v7379_v44  ;;  %4949 = vmatpush2.bf16.msra.mxu0 %v7382_v60  ;;  %v4113_v19 = vpop.f32.mrf.mxu1  ;;  %v4214_v5 = vpop.f32.mrf.mxu0  ;;  %v7421_v44 = vld [vmem:[%s11520_s4 + $0x4d0] ss:$144 sps:$4 sm:$0xff]   ;;  %v7424_v60 = vld [vmem:[%s11520_s4 + $0x4d8] ss:$144 sps:$4 sm:$0xff]  }
 0x243   :  { %4849 = vmatprep.subr.bf16.mxu1 %v7387_v63  ;;  %4950 = vmatprep.subr.bf16.mxu0 %v7390_v3  ;;  %v7429_v63 = vld [vmem:[%s11520_s4 + $0x3b4] ss:$144 sps:$4 sm:$0xff]   ;;  %v7432_v3 = vld [vmem:[%s11520_s4 + $0x3bc] ss:$144 sps:$4 sm:$0xff]  }
 0x244   :  { %v4114_v32 = vpop.f32.mrf.mxu1  ;;  %v4215_v42 = vpop.f32.mrf.mxu0 }
 0x246   :  { %4850 = vmatpush2.bf16.msra.mxu1 %v7385_v18  ;;  %4951 = vmatpush2.bf16.msra.mxu0 %v7388_v57  ;;  %v7427_v18 = vld [vmem:[%s11520_s4 + $0x3b0] ss:$144 sps:$4 sm:$0xff]   ;;  %v7430_v57 = vld [vmem:[%s11520_s4 + $0x3b8] ss:$144 sps:$4 sm:$0xff]  }
 0x247   :  { %4851 = vmatprep.subr.bf16.mxu1 %v7393_v25  ;;  %4952 = vmatprep.subr.bf16.mxu0 %v7396_v27  ;;  %v7435_v25 = vld [vmem:[%s11520_s4 + $0x294] ss:$144 sps:$4 sm:$0xff]   ;;  %v7438_v27 = vld [vmem:[%s11520_s4 + $0x29c] ss:$144 sps:$4 sm:$0xff]  }
 0x24a   :  { %4852 = vmatpush2.bf16.msra.mxu1 %v7391_v37  ;;  %4953 = vmatpush2.bf16.msra.mxu0 %v7394_v58  ;;  %v7433_v37 = vld [vmem:[%s11520_s4 + $0x290] ss:$144 sps:$4 sm:$0xff]   ;;  %v7436_v58 = vld [vmem:[%s11520_s4 + $0x298] ss:$144 sps:$4 sm:$0xff]  }
 0x24b   :  { %4853 = vmatprep.subr.bf16.mxu1 %v7399_v8  ;;  %4954 = vmatprep.subr.bf16.mxu0 %v7402_v50 }
 0x24e   :  { %4854 = vmatpush2.bf16.msra.mxu1 %v7397_v9  ;;  %4955 = vmatpush2.bf16.msra.mxu0 %v7400_v51  ;;  %v4251_v14 = vpop.f32.mrf.mxu1  ;;  %v4352_v15 = vpop.f32.mrf.mxu0  ;;  %v7441_v9 = vld [vmem:[%s11520_s4 + $0x174] ss:$144 sps:$4 sm:$0xff]   ;;  %v7444_v51 = vld [vmem:[%s11520_s4 + $0x17c] ss:$144 sps:$4 sm:$0xff]  }
 0x24f   :  { %5837 = vst [vmem:[%s11523_s5 + $0x20] sm:$0xff] %v4251_v14  ;;  %5839 = vst [vmem:[%s11523_s5 + $0x30] sm:$0xff] %v4352_v15  ;;  %5025 = vmatprep.subr.bf16.mxu1 %v7405_v10  ;;  %5126 = vmatprep.subr.bf16.mxu0 %v7408_v11  ;;  %v7439_v14 = vld [vmem:[%s11520_s4 + $0x170] ss:$144 sps:$4 sm:$0xff]   ;;  %v7442_v15 = vld [vmem:[%s11520_s4 + $0x178] ss:$144 sps:$4 sm:$0xff]  }
 0x250   :  { %v4253_v24 = vpop.f32.mrf.mxu1  ;;  %v4354_v26 = vpop.f32.mrf.mxu0 }
 0x251   :  { %4856 = vmatmul.mubr.bf16.vlgmr.msra.gmra.mxu1 %v8253_v41  ;;  %4957 = vmatmul.mubr.bf16.vlgmr.msra.gmra.mxu0 %v8253_v41  ;;  %5838 = vst [vmem:[%s11523_s5 + $0x28] sm:$0xff] %v4253_v24  ;;  %5840 = vst [vmem:[%s11523_s5 + $0x38] sm:$0xff] %v4354_v26  ;;  %v7447_v24 = vld [vmem:[%s11520_s4 + $0x54] ss:$144 sps:$4 sm:$0xff]   ;;  %v7450_v26 = vld [vmem:[%s11520_s4 + $0x5c] ss:$144 sps:$4 sm:$0xff]  }
 0x252   :  { %4865 = vmatprep.mubr.bf16.mxu1 %v8282_v12  ;;  %4966 = vmatprep.mubr.bf16.mxu0 %v8282_v12  ;;  %v4255_v34 = vpop.f32.mrf.mxu1  ;;  %v4356_v28 = vpop.f32.mrf.mxu0 }
 0x253   :  { %5026 = vmatpush1.bf16.msra.mxu1 %v7403_v20  ;;  %5127 = vmatpush1.bf16.msra.mxu0 %v7406_v21  ;;  %5873 = vst [vmem:[%s11523_s5 + $0x140] sm:$0xff] %v4255_v34  ;;  %5875 = vst [vmem:[%s11523_s5 + $0x150] sm:$0xff] %v4356_v28  ;;  %v7445_v34 = vld [vmem:[%s11520_s4 + $0x50] ss:$144 sps:$4 sm:$0xff]   ;;  %v7448_v28 = vld [vmem:[%s11520_s4 + $0x58] ss:$144 sps:$4 sm:$0xff]  }
 0x254   :  { %5027 = vmatprep.subr.bf16.mxu1 %v7411_v35  ;;  %5128 = vmatprep.subr.bf16.mxu0 %v7414_v36  ;;  %v4257_v31 = vpop.f32.mrf.mxu1  ;;  %v4358_v43 = vpop.f32.mrf.mxu0 }
 0x255   :  { %5874 = vst [vmem:[%s11523_s5 + $0x148] sm:$0xff] %v4257_v31  ;;  %5876 = vst [vmem:[%s11523_s5 + $0x158] sm:$0xff] %v4358_v43  ;;  %v7453_v31 = vld [vmem:[%s11520_s4 + $0x1134] ss:$144 sps:$4 sm:$0xff]   ;;  %v7456_v43 = vld [vmem:[%s11520_s4 + $0x113c] ss:$144 sps:$4 sm:$0xff]  }
 0x256   :  { %v4261_v6 = vpop.f32.mrf.mxu1  ;;  %v4362_v45 = vpop.f32.mrf.mxu0 }
 0x257   :  { %5028 = vmatpush1.bf16.msra.mxu1 %v7409_v38  ;;  %5129 = vmatpush1.bf16.msra.mxu0 %v7412_v39  ;;  %5909 = vst [vmem:[%s11523_s5 + $0x260] sm:$0xff] %v4261_v6  ;;  %5911 = vst [vmem:[%s11523_s5 + $0x270] sm:$0xff] %v4362_v45  ;;  %v7451_v6 = vld [vmem:[%s11520_s4 + $0x1130] ss:$144 sps:$4 sm:$0xff]   ;;  %v7454_v45 = vld [vmem:[%s11520_s4 + $0x1138] ss:$144 sps:$4 sm:$0xff]  }
 0x258   :  { %5029 = vmatprep.subr.bf16.mxu1 %v7417_v40  ;;  %5130 = vmatprep.subr.bf16.mxu0 %v7420_v0  ;;  %v4263_v48 = vpop.f32.mrf.mxu1  ;;  %v4364_v49 = vpop.f32.mrf.mxu0 }
 0x259   :  { %4866 = vmatmul.mubr.bf16.gmra.mxu1 %v8318_v17  ;;  %4967 = vmatmul.mubr.bf16.gmra.mxu0 %v8318_v17  ;;  %5910 = vst [vmem:[%s11523_s5 + $0x268] sm:$0xff] %v4263_v48  ;;  %5912 = vst [vmem:[%s11523_s5 + $0x278] sm:$0xff] %v4364_v49  ;;  %v7459_v48 = vld [vmem:[%s11520_s4 + $0x1014] ss:$144 sps:$4 sm:$0xff]   ;;  %v7462_v49 = vld [vmem:[%s11520_s4 + $0x101c] ss:$144 sps:$4 sm:$0xff]  }
 0x25a   :  { %4875 = vmatprep.mubr.bf16.mxu1 %v8328_v23  ;;  %4976 = vmatprep.mubr.bf16.mxu0 %v8328_v23  ;;  %v4265_v54 = vpop.f32.mrf.mxu1  ;;  %v4366_v1 = vpop.f32.mrf.mxu0 }
 0x25b   :  { %5030 = vmatpush1.bf16.msra.mxu1 %v7415_v59  ;;  %5131 = vmatpush1.bf16.msra.mxu0 %v7418_v33  ;;  %5945 = vst [vmem:[%s11523_s5 + $0x380] sm:$0xff] %v4265_v54  ;;  %5947 = vst [vmem:[%s11523_s5 + $0x390] sm:$0xff] %v4366_v1  ;;  %v7457_v54 = vld [vmem:[%s11520_s4 + $0x1010] ss:$144 sps:$4 sm:$0xff]   ;;  %v7460_v1 = vld [vmem:[%s11520_s4 + $0x1018] ss:$144 sps:$4 sm:$0xff]  }
 0x25c   :  { %5031 = vmatprep.subr.bf16.mxu1 %v7423_v52  ;;  %5132 = vmatprep.subr.bf16.mxu0 %v7426_v53  ;;  %v4267_v61 = vpop.f32.mrf.mxu1  ;;  %v4368_v55 = vpop.f32.mrf.mxu0 }
 0x25d   :  { %5946 = vst [vmem:[%s11523_s5 + $0x388] sm:$0xff] %v4267_v61  ;;  %5948 = vst [vmem:[%s11523_s5 + $0x398] sm:$0xff] %v4368_v55  ;;  %v7465_v61 = vld [vmem:[%s11520_s4 + $0xef4] ss:$144 sps:$4 sm:$0xff]   ;;  %v7468_v55 = vld [vmem:[%s11520_s4 + $0xefc] ss:$144 sps:$4 sm:$0xff]  }
 0x25e   :  { %v4271_v4 = vpop.f32.mrf.mxu1  ;;  %v4372_v13 = vpop.f32.mrf.mxu0 }
 0x25f   :  { %5032 = vmatpush1.bf16.msra.mxu1 %v7421_v44  ;;  %5133 = vmatpush1.bf16.msra.mxu0 %v7424_v60  ;;  %5981 = vst [vmem:[%s11523_s5 + $0x4a0] sm:$0xff] %v4271_v4  ;;  %5983 = vst [vmem:[%s11523_s5 + $0x4b0] sm:$0xff] %v4372_v13  ;;  %v7463_v4 = vld [vmem:[%s11520_s4 + $0xef0] ss:$144 sps:$4 sm:$0xff]   ;;  %v7466_v13 = vld [vmem:[%s11520_s4 + $0xef8] ss:$144 sps:$4 sm:$0xff]  }
 0x260   :  { %5033 = vmatprep.subr.bf16.mxu1 %v7429_v63  ;;  %5134 = vmatprep.subr.bf16.mxu0 %v7432_v3  ;;  %v4273_v19 = vpop.f32.mrf.mxu1  ;;  %v4374_v5 = vpop.f32.mrf.mxu0 }
 0x261   :  { %4876 = vmatmul.mubr.bf16.gmra.mxu1 %v8364_v56  ;;  %4977 = vmatmul.mubr.bf16.gmra.mxu0 %v8364_v56  ;;  %5982 = vst [vmem:[%s11523_s5 + $0x4a8] sm:$0xff] %v4273_v19  ;;  %5984 = vst [vmem:[%s11523_s5 + $0x4b8] sm:$0xff] %v4374_v5  ;;  %v7471_v19 = vld [vmem:[%s11520_s4 + $0xdd4] ss:$144 sps:$4 sm:$0xff]   ;;  %v7474_v5 = vld [vmem:[%s11520_s4 + $0xddc] ss:$144 sps:$4 sm:$0xff]  }
 0x262   :  { %4885 = vmatprep.mubr.bf16.mxu1 %v8374_v30  ;;  %4986 = vmatprep.mubr.bf16.mxu0 %v8374_v30  ;;  %v4275_v32 = vpop.f32.mrf.mxu1  ;;  %v4376_v42 = vpop.f32.mrf.mxu0 }
 0x263   :  { %5034 = vmatpush1.bf16.msra.mxu1 %v7427_v18  ;;  %5135 = vmatpush1.bf16.msra.mxu0 %v7430_v57  ;;  %6017 = vst [vmem:[%s11523_s5 + $0x5c0] sm:$0xff] %v4275_v32  ;;  %6019 = vst [vmem:[%s11523_s5 + $0x5d0] sm:$0xff] %v4376_v42  ;;  %v7469_v32 = vld [vmem:[%s11520_s4 + $0xdd0] ss:$144 sps:$4 sm:$0xff]   ;;  %v7472_v42 = vld [vmem:[%s11520_s4 + $0xdd8] ss:$144 sps:$4 sm:$0xff]  }
 0x264   :  { %5035 = vmatprep.subr.bf16.mxu1 %v7435_v25  ;;  %5136 = vmatprep.subr.bf16.mxu0 %v7438_v27  ;;  %v4277_v8 = vpop.f32.mrf.mxu1  ;;  %v4378_v50 = vpop.f32.mrf.mxu0 }
 0x265   :  { %6018 = vst [vmem:[%s11523_s5 + $0x5c8] sm:$0xff] %v4277_v8  ;;  %6020 = vst [vmem:[%s11523_s5 + $0x5d8] sm:$0xff] %v4378_v50  ;;  %v7477_v8 = vld [vmem:[%s11520_s4 + $0xcb4] ss:$144 sps:$4 sm:$0xff]   ;;  %v7480_v50 = vld [vmem:[%s11520_s4 + $0xcbc] ss:$144 sps:$4 sm:$0xff]  }
 0x266   :  { %v4281_v10 = vpop.f32.mrf.mxu1  ;;  %v4382_v11 = vpop.f32.mrf.mxu0 }
 0x267   :  { %5036 = vmatpush1.bf16.msra.mxu1 %v7433_v37  ;;  %5137 = vmatpush1.bf16.msra.mxu0 %v7436_v58  ;;  %6053 = vst [vmem:[%s11523_s5 + $0x6e0] sm:$0xff] %v4281_v10  ;;  %6055 = vst [vmem:[%s11523_s5 + $0x6f0] sm:$0xff] %v4382_v11  ;;  %v7475_v10 = vld [vmem:[%s11520_s4 + $0xcb0] ss:$144 sps:$4 sm:$0xff]   ;;  %v7478_v11 = vld [vmem:[%s11520_s4 + $0xcb8] ss:$144 sps:$4 sm:$0xff]  }
 0x268   :  { %5037 = vmatprep.subr.bf16.mxu1 %v7441_v9  ;;  %5138 = vmatprep.subr.bf16.mxu0 %v7444_v51  ;;  %v4283_v20 = vpop.f32.mrf.mxu1  ;;  %v4384_v21 = vpop.f32.mrf.mxu0 }
 0x269   :  { %4886 = vmatmul.mubr.bf16.gmra.mxu1 %v8410_v29  ;;  %4987 = vmatmul.mubr.bf16.gmra.mxu0 %v8410_v29  ;;  %6054 = vst [vmem:[%s11523_s5 + $0x6e8] sm:$0xff] %v4283_v20  ;;  %6056 = vst [vmem:[%s11523_s5 + $0x6f8] sm:$0xff] %v4384_v21  ;;  %v7483_v20 = vld [vmem:[%s11520_s4 + $0xb94] ss:$144 sps:$4 sm:$0xff]   ;;  %v7486_v21 = vld [vmem:[%s11520_s4 + $0xb9c] ss:$144 sps:$4 sm:$0xff]  }
 0x26a   :  { %4895 = vmatprep.mubr.bf16.mxu1 %v8418_v22  ;;  %4996 = vmatprep.mubr.bf16.mxu0 %v8418_v22  ;;  %v4285_v35 = vpop.f32.mrf.mxu1  ;;  %v4386_v36 = vpop.f32.mrf.mxu0 }
 0x26b   :  { %5038 = vmatpush1.bf16.msra.mxu1 %v7439_v14  ;;  %5139 = vmatpush1.bf16.msra.mxu0 %v7442_v15  ;;  %6089 = vst [vmem:[%s11523_s5 + $0x800] sm:$0xff] %v4285_v35  ;;  %6091 = vst [vmem:[%s11523_s5 + $0x810] sm:$0xff] %v4386_v36  ;;  %v7481_v35 = vld [vmem:[%s11520_s4 + $0xb90] ss:$144 sps:$4 sm:$0xff]   ;;  %v7484_v36 = vld [vmem:[%s11520_s4 + $0xb98] ss:$144 sps:$4 sm:$0xff]  }
 0x26c   :  { %5039 = vmatprep.subr.bf16.mxu1 %v7447_v24  ;;  %5140 = vmatprep.subr.bf16.mxu0 %v7450_v26  ;;  %v4287_v38 = vpop.f32.mrf.mxu1  ;;  %v4388_v39 = vpop.f32.mrf.mxu0 }
 0x26d   :  { %6090 = vst [vmem:[%s11523_s5 + $0x808] sm:$0xff] %v4287_v38  ;;  %6092 = vst [vmem:[%s11523_s5 + $0x818] sm:$0xff] %v4388_v39  ;;  %v7489_v38 = vld [vmem:[%s11520_s4 + $0xa74] ss:$144 sps:$4 sm:$0xff]   ;;  %v7492_v39 = vld [vmem:[%s11520_s4 + $0xa7c] ss:$144 sps:$4 sm:$0xff]  }
 0x26e   :  { %v4291_v40 = vpop.f32.mrf.mxu1  ;;  %v4392_v0 = vpop.f32.mrf.mxu0 }
 0x26f   :  { %5040 = vmatpush1.bf16.msra.mxu1 %v7445_v34  ;;  %5141 = vmatpush1.bf16.msra.mxu0 %v7448_v28  ;;  %6125 = vst [vmem:[%s11523_s5 + $0x920] sm:$0xff] %v4291_v40  ;;  %6127 = vst [vmem:[%s11523_s5 + $0x930] sm:$0xff] %v4392_v0  ;;  %v7495_v40 = vld [vmem:[%s11520_s4 + $0x954] ss:$144 sps:$4 sm:$0xff]   ;;  %v7498_v0 = vld [vmem:[%s11520_s4 + $0x95c] ss:$144 sps:$4 sm:$0xff]  }
 0x270   :  { %5041 = vmatprep.subr.bf16.mxu1 %v7453_v31  ;;  %5142 = vmatprep.subr.bf16.mxu0 %v7456_v43  ;;  %v4293_v59 = vpop.f32.mrf.mxu1  ;;  %v4394_v33 = vpop.f32.mrf.mxu0  ;;  %v7487_v31 = vld [vmem:[%s11520_s4 + $0xa70] ss:$144 sps:$4 sm:$0xff]   ;;  %v7490_v43 = vld [vmem:[%s11520_s4 + $0xa78] ss:$144 sps:$4 sm:$0xff]  }
 0x271   :  { %4896 = vmatmul.mubr.bf16.gmra.mxu1 %v8447_v47  ;;  %4997 = vmatmul.mubr.bf16.gmra.mxu0 %v8447_v47  ;;  %6126 = vst [vmem:[%s11523_s5 + $0x928] sm:$0xff] %v4293_v59  ;;  %6128 = vst [vmem:[%s11523_s5 + $0x938] sm:$0xff] %v4394_v33  ;;  %v7501_v59 = vld [vmem:[%s11520_s4 + $0x844] ss:$144 sps:$4 sm:$0xff]   ;;  %v7504_v33 = vld [vmem:[%s11520_s4 + $0x84c] ss:$144 sps:$4 sm:$0xff]  }
 0x272   :  { %4905 = vmatprep.mubr.bf16.mxu1 %v8452_v16  ;;  %5006 = vmatprep.mubr.bf16.mxu0 %v8452_v16  ;;  %v4295_v52 = vpop.f32.mrf.mxu1  ;;  %v4396_v53 = vpop.f32.mrf.mxu0 }
 0x273   :  { %5042 = vmatpush2.bf16.msra.mxu1 %v7451_v6  ;;  %5143 = vmatpush2.bf16.msra.mxu0 %v7454_v45  ;;  %6161 = vst [vmem:[%s11523_s5 + $0xa40] sm:$0xff] %v4295_v52  ;;  %6163 = vst [vmem:[%s11523_s5 + $0xa50] sm:$0xff] %v4396_v53  ;;  %v7493_v6 = vld [vmem:[%s11520_s4 + $0x950] ss:$144 sps:$4 sm:$0xff]   ;;  %v7496_v45 = vld [vmem:[%s11520_s4 + $0x958] ss:$144 sps:$4 sm:$0xff]  }
 0x274   :  { %5043 = vmatprep.subr.bf16.mxu1 %v7459_v48  ;;  %5144 = vmatprep.subr.bf16.mxu0 %v7462_v49  ;;  %v4297_v44 = vpop.f32.mrf.mxu1  ;;  %v4398_v60 = vpop.f32.mrf.mxu0  ;;  %v7499_v52 = vld [vmem:[%s11520_s4 + $0x840] ss:$144 sps:$4 sm:$0xff]   ;;  %v7502_v53 = vld [vmem:[%s11520_s4 + $0x848] ss:$144 sps:$4 sm:$0xff]  }
 0x275   :  { %6162 = vst [vmem:[%s11523_s5 + $0xa48] sm:$0xff] %v4297_v44  ;;  %6164 = vst [vmem:[%s11523_s5 + $0xa58] sm:$0xff] %v4398_v60  ;;  %v7507_v44 = vld [vmem:[%s11520_s4 + $0x724] ss:$144 sps:$4 sm:$0xff]   ;;  %v7510_v60 = vld [vmem:[%s11520_s4 + $0x72c] ss:$144 sps:$4 sm:$0xff]  }
 0x276   :  { %v4301_v63 = vpop.f32.mrf.mxu1  ;;  %v4402_v3 = vpop.f32.mrf.mxu0 }
 0x277   :  { %5044 = vmatpush2.bf16.msra.mxu1 %v7457_v54  ;;  %5145 = vmatpush2.bf16.msra.mxu0 %v7460_v1  ;;  %6197 = vst [vmem:[%s11523_s5 + $0xb60] sm:$0xff] %v4301_v63  ;;  %6199 = vst [vmem:[%s11523_s5 + $0xb70] sm:$0xff] %v4402_v3  ;;  %v7505_v63 = vld [vmem:[%s11520_s4 + $0x720] ss:$144 sps:$4 sm:$0xff]   ;;  %v7508_v3 = vld [vmem:[%s11520_s4 + $0x728] ss:$144 sps:$4 sm:$0xff]  }
 0x278   :  { %5045 = vmatprep.subr.bf16.mxu1 %v7465_v61  ;;  %5146 = vmatprep.subr.bf16.mxu0 %v7468_v55  ;;  %v4303_v18 = vpop.f32.mrf.mxu1  ;;  %v4404_v57 = vpop.f32.mrf.mxu0 }
 0x279   :  { %4906 = vmatmul.mubr.bf16.gmra.mxu1 %v8273_v62  ;;  %5007 = vmatmul.mubr.bf16.gmra.mxu0 %v8273_v62  ;;  %6198 = vst [vmem:[%s11523_s5 + $0xb68] sm:$0xff] %v4303_v18  ;;  %6200 = vst [vmem:[%s11523_s5 + $0xb78] sm:$0xff] %v4404_v57  ;;  %v7513_v18 = vld [vmem:[%s11520_s4 + $0x604] ss:$144 sps:$4 sm:$0xff]   ;;  %v7516_v57 = vld [vmem:[%s11520_s4 + $0x60c] ss:$144 sps:$4 sm:$0xff]  }
 0x27a   :  { %4915 = vmatprep.mubr.bf16.mxu1 %v8482_v2  ;;  %5016 = vmatprep.mubr.bf16.mxu0 %v8482_v2  ;;  %v4305_v25 = vpop.f32.mrf.mxu1  ;;  %v4406_v27 = vpop.f32.mrf.mxu0 }
 0x27b   :  { %5046 = vmatpush2.bf16.msra.mxu1 %v7463_v4  ;;  %5147 = vmatpush2.bf16.msra.mxu0 %v7466_v13  ;;  %6233 = vst [vmem:[%s11523_s5 + $0xc80] sm:$0xff] %v4305_v25  ;;  %6235 = vst [vmem:[%s11523_s5 + $0xc90] sm:$0xff] %v4406_v27  ;;  %v7511_v25 = vld [vmem:[%s11520_s4 + $0x600] ss:$144 sps:$4 sm:$0xff]   ;;  %v7514_v27 = vld [vmem:[%s11520_s4 + $0x608] ss:$144 sps:$4 sm:$0xff]  }
 0x27c   :  { %5047 = vmatprep.subr.bf16.mxu1 %v7471_v19  ;;  %5148 = vmatprep.subr.bf16.mxu0 %v7474_v5  ;;  %v4307_v37 = vpop.f32.mrf.mxu1  ;;  %v4408_v58 = vpop.f32.mrf.mxu0 }
 0x27d   :  { %6234 = vst [vmem:[%s11523_s5 + $0xc88] sm:$0xff] %v4307_v37  ;;  %6236 = vst [vmem:[%s11523_s5 + $0xc98] sm:$0xff] %v4408_v58  ;;  %v7519_v37 = vld [vmem:[%s11520_s4 + $0x4e4] ss:$144 sps:$4 sm:$0xff]   ;;  %v7522_v58 = vld [vmem:[%s11520_s4 + $0x4ec] ss:$144 sps:$4 sm:$0xff]  }
 0x27e   :  { %v4311_v9 = vpop.f32.mrf.mxu1  ;;  %v4412_v51 = vpop.f32.mrf.mxu0 }
 0x27f   :  { %5048 = vmatpush2.bf16.msra.mxu1 %v7469_v32  ;;  %5149 = vmatpush2.bf16.msra.mxu0 %v7472_v42  ;;  %6269 = vst [vmem:[%s11523_s5 + $0xda0] sm:$0xff] %v4311_v9  ;;  %6271 = vst [vmem:[%s11523_s5 + $0xdb0] sm:$0xff] %v4412_v51  ;;  %v7517_v9 = vld [vmem:[%s11520_s4 + $0x4e0] ss:$144 sps:$4 sm:$0xff]   ;;  %v7520_v51 = vld [vmem:[%s11520_s4 + $0x4e8] ss:$144 sps:$4 sm:$0xff]  }
 0x280   :  { %5049 = vmatprep.subr.bf16.mxu1 %v7477_v8  ;;  %5150 = vmatprep.subr.bf16.mxu0 %v7480_v50  ;;  %v4313_v14 = vpop.f32.mrf.mxu1  ;;  %v4414_v15 = vpop.f32.mrf.mxu0 }
 0x281   :  { %4916 = vmatmul.mubr.bf16.gmra.mxu1 %v8512_v7  ;;  %5017 = vmatmul.mubr.bf16.gmra.mxu0 %v8512_v7  ;;  %6270 = vst [vmem:[%s11523_s5 + $0xda8] sm:$0xff] %v4313_v14  ;;  %6272 = vst [vmem:[%s11523_s5 + $0xdb8] sm:$0xff] %v4414_v15  ;;  %v7525_v14 = vld [vmem:[%s11520_s4 + $0x3c4] ss:$144 sps:$4 sm:$0xff]   ;;  %v7528_v15 = vld [vmem:[%s11520_s4 + $0x3cc] ss:$144 sps:$4 sm:$0xff]  }
 0x282   :  { %5057 = vmatprep.mubr.bf16.mxu1 %v8255_v46  ;;  %5158 = vmatprep.mubr.bf16.mxu0 %v8255_v46  ;;  %v4315_v24 = vpop.f32.mrf.mxu1  ;;  %v4416_v26 = vpop.f32.mrf.mxu0 }
 0x283   :  { %5050 = vmatpush2.bf16.msra.mxu1 %v7475_v10  ;;  %5151 = vmatpush2.bf16.msra.mxu0 %v7478_v11  ;;  %v7523_v24 = vld [vmem:[%s11520_s4 + $0x3c0] ss:$144 sps:$4 sm:$0xff]   ;;  %v7526_v26 = vld [vmem:[%s11520_s4 + $0x3c8] ss:$144 sps:$4 sm:$0xff]  }
 0x284   :  { %5051 = vmatprep.subr.bf16.mxu1 %v7483_v20  ;;  %5152 = vmatprep.subr.bf16.mxu0 %v7486_v21  ;;  %v4316_v34 = vpop.f32.mrf.mxu1  ;;  %v4417_v28 = vpop.f32.mrf.mxu0 }
 0x285   :  { %v7531_v34 = vld [vmem:[%s11520_s4 + $0x2a4] ss:$144 sps:$4 sm:$0xff]   ;;  %v7534_v28 = vld [vmem:[%s11520_s4 + $0x2ac] ss:$144 sps:$4 sm:$0xff]  }
 0x287   :  { %5052 = vmatpush2.bf16.msra.mxu1 %v7481_v35  ;;  %5153 = vmatpush2.bf16.msra.mxu0 %v7484_v36 }
 0x288   :  { %5053 = vmatprep.subr.bf16.mxu1 %v7489_v38  ;;  %5154 = vmatprep.subr.bf16.mxu0 %v7492_v39 }
 0x28b   :  { %5054 = vmatpush2.bf16.msra.mxu1 %v7487_v31  ;;  %5155 = vmatpush2.bf16.msra.mxu0 %v7490_v43  ;;  %v7529_v31 = vld [vmem:[%s11520_s4 + $0x2a0] ss:$144 sps:$4 sm:$0xff]   ;;  %v7532_v43 = vld [vmem:[%s11520_s4 + $0x2a8] ss:$144 sps:$4 sm:$0xff]  }
 0x28c   :  { %5055 = vmatprep.subr.bf16.mxu1 %v7495_v40  ;;  %5156 = vmatprep.subr.bf16.mxu0 %v7498_v0 }
 0x28f   :  { %5056 = vmatpush2.bf16.msra.mxu1 %v7493_v6  ;;  %5157 = vmatpush2.bf16.msra.mxu0 %v7496_v45  ;;  %v4453_v48 = vpop.f32.mrf.mxu1  ;;  %v4554_v49 = vpop.f32.mrf.mxu0  ;;  %v7537_v6 = vld [vmem:[%s11520_s4 + $0x184] ss:$144 sps:$4 sm:$0xff]   ;;  %v7540_v45 = vld [vmem:[%s11520_s4 + $0x18c] ss:$144 sps:$4 sm:$0xff]  }
 0x290   :  { %5841 = vst [vmem:[%s11523_s5 + $0x40] sm:$0xff] %v4453_v48  ;;  %5843 = vst [vmem:[%s11523_s5 + $0x50] sm:$0xff] %v4554_v49  ;;  %5227 = vmatprep.subr.bf16.mxu1 %v7501_v59  ;;  %5328 = vmatprep.subr.bf16.mxu0 %v7504_v33  ;;  %v7535_v48 = vld [vmem:[%s11520_s4 + $0x180] ss:$144 sps:$4 sm:$0xff]   ;;  %v7538_v49 = vld [vmem:[%s11520_s4 + $0x188] ss:$144 sps:$4 sm:$0xff]  }
 0x291   :  { %v4455_v54 = vpop.f32.mrf.mxu1  ;;  %v4556_v1 = vpop.f32.mrf.mxu0 }
 0x292   :  { %5058 = vmatmul.mubr.bf16.vlgmr.msra.gmra.mxu1 %v8253_v41  ;;  %5159 = vmatmul.mubr.bf16.vlgmr.msra.gmra.mxu0 %v8253_v41  ;;  %5842 = vst [vmem:[%s11523_s5 + $0x48] sm:$0xff] %v4455_v54  ;;  %5844 = vst [vmem:[%s11523_s5 + $0x58] sm:$0xff] %v4556_v1  ;;  %v7543_v54 = vld [vmem:[%s11520_s4 + $0x64] ss:$144 sps:$4 sm:$0xff]   ;;  %v7546_v1 = vld [vmem:[%s11520_s4 + $0x6c] ss:$144 sps:$4 sm:$0xff]  }
 0x293   :  { %5067 = vmatprep.mubr.bf16.mxu1 %v8282_v12  ;;  %5168 = vmatprep.mubr.bf16.mxu0 %v8282_v12  ;;  %v4457_v61 = vpop.f32.mrf.mxu1  ;;  %v4558_v55 = vpop.f32.mrf.mxu0 }
 0x294   :  { %5228 = vmatpush1.bf16.msra.mxu1 %v7499_v52  ;;  %5329 = vmatpush1.bf16.msra.mxu0 %v7502_v53  ;;  %5877 = vst [vmem:[%s11523_s5 + $0x160] sm:$0xff] %v4457_v61  ;;  %5879 = vst [vmem:[%s11523_s5 + $0x170] sm:$0xff] %v4558_v55  ;;  %v7541_v61 = vld [vmem:[%s11520_s4 + $0x60] ss:$144 sps:$4 sm:$0xff]   ;;  %v7544_v55 = vld [vmem:[%s11520_s4 + $0x68] ss:$144 sps:$4 sm:$0xff]  }
 0x295   :  { %5229 = vmatprep.subr.bf16.mxu1 %v7507_v44  ;;  %5330 = vmatprep.subr.bf16.mxu0 %v7510_v60  ;;  %v4459_v4 = vpop.f32.mrf.mxu1  ;;  %v4560_v13 = vpop.f32.mrf.mxu0 }
 0x296   :  { %5878 = vst [vmem:[%s11523_s5 + $0x168] sm:$0xff] %v4459_v4  ;;  %5880 = vst [vmem:[%s11523_s5 + $0x178] sm:$0xff] %v4560_v13  ;;  %v7549_v4 = vld [vmem:[%s11520_s4 + $0x1144] ss:$144 sps:$4 sm:$0xff]   ;;  %v7552_v13 = vld [vmem:[%s11520_s4 + $0x114c] ss:$144 sps:$4 sm:$0xff]  }
 0x297   :  { %v4463_v19 = vpop.f32.mrf.mxu1  ;;  %v4564_v5 = vpop.f32.mrf.mxu0 }
 0x298   :  { %5230 = vmatpush1.bf16.msra.mxu1 %v7505_v63  ;;  %5331 = vmatpush1.bf16.msra.mxu0 %v7508_v3  ;;  %5913 = vst [vmem:[%s11523_s5 + $0x280] sm:$0xff] %v4463_v19  ;;  %5915 = vst [vmem:[%s11523_s5 + $0x290] sm:$0xff] %v4564_v5  ;;  %v7547_v19 = vld [vmem:[%s11520_s4 + $0x1140] ss:$144 sps:$4 sm:$0xff]   ;;  %v7550_v5 = vld [vmem:[%s11520_s4 + $0x1148] ss:$144 sps:$4 sm:$0xff]  }
 0x299   :  { %5231 = vmatprep.subr.bf16.mxu1 %v7513_v18  ;;  %5332 = vmatprep.subr.bf16.mxu0 %v7516_v57  ;;  %v4465_v32 = vpop.f32.mrf.mxu1  ;;  %v4566_v42 = vpop.f32.mrf.mxu0 }
 0x29a   :  { %5068 = vmatmul.mubr.bf16.gmra.mxu1 %v8318_v17  ;;  %5169 = vmatmul.mubr.bf16.gmra.mxu0 %v8318_v17  ;;  %5914 = vst [vmem:[%s11523_s5 + $0x288] sm:$0xff] %v4465_v32  ;;  %5916 = vst [vmem:[%s11523_s5 + $0x298] sm:$0xff] %v4566_v42  ;;  %v7555_v32 = vld [vmem:[%s11520_s4 + $0x1024] ss:$144 sps:$4 sm:$0xff]   ;;  %v7558_v42 = vld [vmem:[%s11520_s4 + $0x102c] ss:$144 sps:$4 sm:$0xff]  }
 0x29b   :  { %5077 = vmatprep.mubr.bf16.mxu1 %v8328_v23  ;;  %5178 = vmatprep.mubr.bf16.mxu0 %v8328_v23  ;;  %v4467_v8 = vpop.f32.mrf.mxu1  ;;  %v4568_v50 = vpop.f32.mrf.mxu0 }
 0x29c   :  { %5232 = vmatpush1.bf16.msra.mxu1 %v7511_v25  ;;  %5333 = vmatpush1.bf16.msra.mxu0 %v7514_v27  ;;  %5949 = vst [vmem:[%s11523_s5 + $0x3a0] sm:$0xff] %v4467_v8  ;;  %5951 = vst [vmem:[%s11523_s5 + $0x3b0] sm:$0xff] %v4568_v50  ;;  %v7553_v8 = vld [vmem:[%s11520_s4 + $0x1020] ss:$144 sps:$4 sm:$0xff]   ;;  %v7556_v50 = vld [vmem:[%s11520_s4 + $0x1028] ss:$144 sps:$4 sm:$0xff]  }
 0x29d   :  { %5233 = vmatprep.subr.bf16.mxu1 %v7519_v37  ;;  %5334 = vmatprep.subr.bf16.mxu0 %v7522_v58  ;;  %v4469_v10 = vpop.f32.mrf.mxu1  ;;  %v4570_v11 = vpop.f32.mrf.mxu0 }
 0x29e   :  { %5950 = vst [vmem:[%s11523_s5 + $0x3a8] sm:$0xff] %v4469_v10  ;;  %5952 = vst [vmem:[%s11523_s5 + $0x3b8] sm:$0xff] %v4570_v11  ;;  %v7561_v10 = vld [vmem:[%s11520_s4 + $0xf04] ss:$144 sps:$4 sm:$0xff]   ;;  %v7564_v11 = vld [vmem:[%s11520_s4 + $0xf0c] ss:$144 sps:$4 sm:$0xff]  }
 0x29f   :  { %v4473_v20 = vpop.f32.mrf.mxu1  ;;  %v4574_v21 = vpop.f32.mrf.mxu0 }
 0x2a0   :  { %5234 = vmatpush1.bf16.msra.mxu1 %v7517_v9  ;;  %5335 = vmatpush1.bf16.msra.mxu0 %v7520_v51  ;;  %5985 = vst [vmem:[%s11523_s5 + $0x4c0] sm:$0xff] %v4473_v20  ;;  %5987 = vst [vmem:[%s11523_s5 + $0x4d0] sm:$0xff] %v4574_v21  ;;  %v7559_v20 = vld [vmem:[%s11520_s4 + $0xf00] ss:$144 sps:$4 sm:$0xff]   ;;  %v7562_v21 = vld [vmem:[%s11520_s4 + $0xf08] ss:$144 sps:$4 sm:$0xff]  }
 0x2a1   :  { %5235 = vmatprep.subr.bf16.mxu1 %v7525_v14  ;;  %5336 = vmatprep.subr.bf16.mxu0 %v7528_v15  ;;  %v4475_v35 = vpop.f32.mrf.mxu1  ;;  %v4576_v36 = vpop.f32.mrf.mxu0 }
 0x2a2   :  { %5078 = vmatmul.mubr.bf16.gmra.mxu1 %v8364_v56  ;;  %5179 = vmatmul.mubr.bf16.gmra.mxu0 %v8364_v56  ;;  %5986 = vst [vmem:[%s11523_s5 + $0x4c8] sm:$0xff] %v4475_v35  ;;  %5988 = vst [vmem:[%s11523_s5 + $0x4d8] sm:$0xff] %v4576_v36  ;;  %v7567_v35 = vld [vmem:[%s11520_s4 + $0xde4] ss:$144 sps:$4 sm:$0xff]   ;;  %v7570_v36 = vld [vmem:[%s11520_s4 + $0xdec] ss:$144 sps:$4 sm:$0xff]  }
 0x2a3   :  { %5087 = vmatprep.mubr.bf16.mxu1 %v8374_v30  ;;  %5188 = vmatprep.mubr.bf16.mxu0 %v8374_v30  ;;  %v4477_v38 = vpop.f32.mrf.mxu1  ;;  %v4578_v39 = vpop.f32.mrf.mxu0 }
 0x2a4   :  { %5236 = vmatpush1.bf16.msra.mxu1 %v7523_v24  ;;  %5337 = vmatpush1.bf16.msra.mxu0 %v7526_v26  ;;  %6021 = vst [vmem:[%s11523_s5 + $0x5e0] sm:$0xff] %v4477_v38  ;;  %6023 = vst [vmem:[%s11523_s5 + $0x5f0] sm:$0xff] %v4578_v39  ;;  %v7565_v38 = vld [vmem:[%s11520_s4 + $0xde0] ss:$144 sps:$4 sm:$0xff]   ;;  %v7568_v39 = vld [vmem:[%s11520_s4 + $0xde8] ss:$144 sps:$4 sm:$0xff]  }
 0x2a5   :  { %5237 = vmatprep.subr.bf16.mxu1 %v7531_v34  ;;  %5338 = vmatprep.subr.bf16.mxu0 %v7534_v28  ;;  %v4479_v40 = vpop.f32.mrf.mxu1  ;;  %v4580_v0 = vpop.f32.mrf.mxu0 }
 0x2a6   :  { %6022 = vst [vmem:[%s11523_s5 + $0x5e8] sm:$0xff] %v4479_v40  ;;  %6024 = vst [vmem:[%s11523_s5 + $0x5f8] sm:$0xff] %v4580_v0  ;;  %v7573_v40 = vld [vmem:[%s11520_s4 + $0xcc4] ss:$144 sps:$4 sm:$0xff]   ;;  %v7576_v0 = vld [vmem:[%s11520_s4 + $0xccc] ss:$144 sps:$4 sm:$0xff]  }
 0x2a7   :  { %v4483_v59 = vpop.f32.mrf.mxu1  ;;  %v4584_v33 = vpop.f32.mrf.mxu0 }
 0x2a8   :  { %5238 = vmatpush1.bf16.msra.mxu1 %v7529_v31  ;;  %5339 = vmatpush1.bf16.msra.mxu0 %v7532_v43  ;;  %6057 = vst [vmem:[%s11523_s5 + $0x700] sm:$0xff] %v4483_v59  ;;  %6059 = vst [vmem:[%s11523_s5 + $0x710] sm:$0xff] %v4584_v33  ;;  %v7571_v59 = vld [vmem:[%s11520_s4 + $0xcc0] ss:$144 sps:$4 sm:$0xff]   ;;  %v7574_v33 = vld [vmem:[%s11520_s4 + $0xcc8] ss:$144 sps:$4 sm:$0xff]  }
 0x2a9   :  { %5239 = vmatprep.subr.bf16.mxu1 %v7537_v6  ;;  %5340 = vmatprep.subr.bf16.mxu0 %v7540_v45  ;;  %v4485_v52 = vpop.f32.mrf.mxu1  ;;  %v4586_v53 = vpop.f32.mrf.mxu0 }
 0x2aa   :  { %5088 = vmatmul.mubr.bf16.gmra.mxu1 %v8410_v29  ;;  %5189 = vmatmul.mubr.bf16.gmra.mxu0 %v8410_v29  ;;  %6058 = vst [vmem:[%s11523_s5 + $0x708] sm:$0xff] %v4485_v52  ;;  %6060 = vst [vmem:[%s11523_s5 + $0x718] sm:$0xff] %v4586_v53  ;;  %v7579_v52 = vld [vmem:[%s11520_s4 + $0xba4] ss:$144 sps:$4 sm:$0xff]   ;;  %v7582_v53 = vld [vmem:[%s11520_s4 + $0xbac] ss:$144 sps:$4 sm:$0xff]  }
 0x2ab   :  { %5097 = vmatprep.mubr.bf16.mxu1 %v8418_v22  ;;  %5198 = vmatprep.mubr.bf16.mxu0 %v8418_v22  ;;  %v4487_v44 = vpop.f32.mrf.mxu1  ;;  %v4588_v60 = vpop.f32.mrf.mxu0 }
 0x2ac   :  { %5240 = vmatpush1.bf16.msra.mxu1 %v7535_v48  ;;  %5341 = vmatpush1.bf16.msra.mxu0 %v7538_v49  ;;  %6093 = vst [vmem:[%s11523_s5 + $0x820] sm:$0xff] %v4487_v44  ;;  %6095 = vst [vmem:[%s11523_s5 + $0x830] sm:$0xff] %v4588_v60  ;;  %v7577_v44 = vld [vmem:[%s11520_s4 + $0xba0] ss:$144 sps:$4 sm:$0xff]   ;;  %v7580_v60 = vld [vmem:[%s11520_s4 + $0xba8] ss:$144 sps:$4 sm:$0xff]  }
 0x2ad   :  { %5241 = vmatprep.subr.bf16.mxu1 %v7543_v54  ;;  %5342 = vmatprep.subr.bf16.mxu0 %v7546_v1  ;;  %v4489_v63 = vpop.f32.mrf.mxu1  ;;  %v4590_v3 = vpop.f32.mrf.mxu0 }
 0x2ae   :  { %6094 = vst [vmem:[%s11523_s5 + $0x828] sm:$0xff] %v4489_v63  ;;  %6096 = vst [vmem:[%s11523_s5 + $0x838] sm:$0xff] %v4590_v3  ;;  %v7585_v63 = vld [vmem:[%s11520_s4 + $0xa84] ss:$144 sps:$4 sm:$0xff]   ;;  %v7588_v3 = vld [vmem:[%s11520_s4 + $0xa8c] ss:$144 sps:$4 sm:$0xff]  }
 0x2af   :  { %v4493_v18 = vpop.f32.mrf.mxu1  ;;  %v4594_v57 = vpop.f32.mrf.mxu0 }
 0x2b0   :  { %5242 = vmatpush1.bf16.msra.mxu1 %v7541_v61  ;;  %5343 = vmatpush1.bf16.msra.mxu0 %v7544_v55  ;;  %6129 = vst [vmem:[%s11523_s5 + $0x940] sm:$0xff] %v4493_v18  ;;  %6131 = vst [vmem:[%s11523_s5 + $0x950] sm:$0xff] %v4594_v57  ;;  %v7591_v18 = vld [vmem:[%s11520_s4 + $0x964] ss:$144 sps:$4 sm:$0xff]   ;;  %v7594_v57 = vld [vmem:[%s11520_s4 + $0x96c] ss:$144 sps:$4 sm:$0xff]  }
 0x2b1   :  { %5243 = vmatprep.subr.bf16.mxu1 %v7549_v4  ;;  %5344 = vmatprep.subr.bf16.mxu0 %v7552_v13  ;;  %v4495_v25 = vpop.f32.mrf.mxu1  ;;  %v4596_v27 = vpop.f32.mrf.mxu0  ;;  %v7583_v4 = vld [vmem:[%s11520_s4 + $0xa80] ss:$144 sps:$4 sm:$0xff]   ;;  %v7586_v13 = vld [vmem:[%s11520_s4 + $0xa88] ss:$144 sps:$4 sm:$0xff]  }
 0x2b2   :  { %5098 = vmatmul.mubr.bf16.gmra.mxu1 %v8447_v47  ;;  %5199 = vmatmul.mubr.bf16.gmra.mxu0 %v8447_v47  ;;  %6130 = vst [vmem:[%s11523_s5 + $0x948] sm:$0xff] %v4495_v25  ;;  %6132 = vst [vmem:[%s11523_s5 + $0x958] sm:$0xff] %v4596_v27  ;;  %v7597_v25 = vld [vmem:[%s11520_s4 + $0x854] ss:$144 sps:$4 sm:$0xff]   ;;  %v7600_v27 = vld [vmem:[%s11520_s4 + $0x85c] ss:$144 sps:$4 sm:$0xff]  }
 0x2b3   :  { %5107 = vmatprep.mubr.bf16.mxu1 %v8452_v16  ;;  %5208 = vmatprep.mubr.bf16.mxu0 %v8452_v16  ;;  %v4497_v37 = vpop.f32.mrf.mxu1  ;;  %v4598_v58 = vpop.f32.mrf.mxu0 }
 0x2b4   :  { %5244 = vmatpush2.bf16.msra.mxu1 %v7547_v19  ;;  %5345 = vmatpush2.bf16.msra.mxu0 %v7550_v5  ;;  %6165 = vst [vmem:[%s11523_s5 + $0xa60] sm:$0xff] %v4497_v37  ;;  %6167 = vst [vmem:[%s11523_s5 + $0xa70] sm:$0xff] %v4598_v58  ;;  %v7589_v19 = vld [vmem:[%s11520_s4 + $0x960] ss:$144 sps:$4 sm:$0xff]   ;;  %v7592_v5 = vld [vmem:[%s11520_s4 + $0x968] ss:$144 sps:$4 sm:$0xff]  }
 0x2b5   :  { %5245 = vmatprep.subr.bf16.mxu1 %v7555_v32  ;;  %5346 = vmatprep.subr.bf16.mxu0 %v7558_v42  ;;  %v4499_v9 = vpop.f32.mrf.mxu1  ;;  %v4600_v51 = vpop.f32.mrf.mxu0  ;;  %v7595_v37 = vld [vmem:[%s11520_s4 + $0x850] ss:$144 sps:$4 sm:$0xff]   ;;  %v7598_v58 = vld [vmem:[%s11520_s4 + $0x858] ss:$144 sps:$4 sm:$0xff]  }
 0x2b6   :  { %6166 = vst [vmem:[%s11523_s5 + $0xa68] sm:$0xff] %v4499_v9  ;;  %6168 = vst [vmem:[%s11523_s5 + $0xa78] sm:$0xff] %v4600_v51  ;;  %v7603_v9 = vld [vmem:[%s11520_s4 + $0x734] ss:$144 sps:$4 sm:$0xff]   ;;  %v7606_v51 = vld [vmem:[%s11520_s4 + $0x73c] ss:$144 sps:$4 sm:$0xff]  }
 0x2b7   :  { %v4503_v14 = vpop.f32.mrf.mxu1  ;;  %v4604_v15 = vpop.f32.mrf.mxu0 }
 0x2b8   :  { %5246 = vmatpush2.bf16.msra.mxu1 %v7553_v8  ;;  %5347 = vmatpush2.bf16.msra.mxu0 %v7556_v50  ;;  %6201 = vst [vmem:[%s11523_s5 + $0xb80] sm:$0xff] %v4503_v14  ;;  %6203 = vst [vmem:[%s11523_s5 + $0xb90] sm:$0xff] %v4604_v15  ;;  %v7601_v14 = vld [vmem:[%s11520_s4 + $0x730] ss:$144 sps:$4 sm:$0xff]   ;;  %v7604_v15 = vld [vmem:[%s11520_s4 + $0x738] ss:$144 sps:$4 sm:$0xff]  }
 0x2b9   :  { %5247 = vmatprep.subr.bf16.mxu1 %v7561_v10  ;;  %5348 = vmatprep.subr.bf16.mxu0 %v7564_v11  ;;  %v4505_v24 = vpop.f32.mrf.mxu1  ;;  %v4606_v26 = vpop.f32.mrf.mxu0 }
 0x2ba   :  { %5108 = vmatmul.mubr.bf16.gmra.mxu1 %v8273_v62  ;;  %5209 = vmatmul.mubr.bf16.gmra.mxu0 %v8273_v62  ;;  %6202 = vst [vmem:[%s11523_s5 + $0xb88] sm:$0xff] %v4505_v24  ;;  %6204 = vst [vmem:[%s11523_s5 + $0xb98] sm:$0xff] %v4606_v26  ;;  %v7609_v24 = vld [vmem:[%s11520_s4 + $0x614] ss:$144 sps:$4 sm:$0xff]   ;;  %v7612_v26 = vld [vmem:[%s11520_s4 + $0x61c] ss:$144 sps:$4 sm:$0xff]  }
 0x2bb   :  { %5117 = vmatprep.mubr.bf16.mxu1 %v8482_v2  ;;  %5218 = vmatprep.mubr.bf16.mxu0 %v8482_v2  ;;  %v4507_v34 = vpop.f32.mrf.mxu1  ;;  %v4608_v28 = vpop.f32.mrf.mxu0 }
 0x2bc   :  { %5248 = vmatpush2.bf16.msra.mxu1 %v7559_v20  ;;  %5349 = vmatpush2.bf16.msra.mxu0 %v7562_v21  ;;  %6237 = vst [vmem:[%s11523_s5 + $0xca0] sm:$0xff] %v4507_v34  ;;  %6239 = vst [vmem:[%s11523_s5 + $0xcb0] sm:$0xff] %v4608_v28  ;;  %v7607_v34 = vld [vmem:[%s11520_s4 + $0x610] ss:$144 sps:$4 sm:$0xff]   ;;  %v7610_v28 = vld [vmem:[%s11520_s4 + $0x618] ss:$144 sps:$4 sm:$0xff]  }
 0x2bd   :  { %5249 = vmatprep.subr.bf16.mxu1 %v7567_v35  ;;  %5350 = vmatprep.subr.bf16.mxu0 %v7570_v36  ;;  %v4509_v31 = vpop.f32.mrf.mxu1  ;;  %v4610_v43 = vpop.f32.mrf.mxu0 }
 0x2be   :  { %6238 = vst [vmem:[%s11523_s5 + $0xca8] sm:$0xff] %v4509_v31  ;;  %6240 = vst [vmem:[%s11523_s5 + $0xcb8] sm:$0xff] %v4610_v43  ;;  %v7615_v31 = vld [vmem:[%s11520_s4 + $0x4f4] ss:$144 sps:$4 sm:$0xff]   ;;  %v7618_v43 = vld [vmem:[%s11520_s4 + $0x4fc] ss:$144 sps:$4 sm:$0xff]  }
 0x2bf   :  { %v4513_v6 = vpop.f32.mrf.mxu1  ;;  %v4614_v45 = vpop.f32.mrf.mxu0 }
 0x2c0   :  { %5250 = vmatpush2.bf16.msra.mxu1 %v7565_v38  ;;  %5351 = vmatpush2.bf16.msra.mxu0 %v7568_v39  ;;  %6273 = vst [vmem:[%s11523_s5 + $0xdc0] sm:$0xff] %v4513_v6  ;;  %6275 = vst [vmem:[%s11523_s5 + $0xdd0] sm:$0xff] %v4614_v45  ;;  %v7613_v6 = vld [vmem:[%s11520_s4 + $0x4f0] ss:$144 sps:$4 sm:$0xff]   ;;  %v7616_v45 = vld [vmem:[%s11520_s4 + $0x4f8] ss:$144 sps:$4 sm:$0xff]  }
 0x2c1   :  { %5251 = vmatprep.subr.bf16.mxu1 %v7573_v40  ;;  %5352 = vmatprep.subr.bf16.mxu0 %v7576_v0  ;;  %v4515_v48 = vpop.f32.mrf.mxu1  ;;  %v4616_v49 = vpop.f32.mrf.mxu0 }
 0x2c2   :  { %5118 = vmatmul.mubr.bf16.gmra.mxu1 %v8512_v7  ;;  %5219 = vmatmul.mubr.bf16.gmra.mxu0 %v8512_v7  ;;  %6274 = vst [vmem:[%s11523_s5 + $0xdc8] sm:$0xff] %v4515_v48  ;;  %6276 = vst [vmem:[%s11523_s5 + $0xdd8] sm:$0xff] %v4616_v49  ;;  %v7621_v48 = vld [vmem:[%s11520_s4 + $0x3d4] ss:$144 sps:$4 sm:$0xff]   ;;  %v7624_v49 = vld [vmem:[%s11520_s4 + $0x3dc] ss:$144 sps:$4 sm:$0xff]  }
 0x2c3   :  { %5259 = vmatprep.mubr.bf16.mxu1 %v8255_v46  ;;  %5360 = vmatprep.mubr.bf16.mxu0 %v8255_v46  ;;  %v4517_v54 = vpop.f32.mrf.mxu1  ;;  %v4618_v1 = vpop.f32.mrf.mxu0 }
 0x2c4   :  { %5252 = vmatpush2.bf16.msra.mxu1 %v7571_v59  ;;  %5353 = vmatpush2.bf16.msra.mxu0 %v7574_v33  ;;  %v7619_v54 = vld [vmem:[%s11520_s4 + $0x3d0] ss:$144 sps:$4 sm:$0xff]   ;;  %v7622_v1 = vld [vmem:[%s11520_s4 + $0x3d8] ss:$144 sps:$4 sm:$0xff]  }
 0x2c5   :  { %5253 = vmatprep.subr.bf16.mxu1 %v7579_v52  ;;  %5354 = vmatprep.subr.bf16.mxu0 %v7582_v53  ;;  %v4518_v61 = vpop.f32.mrf.mxu1  ;;  %v4619_v55 = vpop.f32.mrf.mxu0 }
 0x2c6   :  { %v7627_v61 = vld [vmem:[%s11520_s4 + $0x2b4] ss:$144 sps:$4 sm:$0xff]   ;;  %v7630_v55 = vld [vmem:[%s11520_s4 + $0x2bc] ss:$144 sps:$4 sm:$0xff]  }
 0x2c8   :  { %5254 = vmatpush2.bf16.msra.mxu1 %v7577_v44  ;;  %5355 = vmatpush2.bf16.msra.mxu0 %v7580_v60 }
 0x2c9   :  { %5255 = vmatprep.subr.bf16.mxu1 %v7585_v63  ;;  %5356 = vmatprep.subr.bf16.mxu0 %v7588_v3 }
 0x2cc   :  { %5256 = vmatpush2.bf16.msra.mxu1 %v7583_v4  ;;  %5357 = vmatpush2.bf16.msra.mxu0 %v7586_v13  ;;  %v7625_v4 = vld [vmem:[%s11520_s4 + $0x2b0] ss:$144 sps:$4 sm:$0xff]   ;;  %v7628_v13 = vld [vmem:[%s11520_s4 + $0x2b8] ss:$144 sps:$4 sm:$0xff]  }
 0x2cd   :  { %5257 = vmatprep.subr.bf16.mxu1 %v7591_v18  ;;  %5358 = vmatprep.subr.bf16.mxu0 %v7594_v57 }
 0x2d0   :  { %5258 = vmatpush2.bf16.msra.mxu1 %v7589_v19  ;;  %5359 = vmatpush2.bf16.msra.mxu0 %v7592_v5  ;;  %v4655_v32 = vpop.f32.mrf.mxu1  ;;  %v4756_v42 = vpop.f32.mrf.mxu0  ;;  %v7633_v19 = vld [vmem:[%s11520_s4 + $0x194] ss:$144 sps:$4 sm:$0xff]   ;;  %v7636_v5 = vld [vmem:[%s11520_s4 + $0x19c] ss:$144 sps:$4 sm:$0xff]  }
 0x2d1   :  { %5845 = vst [vmem:[%s11523_s5 + $0x60] sm:$0xff] %v4655_v32  ;;  %5847 = vst [vmem:[%s11523_s5 + $0x70] sm:$0xff] %v4756_v42  ;;  %5429 = vmatprep.subr.bf16.mxu1 %v7597_v25  ;;  %5530 = vmatprep.subr.bf16.mxu0 %v7600_v27  ;;  %v7631_v32 = vld [vmem:[%s11520_s4 + $0x190] ss:$144 sps:$4 sm:$0xff]   ;;  %v7634_v42 = vld [vmem:[%s11520_s4 + $0x198] ss:$144 sps:$4 sm:$0xff]  }
 0x2d2   :  { %v4657_v8 = vpop.f32.mrf.mxu1  ;;  %v4758_v50 = vpop.f32.mrf.mxu0 }
 0x2d3   :  { %5260 = vmatmul.mubr.bf16.vlgmr.msra.gmra.mxu1 %v8253_v41  ;;  %5361 = vmatmul.mubr.bf16.vlgmr.msra.gmra.mxu0 %v8253_v41  ;;  %5846 = vst [vmem:[%s11523_s5 + $0x68] sm:$0xff] %v4657_v8  ;;  %5848 = vst [vmem:[%s11523_s5 + $0x78] sm:$0xff] %v4758_v50  ;;  %v7639_v8 = vld [vmem:[%s11520_s4 + $0x74] ss:$144 sps:$4 sm:$0xff]   ;;  %v7642_v50 = vld [vmem:[%s11520_s4 + $0x7c] ss:$144 sps:$4 sm:$0xff]  }
 0x2d4   :  { %5269 = vmatprep.mubr.bf16.mxu1 %v8282_v12  ;;  %5370 = vmatprep.mubr.bf16.mxu0 %v8282_v12  ;;  %v4659_v10 = vpop.f32.mrf.mxu1  ;;  %v4760_v11 = vpop.f32.mrf.mxu0 }
 0x2d5   :  { %5430 = vmatpush1.bf16.msra.mxu1 %v7595_v37  ;;  %5531 = vmatpush1.bf16.msra.mxu0 %v7598_v58  ;;  %5881 = vst [vmem:[%s11523_s5 + $0x180] sm:$0xff] %v4659_v10  ;;  %5883 = vst [vmem:[%s11523_s5 + $0x190] sm:$0xff] %v4760_v11  ;;  %v7637_v10 = vld [vmem:[%s11520_s4 + $0x70] ss:$144 sps:$4 sm:$0xff]   ;;  %v7640_v11 = vld [vmem:[%s11520_s4 + $0x78] ss:$144 sps:$4 sm:$0xff]  }
 0x2d6   :  { %5431 = vmatprep.subr.bf16.mxu1 %v7603_v9  ;;  %5532 = vmatprep.subr.bf16.mxu0 %v7606_v51  ;;  %v4661_v20 = vpop.f32.mrf.mxu1  ;;  %v4762_v21 = vpop.f32.mrf.mxu0 }
 0x2d7   :  { %5882 = vst [vmem:[%s11523_s5 + $0x188] sm:$0xff] %v4661_v20  ;;  %5884 = vst [vmem:[%s11523_s5 + $0x198] sm:$0xff] %v4762_v21  ;;  %v7645_v20 = vld [vmem:[%s11520_s4 + $0x1154] ss:$144 sps:$4 sm:$0xff]   ;;  %v7648_v21 = vld [vmem:[%s11520_s4 + $0x115c] ss:$144 sps:$4 sm:$0xff]  }
 0x2d8   :  { %v4665_v35 = vpop.f32.mrf.mxu1  ;;  %v4766_v36 = vpop.f32.mrf.mxu0 }
 0x2d9   :  { %5432 = vmatpush1.bf16.msra.mxu1 %v7601_v14  ;;  %5533 = vmatpush1.bf16.msra.mxu0 %v7604_v15  ;;  %5917 = vst [vmem:[%s11523_s5 + $0x2a0] sm:$0xff] %v4665_v35  ;;  %5919 = vst [vmem:[%s11523_s5 + $0x2b0] sm:$0xff] %v4766_v36  ;;  %v7643_v35 = vld [vmem:[%s11520_s4 + $0x1150] ss:$144 sps:$4 sm:$0xff]   ;;  %v7646_v36 = vld [vmem:[%s11520_s4 + $0x1158] ss:$144 sps:$4 sm:$0xff]  }
 0x2da   :  { %5433 = vmatprep.subr.bf16.mxu1 %v7609_v24  ;;  %5534 = vmatprep.subr.bf16.mxu0 %v7612_v26  ;;  %v4667_v38 = vpop.f32.mrf.mxu1  ;;  %v4768_v39 = vpop.f32.mrf.mxu0 }
 0x2db   :  { %5270 = vmatmul.mubr.bf16.gmra.mxu1 %v8318_v17  ;;  %5371 = vmatmul.mubr.bf16.gmra.mxu0 %v8318_v17  ;;  %5918 = vst [vmem:[%s11523_s5 + $0x2a8] sm:$0xff] %v4667_v38  ;;  %5920 = vst [vmem:[%s11523_s5 + $0x2b8] sm:$0xff] %v4768_v39  ;;  %v7651_v38 = vld [vmem:[%s11520_s4 + $0x1034] ss:$144 sps:$4 sm:$0xff]   ;;  %v7654_v39 = vld [vmem:[%s11520_s4 + $0x103c] ss:$144 sps:$4 sm:$0xff]  }
 0x2dc   :  { %5279 = vmatprep.mubr.bf16.mxu1 %v8328_v23  ;;  %5380 = vmatprep.mubr.bf16.mxu0 %v8328_v23  ;;  %v4669_v40 = vpop.f32.mrf.mxu1  ;;  %v4770_v0 = vpop.f32.mrf.mxu0 }
 0x2dd   :  { %5434 = vmatpush1.bf16.msra.mxu1 %v7607_v34  ;;  %5535 = vmatpush1.bf16.msra.mxu0 %v7610_v28  ;;  %5953 = vst [vmem:[%s11523_s5 + $0x3c0] sm:$0xff] %v4669_v40  ;;  %5955 = vst [vmem:[%s11523_s5 + $0x3d0] sm:$0xff] %v4770_v0  ;;  %v7649_v40 = vld [vmem:[%s11520_s4 + $0x1030] ss:$144 sps:$4 sm:$0xff]   ;;  %v7652_v0 = vld [vmem:[%s11520_s4 + $0x1038] ss:$144 sps:$4 sm:$0xff]  }
 0x2de   :  { %5435 = vmatprep.subr.bf16.mxu1 %v7615_v31  ;;  %5536 = vmatprep.subr.bf16.mxu0 %v7618_v43  ;;  %v4671_v59 = vpop.f32.mrf.mxu1  ;;  %v4772_v33 = vpop.f32.mrf.mxu0 }
 0x2df   :  { %5954 = vst [vmem:[%s11523_s5 + $0x3c8] sm:$0xff] %v4671_v59  ;;  %5956 = vst [vmem:[%s11523_s5 + $0x3d8] sm:$0xff] %v4772_v33  ;;  %v7657_v59 = vld [vmem:[%s11520_s4 + $0xf14] ss:$144 sps:$4 sm:$0xff]   ;;  %v7660_v33 = vld [vmem:[%s11520_s4 + $0xf1c] ss:$144 sps:$4 sm:$0xff]  }
 0x2e0   :  { %v4675_v52 = vpop.f32.mrf.mxu1  ;;  %v4776_v53 = vpop.f32.mrf.mxu0 }
 0x2e1   :  { %5436 = vmatpush1.bf16.msra.mxu1 %v7613_v6  ;;  %5537 = vmatpush1.bf16.msra.mxu0 %v7616_v45  ;;  %5989 = vst [vmem:[%s11523_s5 + $0x4e0] sm:$0xff] %v4675_v52  ;;  %5991 = vst [vmem:[%s11523_s5 + $0x4f0] sm:$0xff] %v4776_v53  ;;  %v7655_v52 = vld [vmem:[%s11520_s4 + $0xf10] ss:$144 sps:$4 sm:$0xff]   ;;  %v7658_v53 = vld [vmem:[%s11520_s4 + $0xf18] ss:$144 sps:$4 sm:$0xff]  }
 0x2e2   :  { %5437 = vmatprep.subr.bf16.mxu1 %v7621_v48  ;;  %5538 = vmatprep.subr.bf16.mxu0 %v7624_v49  ;;  %v4677_v44 = vpop.f32.mrf.mxu1  ;;  %v4778_v60 = vpop.f32.mrf.mxu0 }
 0x2e3   :  { %5280 = vmatmul.mubr.bf16.gmra.mxu1 %v8364_v56  ;;  %5381 = vmatmul.mubr.bf16.gmra.mxu0 %v8364_v56  ;;  %5990 = vst [vmem:[%s11523_s5 + $0x4e8] sm:$0xff] %v4677_v44  ;;  %5992 = vst [vmem:[%s11523_s5 + $0x4f8] sm:$0xff] %v4778_v60  ;;  %v7663_v44 = vld [vmem:[%s11520_s4 + $0xdf4] ss:$144 sps:$4 sm:$0xff]   ;;  %v7666_v60 = vld [vmem:[%s11520_s4 + $0xdfc] ss:$144 sps:$4 sm:$0xff]  }
 0x2e4   :  { %5289 = vmatprep.mubr.bf16.mxu1 %v8374_v30  ;;  %5390 = vmatprep.mubr.bf16.mxu0 %v8374_v30  ;;  %v4679_v63 = vpop.f32.mrf.mxu1  ;;  %v4780_v3 = vpop.f32.mrf.mxu0 }
 0x2e5   :  { %5438 = vmatpush1.bf16.msra.mxu1 %v7619_v54  ;;  %5539 = vmatpush1.bf16.msra.mxu0 %v7622_v1  ;;  %6025 = vst [vmem:[%s11523_s5 + $0x600] sm:$0xff] %v4679_v63  ;;  %6027 = vst [vmem:[%s11523_s5 + $0x610] sm:$0xff] %v4780_v3  ;;  %v7661_v63 = vld [vmem:[%s11520_s4 + $0xdf0] ss:$144 sps:$4 sm:$0xff]   ;;  %v7664_v3 = vld [vmem:[%s11520_s4 + $0xdf8] ss:$144 sps:$4 sm:$0xff]  }
 0x2e6   :  { %5439 = vmatprep.subr.bf16.mxu1 %v7627_v61  ;;  %5540 = vmatprep.subr.bf16.mxu0 %v7630_v55  ;;  %v4681_v18 = vpop.f32.mrf.mxu1  ;;  %v4782_v57 = vpop.f32.mrf.mxu0 }
 0x2e7   :  { %6026 = vst [vmem:[%s11523_s5 + $0x608] sm:$0xff] %v4681_v18  ;;  %6028 = vst [vmem:[%s11523_s5 + $0x618] sm:$0xff] %v4782_v57  ;;  %v7669_v18 = vld [vmem:[%s11520_s4 + $0xcd4] ss:$144 sps:$4 sm:$0xff]   ;;  %v7672_v57 = vld [vmem:[%s11520_s4 + $0xcdc] ss:$144 sps:$4 sm:$0xff]  }
 0x2e8   :  { %v4685_v25 = vpop.f32.mrf.mxu1  ;;  %v4786_v27 = vpop.f32.mrf.mxu0 }
 0x2e9   :  { %5440 = vmatpush1.bf16.msra.mxu1 %v7625_v4  ;;  %5541 = vmatpush1.bf16.msra.mxu0 %v7628_v13  ;;  %6061 = vst [vmem:[%s11523_s5 + $0x720] sm:$0xff] %v4685_v25  ;;  %6063 = vst [vmem:[%s11523_s5 + $0x730] sm:$0xff] %v4786_v27  ;;  %v7667_v25 = vld [vmem:[%s11520_s4 + $0xcd0] ss:$144 sps:$4 sm:$0xff]   ;;  %v7670_v27 = vld [vmem:[%s11520_s4 + $0xcd8] ss:$144 sps:$4 sm:$0xff]  }
 0x2ea   :  { %5441 = vmatprep.subr.bf16.mxu1 %v7633_v19  ;;  %5542 = vmatprep.subr.bf16.mxu0 %v7636_v5  ;;  %v4687_v37 = vpop.f32.mrf.mxu1  ;;  %v4788_v58 = vpop.f32.mrf.mxu0 }
 0x2eb   :  { %5290 = vmatmul.mubr.bf16.gmra.mxu1 %v8410_v29  ;;  %5391 = vmatmul.mubr.bf16.gmra.mxu0 %v8410_v29  ;;  %6062 = vst [vmem:[%s11523_s5 + $0x728] sm:$0xff] %v4687_v37  ;;  %6064 = vst [vmem:[%s11523_s5 + $0x738] sm:$0xff] %v4788_v58  ;;  %v7675_v37 = vld [vmem:[%s11520_s4 + $0xbb4] ss:$144 sps:$4 sm:$0xff]   ;;  %v7678_v58 = vld [vmem:[%s11520_s4 + $0xbbc] ss:$144 sps:$4 sm:$0xff]  }
 0x2ec   :  { %5299 = vmatprep.mubr.bf16.mxu1 %v8418_v22  ;;  %5400 = vmatprep.mubr.bf16.mxu0 %v8418_v22  ;;  %v4689_v9 = vpop.f32.mrf.mxu1  ;;  %v4790_v51 = vpop.f32.mrf.mxu0 }
 0x2ed   :  { %5442 = vmatpush1.bf16.msra.mxu1 %v7631_v32  ;;  %5543 = vmatpush1.bf16.msra.mxu0 %v7634_v42  ;;  %6097 = vst [vmem:[%s11523_s5 + $0x840] sm:$0xff] %v4689_v9  ;;  %6099 = vst [vmem:[%s11523_s5 + $0x850] sm:$0xff] %v4790_v51  ;;  %v7673_v9 = vld [vmem:[%s11520_s4 + $0xbb0] ss:$144 sps:$4 sm:$0xff]   ;;  %v7676_v51 = vld [vmem:[%s11520_s4 + $0xbb8] ss:$144 sps:$4 sm:$0xff]  }
 0x2ee   :  { %5443 = vmatprep.subr.bf16.mxu1 %v7639_v8  ;;  %5544 = vmatprep.subr.bf16.mxu0 %v7642_v50  ;;  %v4691_v14 = vpop.f32.mrf.mxu1  ;;  %v4792_v15 = vpop.f32.mrf.mxu0 }
 0x2ef   :  { %6098 = vst [vmem:[%s11523_s5 + $0x848] sm:$0xff] %v4691_v14  ;;  %6100 = vst [vmem:[%s11523_s5 + $0x858] sm:$0xff] %v4792_v15  ;;  %v7681_v14 = vld [vmem:[%s11520_s4 + $0xa94] ss:$144 sps:$4 sm:$0xff]   ;;  %v7684_v15 = vld [vmem:[%s11520_s4 + $0xa9c] ss:$144 sps:$4 sm:$0xff]  }
 0x2f0   :  { %v4695_v24 = vpop.f32.mrf.mxu1  ;;  %v4796_v26 = vpop.f32.mrf.mxu0 }
 0x2f1   :  { %5444 = vmatpush1.bf16.msra.mxu1 %v7637_v10  ;;  %5545 = vmatpush1.bf16.msra.mxu0 %v7640_v11  ;;  %6133 = vst [vmem:[%s11523_s5 + $0x960] sm:$0xff] %v4695_v24  ;;  %6135 = vst [vmem:[%s11523_s5 + $0x970] sm:$0xff] %v4796_v26  ;;  %v7687_v24 = vld [vmem:[%s11520_s4 + $0x974] ss:$144 sps:$4 sm:$0xff]   ;;  %v7690_v26 = vld [vmem:[%s11520_s4 + $0x97c] ss:$144 sps:$4 sm:$0xff]  }
 0x2f2   :  { %5445 = vmatprep.subr.bf16.mxu1 %v7645_v20  ;;  %5546 = vmatprep.subr.bf16.mxu0 %v7648_v21  ;;  %v4697_v34 = vpop.f32.mrf.mxu1  ;;  %v4798_v28 = vpop.f32.mrf.mxu0  ;;  %v7679_v20 = vld [vmem:[%s11520_s4 + $0xa90] ss:$144 sps:$4 sm:$0xff]   ;;  %v7682_v21 = vld [vmem:[%s11520_s4 + $0xa98] ss:$144 sps:$4 sm:$0xff]  }
 0x2f3   :  { %5300 = vmatmul.mubr.bf16.gmra.mxu1 %v8447_v47  ;;  %5401 = vmatmul.mubr.bf16.gmra.mxu0 %v8447_v47  ;;  %6134 = vst [vmem:[%s11523_s5 + $0x968] sm:$0xff] %v4697_v34  ;;  %6136 = vst [vmem:[%s11523_s5 + $0x978] sm:$0xff] %v4798_v28  ;;  %v7693_v34 = vld [vmem:[%s11520_s4 + $0x864] ss:$144 sps:$4 sm:$0xff]   ;;  %v7696_v28 = vld [vmem:[%s11520_s4 + $0x86c] ss:$144 sps:$4 sm:$0xff]  }
 0x2f4   :  { %5309 = vmatprep.mubr.bf16.mxu1 %v8452_v16  ;;  %5410 = vmatprep.mubr.bf16.mxu0 %v8452_v16  ;;  %v4699_v31 = vpop.f32.mrf.mxu1  ;;  %v4800_v43 = vpop.f32.mrf.mxu0 }
 0x2f5   :  { %5446 = vmatpush2.bf16.msra.mxu1 %v7643_v35  ;;  %5547 = vmatpush2.bf16.msra.mxu0 %v7646_v36  ;;  %6169 = vst [vmem:[%s11523_s5 + $0xa80] sm:$0xff] %v4699_v31  ;;  %6171 = vst [vmem:[%s11523_s5 + $0xa90] sm:$0xff] %v4800_v43  ;;  %v7685_v35 = vld [vmem:[%s11520_s4 + $0x970] ss:$144 sps:$4 sm:$0xff]   ;;  %v7688_v36 = vld [vmem:[%s11520_s4 + $0x978] ss:$144 sps:$4 sm:$0xff]  }
 0x2f6   :  { %5447 = vmatprep.subr.bf16.mxu1 %v7651_v38  ;;  %5548 = vmatprep.subr.bf16.mxu0 %v7654_v39  ;;  %v4701_v6 = vpop.f32.mrf.mxu1  ;;  %v4802_v45 = vpop.f32.mrf.mxu0  ;;  %v7691_v31 = vld [vmem:[%s11520_s4 + $0x860] ss:$144 sps:$4 sm:$0xff]   ;;  %v7694_v43 = vld [vmem:[%s11520_s4 + $0x868] ss:$144 sps:$4 sm:$0xff]  }
 0x2f7   :  { %6170 = vst [vmem:[%s11523_s5 + $0xa88] sm:$0xff] %v4701_v6  ;;  %6172 = vst [vmem:[%s11523_s5 + $0xa98] sm:$0xff] %v4802_v45  ;;  %v7699_v6 = vld [vmem:[%s11520_s4 + $0x744] ss:$144 sps:$4 sm:$0xff]   ;;  %v7702_v45 = vld [vmem:[%s11520_s4 + $0x74c] ss:$144 sps:$4 sm:$0xff]  }
 0x2f8   :  { %v4705_v48 = vpop.f32.mrf.mxu1  ;;  %v4806_v49 = vpop.f32.mrf.mxu0 }
 0x2f9   :  { %5448 = vmatpush2.bf16.msra.mxu1 %v7649_v40  ;;  %5549 = vmatpush2.bf16.msra.mxu0 %v7652_v0  ;;  %6205 = vst [vmem:[%s11523_s5 + $0xba0] sm:$0xff] %v4705_v48  ;;  %6207 = vst [vmem:[%s11523_s5 + $0xbb0] sm:$0xff] %v4806_v49  ;;  %v7697_v48 = vld [vmem:[%s11520_s4 + $0x740] ss:$144 sps:$4 sm:$0xff]   ;;  %v7700_v49 = vld [vmem:[%s11520_s4 + $0x748] ss:$144 sps:$4 sm:$0xff]  }
 0x2fa   :  { %5449 = vmatprep.subr.bf16.mxu1 %v7657_v59  ;;  %5550 = vmatprep.subr.bf16.mxu0 %v7660_v33  ;;  %v4707_v54 = vpop.f32.mrf.mxu1  ;;  %v4808_v1 = vpop.f32.mrf.mxu0 }
 0x2fb   :  { %5310 = vmatmul.mubr.bf16.gmra.mxu1 %v8273_v62  ;;  %5411 = vmatmul.mubr.bf16.gmra.mxu0 %v8273_v62  ;;  %6206 = vst [vmem:[%s11523_s5 + $0xba8] sm:$0xff] %v4707_v54  ;;  %6208 = vst [vmem:[%s11523_s5 + $0xbb8] sm:$0xff] %v4808_v1  ;;  %v7705_v54 = vld [vmem:[%s11520_s4 + $0x624] ss:$144 sps:$4 sm:$0xff]   ;;  %v7708_v1 = vld [vmem:[%s11520_s4 + $0x62c] ss:$144 sps:$4 sm:$0xff]  }
 0x2fc   :  { %5319 = vmatprep.mubr.bf16.mxu1 %v8482_v2  ;;  %5420 = vmatprep.mubr.bf16.mxu0 %v8482_v2  ;;  %v4709_v61 = vpop.f32.mrf.mxu1  ;;  %v4810_v55 = vpop.f32.mrf.mxu0 }
 0x2fd   :  { %5450 = vmatpush2.bf16.msra.mxu1 %v7655_v52  ;;  %5551 = vmatpush2.bf16.msra.mxu0 %v7658_v53  ;;  %6241 = vst [vmem:[%s11523_s5 + $0xcc0] sm:$0xff] %v4709_v61  ;;  %6243 = vst [vmem:[%s11523_s5 + $0xcd0] sm:$0xff] %v4810_v55  ;;  %v7703_v61 = vld [vmem:[%s11520_s4 + $0x620] ss:$144 sps:$4 sm:$0xff]   ;;  %v7706_v55 = vld [vmem:[%s11520_s4 + $0x628] ss:$144 sps:$4 sm:$0xff]  }
 0x2fe   :  { %5451 = vmatprep.subr.bf16.mxu1 %v7663_v44  ;;  %5552 = vmatprep.subr.bf16.mxu0 %v7666_v60  ;;  %v4711_v4 = vpop.f32.mrf.mxu1  ;;  %v4812_v13 = vpop.f32.mrf.mxu0 }
 0x2ff   :  { %6242 = vst [vmem:[%s11523_s5 + $0xcc8] sm:$0xff] %v4711_v4  ;;  %6244 = vst [vmem:[%s11523_s5 + $0xcd8] sm:$0xff] %v4812_v13  ;;  %v7711_v4 = vld [vmem:[%s11520_s4 + $0x504] ss:$144 sps:$4 sm:$0xff]   ;;  %v7714_v13 = vld [vmem:[%s11520_s4 + $0x50c] ss:$144 sps:$4 sm:$0xff]  }
 0x300   :  { %v4715_v19 = vpop.f32.mrf.mxu1  ;;  %v4816_v5 = vpop.f32.mrf.mxu0 }
 0x301   :  { %5452 = vmatpush2.bf16.msra.mxu1 %v7661_v63  ;;  %5553 = vmatpush2.bf16.msra.mxu0 %v7664_v3  ;;  %6277 = vst [vmem:[%s11523_s5 + $0xde0] sm:$0xff] %v4715_v19  ;;  %6279 = vst [vmem:[%s11523_s5 + $0xdf0] sm:$0xff] %v4816_v5  ;;  %v7709_v19 = vld [vmem:[%s11520_s4 + $0x500] ss:$144 sps:$4 sm:$0xff]   ;;  %v7712_v5 = vld [vmem:[%s11520_s4 + $0x508] ss:$144 sps:$4 sm:$0xff]  }
 0x302   :  { %5453 = vmatprep.subr.bf16.mxu1 %v7669_v18  ;;  %5554 = vmatprep.subr.bf16.mxu0 %v7672_v57  ;;  %v4717_v32 = vpop.f32.mrf.mxu1  ;;  %v4818_v42 = vpop.f32.mrf.mxu0 }
 0x303   :  { %5320 = vmatmul.mubr.bf16.gmra.mxu1 %v8512_v7  ;;  %5421 = vmatmul.mubr.bf16.gmra.mxu0 %v8512_v7  ;;  %6278 = vst [vmem:[%s11523_s5 + $0xde8] sm:$0xff] %v4717_v32  ;;  %6280 = vst [vmem:[%s11523_s5 + $0xdf8] sm:$0xff] %v4818_v42  ;;  %v7717_v32 = vld [vmem:[%s11520_s4 + $0x3e4] ss:$144 sps:$4 sm:$0xff]   ;;  %v7720_v42 = vld [vmem:[%s11520_s4 + $0x3ec] ss:$144 sps:$4 sm:$0xff]  }
 0x304   :  { %5461 = vmatprep.mubr.bf16.mxu1 %v8255_v46  ;;  %5562 = vmatprep.mubr.bf16.mxu0 %v8255_v46  ;;  %v4719_v8 = vpop.f32.mrf.mxu1  ;;  %v4820_v50 = vpop.f32.mrf.mxu0 }
 0x305   :  { %5454 = vmatpush2.bf16.msra.mxu1 %v7667_v25  ;;  %5555 = vmatpush2.bf16.msra.mxu0 %v7670_v27  ;;  %v7715_v8 = vld [vmem:[%s11520_s4 + $0x3e0] ss:$144 sps:$4 sm:$0xff]   ;;  %v7718_v50 = vld [vmem:[%s11520_s4 + $0x3e8] ss:$144 sps:$4 sm:$0xff]  }
 0x306   :  { %5455 = vmatprep.subr.bf16.mxu1 %v7675_v37  ;;  %5556 = vmatprep.subr.bf16.mxu0 %v7678_v58  ;;  %v4720_v10 = vpop.f32.mrf.mxu1  ;;  %v4821_v11 = vpop.f32.mrf.mxu0 }
 0x307   :  { %v7723_v10 = vld [vmem:[%s11520_s4 + $0x2c4] ss:$144 sps:$4 sm:$0xff]   ;;  %v7726_v11 = vld [vmem:[%s11520_s4 + $0x2cc] ss:$144 sps:$4 sm:$0xff]  }
 0x309   :  { %5456 = vmatpush2.bf16.msra.mxu1 %v7673_v9  ;;  %5557 = vmatpush2.bf16.msra.mxu0 %v7676_v51 }
 0x30a   :  { %5457 = vmatprep.subr.bf16.mxu1 %v7681_v14  ;;  %5558 = vmatprep.subr.bf16.mxu0 %v7684_v15 }
 0x30d   :  { %5458 = vmatpush2.bf16.msra.mxu1 %v7679_v20  ;;  %5559 = vmatpush2.bf16.msra.mxu0 %v7682_v21  ;;  %v7721_v20 = vld [vmem:[%s11520_s4 + $0x2c0] ss:$144 sps:$4 sm:$0xff]   ;;  %v7724_v21 = vld [vmem:[%s11520_s4 + $0x2c8] ss:$144 sps:$4 sm:$0xff]  }
 0x30e   :  { %5459 = vmatprep.subr.bf16.mxu1 %v7687_v24  ;;  %5560 = vmatprep.subr.bf16.mxu0 %v7690_v26 }
 0x311   :  { %5460 = vmatpush2.bf16.msra.mxu1 %v7685_v35  ;;  %5561 = vmatpush2.bf16.msra.mxu0 %v7688_v36  ;;  %v4857_v38 = vpop.f32.mrf.mxu1  ;;  %v4958_v39 = vpop.f32.mrf.mxu0  ;;  %v7729_v35 = vld [vmem:[%s11520_s4 + $0x1a4] ss:$144 sps:$4 sm:$0xff]   ;;  %v7732_v36 = vld [vmem:[%s11520_s4 + $0x1ac] ss:$144 sps:$4 sm:$0xff]  }
 0x312   :  { %5849 = vst [vmem:[%s11523_s5 + $0x80] sm:$0xff] %v4857_v38  ;;  %5851 = vst [vmem:[%s11523_s5 + $0x90] sm:$0xff] %v4958_v39  ;;  %5631 = vmatprep.subr.bf16.mxu1 %v7693_v34  ;;  %5732 = vmatprep.subr.bf16.mxu0 %v7696_v28  ;;  %v7727_v38 = vld [vmem:[%s11520_s4 + $0x1a0] ss:$144 sps:$4 sm:$0xff]   ;;  %v7730_v39 = vld [vmem:[%s11520_s4 + $0x1a8] ss:$144 sps:$4 sm:$0xff]  }
 0x313   :  { %v4859_v40 = vpop.f32.mrf.mxu1  ;;  %v4960_v0 = vpop.f32.mrf.mxu0 }
 0x314   :  { %5462 = vmatmul.mubr.bf16.vlgmr.msra.gmra.mxu1 %v8253_v41  ;;  %5563 = vmatmul.mubr.bf16.vlgmr.msra.gmra.mxu0 %v8253_v41  ;;  %5850 = vst [vmem:[%s11523_s5 + $0x88] sm:$0xff] %v4859_v40  ;;  %5852 = vst [vmem:[%s11523_s5 + $0x98] sm:$0xff] %v4960_v0  ;;  %v7735_v40 = vld [vmem:[%s11520_s4 + $0x84] ss:$144 sps:$4 sm:$0xff]   ;;  %v7738_v0 = vld [vmem:[%s11520_s4 + $0x8c] ss:$144 sps:$4 sm:$0xff]  }
 0x315   :  { %5471 = vmatprep.mubr.bf16.mxu1 %v8282_v12  ;;  %5572 = vmatprep.mubr.bf16.mxu0 %v8282_v12  ;;  %v4861_v59 = vpop.f32.mrf.mxu1  ;;  %v4962_v33 = vpop.f32.mrf.mxu0 }
 0x316   :  { %5632 = vmatpush1.bf16.msra.mxu1 %v7691_v31  ;;  %5733 = vmatpush1.bf16.msra.mxu0 %v7694_v43  ;;  %5885 = vst [vmem:[%s11523_s5 + $0x1a0] sm:$0xff] %v4861_v59  ;;  %5887 = vst [vmem:[%s11523_s5 + $0x1b0] sm:$0xff] %v4962_v33  ;;  %v7733_v59 = vld [vmem:[%s11520_s4 + $0x80] ss:$144 sps:$4 sm:$0xff]   ;;  %v7736_v33 = vld [vmem:[%s11520_s4 + $0x88] ss:$144 sps:$4 sm:$0xff]  }
 0x317   :  { %5633 = vmatprep.subr.bf16.mxu1 %v7699_v6  ;;  %5734 = vmatprep.subr.bf16.mxu0 %v7702_v45  ;;  %v4863_v52 = vpop.f32.mrf.mxu1  ;;  %v4964_v53 = vpop.f32.mrf.mxu0 }
 0x318   :  { %5886 = vst [vmem:[%s11523_s5 + $0x1a8] sm:$0xff] %v4863_v52  ;;  %5888 = vst [vmem:[%s11523_s5 + $0x1b8] sm:$0xff] %v4964_v53  ;;  %v7741_v52 = vld [vmem:[%s11520_s4 + $0x1164] ss:$144 sps:$4 sm:$0xff]   ;;  %v7744_v53 = vld [vmem:[%s11520_s4 + $0x116c] ss:$144 sps:$4 sm:$0xff]  }
 0x319   :  { %v4867_v44 = vpop.f32.mrf.mxu1  ;;  %v4968_v60 = vpop.f32.mrf.mxu0 }
 0x31a   :  { %5634 = vmatpush1.bf16.msra.mxu1 %v7697_v48  ;;  %5735 = vmatpush1.bf16.msra.mxu0 %v7700_v49  ;;  %5921 = vst [vmem:[%s11523_s5 + $0x2c0] sm:$0xff] %v4867_v44  ;;  %5923 = vst [vmem:[%s11523_s5 + $0x2d0] sm:$0xff] %v4968_v60  ;;  %v7739_v44 = vld [vmem:[%s11520_s4 + $0x1160] ss:$144 sps:$4 sm:$0xff]   ;;  %v7742_v60 = vld [vmem:[%s11520_s4 + $0x1168] ss:$144 sps:$4 sm:$0xff]  }
 0x31b   :  { %5635 = vmatprep.subr.bf16.mxu1 %v7705_v54  ;;  %5736 = vmatprep.subr.bf16.mxu0 %v7708_v1  ;;  %v4869_v63 = vpop.f32.mrf.mxu1  ;;  %v4970_v3 = vpop.f32.mrf.mxu0 }
 0x31c   :  { %5472 = vmatmul.mubr.bf16.gmra.mxu1 %v8318_v17  ;;  %5573 = vmatmul.mubr.bf16.gmra.mxu0 %v8318_v17  ;;  %5922 = vst [vmem:[%s11523_s5 + $0x2c8] sm:$0xff] %v4869_v63  ;;  %5924 = vst [vmem:[%s11523_s5 + $0x2d8] sm:$0xff] %v4970_v3  ;;  %v7747_v63 = vld [vmem:[%s11520_s4 + $0x1044] ss:$144 sps:$4 sm:$0xff]   ;;  %v7750_v3 = vld [vmem:[%s11520_s4 + $0x104c] ss:$144 sps:$4 sm:$0xff]  }
 0x31d   :  { %5481 = vmatprep.mubr.bf16.mxu1 %v8328_v23  ;;  %5582 = vmatprep.mubr.bf16.mxu0 %v8328_v23  ;;  %v4871_v18 = vpop.f32.mrf.mxu1  ;;  %v4972_v57 = vpop.f32.mrf.mxu0 }
 0x31e   :  { %5636 = vmatpush1.bf16.msra.mxu1 %v7703_v61  ;;  %5737 = vmatpush1.bf16.msra.mxu0 %v7706_v55  ;;  %5957 = vst [vmem:[%s11523_s5 + $0x3e0] sm:$0xff] %v4871_v18  ;;  %5959 = vst [vmem:[%s11523_s5 + $0x3f0] sm:$0xff] %v4972_v57  ;;  %v7745_v18 = vld [vmem:[%s11520_s4 + $0x1040] ss:$144 sps:$4 sm:$0xff]   ;;  %v7748_v57 = vld [vmem:[%s11520_s4 + $0x1048] ss:$144 sps:$4 sm:$0xff]  }
 0x31f   :  { %5637 = vmatprep.subr.bf16.mxu1 %v7711_v4  ;;  %5738 = vmatprep.subr.bf16.mxu0 %v7714_v13  ;;  %v4873_v25 = vpop.f32.mrf.mxu1  ;;  %v4974_v27 = vpop.f32.mrf.mxu0 }
 0x320   :  { %5958 = vst [vmem:[%s11523_s5 + $0x3e8] sm:$0xff] %v4873_v25  ;;  %5960 = vst [vmem:[%s11523_s5 + $0x3f8] sm:$0xff] %v4974_v27  ;;  %v7753_v25 = vld [vmem:[%s11520_s4 + $0xf24] ss:$144 sps:$4 sm:$0xff]   ;;  %v7756_v27 = vld [vmem:[%s11520_s4 + $0xf2c] ss:$144 sps:$4 sm:$0xff]  }
 0x321   :  { %v4877_v37 = vpop.f32.mrf.mxu1  ;;  %v4978_v58 = vpop.f32.mrf.mxu0 }
 0x322   :  { %5638 = vmatpush1.bf16.msra.mxu1 %v7709_v19  ;;  %5739 = vmatpush1.bf16.msra.mxu0 %v7712_v5  ;;  %5993 = vst [vmem:[%s11523_s5 + $0x500] sm:$0xff] %v4877_v37  ;;  %5995 = vst [vmem:[%s11523_s5 + $0x510] sm:$0xff] %v4978_v58  ;;  %v7751_v37 = vld [vmem:[%s11520_s4 + $0xf20] ss:$144 sps:$4 sm:$0xff]   ;;  %v7754_v58 = vld [vmem:[%s11520_s4 + $0xf28] ss:$144 sps:$4 sm:$0xff]  }
 0x323   :  { %5639 = vmatprep.subr.bf16.mxu1 %v7717_v32  ;;  %5740 = vmatprep.subr.bf16.mxu0 %v7720_v42  ;;  %v4879_v9 = vpop.f32.mrf.mxu1  ;;  %v4980_v51 = vpop.f32.mrf.mxu0 }
 0x324   :  { %5482 = vmatmul.mubr.bf16.gmra.mxu1 %v8364_v56  ;;  %5583 = vmatmul.mubr.bf16.gmra.mxu0 %v8364_v56  ;;  %5994 = vst [vmem:[%s11523_s5 + $0x508] sm:$0xff] %v4879_v9  ;;  %5996 = vst [vmem:[%s11523_s5 + $0x518] sm:$0xff] %v4980_v51  ;;  %v7759_v9 = vld [vmem:[%s11520_s4 + $0xe04] ss:$144 sps:$4 sm:$0xff]   ;;  %v7762_v51 = vld [vmem:[%s11520_s4 + $0xe0c] ss:$144 sps:$4 sm:$0xff]  }
 0x325   :  { %5491 = vmatprep.mubr.bf16.mxu1 %v8374_v30  ;;  %5592 = vmatprep.mubr.bf16.mxu0 %v8374_v30  ;;  %v4881_v14 = vpop.f32.mrf.mxu1  ;;  %v4982_v15 = vpop.f32.mrf.mxu0 }
 0x326   :  { %5640 = vmatpush1.bf16.msra.mxu1 %v7715_v8  ;;  %5741 = vmatpush1.bf16.msra.mxu0 %v7718_v50  ;;  %6029 = vst [vmem:[%s11523_s5 + $0x620] sm:$0xff] %v4881_v14  ;;  %6031 = vst [vmem:[%s11523_s5 + $0x630] sm:$0xff] %v4982_v15  ;;  %v7757_v14 = vld [vmem:[%s11520_s4 + $0xe00] ss:$144 sps:$4 sm:$0xff]   ;;  %v7760_v15 = vld [vmem:[%s11520_s4 + $0xe08] ss:$144 sps:$4 sm:$0xff]  }
 0x327   :  { %5641 = vmatprep.subr.bf16.mxu1 %v7723_v10  ;;  %5742 = vmatprep.subr.bf16.mxu0 %v7726_v11  ;;  %v4883_v24 = vpop.f32.mrf.mxu1  ;;  %v4984_v26 = vpop.f32.mrf.mxu0 }
 0x328   :  { %6030 = vst [vmem:[%s11523_s5 + $0x628] sm:$0xff] %v4883_v24  ;;  %6032 = vst [vmem:[%s11523_s5 + $0x638] sm:$0xff] %v4984_v26  ;;  %v7765_v24 = vld [vmem:[%s11520_s4 + $0xce4] ss:$144 sps:$4 sm:$0xff]   ;;  %v7768_v26 = vld [vmem:[%s11520_s4 + $0xcec] ss:$144 sps:$4 sm:$0xff]  }
 0x329   :  { %v4887_v34 = vpop.f32.mrf.mxu1  ;;  %v4988_v28 = vpop.f32.mrf.mxu0 }
 0x32a   :  { %5642 = vmatpush1.bf16.msra.mxu1 %v7721_v20  ;;  %5743 = vmatpush1.bf16.msra.mxu0 %v7724_v21  ;;  %6065 = vst [vmem:[%s11523_s5 + $0x740] sm:$0xff] %v4887_v34  ;;  %6067 = vst [vmem:[%s11523_s5 + $0x750] sm:$0xff] %v4988_v28  ;;  %v7763_v34 = vld [vmem:[%s11520_s4 + $0xce0] ss:$144 sps:$4 sm:$0xff]   ;;  %v7766_v28 = vld [vmem:[%s11520_s4 + $0xce8] ss:$144 sps:$4 sm:$0xff]  }
 0x32b   :  { %5643 = vmatprep.subr.bf16.mxu1 %v7729_v35  ;;  %5744 = vmatprep.subr.bf16.mxu0 %v7732_v36  ;;  %v4889_v31 = vpop.f32.mrf.mxu1  ;;  %v4990_v43 = vpop.f32.mrf.mxu0 }
 0x32c   :  { %5492 = vmatmul.mubr.bf16.gmra.mxu1 %v8410_v29  ;;  %5593 = vmatmul.mubr.bf16.gmra.mxu0 %v8410_v29  ;;  %6066 = vst [vmem:[%s11523_s5 + $0x748] sm:$0xff] %v4889_v31  ;;  %6068 = vst [vmem:[%s11523_s5 + $0x758] sm:$0xff] %v4990_v43  ;;  %v7771_v31 = vld [vmem:[%s11520_s4 + $0xbc4] ss:$144 sps:$4 sm:$0xff]   ;;  %v7774_v43 = vld [vmem:[%s11520_s4 + $0xbcc] ss:$144 sps:$4 sm:$0xff]  }
 0x32d   :  { %5501 = vmatprep.mubr.bf16.mxu1 %v8418_v22  ;;  %5602 = vmatprep.mubr.bf16.mxu0 %v8418_v22  ;;  %v4891_v6 = vpop.f32.mrf.mxu1  ;;  %v4992_v45 = vpop.f32.mrf.mxu0 }
 0x32e   :  { %5644 = vmatpush1.bf16.msra.mxu1 %v7727_v38  ;;  %5745 = vmatpush1.bf16.msra.mxu0 %v7730_v39  ;;  %6101 = vst [vmem:[%s11523_s5 + $0x860] sm:$0xff] %v4891_v6  ;;  %6103 = vst [vmem:[%s11523_s5 + $0x870] sm:$0xff] %v4992_v45  ;;  %v7769_v6 = vld [vmem:[%s11520_s4 + $0xbc0] ss:$144 sps:$4 sm:$0xff]   ;;  %v7772_v45 = vld [vmem:[%s11520_s4 + $0xbc8] ss:$144 sps:$4 sm:$0xff]  }
 0x32f   :  { %5645 = vmatprep.subr.bf16.mxu1 %v7735_v40  ;;  %5746 = vmatprep.subr.bf16.mxu0 %v7738_v0  ;;  %v4893_v48 = vpop.f32.mrf.mxu1  ;;  %v4994_v49 = vpop.f32.mrf.mxu0 }
 0x330   :  { %6102 = vst [vmem:[%s11523_s5 + $0x868] sm:$0xff] %v4893_v48  ;;  %6104 = vst [vmem:[%s11523_s5 + $0x878] sm:$0xff] %v4994_v49  ;;  %v7780_v48 = vld [vmem:[%s11520_s4 + $0xaac] ss:$144 sps:$4 sm:$0xff]   ;;  %v7775_v49 = vld [vmem:[%s11520_s4 + $0xaa0] ss:$144 sps:$4 sm:$0xff]  }
 0x331   :  { %v4897_v54 = vpop.f32.mrf.mxu1  ;;  %v4998_v1 = vpop.f32.mrf.mxu0 }
 0x332   :  { %5646 = vmatpush1.bf16.msra.mxu1 %v7733_v59  ;;  %5747 = vmatpush1.bf16.msra.mxu0 %v7736_v33  ;;  %6137 = vst [vmem:[%s11523_s5 + $0x980] sm:$0xff] %v4897_v54  ;;  %6139 = vst [vmem:[%s11523_s5 + $0x990] sm:$0xff] %v4998_v1  ;;  %v7786_v54 = vld [vmem:[%s11520_s4 + $0x98c] ss:$144 sps:$4 sm:$0xff]   ;;  %v7781_v1 = vld [vmem:[%s11520_s4 + $0x980] ss:$144 sps:$4 sm:$0xff]  }
 0x333   :  { %5647 = vmatprep.subr.bf16.mxu1 %v7741_v52  ;;  %5748 = vmatprep.subr.bf16.mxu0 %v7744_v53  ;;  %v4899_v61 = vpop.f32.mrf.mxu1  ;;  %v5000_v55 = vpop.f32.mrf.mxu0  ;;  %v7778_v52 = vld [vmem:[%s11520_s4 + $0xaa8] ss:$144 sps:$4 sm:$0xff]   ;;  %v7783_v53 = vld [vmem:[%s11520_s4 + $0x984] ss:$144 sps:$4 sm:$0xff]  }
 0x334   :  { %5502 = vmatmul.mubr.bf16.gmra.mxu1 %v8447_v47  ;;  %5603 = vmatmul.mubr.bf16.gmra.mxu0 %v8447_v47  ;;  %6138 = vst [vmem:[%s11523_s5 + $0x988] sm:$0xff] %v4899_v61  ;;  %6140 = vst [vmem:[%s11523_s5 + $0x998] sm:$0xff] %v5000_v55 }
 0x335   :  { %5511 = vmatprep.mubr.bf16.mxu1 %v8452_v16  ;;  %5612 = vmatprep.mubr.bf16.mxu0 %v8452_v16  ;;  %v4901_v4 = vpop.f32.mrf.mxu1  ;;  %v5002_v13 = vpop.f32.mrf.mxu0 }
 0x336   :  { %5648 = vmatpush2.bf16.msra.mxu1 %v7739_v44  ;;  %5749 = vmatpush2.bf16.msra.mxu0 %v7742_v60  ;;  %6173 = vst [vmem:[%s11523_s5 + $0xaa0] sm:$0xff] %v4901_v4  ;;  %6175 = vst [vmem:[%s11523_s5 + $0xab0] sm:$0xff] %v5002_v13  ;;  %v7784_v44 = vld [vmem:[%s11520_s4 + $0x988] ss:$144 sps:$4 sm:$0xff]  }
 0x337   :  { %5649 = vmatprep.subr.bf16.mxu1 %v7747_v63  ;;  %5750 = vmatprep.subr.bf16.mxu0 %v7750_v3  ;;  %v4903_v19 = vpop.f32.mrf.mxu1  ;;  %v5004_v5 = vpop.f32.mrf.mxu0 }
 0x338   :  { %6174 = vst [vmem:[%s11523_s5 + $0xaa8] sm:$0xff] %v4903_v19  ;;  %6176 = vst [vmem:[%s11523_s5 + $0xab8] sm:$0xff] %v5004_v5 }
 0x339   :  { %v4907_v32 = vpop.f32.mrf.mxu1  ;;  %v5008_v42 = vpop.f32.mrf.mxu0 }
 0x33a   :  { %5650 = vmatpush2.bf16.msra.mxu1 %v7745_v18  ;;  %5751 = vmatpush2.bf16.msra.mxu0 %v7748_v57  ;;  %6209 = vst [vmem:[%s11523_s5 + $0xbc0] sm:$0xff] %v4907_v32  ;;  %6211 = vst [vmem:[%s11523_s5 + $0xbd0] sm:$0xff] %v5008_v42 }
 0x33b   :  { %5651 = vmatprep.subr.bf16.mxu1 %v7753_v25  ;;  %5752 = vmatprep.subr.bf16.mxu0 %v7756_v27  ;;  %v4909_v8 = vpop.f32.mrf.mxu1  ;;  %v5010_v50 = vpop.f32.mrf.mxu0 }
 0x33c   :  { %5512 = vmatmul.mubr.bf16.gmra.mxu1 %v8273_v62  ;;  %5613 = vmatmul.mubr.bf16.gmra.mxu0 %v8273_v62  ;;  %6210 = vst [vmem:[%s11523_s5 + $0xbc8] sm:$0xff] %v4909_v8  ;;  %6212 = vst [vmem:[%s11523_s5 + $0xbd8] sm:$0xff] %v5010_v50 }
 0x33d   :  { %5521 = vmatprep.mubr.bf16.mxu1 %v8482_v2  ;;  %5622 = vmatprep.mubr.bf16.mxu0 %v8482_v2  ;;  %v4911_v10 = vpop.f32.mrf.mxu1  ;;  %v5012_v11 = vpop.f32.mrf.mxu0 }
 0x33e   :  { %5652 = vmatpush2.bf16.msra.mxu1 %v7751_v37  ;;  %5753 = vmatpush2.bf16.msra.mxu0 %v7754_v58  ;;  %6245 = vst [vmem:[%s11523_s5 + $0xce0] sm:$0xff] %v4911_v10  ;;  %6247 = vst [vmem:[%s11523_s5 + $0xcf0] sm:$0xff] %v5012_v11 }
 0x33f   :  { %5653 = vmatprep.subr.bf16.mxu1 %v7759_v9  ;;  %5754 = vmatprep.subr.bf16.mxu0 %v7762_v51  ;;  %v4913_v20 = vpop.f32.mrf.mxu1  ;;  %v5014_v21 = vpop.f32.mrf.mxu0 }
 0x340   :  { %6246 = vst [vmem:[%s11523_s5 + $0xce8] sm:$0xff] %v4913_v20  ;;  %6248 = vst [vmem:[%s11523_s5 + $0xcf8] sm:$0xff] %v5014_v21 }
 0x341   :  { %v4917_v35 = vpop.f32.mrf.mxu1  ;;  %v5018_v36 = vpop.f32.mrf.mxu0 }
 0x342   :  { %5654 = vmatpush2.bf16.msra.mxu1 %v7757_v14  ;;  %5755 = vmatpush2.bf16.msra.mxu0 %v7760_v15  ;;  %6281 = vst [vmem:[%s11523_s5 + $0xe00] sm:$0xff] %v4917_v35  ;;  %6283 = vst [vmem:[%s11523_s5 + $0xe10] sm:$0xff] %v5018_v36 }
 0x343   :  { %5655 = vmatprep.subr.bf16.mxu1 %v7765_v24  ;;  %5756 = vmatprep.subr.bf16.mxu0 %v7768_v26  ;;  %v4919_v38 = vpop.f32.mrf.mxu1  ;;  %v5020_v39 = vpop.f32.mrf.mxu0 }
 0x344   :  { %5522 = vmatmul.mubr.bf16.gmra.mxu1 %v8512_v7  ;;  %5623 = vmatmul.mubr.bf16.gmra.mxu0 %v8512_v7  ;;  %6282 = vst [vmem:[%s11523_s5 + $0xe08] sm:$0xff] %v4919_v38  ;;  %6284 = vst [vmem:[%s11523_s5 + $0xe18] sm:$0xff] %v5020_v39 }
 0x345   :  { %5663 = vmatprep.mubr.bf16.mxu1 %v8255_v46  ;;  %5764 = vmatprep.mubr.bf16.mxu0 %v8255_v46  ;;  %v4921_v40 = vpop.f32.mrf.mxu1  ;;  %v5022_v0 = vpop.f32.mrf.mxu0  ;;  %v7777_v46 = vld [vmem:[%s11520_s4 + $0xaa4] ss:$144 sps:$4 sm:$0xff]  }
 0x346   :  { %5656 = vmatpush2.bf16.msra.mxu1 %v7763_v34  ;;  %5757 = vmatpush2.bf16.msra.mxu0 %v7766_v28 }
 0x347   :  { %5657 = vmatprep.subr.bf16.mxu1 %v7771_v31  ;;  %5758 = vmatprep.subr.bf16.mxu0 %v7774_v43  ;;  %v4922_v59 = vpop.f32.mrf.mxu1  ;;  %v5023_v33 = vpop.f32.mrf.mxu0 }
 0x34a   :  { %5658 = vmatpush2.bf16.msra.mxu1 %v7769_v6  ;;  %5759 = vmatpush2.bf16.msra.mxu0 %v7772_v45 }
 0x34b   :  { %5659 = vmatprep.subr.bf16.mxu1 %v7777_v46  ;;  %5760 = vmatprep.subr.bf16.mxu0 %v7780_v48 }
 0x34e   :  { %5660 = vmatpush2.bf16.msra.mxu1 %v7775_v49  ;;  %5761 = vmatpush2.bf16.msra.mxu0 %v7778_v52 }
 0x34f   :  { %5661 = vmatprep.subr.bf16.mxu1 %v7783_v53  ;;  %5762 = vmatprep.subr.bf16.mxu0 %v7786_v54 }
 0x352   :  { %5662 = vmatpush2.bf16.msra.mxu1 %v7781_v1  ;;  %5763 = vmatpush2.bf16.msra.mxu0 %v7784_v44  ;;  %v5059_v60 = vpop.f32.mrf.mxu1  ;;  %v5160_v61 = vpop.f32.mrf.mxu0 }
 0x353   :  { %5853 = vst [vmem:[%s11523_s5 + $0xa0] sm:$0xff] %v5059_v60  ;;  %5855 = vst [vmem:[%s11523_s5 + $0xb0] sm:$0xff] %v5160_v61 }
 0x354   :  { %v5061_v55 = vpop.f32.mrf.mxu1  ;;  %v5162_v63 = vpop.f32.mrf.mxu0 }
 0x355   :  { %5664 = vmatmul.mubr.bf16.vlgmr.msra.gmra.mxu1 %v8253_v41  ;;  %5765 = vmatmul.mubr.bf16.vlgmr.msra.gmra.mxu0 %v8253_v41  ;;  %5854 = vst [vmem:[%s11523_s5 + $0xa8] sm:$0xff] %v5061_v55  ;;  %5856 = vst [vmem:[%s11523_s5 + $0xb8] sm:$0xff] %v5162_v63 }
 0x356   :  { %5673 = vmatprep.mubr.bf16.mxu1 %v8282_v12  ;;  %5774 = vmatprep.mubr.bf16.mxu0 %v8282_v12  ;;  %v5063_v3 = vpop.f32.mrf.mxu1  ;;  %v5164_v4 = vpop.f32.mrf.mxu0 }
 0x357   :  { %5889 = vst [vmem:[%s11523_s5 + $0x1c0] sm:$0xff] %v5063_v3  ;;  %5891 = vst [vmem:[%s11523_s5 + $0x1d0] sm:$0xff] %v5164_v4 }
 0x358   :  { %v5065_v41 = vpop.f32.mrf.mxu1  ;;  %v5166_v13 = vpop.f32.mrf.mxu0 }
 0x359   :  { %5890 = vst [vmem:[%s11523_s5 + $0x1c8] sm:$0xff] %v5065_v41  ;;  %5892 = vst [vmem:[%s11523_s5 + $0x1d8] sm:$0xff] %v5166_v13 }
 0x35a   :  { %v5069_v12 = vpop.f32.mrf.mxu1  ;;  %v5170_v18 = vpop.f32.mrf.mxu0 }
 0x35b   :  { %5925 = vst [vmem:[%s11523_s5 + $0x2e0] sm:$0xff] %v5069_v12  ;;  %5927 = vst [vmem:[%s11523_s5 + $0x2f0] sm:$0xff] %v5170_v18 }
 0x35c   :  { %v5071_v57 = vpop.f32.mrf.mxu1  ;;  %v5172_v19 = vpop.f32.mrf.mxu0 }
 0x35d   :  { %5674 = vmatmul.mubr.bf16.gmra.mxu1 %v8318_v17  ;;  %5775 = vmatmul.mubr.bf16.gmra.mxu0 %v8318_v17  ;;  %5926 = vst [vmem:[%s11523_s5 + $0x2e8] sm:$0xff] %v5071_v57  ;;  %5928 = vst [vmem:[%s11523_s5 + $0x2f8] sm:$0xff] %v5172_v19 }
 0x35e   :  { %5683 = vmatprep.mubr.bf16.mxu1 %v8328_v23  ;;  %5784 = vmatprep.mubr.bf16.mxu0 %v8328_v23  ;;  %v5073_v5 = vpop.f32.mrf.mxu1  ;;  %v5174_v25 = vpop.f32.mrf.mxu0 }
 0x35f   :  { %5961 = vst [vmem:[%s11523_s5 + $0x400] sm:$0xff] %v5073_v5  ;;  %5963 = vst [vmem:[%s11523_s5 + $0x410] sm:$0xff] %v5174_v25 }
 0x360   :  { %v5075_v17 = vpop.f32.mrf.mxu1  ;;  %v5176_v27 = vpop.f32.mrf.mxu0 }
 0x361   :  { %5962 = vst [vmem:[%s11523_s5 + $0x408] sm:$0xff] %v5075_v17  ;;  %5964 = vst [vmem:[%s11523_s5 + $0x418] sm:$0xff] %v5176_v27 }
 0x362   :  { %v5079_v23 = vpop.f32.mrf.mxu1  ;;  %v5180_v32 = vpop.f32.mrf.mxu0 }
 0x363   :  { %5997 = vst [vmem:[%s11523_s5 + $0x520] sm:$0xff] %v5079_v23  ;;  %5999 = vst [vmem:[%s11523_s5 + $0x530] sm:$0xff] %v5180_v32 }
 0x364   :  { %v5081_v42 = vpop.f32.mrf.mxu1  ;;  %v5182_v37 = vpop.f32.mrf.mxu0 }
 0x365   :  { %5684 = vmatmul.mubr.bf16.gmra.mxu1 %v8364_v56  ;;  %5785 = vmatmul.mubr.bf16.gmra.mxu0 %v8364_v56  ;;  %5998 = vst [vmem:[%s11523_s5 + $0x528] sm:$0xff] %v5081_v42  ;;  %6000 = vst [vmem:[%s11523_s5 + $0x538] sm:$0xff] %v5182_v37 }
 0x366   :  { %5693 = vmatprep.mubr.bf16.mxu1 %v8374_v30  ;;  %5794 = vmatprep.mubr.bf16.mxu0 %v8374_v30  ;;  %v5083_v58 = vpop.f32.mrf.mxu1  ;;  %v5184_v8 = vpop.f32.mrf.mxu0 }
 0x367   :  { %6033 = vst [vmem:[%s11523_s5 + $0x640] sm:$0xff] %v5083_v58  ;;  %6035 = vst [vmem:[%s11523_s5 + $0x650] sm:$0xff] %v5184_v8 }
 0x368   :  { %v5085_v56 = vpop.f32.mrf.mxu1  ;;  %v5186_v50 = vpop.f32.mrf.mxu0 }
 0x369   :  { %6034 = vst [vmem:[%s11523_s5 + $0x648] sm:$0xff] %v5085_v56  ;;  %6036 = vst [vmem:[%s11523_s5 + $0x658] sm:$0xff] %v5186_v50 }
 0x36a   :  { %v5089_v30 = vpop.f32.mrf.mxu1  ;;  %v5190_v9 = vpop.f32.mrf.mxu0 }
 0x36b   :  { %6069 = vst [vmem:[%s11523_s5 + $0x760] sm:$0xff] %v5089_v30  ;;  %6071 = vst [vmem:[%s11523_s5 + $0x770] sm:$0xff] %v5190_v9 }
 0x36c   :  { %v5091_v51 = vpop.f32.mrf.mxu1  ;;  %v5192_v10 = vpop.f32.mrf.mxu0 }
 0x36d   :  { %5694 = vmatmul.mubr.bf16.gmra.mxu1 %v8410_v29  ;;  %5795 = vmatmul.mubr.bf16.gmra.mxu0 %v8410_v29  ;;  %6070 = vst [vmem:[%s11523_s5 + $0x768] sm:$0xff] %v5091_v51  ;;  %6072 = vst [vmem:[%s11523_s5 + $0x778] sm:$0xff] %v5192_v10 }
 0x36e   :  { %5703 = vmatprep.mubr.bf16.mxu1 %v8418_v22  ;;  %5804 = vmatprep.mubr.bf16.mxu0 %v8418_v22  ;;  %v5093_v11 = vpop.f32.mrf.mxu1  ;;  %v5194_v14 = vpop.f32.mrf.mxu0 }
 0x36f   :  { %6105 = vst [vmem:[%s11523_s5 + $0x880] sm:$0xff] %v5093_v11  ;;  %6107 = vst [vmem:[%s11523_s5 + $0x890] sm:$0xff] %v5194_v14 }
 0x370   :  { %v5095_v29 = vpop.f32.mrf.mxu1  ;;  %v5196_v15 = vpop.f32.mrf.mxu0 }
 0x371   :  { %6106 = vst [vmem:[%s11523_s5 + $0x888] sm:$0xff] %v5095_v29  ;;  %6108 = vst [vmem:[%s11523_s5 + $0x898] sm:$0xff] %v5196_v15 }
 0x372   :  { %v5099_v22 = vpop.f32.mrf.mxu1  ;;  %v5200_v20 = vpop.f32.mrf.mxu0 }
 0x373   :  { %6141 = vst [vmem:[%s11523_s5 + $0x9a0] sm:$0xff] %v5099_v22  ;;  %6143 = vst [vmem:[%s11523_s5 + $0x9b0] sm:$0xff] %v5200_v20 }
 0x374   :  { %v5101_v21 = vpop.f32.mrf.mxu1  ;;  %v5202_v24 = vpop.f32.mrf.mxu0 }
 0x375   :  { %5704 = vmatmul.mubr.bf16.gmra.mxu1 %v8447_v47  ;;  %5805 = vmatmul.mubr.bf16.gmra.mxu0 %v8447_v47  ;;  %6142 = vst [vmem:[%s11523_s5 + $0x9a8] sm:$0xff] %v5101_v21  ;;  %6144 = vst [vmem:[%s11523_s5 + $0x9b8] sm:$0xff] %v5202_v24 }
 0x376   :  { %5713 = vmatprep.mubr.bf16.mxu1 %v8452_v16  ;;  %5814 = vmatprep.mubr.bf16.mxu0 %v8452_v16  ;;  %v5103_v26 = vpop.f32.mrf.mxu1  ;;  %v5204_v35 = vpop.f32.mrf.mxu0 }
 0x377   :  { %6177 = vst [vmem:[%s11523_s5 + $0xac0] sm:$0xff] %v5103_v26  ;;  %6179 = vst [vmem:[%s11523_s5 + $0xad0] sm:$0xff] %v5204_v35 }
 0x378   :  { %v5105_v47 = vpop.f32.mrf.mxu1  ;;  %v5206_v36 = vpop.f32.mrf.mxu0 }
 0x379   :  { %6178 = vst [vmem:[%s11523_s5 + $0xac8] sm:$0xff] %v5105_v47  ;;  %6180 = vst [vmem:[%s11523_s5 + $0xad8] sm:$0xff] %v5206_v36 }
 0x37a   :  { %v5109_v16 = vpop.f32.mrf.mxu1  ;;  %v5210_v34 = vpop.f32.mrf.mxu0 }
 0x37b   :  { %6213 = vst [vmem:[%s11523_s5 + $0xbe0] sm:$0xff] %v5109_v16  ;;  %6215 = vst [vmem:[%s11523_s5 + $0xbf0] sm:$0xff] %v5210_v34 }
 0x37c   :  { %v5111_v28 = vpop.f32.mrf.mxu1  ;;  %v5212_v38 = vpop.f32.mrf.mxu0 }
 0x37d   :  { %5714 = vmatmul.mubr.bf16.gmra.mxu1 %v8273_v62  ;;  %5815 = vmatmul.mubr.bf16.gmra.mxu0 %v8273_v62  ;;  %6214 = vst [vmem:[%s11523_s5 + $0xbe8] sm:$0xff] %v5111_v28  ;;  %6216 = vst [vmem:[%s11523_s5 + $0xbf8] sm:$0xff] %v5212_v38 }
 0x37e   :  { %5723 = vmatprep.mubr.bf16.mxu1 %v8482_v2  ;;  %5824 = vmatprep.mubr.bf16.mxu0 %v8482_v2  ;;  %v5113_v39 = vpop.f32.mrf.mxu1  ;;  %v5214_v31 = vpop.f32.mrf.mxu0 }
 0x37f   :  { %6249 = vst [vmem:[%s11523_s5 + $0xd00] sm:$0xff] %v5113_v39  ;;  %6251 = vst [vmem:[%s11523_s5 + $0xd10] sm:$0xff] %v5214_v31 }
 0x380   :  { %v5115_v62 = vpop.f32.mrf.mxu1  ;;  %v5216_v43 = vpop.f32.mrf.mxu0 }
 0x381   :  { %6250 = vst [vmem:[%s11523_s5 + $0xd08] sm:$0xff] %v5115_v62  ;;  %6252 = vst [vmem:[%s11523_s5 + $0xd18] sm:$0xff] %v5216_v43 }
 0x382   :  { %v5119_v2 = vpop.f32.mrf.mxu1  ;;  %v5220_v40 = vpop.f32.mrf.mxu0 }
 0x383   :  { %6285 = vst [vmem:[%s11523_s5 + $0xe20] sm:$0xff] %v5119_v2  ;;  %6287 = vst [vmem:[%s11523_s5 + $0xe30] sm:$0xff] %v5220_v40 }
 0x384   :  { %v5121_v0 = vpop.f32.mrf.mxu1  ;;  %v5222_v6 = vpop.f32.mrf.mxu0 }
 0x385   :  { %5724 = vmatmul.mubr.bf16.gmra.mxu1 %v8512_v7  ;;  %5825 = vmatmul.mubr.bf16.gmra.mxu0 %v8512_v7  ;;  %6286 = vst [vmem:[%s11523_s5 + $0xe28] sm:$0xff] %v5121_v0  ;;  %6288 = vst [vmem:[%s11523_s5 + $0xe38] sm:$0xff] %v5222_v6 }
 0x386   :  { %v5123_v45 = vpop.f32.mrf.mxu1  ;;  %v5224_v59 = vpop.f32.mrf.mxu0 }
 0x388   :  { %v5124_v33 = vpop.f32.mrf.mxu1  ;;  %v5225_v46 = vpop.f32.mrf.mxu0 }
 0x393   :  { %v5261_v48 = vpop.f32.mrf.mxu1  ;;  %v5362_v49 = vpop.f32.mrf.mxu0 }
 0x394   :  { %5857 = vst [vmem:[%s11523_s5 + $0xc0] sm:$0xff] %v5261_v48  ;;  %5859 = vst [vmem:[%s11523_s5 + $0xd0] sm:$0xff] %v5362_v49 }
 0x395   :  { %v5263_v7 = vpop.f32.mrf.mxu1  ;;  %v5364_v52 = vpop.f32.mrf.mxu0 }
 0x396   :  { %5858 = vst [vmem:[%s11523_s5 + $0xc8] sm:$0xff] %v5263_v7  ;;  %5860 = vst [vmem:[%s11523_s5 + $0xd8] sm:$0xff] %v5364_v52 }
 0x397   :  { %v5265_v53 = vpop.f32.mrf.mxu1  ;;  %v5366_v54 = vpop.f32.mrf.mxu0 }
 0x398   :  { %5893 = vst [vmem:[%s11523_s5 + $0x1e0] sm:$0xff] %v5265_v53  ;;  %5895 = vst [vmem:[%s11523_s5 + $0x1f0] sm:$0xff] %v5366_v54 }
 0x399   :  { %v5267_v1 = vpop.f32.mrf.mxu1  ;;  %v5368_v44 = vpop.f32.mrf.mxu0 }
 0x39a   :  { %5894 = vst [vmem:[%s11523_s5 + $0x1e8] sm:$0xff] %v5267_v1  ;;  %5896 = vst [vmem:[%s11523_s5 + $0x1f8] sm:$0xff] %v5368_v44 }
 0x39b   :  { %v5271_v60 = vpop.f32.mrf.mxu1  ;;  %v5372_v61 = vpop.f32.mrf.mxu0 }
 0x39c   :  { %5929 = vst [vmem:[%s11523_s5 + $0x300] sm:$0xff] %v5271_v60  ;;  %5931 = vst [vmem:[%s11523_s5 + $0x310] sm:$0xff] %v5372_v61 }
 0x39d   :  { %v5273_v55 = vpop.f32.mrf.mxu1  ;;  %v5374_v63 = vpop.f32.mrf.mxu0 }
 0x39e   :  { %5930 = vst [vmem:[%s11523_s5 + $0x308] sm:$0xff] %v5273_v55  ;;  %5932 = vst [vmem:[%s11523_s5 + $0x318] sm:$0xff] %v5374_v63 }
 0x39f   :  { %v5275_v3 = vpop.f32.mrf.mxu1  ;;  %v5376_v4 = vpop.f32.mrf.mxu0 }
 0x3a0   :  { %5965 = vst [vmem:[%s11523_s5 + $0x420] sm:$0xff] %v5275_v3  ;;  %5967 = vst [vmem:[%s11523_s5 + $0x430] sm:$0xff] %v5376_v4 }
 0x3a1   :  { %v5277_v41 = vpop.f32.mrf.mxu1  ;;  %v5378_v13 = vpop.f32.mrf.mxu0 }
 0x3a2   :  { %5966 = vst [vmem:[%s11523_s5 + $0x428] sm:$0xff] %v5277_v41  ;;  %5968 = vst [vmem:[%s11523_s5 + $0x438] sm:$0xff] %v5378_v13 }
 0x3a3   :  { %v5281_v12 = vpop.f32.mrf.mxu1  ;;  %v5382_v18 = vpop.f32.mrf.mxu0 }
 0x3a4   :  { %6001 = vst [vmem:[%s11523_s5 + $0x540] sm:$0xff] %v5281_v12  ;;  %6003 = vst [vmem:[%s11523_s5 + $0x550] sm:$0xff] %v5382_v18 }
 0x3a5   :  { %v5283_v57 = vpop.f32.mrf.mxu1  ;;  %v5384_v19 = vpop.f32.mrf.mxu0 }
 0x3a6   :  { %6002 = vst [vmem:[%s11523_s5 + $0x548] sm:$0xff] %v5283_v57  ;;  %6004 = vst [vmem:[%s11523_s5 + $0x558] sm:$0xff] %v5384_v19 }
 0x3a7   :  { %v5285_v5 = vpop.f32.mrf.mxu1  ;;  %v5386_v25 = vpop.f32.mrf.mxu0 }
 0x3a8   :  { %6037 = vst [vmem:[%s11523_s5 + $0x660] sm:$0xff] %v5285_v5  ;;  %6039 = vst [vmem:[%s11523_s5 + $0x670] sm:$0xff] %v5386_v25 }
 0x3a9   :  { %v5287_v17 = vpop.f32.mrf.mxu1  ;;  %v5388_v27 = vpop.f32.mrf.mxu0 }
 0x3aa   :  { %6038 = vst [vmem:[%s11523_s5 + $0x668] sm:$0xff] %v5287_v17  ;;  %6040 = vst [vmem:[%s11523_s5 + $0x678] sm:$0xff] %v5388_v27 }
 0x3ab   :  { %v5291_v23 = vpop.f32.mrf.mxu1  ;;  %v5392_v32 = vpop.f32.mrf.mxu0 }
 0x3ac   :  { %6073 = vst [vmem:[%s11523_s5 + $0x780] sm:$0xff] %v5291_v23  ;;  %6075 = vst [vmem:[%s11523_s5 + $0x790] sm:$0xff] %v5392_v32 }
 0x3ad   :  { %v5293_v42 = vpop.f32.mrf.mxu1  ;;  %v5394_v37 = vpop.f32.mrf.mxu0 }
 0x3ae   :  { %6074 = vst [vmem:[%s11523_s5 + $0x788] sm:$0xff] %v5293_v42  ;;  %6076 = vst [vmem:[%s11523_s5 + $0x798] sm:$0xff] %v5394_v37 }
 0x3af   :  { %v5295_v58 = vpop.f32.mrf.mxu1  ;;  %v5396_v8 = vpop.f32.mrf.mxu0 }
 0x3b0   :  { %6109 = vst [vmem:[%s11523_s5 + $0x8a0] sm:$0xff] %v5295_v58  ;;  %6111 = vst [vmem:[%s11523_s5 + $0x8b0] sm:$0xff] %v5396_v8 }
 0x3b1   :  { %v5297_v56 = vpop.f32.mrf.mxu1  ;;  %v5398_v50 = vpop.f32.mrf.mxu0 }
 0x3b2   :  { %6110 = vst [vmem:[%s11523_s5 + $0x8a8] sm:$0xff] %v5297_v56  ;;  %6112 = vst [vmem:[%s11523_s5 + $0x8b8] sm:$0xff] %v5398_v50 }
 0x3b3   :  { %v5301_v30 = vpop.f32.mrf.mxu1  ;;  %v5402_v9 = vpop.f32.mrf.mxu0 }
 0x3b4   :  { %6145 = vst [vmem:[%s11523_s5 + $0x9c0] sm:$0xff] %v5301_v30  ;;  %6147 = vst [vmem:[%s11523_s5 + $0x9d0] sm:$0xff] %v5402_v9 }
 0x3b5   :  { %v5303_v51 = vpop.f32.mrf.mxu1  ;;  %v5404_v10 = vpop.f32.mrf.mxu0 }
 0x3b6   :  { %6146 = vst [vmem:[%s11523_s5 + $0x9c8] sm:$0xff] %v5303_v51  ;;  %6148 = vst [vmem:[%s11523_s5 + $0x9d8] sm:$0xff] %v5404_v10 }
 0x3b7   :  { %v5305_v11 = vpop.f32.mrf.mxu1  ;;  %v5406_v14 = vpop.f32.mrf.mxu0 }
 0x3b8   :  { %6181 = vst [vmem:[%s11523_s5 + $0xae0] sm:$0xff] %v5305_v11  ;;  %6183 = vst [vmem:[%s11523_s5 + $0xaf0] sm:$0xff] %v5406_v14 }
 0x3b9   :  { %v5307_v29 = vpop.f32.mrf.mxu1  ;;  %v5408_v15 = vpop.f32.mrf.mxu0 }
 0x3ba   :  { %6182 = vst [vmem:[%s11523_s5 + $0xae8] sm:$0xff] %v5307_v29  ;;  %6184 = vst [vmem:[%s11523_s5 + $0xaf8] sm:$0xff] %v5408_v15 }
 0x3bb   :  { %v5311_v22 = vpop.f32.mrf.mxu1  ;;  %v5412_v20 = vpop.f32.mrf.mxu0 }
 0x3bc   :  { %6217 = vst [vmem:[%s11523_s5 + $0xc00] sm:$0xff] %v5311_v22  ;;  %6219 = vst [vmem:[%s11523_s5 + $0xc10] sm:$0xff] %v5412_v20 }
 0x3bd   :  { %v5313_v21 = vpop.f32.mrf.mxu1  ;;  %v5414_v24 = vpop.f32.mrf.mxu0 }
 0x3be   :  { %6218 = vst [vmem:[%s11523_s5 + $0xc08] sm:$0xff] %v5313_v21  ;;  %6220 = vst [vmem:[%s11523_s5 + $0xc18] sm:$0xff] %v5414_v24 }
 0x3bf   :  { %v5315_v26 = vpop.f32.mrf.mxu1  ;;  %v5416_v35 = vpop.f32.mrf.mxu0 }
 0x3c0   :  { %6253 = vst [vmem:[%s11523_s5 + $0xd20] sm:$0xff] %v5315_v26  ;;  %6255 = vst [vmem:[%s11523_s5 + $0xd30] sm:$0xff] %v5416_v35 }
 0x3c1   :  { %v5317_v47 = vpop.f32.mrf.mxu1  ;;  %v5418_v36 = vpop.f32.mrf.mxu0 }
 0x3c2   :  { %6254 = vst [vmem:[%s11523_s5 + $0xd28] sm:$0xff] %v5317_v47  ;;  %6256 = vst [vmem:[%s11523_s5 + $0xd38] sm:$0xff] %v5418_v36 }
 0x3c3   :  { %v5321_v16 = vpop.f32.mrf.mxu1  ;;  %v5422_v34 = vpop.f32.mrf.mxu0 }
 0x3c4   :  { %6289 = vst [vmem:[%s11523_s5 + $0xe40] sm:$0xff] %v5321_v16  ;;  %6291 = vst [vmem:[%s11523_s5 + $0xe50] sm:$0xff] %v5422_v34 }
 0x3c5   :  { %v5323_v28 = vpop.f32.mrf.mxu1  ;;  %v5424_v38 = vpop.f32.mrf.mxu0 }
 0x3c6   :  { %6290 = vst [vmem:[%s11523_s5 + $0xe48] sm:$0xff] %v5323_v28  ;;  %6292 = vst [vmem:[%s11523_s5 + $0xe58] sm:$0xff] %v5424_v38 }
 0x3c7   :  { %v5325_v39 = vpop.f32.mrf.mxu1  ;;  %v5426_v31 = vpop.f32.mrf.mxu0 }
 0x3c9   :  { %v5326_v62 = vpop.f32.mrf.mxu1  ;;  %v5427_v43 = vpop.f32.mrf.mxu0 }
 0x3d4   :  { %v5463_v2 = vpop.f32.mrf.mxu1  ;;  %v5564_v40 = vpop.f32.mrf.mxu0 }
 0x3d5   :  { %5861 = vst [vmem:[%s11523_s5 + $0xe0] sm:$0xff] %v5463_v2  ;;  %5863 = vst [vmem:[%s11523_s5 + $0xf0] sm:$0xff] %v5564_v40 }
 0x3d6   :  { %v5465_v0 = vpop.f32.mrf.mxu1  ;;  %v5566_v6 = vpop.f32.mrf.mxu0 }
 0x3d7   :  { %5862 = vst [vmem:[%s11523_s5 + $0xe8] sm:$0xff] %v5465_v0  ;;  %5864 = vst [vmem:[%s11523_s5 + $0xf8] sm:$0xff] %v5566_v6 }
 0x3d8   :  { %v5467_v45 = vpop.f32.mrf.mxu1  ;;  %v5568_v59 = vpop.f32.mrf.mxu0 }
 0x3d9   :  { %5897 = vst [vmem:[%s11523_s5 + $0x200] sm:$0xff] %v5467_v45  ;;  %5899 = vst [vmem:[%s11523_s5 + $0x210] sm:$0xff] %v5568_v59 }
 0x3da   :  { %v5469_v33 = vpop.f32.mrf.mxu1  ;;  %v5570_v46 = vpop.f32.mrf.mxu0 }
 0x3db   :  { %5898 = vst [vmem:[%s11523_s5 + $0x208] sm:$0xff] %v5469_v33  ;;  %5900 = vst [vmem:[%s11523_s5 + $0x218] sm:$0xff] %v5570_v46 }
 0x3dc   :  { %v5473_v48 = vpop.f32.mrf.mxu1  ;;  %v5574_v49 = vpop.f32.mrf.mxu0 }
 0x3dd   :  { %5933 = vst [vmem:[%s11523_s5 + $0x320] sm:$0xff] %v5473_v48  ;;  %5935 = vst [vmem:[%s11523_s5 + $0x330] sm:$0xff] %v5574_v49 }
 0x3de   :  { %v5475_v7 = vpop.f32.mrf.mxu1  ;;  %v5576_v52 = vpop.f32.mrf.mxu0 }
 0x3df   :  { %5934 = vst [vmem:[%s11523_s5 + $0x328] sm:$0xff] %v5475_v7  ;;  %5936 = vst [vmem:[%s11523_s5 + $0x338] sm:$0xff] %v5576_v52 }
 0x3e0   :  { %v5477_v53 = vpop.f32.mrf.mxu1  ;;  %v5578_v54 = vpop.f32.mrf.mxu0 }
 0x3e1   :  { %5969 = vst [vmem:[%s11523_s5 + $0x440] sm:$0xff] %v5477_v53  ;;  %5971 = vst [vmem:[%s11523_s5 + $0x450] sm:$0xff] %v5578_v54 }
 0x3e2   :  { %v5479_v1 = vpop.f32.mrf.mxu1  ;;  %v5580_v44 = vpop.f32.mrf.mxu0 }
 0x3e3   :  { %5970 = vst [vmem:[%s11523_s5 + $0x448] sm:$0xff] %v5479_v1  ;;  %5972 = vst [vmem:[%s11523_s5 + $0x458] sm:$0xff] %v5580_v44 }
 0x3e4   :  { %v5483_v60 = vpop.f32.mrf.mxu1  ;;  %v5584_v61 = vpop.f32.mrf.mxu0 }
 0x3e5   :  { %6005 = vst [vmem:[%s11523_s5 + $0x560] sm:$0xff] %v5483_v60  ;;  %6007 = vst [vmem:[%s11523_s5 + $0x570] sm:$0xff] %v5584_v61 }
 0x3e6   :  { %v5485_v55 = vpop.f32.mrf.mxu1  ;;  %v5586_v63 = vpop.f32.mrf.mxu0 }
 0x3e7   :  { %6006 = vst [vmem:[%s11523_s5 + $0x568] sm:$0xff] %v5485_v55  ;;  %6008 = vst [vmem:[%s11523_s5 + $0x578] sm:$0xff] %v5586_v63 }
 0x3e8   :  { %v5487_v3 = vpop.f32.mrf.mxu1  ;;  %v5588_v4 = vpop.f32.mrf.mxu0 }
 0x3e9   :  { %6041 = vst [vmem:[%s11523_s5 + $0x680] sm:$0xff] %v5487_v3  ;;  %6043 = vst [vmem:[%s11523_s5 + $0x690] sm:$0xff] %v5588_v4 }
 0x3ea   :  { %v5489_v41 = vpop.f32.mrf.mxu1  ;;  %v5590_v13 = vpop.f32.mrf.mxu0 }
 0x3eb   :  { %6042 = vst [vmem:[%s11523_s5 + $0x688] sm:$0xff] %v5489_v41  ;;  %6044 = vst [vmem:[%s11523_s5 + $0x698] sm:$0xff] %v5590_v13 }
 0x3ec   :  { %v5493_v12 = vpop.f32.mrf.mxu1  ;;  %v5594_v18 = vpop.f32.mrf.mxu0 }
 0x3ed   :  { %6077 = vst [vmem:[%s11523_s5 + $0x7a0] sm:$0xff] %v5493_v12  ;;  %6079 = vst [vmem:[%s11523_s5 + $0x7b0] sm:$0xff] %v5594_v18 }
 0x3ee   :  { %v5495_v57 = vpop.f32.mrf.mxu1  ;;  %v5596_v19 = vpop.f32.mrf.mxu0 }
 0x3ef   :  { %6078 = vst [vmem:[%s11523_s5 + $0x7a8] sm:$0xff] %v5495_v57  ;;  %6080 = vst [vmem:[%s11523_s5 + $0x7b8] sm:$0xff] %v5596_v19 }
 0x3f0   :  { %v5497_v5 = vpop.f32.mrf.mxu1  ;;  %v5598_v25 = vpop.f32.mrf.mxu0 }
 0x3f1   :  { %6113 = vst [vmem:[%s11523_s5 + $0x8c0] sm:$0xff] %v5497_v5  ;;  %6115 = vst [vmem:[%s11523_s5 + $0x8d0] sm:$0xff] %v5598_v25 }
 0x3f2   :  { %v5499_v17 = vpop.f32.mrf.mxu1  ;;  %v5600_v27 = vpop.f32.mrf.mxu0 }
 0x3f3   :  { %6114 = vst [vmem:[%s11523_s5 + $0x8c8] sm:$0xff] %v5499_v17  ;;  %6116 = vst [vmem:[%s11523_s5 + $0x8d8] sm:$0xff] %v5600_v27 }
 0x3f4   :  { %v5503_v23 = vpop.f32.mrf.mxu1  ;;  %v5604_v32 = vpop.f32.mrf.mxu0 }
 0x3f5   :  { %6149 = vst [vmem:[%s11523_s5 + $0x9e0] sm:$0xff] %v5503_v23  ;;  %6151 = vst [vmem:[%s11523_s5 + $0x9f0] sm:$0xff] %v5604_v32 }
 0x3f6   :  { %v5505_v42 = vpop.f32.mrf.mxu1  ;;  %v5606_v37 = vpop.f32.mrf.mxu0 }
 0x3f7   :  { %6150 = vst [vmem:[%s11523_s5 + $0x9e8] sm:$0xff] %v5505_v42  ;;  %6152 = vst [vmem:[%s11523_s5 + $0x9f8] sm:$0xff] %v5606_v37 }
 0x3f8   :  { %v5507_v58 = vpop.f32.mrf.mxu1  ;;  %v5608_v8 = vpop.f32.mrf.mxu0 }
 0x3f9   :  { %6185 = vst [vmem:[%s11523_s5 + $0xb00] sm:$0xff] %v5507_v58  ;;  %6187 = vst [vmem:[%s11523_s5 + $0xb10] sm:$0xff] %v5608_v8 }
 0x3fa   :  { %v5509_v56 = vpop.f32.mrf.mxu1  ;;  %v5610_v50 = vpop.f32.mrf.mxu0 }
 0x3fb   :  { %6186 = vst [vmem:[%s11523_s5 + $0xb08] sm:$0xff] %v5509_v56  ;;  %6188 = vst [vmem:[%s11523_s5 + $0xb18] sm:$0xff] %v5610_v50 }
 0x3fc   :  { %v5513_v30 = vpop.f32.mrf.mxu1  ;;  %v5614_v9 = vpop.f32.mrf.mxu0 }
 0x3fd   :  { %6221 = vst [vmem:[%s11523_s5 + $0xc20] sm:$0xff] %v5513_v30  ;;  %6223 = vst [vmem:[%s11523_s5 + $0xc30] sm:$0xff] %v5614_v9 }
 0x3fe   :  { %v5515_v51 = vpop.f32.mrf.mxu1  ;;  %v5616_v10 = vpop.f32.mrf.mxu0 }
 0x3ff   :  { %6222 = vst [vmem:[%s11523_s5 + $0xc28] sm:$0xff] %v5515_v51  ;;  %6224 = vst [vmem:[%s11523_s5 + $0xc38] sm:$0xff] %v5616_v10 }
 0x400   :  { %v5517_v11 = vpop.f32.mrf.mxu1  ;;  %v5618_v14 = vpop.f32.mrf.mxu0 }
 0x401   :  { %6257 = vst [vmem:[%s11523_s5 + $0xd40] sm:$0xff] %v5517_v11  ;;  %6259 = vst [vmem:[%s11523_s5 + $0xd50] sm:$0xff] %v5618_v14 }
 0x402   :  { %v5519_v29 = vpop.f32.mrf.mxu1  ;;  %v5620_v15 = vpop.f32.mrf.mxu0 }
 0x403   :  { %6258 = vst [vmem:[%s11523_s5 + $0xd48] sm:$0xff] %v5519_v29  ;;  %6260 = vst [vmem:[%s11523_s5 + $0xd58] sm:$0xff] %v5620_v15 }
 0x404   :  { %v5523_v22 = vpop.f32.mrf.mxu1  ;;  %v5624_v20 = vpop.f32.mrf.mxu0 }
 0x405   :  { %6293 = vst [vmem:[%s11523_s5 + $0xe60] sm:$0xff] %v5523_v22  ;;  %6295 = vst [vmem:[%s11523_s5 + $0xe70] sm:$0xff] %v5624_v20 }
 0x406   :  { %v5525_v21 = vpop.f32.mrf.mxu1  ;;  %v5626_v24 = vpop.f32.mrf.mxu0 }
 0x407   :  { %6294 = vst [vmem:[%s11523_s5 + $0xe68] sm:$0xff] %v5525_v21  ;;  %6296 = vst [vmem:[%s11523_s5 + $0xe78] sm:$0xff] %v5626_v24 }
 0x408   :  { %v5527_v26 = vpop.f32.mrf.mxu1  ;;  %v5628_v35 = vpop.f32.mrf.mxu0 }
 0x40a   :  { %v5528_v47 = vpop.f32.mrf.mxu1  ;;  %v5629_v36 = vpop.f32.mrf.mxu0 }
 0x415   :  { %v5665_v16 = vpop.f32.mrf.mxu1  ;;  %v5766_v34 = vpop.f32.mrf.mxu0 }
 0x416   :  { %5865 = vst [vmem:[%s11523_s5 + $0x100] sm:$0xff] %v5665_v16  ;;  %5867 = vst [vmem:[%s11523_s5 + $0x110] sm:$0xff] %v5766_v34 }
 0x417   :  { %v5667_v28 = vpop.f32.mrf.mxu1  ;;  %v5768_v38 = vpop.f32.mrf.mxu0 }
 0x418   :  { %5866 = vst [vmem:[%s11523_s5 + $0x108] sm:$0xff] %v5667_v28  ;;  %5868 = vst [vmem:[%s11523_s5 + $0x118] sm:$0xff] %v5768_v38 }
 0x419   :  { %v5669_v39 = vpop.f32.mrf.mxu1  ;;  %v5770_v31 = vpop.f32.mrf.mxu0 }
 0x41a   :  { %5901 = vst [vmem:[%s11523_s5 + $0x220] sm:$0xff] %v5669_v39  ;;  %5903 = vst [vmem:[%s11523_s5 + $0x230] sm:$0xff] %v5770_v31 }
 0x41b   :  { %v5671_v62 = vpop.f32.mrf.mxu1  ;;  %v5772_v43 = vpop.f32.mrf.mxu0 }
 0x41c   :  { %5902 = vst [vmem:[%s11523_s5 + $0x228] sm:$0xff] %v5671_v62  ;;  %5904 = vst [vmem:[%s11523_s5 + $0x238] sm:$0xff] %v5772_v43 }
 0x41d   :  { %v5675_v2 = vpop.f32.mrf.mxu1  ;;  %v5776_v40 = vpop.f32.mrf.mxu0 }
 0x41e   :  { %5937 = vst [vmem:[%s11523_s5 + $0x340] sm:$0xff] %v5675_v2  ;;  %5939 = vst [vmem:[%s11523_s5 + $0x350] sm:$0xff] %v5776_v40 }
 0x41f   :  { %v5677_v0 = vpop.f32.mrf.mxu1  ;;  %v5778_v6 = vpop.f32.mrf.mxu0 }
 0x420   :  { %5938 = vst [vmem:[%s11523_s5 + $0x348] sm:$0xff] %v5677_v0  ;;  %5940 = vst [vmem:[%s11523_s5 + $0x358] sm:$0xff] %v5778_v6 }
 0x421   :  { %v5679_v45 = vpop.f32.mrf.mxu1  ;;  %v5780_v59 = vpop.f32.mrf.mxu0 }
 0x422   :  { %5973 = vst [vmem:[%s11523_s5 + $0x460] sm:$0xff] %v5679_v45  ;;  %5975 = vst [vmem:[%s11523_s5 + $0x470] sm:$0xff] %v5780_v59 }
 0x423   :  { %v5681_v33 = vpop.f32.mrf.mxu1  ;;  %v5782_v46 = vpop.f32.mrf.mxu0 }
 0x424   :  { %5974 = vst [vmem:[%s11523_s5 + $0x468] sm:$0xff] %v5681_v33  ;;  %5976 = vst [vmem:[%s11523_s5 + $0x478] sm:$0xff] %v5782_v46 }
 0x425   :  { %v5685_v48 = vpop.f32.mrf.mxu1  ;;  %v5786_v49 = vpop.f32.mrf.mxu0 }
 0x426   :  { %6009 = vst [vmem:[%s11523_s5 + $0x580] sm:$0xff] %v5685_v48  ;;  %6011 = vst [vmem:[%s11523_s5 + $0x590] sm:$0xff] %v5786_v49 }
 0x427   :  { %v5687_v7 = vpop.f32.mrf.mxu1  ;;  %v5788_v52 = vpop.f32.mrf.mxu0 }
 0x428   :  { %6010 = vst [vmem:[%s11523_s5 + $0x588] sm:$0xff] %v5687_v7  ;;  %6012 = vst [vmem:[%s11523_s5 + $0x598] sm:$0xff] %v5788_v52 }
 0x429   :  { %v5689_v53 = vpop.f32.mrf.mxu1  ;;  %v5790_v54 = vpop.f32.mrf.mxu0 }
 0x42a   :  { %6045 = vst [vmem:[%s11523_s5 + $0x6a0] sm:$0xff] %v5689_v53  ;;  %6047 = vst [vmem:[%s11523_s5 + $0x6b0] sm:$0xff] %v5790_v54 }
 0x42b   :  { %v5691_v1 = vpop.f32.mrf.mxu1  ;;  %v5792_v44 = vpop.f32.mrf.mxu0 }
 0x42c   :  { %6046 = vst [vmem:[%s11523_s5 + $0x6a8] sm:$0xff] %v5691_v1  ;;  %6048 = vst [vmem:[%s11523_s5 + $0x6b8] sm:$0xff] %v5792_v44 }
 0x42d   :  { %v5695_v60 = vpop.f32.mrf.mxu1  ;;  %v5796_v61 = vpop.f32.mrf.mxu0 }
 0x42e   :  { %6081 = vst [vmem:[%s11523_s5 + $0x7c0] sm:$0xff] %v5695_v60  ;;  %6083 = vst [vmem:[%s11523_s5 + $0x7d0] sm:$0xff] %v5796_v61 }
 0x42f   :  { %v5697_v55 = vpop.f32.mrf.mxu1  ;;  %v5798_v63 = vpop.f32.mrf.mxu0 }
 0x430   :  { %6082 = vst [vmem:[%s11523_s5 + $0x7c8] sm:$0xff] %v5697_v55  ;;  %6084 = vst [vmem:[%s11523_s5 + $0x7d8] sm:$0xff] %v5798_v63 }
 0x431   :  { %v5699_v3 = vpop.f32.mrf.mxu1  ;;  %v5800_v4 = vpop.f32.mrf.mxu0 }
 0x432   :  { %6117 = vst [vmem:[%s11523_s5 + $0x8e0] sm:$0xff] %v5699_v3  ;;  %6119 = vst [vmem:[%s11523_s5 + $0x8f0] sm:$0xff] %v5800_v4 }
 0x433   :  { %v5701_v41 = vpop.f32.mrf.mxu1  ;;  %v5802_v13 = vpop.f32.mrf.mxu0 }
 0x434   :  { %6118 = vst [vmem:[%s11523_s5 + $0x8e8] sm:$0xff] %v5701_v41  ;;  %6120 = vst [vmem:[%s11523_s5 + $0x8f8] sm:$0xff] %v5802_v13 }
 0x435   :  { %v5705_v12 = vpop.f32.mrf.mxu1  ;;  %v5806_v18 = vpop.f32.mrf.mxu0 }
 0x436   :  { %6153 = vst [vmem:[%s11523_s5 + $0xa00] sm:$0xff] %v5705_v12  ;;  %6155 = vst [vmem:[%s11523_s5 + $0xa10] sm:$0xff] %v5806_v18 }
 0x437   :  { %v5707_v57 = vpop.f32.mrf.mxu1  ;;  %v5808_v19 = vpop.f32.mrf.mxu0 }
 0x438   :  { %6154 = vst [vmem:[%s11523_s5 + $0xa08] sm:$0xff] %v5707_v57  ;;  %6156 = vst [vmem:[%s11523_s5 + $0xa18] sm:$0xff] %v5808_v19 }
 0x439   :  { %v5709_v5 = vpop.f32.mrf.mxu1  ;;  %v5810_v25 = vpop.f32.mrf.mxu0 }
 0x43a   :  { %6189 = vst [vmem:[%s11523_s5 + $0xb20] sm:$0xff] %v5709_v5  ;;  %6191 = vst [vmem:[%s11523_s5 + $0xb30] sm:$0xff] %v5810_v25 }
 0x43b   :  { %v5711_v17 = vpop.f32.mrf.mxu1  ;;  %v5812_v27 = vpop.f32.mrf.mxu0 }
 0x43c   :  { %6190 = vst [vmem:[%s11523_s5 + $0xb28] sm:$0xff] %v5711_v17  ;;  %6192 = vst [vmem:[%s11523_s5 + $0xb38] sm:$0xff] %v5812_v27 }
 0x43d   :  { %v5715_v23 = vpop.f32.mrf.mxu1  ;;  %v5816_v32 = vpop.f32.mrf.mxu0 }
 0x43e   :  { %6225 = vst [vmem:[%s11523_s5 + $0xc40] sm:$0xff] %v5715_v23  ;;  %6227 = vst [vmem:[%s11523_s5 + $0xc50] sm:$0xff] %v5816_v32 }
 0x43f   :  { %v5717_v42 = vpop.f32.mrf.mxu1  ;;  %v5818_v37 = vpop.f32.mrf.mxu0 }
 0x440   :  { %6226 = vst [vmem:[%s11523_s5 + $0xc48] sm:$0xff] %v5717_v42  ;;  %6228 = vst [vmem:[%s11523_s5 + $0xc58] sm:$0xff] %v5818_v37 }
 0x441   :  { %v5719_v58 = vpop.f32.mrf.mxu1  ;;  %v5820_v8 = vpop.f32.mrf.mxu0 }
 0x442   :  { %6261 = vst [vmem:[%s11523_s5 + $0xd60] sm:$0xff] %v5719_v58  ;;  %6263 = vst [vmem:[%s11523_s5 + $0xd70] sm:$0xff] %v5820_v8 }
 0x443   :  { %v5721_v56 = vpop.f32.mrf.mxu1  ;;  %v5822_v50 = vpop.f32.mrf.mxu0 }
 0x444   :  { %6262 = vst [vmem:[%s11523_s5 + $0xd68] sm:$0xff] %v5721_v56  ;;  %6264 = vst [vmem:[%s11523_s5 + $0xd78] sm:$0xff] %v5822_v50 }
 0x445   :  { %v5725_v30 = vpop.f32.mrf.mxu1  ;;  %v5826_v9 = vpop.f32.mrf.mxu0 }
 0x446   :  { %6297 = vst [vmem:[%s11523_s5 + $0xe80] sm:$0xff] %v5725_v30  ;;  %6299 = vst [vmem:[%s11523_s5 + $0xe90] sm:$0xff] %v5826_v9 }
 0x447   :  { %v5727_v51 = vpop.f32.mrf.mxu1  ;;  %v5828_v10 = vpop.f32.mrf.mxu0 }
 0x448   :  { %6298 = vst [vmem:[%s11523_s5 + $0xe88] sm:$0xff] %v5727_v51  ;;  %6300 = vst [vmem:[%s11523_s5 + $0xe98] sm:$0xff] %v5828_v10 }
 0x449   :  { %v5729_v11 = vpop.f32.mrf.mxu1  ;;  %v5830_v14 = vpop.f32.mrf.mxu0 }
 0x44b   :  { %v5730_v29 = vpop.f32.mrf.mxu1  ;;  %v5831_v15 = vpop.f32.mrf.mxu0 }

// kernel: shoobygen_forward.4
= control target key start
LH: loop header
LB: loop body
LE: loop exit
PB: predicated region body
PF: predicated region fallthrough
CT: control target
= control target key end

     0   :  { %v4761_v0 = vmov 0.0   ;;  %vm2699_vm0 = vmmov 0   ;;  %s4756_s3 = inlined_call_operand.vmem [shape: bf16[128,128], index: 3, kind: input, shape index: {}]   ;;  %s4757_s0 = inlined_call_operand.vmem [shape: f32[1256,128], index: 0, kind: input, shape index: {}]   ;;  %s4758_s1 = inlined_call_operand.vmem [shape: f32[1,128], index: 1, kind: input, shape index: {}]   ;;  %s4759_s2 = inlined_call_operand.vmem [shape: f32[1,128], index: 2, kind: input, shape index: {}]   ;;  %s4760_s4 = inlined_call_operand.vmem [shape: f32[1256,128], index: 4, kind: output, shape index: {}]  }
   0x1   :  { %2213 = vmatprep.subr.bf16.mxu0 %v4761_v0  ;;  %v2563_v1 = vld [vmem:[%s4756_s3 + $0x38] sm:$0xff]   ;;  %2545 = vmatprep.subr.bf16.mxu1 %v4761_v0  ;;  %v2564_v2 = vld [vmem:[%s4756_s3 + $0x30] sm:$0xff]   ;;  %v2565_v3 = vld [vmem:[%s4756_s3 + $0x28] sm:$0xff]  }
   0x2   :  { %2229 = vmatprep.mubr.msk.bf16.mxu0 %vm2699_vm0, %v4761_v0  ;;  %2389 = vmatprep.mubr.msk.bf16.mxu1 %vm2699_vm0, %v4761_v0  ;;  %v18_v4 = vld [vmem:[%s4757_s0] sm:$0xff]  ;;  %v19_v5 = vld [vmem:[%s4757_s0 + $0x8] sm:$0xff]  ;;  %v20_v6 = vld [vmem:[%s4757_s0 + $0x10] sm:$0xff] }
   0x3   :  { %2214 = vmatpush3.bf16.msra.mxu0 %v2563_v1  ;;  %2553 = vmatpush3.bf16.msra.mxu1 %v2563_v1  ;;  %v175_v7 = vadd.f32 %v19_v5, %v18_v4  ;;  %v2566_v8 = vld [vmem:[%s4756_s3 + $0x20] sm:$0xff]   ;;  %v21_v9 = vld [vmem:[%s4757_s0 + $0x18] sm:$0xff]  ;;  %v23_v14 = vld [vmem:[%s4757_s0 + $0x28] sm:$0xff]  ;;  %v337_v32 = vmul.f32 %v18_v4, %v18_v4  ;;  %v338_v33 = vmul.f32 %v19_v5, %v19_v5 }
   0x4   :  { %2215 = vmatprep.subr.bf16.mxu0 %v4761_v0  ;;  %2546 = vmatprep.subr.bf16.mxu1 %v4761_v0  ;;  %v22_v11 = vld [vmem:[%s4757_s0 + $0x20] sm:$0xff]  ;;  %v2567_v13 = vld [vmem:[%s4756_s3 + $0x18] sm:$0xff]   ;;  %v24_v16 = vld [vmem:[%s4757_s0 + $0x30] sm:$0xff]  ;;  %v339_v36 = vmul.f32 %v20_v6, %v20_v6  ;;  %v340_v39 = vmul.f32 %v21_v9, %v21_v9  ;;  %v342_v47 = vmul.f32 %v23_v14, %v23_v14 }
   0x5   :  { %v176_v10 = vadd.f32 %v175_v7, %v20_v6  ;;  %v2568_v18 = vld [vmem:[%s4756_s3 + $0x10] sm:$0xff]   ;;  %v25_v19 = vld [vmem:[%s4757_s0 + $0x38] sm:$0xff]  ;;  %v26_v21 = vld [vmem:[%s4757_s0 + $0x40] sm:$0xff]  ;;  %v494_v40 = vadd.f32 %v338_v33, %v337_v32  ;;  %v341_v43 = vmul.f32 %v22_v11, %v22_v11  ;;  %v343_v51 = vmul.f32 %v24_v16, %v24_v16 }
   0x6   :  { %v2569_v23 = vld [vmem:[%s4756_s3 + $0x8] sm:$0xff]   ;;  %v28_v26 = vld [vmem:[%s4757_s0 + $0x50] sm:$0xff]  ;;  %v2570_v28 = vld [vmem:[%s4756_s3] sm:$0xff]   ;;  %v344_v55 = vmul.f32 %v25_v19, %v25_v19  ;;  %v345_v59 = vmul.f32 %v26_v21, %v26_v21 }
   0x7   :  { %2216 = vmatpush3.bf16.msra.mxu0 %v2564_v2  ;;  %2554 = vmatpush3.bf16.msra.mxu1 %v2564_v2  ;;  %v177_v12 = vadd.f32 %v176_v10, %v21_v9  ;;  %v27_v24 = vld [vmem:[%s4757_s0 + $0x48] sm:$0xff]  ;;  %v29_v29 = vld [vmem:[%s4757_s0 + $0x58] sm:$0xff]  ;;  %v30_v31 = vld [vmem:[%s4757_s0 + $0x60] sm:$0xff]  ;;  %v495_v44 = vadd.f32 %v494_v40, %v339_v36  ;;  %v347_v4 = vmul.f32 %v28_v26, %v28_v26 }
   0x8   :  { %2217 = vmatprep.subr.bf16.mxu0 %v4761_v0  ;;  %2547 = vmatprep.subr.bf16.mxu1 %v4761_v0  ;;  %v31_v35 = vld [vmem:[%s4757_s0 + $0x68] sm:$0xff]  ;;  %v32_v38 = vld [vmem:[%s4757_s0 + $0x70] sm:$0xff]  ;;  %v33_v42 = vld [vmem:[%s4757_s0 + $0x78] sm:$0xff]  ;;  %v346_v63 = vmul.f32 %v27_v24, %v27_v24 }
   0x9   :  { %v178_v15 = vadd.f32 %v177_v12, %v22_v11  ;;  %v34_v46 = vld [vmem:[%s4757_s0 + $0x80] sm:$0xff]  ;;  %v496_v48 = vadd.f32 %v495_v44, %v340_v39  ;;  %v35_v50 = vld [vmem:[%s4757_s0 + $0x88] sm:$0xff]  ;;  %v36_v54 = vld [vmem:[%s4757_s0 + $0x90] sm:$0xff]  ;;  %v349_v12 = vmul.f32 %v30_v31, %v30_v31 }
   0xa   :  { %v37_v58 = vld [vmem:[%s4757_s0 + $0x98] sm:$0xff]  ;;  %v38_v62 = vld [vmem:[%s4757_s0 + $0xa0] sm:$0xff]  ;;  %v40_v7 = vld [vmem:[%s4757_s0 + $0xb0] sm:$0xff]  ;;  %v354_v32 = vmul.f32 %v35_v50, %v35_v50  ;;  %v355_v36 = vmul.f32 %v36_v54, %v36_v54 }
   0xb   :  { %2218 = vmatpush3.bf16.msra.mxu0 %v2565_v3  ;;  %2555 = vmatpush3.bf16.msra.mxu1 %v2565_v3  ;;  %v179_v17 = vadd.f32 %v178_v15, %v23_v14  ;;  %v497_v52 = vadd.f32 %v496_v48, %v341_v43  ;;  %v39_v3 = vld [vmem:[%s4757_s0 + $0xa8] sm:$0xff]  ;;  %v41_v11 = vld [vmem:[%s4757_s0 + $0xb8] sm:$0xff]  ;;  %v42_v15 = vld [vmem:[%s4757_s0 + $0xc0] sm:$0xff]  ;;  %v356_v40 = vmul.f32 %v37_v58, %v37_v58 }
   0xc   :  { %2219 = vmatprep.subr.bf16.mxu0 %v4761_v0  ;;  %2548 = vmatprep.subr.bf16.mxu1 %v4761_v0  ;;  %v48_v39 = vld [vmem:[%s4757_s0 + $0xf0] sm:$0xff]  ;;  %v49_v43 = vld [vmem:[%s4757_s0 + $0xf8] sm:$0xff]  ;;  %v357_v44 = vmul.f32 %v38_v62, %v38_v62  ;;  %v358_v48 = vmul.f32 %v39_v3, %v39_v3 }
   0xd   :  { %v180_v20 = vadd.f32 %v179_v17, %v24_v16  ;;  %v498_v56 = vadd.f32 %v497_v52, %v342_v47  ;;  %v350_v16 = vmul.f32 %v31_v35, %v31_v35  ;;  %v50_v47 = vld [vmem:[%s4757_s0 + $0x100] sm:$0xff]  ;;  %v359_v52 = vmul.f32 %v40_v7, %v40_v7 }
   0xf   :  { %2220 = vmatpush3.bf16.msra.mxu0 %v2566_v8  ;;  %2556 = vmatpush3.bf16.msra.mxu1 %v2566_v8  ;;  %v181_v22 = vadd.f32 %v180_v20, %v25_v19  ;;  %v499_v60 = vadd.f32 %v498_v56, %v343_v51  ;;  %v348_v8 = vmul.f32 %v29_v29, %v29_v29  ;;  %v43_v19 = vld [vmem:[%s4757_s0 + $0xc8] sm:$0xff] }
  0x10   :  { %2221 = vmatprep.subr.bf16.mxu0 %v4761_v0  ;;  %2549 = vmatprep.subr.bf16.mxu1 %v4761_v0  ;;  %v351_v20 = vmul.f32 %v32_v38, %v32_v38  ;;  %v51_v51 = vld [vmem:[%s4757_s0 + $0x108] sm:$0xff]  ;;  %v360_v56 = vmul.f32 %v41_v11, %v41_v11 }
  0x11   :  { %v182_v25 = vadd.f32 %v181_v22, %v26_v21  ;;  %v500_v1 = vadd.f32 %v499_v60, %v344_v55  ;;  %v52_v55 = vld [vmem:[%s4757_s0 + $0x110] sm:$0xff]  ;;  %v361_v60 = vmul.f32 %v42_v15, %v42_v15 }
  0x13   :  { %2222 = vmatpush3.bf16.msra.mxu0 %v2567_v13  ;;  %2557 = vmatpush3.bf16.msra.mxu1 %v2567_v13  ;;  %v183_v27 = vadd.f32 %v182_v25, %v27_v24  ;;  %v501_v5 = vadd.f32 %v500_v1, %v345_v59  ;;  %v352_v24 = vmul.f32 %v33_v42, %v33_v42  ;;  %v53_v59 = vld [vmem:[%s4757_s0 + $0x118] sm:$0xff] }
  0x14   :  { %2223 = vmatprep.subr.bf16.mxu0 %v4761_v0  ;;  %2550 = vmatprep.subr.bf16.mxu1 %v4761_v0  ;;  %v362_v1 = vmul.f32 %v43_v19, %v43_v19 }
  0x15   :  { %v184_v30 = vadd.f32 %v183_v27, %v28_v26  ;;  %v502_v9 = vadd.f32 %v501_v5, %v346_v63  ;;  %v45_v27 = vld [vmem:[%s4757_s0 + $0xd8] sm:$0xff]  ;;  %v54_v63 = vld [vmem:[%s4757_s0 + $0x120] sm:$0xff] }
  0x17   :  { %2224 = vmatpush3.bf16.msra.mxu0 %v2568_v18  ;;  %2558 = vmatpush3.bf16.msra.mxu1 %v2568_v18  ;;  %v185_v34 = vadd.f32 %v184_v30, %v29_v29  ;;  %v503_v13 = vadd.f32 %v502_v9, %v347_v4  ;;  %v55_v4 = vld [vmem:[%s4757_s0 + $0x128] sm:$0xff]  ;;  %v364_v9 = vmul.f32 %v45_v27, %v45_v27 }
  0x18   :  { %2225 = vmatprep.subr.bf16.mxu0 %v4761_v0  ;;  %2551 = vmatprep.subr.bf16.mxu1 %v4761_v0 }
  0x19   :  { %v186_v37 = vadd.f32 %v185_v34, %v30_v31  ;;  %v504_v17 = vadd.f32 %v503_v13, %v348_v8  ;;  %v46_v31 = vld [vmem:[%s4757_s0 + $0xe0] sm:$0xff]  ;;  %v56_v8 = vld [vmem:[%s4757_s0 + $0x130] sm:$0xff] }
  0x1a   :  { %v365_v13 = vmul.f32 %v46_v31, %v46_v31 }
  0x1b   :  { %2226 = vmatpush3.bf16.msra.mxu0 %v2569_v23  ;;  %2559 = vmatpush3.bf16.msra.mxu1 %v2569_v23  ;;  %v187_v41 = vadd.f32 %v186_v37, %v31_v35  ;;  %v505_v21 = vadd.f32 %v504_v17, %v349_v12  ;;  %v44_v23 = vld [vmem:[%s4757_s0 + $0xd0] sm:$0xff]  ;;  %v47_v35 = vld [vmem:[%s4757_s0 + $0xe8] sm:$0xff]  ;;  %v57_v12 = vld [vmem:[%s4757_s0 + $0x138] sm:$0xff] }
  0x1c   :  { %2227 = vmatprep.subr.bf16.mxu0 %v4761_v0  ;;  %2552 = vmatprep.subr.bf16.mxu1 %v4761_v0  ;;  %v363_v5 = vmul.f32 %v44_v23, %v44_v23  ;;  %v366_v17 = vmul.f32 %v47_v35, %v47_v35 }
  0x1d   :  { %v188_v45 = vadd.f32 %v187_v41, %v32_v38  ;;  %v506_v25 = vadd.f32 %v505_v21, %v350_v16  ;;  %v58_v16 = vld [vmem:[%s4757_s0 + $0x140] sm:$0xff]  ;;  %v367_v21 = vmul.f32 %v48_v39, %v48_v39 }
  0x1f   :  { %2228 = vmatpush3.bf16.msra.mxu0 %v2570_v28  ;;  %2560 = vmatpush3.bf16.msra.mxu1 %v2570_v28  ;;  %v189_v49 = vadd.f32 %v188_v45, %v33_v42  ;;  %v353_v28 = vmul.f32 %v34_v46, %v34_v46  ;;  %v507_v29 = vadd.f32 %v506_v25, %v351_v20  ;;  %v59_v20 = vld [vmem:[%s4757_s0 + $0x148] sm:$0xff] }
  0x20   :  { %v368_v25 = vmul.f32 %v49_v43, %v49_v43 }
  0x21   :  { %v190_v53 = vadd.f32 %v189_v49, %v34_v46  ;;  %v508_v33 = vadd.f32 %v507_v29, %v352_v24  ;;  %v60_v24 = vld [vmem:[%s4757_s0 + $0x150] sm:$0xff]  ;;  %v369_v29 = vmul.f32 %v50_v47, %v50_v47 }
  0x23   :  { %v191_v57 = vadd.f32 %v190_v53, %v35_v50  ;;  %v509_v37 = vadd.f32 %v508_v33, %v353_v28  ;;  %v61_v28 = vld [vmem:[%s4757_s0 + $0x158] sm:$0xff]  ;;  %v370_v33 = vmul.f32 %v51_v51, %v51_v51 }
  0x25   :  { %v192_v61 = vadd.f32 %v191_v57, %v36_v54  ;;  %v510_v41 = vadd.f32 %v509_v37, %v354_v32  ;;  %v62_v32 = vld [vmem:[%s4757_s0 + $0x160] sm:$0xff]  ;;  %v371_v37 = vmul.f32 %v52_v55, %v52_v55 }
  0x27   :  { %v193_v2 = vadd.f32 %v192_v61, %v37_v58  ;;  %v511_v45 = vadd.f32 %v510_v41, %v355_v36  ;;  %v63_v36 = vld [vmem:[%s4757_s0 + $0x168] sm:$0xff]  ;;  %v372_v41 = vmul.f32 %v53_v59, %v53_v59 }
  0x29   :  { %v194_v6 = vadd.f32 %v193_v2, %v38_v62  ;;  %v512_v49 = vadd.f32 %v511_v45, %v356_v40  ;;  %v64_v40 = vld [vmem:[%s4757_s0 + $0x170] sm:$0xff]  ;;  %v373_v45 = vmul.f32 %v54_v63, %v54_v63 }
  0x2b   :  { %v195_v10 = vadd.f32 %v194_v6, %v39_v3  ;;  %v513_v53 = vadd.f32 %v512_v49, %v357_v44  ;;  %v65_v44 = vld [vmem:[%s4757_s0 + $0x178] sm:$0xff]  ;;  %v374_v49 = vmul.f32 %v55_v4, %v55_v4 }
  0x2d   :  { %v196_v14 = vadd.f32 %v195_v10, %v40_v7  ;;  %v514_v57 = vadd.f32 %v513_v53, %v358_v48  ;;  %v66_v48 = vld [vmem:[%s4757_s0 + $0x180] sm:$0xff]  ;;  %v375_v53 = vmul.f32 %v56_v8, %v56_v8 }
  0x2f   :  { %v197_v18 = vadd.f32 %v196_v14, %v41_v11  ;;  %v515_v61 = vadd.f32 %v514_v57, %v359_v52  ;;  %v67_v52 = vld [vmem:[%s4757_s0 + $0x188] sm:$0xff]  ;;  %v376_v57 = vmul.f32 %v57_v12, %v57_v12 }
  0x31   :  { %v198_v22 = vadd.f32 %v197_v18, %v42_v15  ;;  %v516_v2 = vadd.f32 %v515_v61, %v360_v56  ;;  %v68_v56 = vld [vmem:[%s4757_s0 + $0x190] sm:$0xff]  ;;  %v377_v61 = vmul.f32 %v58_v16, %v58_v16 }
  0x33   :  { %v199_v26 = vadd.f32 %v198_v22, %v43_v19  ;;  %v517_v6 = vadd.f32 %v516_v2, %v361_v60  ;;  %v69_v60 = vld [vmem:[%s4757_s0 + $0x198] sm:$0xff]  ;;  %v378_v2 = vmul.f32 %v59_v20, %v59_v20 }
  0x35   :  { %v200_v30 = vadd.f32 %v199_v26, %v44_v23  ;;  %v518_v10 = vadd.f32 %v517_v6, %v362_v1  ;;  %v70_v1 = vld [vmem:[%s4757_s0 + $0x1a0] sm:$0xff]  ;;  %v379_v6 = vmul.f32 %v60_v24, %v60_v24 }
  0x37   :  { %v201_v34 = vadd.f32 %v200_v30, %v45_v27  ;;  %v519_v14 = vadd.f32 %v518_v10, %v363_v5  ;;  %v71_v5 = vld [vmem:[%s4757_s0 + $0x1a8] sm:$0xff]  ;;  %v380_v10 = vmul.f32 %v61_v28, %v61_v28 }
  0x39   :  { %v202_v38 = vadd.f32 %v201_v34, %v46_v31  ;;  %v520_v18 = vadd.f32 %v519_v14, %v364_v9  ;;  %v72_v9 = vld [vmem:[%s4757_s0 + $0x1b0] sm:$0xff]  ;;  %v381_v14 = vmul.f32 %v62_v32, %v62_v32 }
  0x3b   :  { %v203_v42 = vadd.f32 %v202_v38, %v47_v35  ;;  %v521_v22 = vadd.f32 %v520_v18, %v365_v13  ;;  %v73_v13 = vld [vmem:[%s4757_s0 + $0x1b8] sm:$0xff]  ;;  %v382_v18 = vmul.f32 %v63_v36, %v63_v36 }
  0x3d   :  { %v204_v46 = vadd.f32 %v203_v42, %v48_v39  ;;  %v522_v26 = vadd.f32 %v521_v22, %v366_v17  ;;  %v74_v17 = vld [vmem:[%s4757_s0 + $0x1c0] sm:$0xff]  ;;  %v383_v22 = vmul.f32 %v64_v40, %v64_v40 }
  0x3f   :  { %v205_v50 = vadd.f32 %v204_v46, %v49_v43  ;;  %v523_v30 = vadd.f32 %v522_v26, %v367_v21  ;;  %v75_v21 = vld [vmem:[%s4757_s0 + $0x1c8] sm:$0xff]  ;;  %v384_v26 = vmul.f32 %v65_v44, %v65_v44 }
  0x41   :  { %v206_v54 = vadd.f32 %v205_v50, %v50_v47  ;;  %v524_v34 = vadd.f32 %v523_v30, %v368_v25  ;;  %v76_v25 = vld [vmem:[%s4757_s0 + $0x1d0] sm:$0xff]  ;;  %v385_v30 = vmul.f32 %v66_v48, %v66_v48 }
  0x43   :  { %v207_v58 = vadd.f32 %v206_v54, %v51_v51  ;;  %v525_v38 = vadd.f32 %v524_v34, %v369_v29  ;;  %v77_v29 = vld [vmem:[%s4757_s0 + $0x1d8] sm:$0xff]  ;;  %v386_v34 = vmul.f32 %v67_v52, %v67_v52 }
  0x45   :  { %v208_v62 = vadd.f32 %v207_v58, %v52_v55  ;;  %v526_v42 = vadd.f32 %v525_v38, %v370_v33  ;;  %v78_v33 = vld [vmem:[%s4757_s0 + $0x1e0] sm:$0xff]  ;;  %v387_v38 = vmul.f32 %v68_v56, %v68_v56 }
  0x47   :  { %v209_v3 = vadd.f32 %v208_v62, %v53_v59  ;;  %v527_v46 = vadd.f32 %v526_v42, %v371_v37  ;;  %v79_v37 = vld [vmem:[%s4757_s0 + $0x1e8] sm:$0xff]  ;;  %v388_v42 = vmul.f32 %v69_v60, %v69_v60 }
  0x49   :  { %v210_v7 = vadd.f32 %v209_v3, %v54_v63  ;;  %v528_v50 = vadd.f32 %v527_v46, %v372_v41  ;;  %v80_v41 = vld [vmem:[%s4757_s0 + $0x1f0] sm:$0xff]  ;;  %v389_v46 = vmul.f32 %v70_v1, %v70_v1 }
  0x4b   :  { %v211_v11 = vadd.f32 %v210_v7, %v55_v4  ;;  %v529_v54 = vadd.f32 %v528_v50, %v373_v45  ;;  %v81_v45 = vld [vmem:[%s4757_s0 + $0x1f8] sm:$0xff]  ;;  %v390_v50 = vmul.f32 %v71_v5, %v71_v5 }
  0x4d   :  { %v212_v15 = vadd.f32 %v211_v11, %v56_v8  ;;  %v530_v58 = vadd.f32 %v529_v54, %v374_v49  ;;  %v82_v49 = vld [vmem:[%s4757_s0 + $0x200] sm:$0xff]  ;;  %v391_v54 = vmul.f32 %v72_v9, %v72_v9 }
  0x4f   :  { %v213_v19 = vadd.f32 %v212_v15, %v57_v12  ;;  %v531_v62 = vadd.f32 %v530_v58, %v375_v53  ;;  %v83_v53 = vld [vmem:[%s4757_s0 + $0x208] sm:$0xff]  ;;  %v392_v58 = vmul.f32 %v73_v13, %v73_v13 }
  0x51   :  { %v214_v23 = vadd.f32 %v213_v19, %v58_v16  ;;  %v532_v3 = vadd.f32 %v531_v62, %v376_v57  ;;  %v84_v57 = vld [vmem:[%s4757_s0 + $0x210] sm:$0xff]  ;;  %v393_v62 = vmul.f32 %v74_v17, %v74_v17 }
  0x53   :  { %v215_v27 = vadd.f32 %v214_v23, %v59_v20  ;;  %v533_v7 = vadd.f32 %v532_v3, %v377_v61  ;;  %v85_v61 = vld [vmem:[%s4757_s0 + $0x218] sm:$0xff]  ;;  %v394_v3 = vmul.f32 %v75_v21, %v75_v21 }
  0x55   :  { %v216_v31 = vadd.f32 %v215_v27, %v60_v24  ;;  %v534_v11 = vadd.f32 %v533_v7, %v378_v2  ;;  %v86_v2 = vld [vmem:[%s4757_s0 + $0x220] sm:$0xff]  ;;  %v395_v7 = vmul.f32 %v76_v25, %v76_v25 }
  0x57   :  { %v217_v35 = vadd.f32 %v216_v31, %v61_v28  ;;  %v535_v15 = vadd.f32 %v534_v11, %v379_v6  ;;  %v87_v6 = vld [vmem:[%s4757_s0 + $0x228] sm:$0xff]  ;;  %v396_v11 = vmul.f32 %v77_v29, %v77_v29 }
  0x59   :  { %v218_v39 = vadd.f32 %v217_v35, %v62_v32  ;;  %v536_v19 = vadd.f32 %v535_v15, %v380_v10  ;;  %v88_v10 = vld [vmem:[%s4757_s0 + $0x230] sm:$0xff]  ;;  %v397_v15 = vmul.f32 %v78_v33, %v78_v33 }
  0x5b   :  { %v219_v43 = vadd.f32 %v218_v39, %v63_v36  ;;  %v537_v23 = vadd.f32 %v536_v19, %v381_v14  ;;  %v89_v14 = vld [vmem:[%s4757_s0 + $0x238] sm:$0xff]  ;;  %v398_v19 = vmul.f32 %v79_v37, %v79_v37 }
  0x5d   :  { %v220_v47 = vadd.f32 %v219_v43, %v64_v40  ;;  %v538_v27 = vadd.f32 %v537_v23, %v382_v18  ;;  %v90_v18 = vld [vmem:[%s4757_s0 + $0x240] sm:$0xff]  ;;  %v399_v23 = vmul.f32 %v80_v41, %v80_v41 }
  0x5f   :  { %v221_v51 = vadd.f32 %v220_v47, %v65_v44  ;;  %v539_v31 = vadd.f32 %v538_v27, %v383_v22  ;;  %v91_v22 = vld [vmem:[%s4757_s0 + $0x248] sm:$0xff]  ;;  %v400_v27 = vmul.f32 %v81_v45, %v81_v45 }
  0x61   :  { %v222_v55 = vadd.f32 %v221_v51, %v66_v48  ;;  %v540_v35 = vadd.f32 %v539_v31, %v384_v26  ;;  %v92_v26 = vld [vmem:[%s4757_s0 + $0x250] sm:$0xff]  ;;  %v401_v31 = vmul.f32 %v82_v49, %v82_v49 }
  0x63   :  { %v223_v59 = vadd.f32 %v222_v55, %v67_v52  ;;  %v541_v39 = vadd.f32 %v540_v35, %v385_v30  ;;  %v93_v30 = vld [vmem:[%s4757_s0 + $0x258] sm:$0xff]  ;;  %v402_v35 = vmul.f32 %v83_v53, %v83_v53 }
  0x65   :  { %v224_v63 = vadd.f32 %v223_v59, %v68_v56  ;;  %v542_v43 = vadd.f32 %v541_v39, %v386_v34  ;;  %v94_v34 = vld [vmem:[%s4757_s0 + $0x260] sm:$0xff]  ;;  %v403_v39 = vmul.f32 %v84_v57, %v84_v57 }
  0x67   :  { %v225_v4 = vadd.f32 %v224_v63, %v69_v60  ;;  %v543_v47 = vadd.f32 %v542_v43, %v387_v38  ;;  %v95_v38 = vld [vmem:[%s4757_s0 + $0x268] sm:$0xff]  ;;  %v404_v43 = vmul.f32 %v85_v61, %v85_v61 }
  0x69   :  { %v226_v8 = vadd.f32 %v225_v4, %v70_v1  ;;  %v544_v51 = vadd.f32 %v543_v47, %v388_v42  ;;  %v96_v42 = vld [vmem:[%s4757_s0 + $0x270] sm:$0xff]  ;;  %v405_v47 = vmul.f32 %v86_v2, %v86_v2 }
  0x6b   :  { %v227_v12 = vadd.f32 %v226_v8, %v71_v5  ;;  %v545_v55 = vadd.f32 %v544_v51, %v389_v46  ;;  %v97_v46 = vld [vmem:[%s4757_s0 + $0x278] sm:$0xff]  ;;  %v406_v51 = vmul.f32 %v87_v6, %v87_v6 }
  0x6d   :  { %v228_v16 = vadd.f32 %v227_v12, %v72_v9  ;;  %v546_v59 = vadd.f32 %v545_v55, %v390_v50  ;;  %v3012_v50 = vld [vmem:[%s4757_s0 + $0x280] sm:$0xff]  ;;  %v407_v55 = vmul.f32 %v88_v10, %v88_v10 }
  0x6f   :  { %v229_v20 = vadd.f32 %v228_v16, %v73_v13  ;;  %v547_v63 = vadd.f32 %v546_v59, %v391_v54  ;;  %v3017_v54 = vld [vmem:[%s4757_s0 + $0x288] sm:$0xff]  ;;  %v408_v59 = vmul.f32 %v89_v14, %v89_v14 }
  0x71   :  { %v230_v24 = vadd.f32 %v229_v20, %v74_v17  ;;  %v548_v4 = vadd.f32 %v547_v63, %v392_v58  ;;  %v3023_v58 = vld [vmem:[%s4757_s0 + $0x290] sm:$0xff]  ;;  %v409_v63 = vmul.f32 %v90_v18, %v90_v18 }
  0x73   :  { %v231_v28 = vadd.f32 %v230_v24, %v75_v21  ;;  %v549_v8 = vadd.f32 %v548_v4, %v393_v62  ;;  %v3029_v62 = vld [vmem:[%s4757_s0 + $0x298] sm:$0xff]  ;;  %v410_v4 = vmul.f32 %v91_v22, %v91_v22 }
  0x75   :  { %v232_v32 = vadd.f32 %v231_v28, %v76_v25  ;;  %v550_v12 = vadd.f32 %v549_v8, %v394_v3  ;;  %v3035_v3 = vld [vmem:[%s4757_s0 + $0x2a0] sm:$0xff]  ;;  %v411_v8 = vmul.f32 %v92_v26, %v92_v26 }
  0x77   :  { %v233_v36 = vadd.f32 %v232_v32, %v77_v29  ;;  %v551_v16 = vadd.f32 %v550_v12, %v395_v7  ;;  %v3041_v7 = vld [vmem:[%s4757_s0 + $0x2a8] sm:$0xff]  ;;  %v412_v12 = vmul.f32 %v93_v30, %v93_v30 }
  0x79   :  { %v234_v40 = vadd.f32 %v233_v36, %v78_v33  ;;  %v552_v20 = vadd.f32 %v551_v16, %v396_v11  ;;  %v3047_v11 = vld [vmem:[%s4757_s0 + $0x2b0] sm:$0xff]  ;;  %v413_v16 = vmul.f32 %v94_v34, %v94_v34 }
  0x7b   :  { %v235_v44 = vadd.f32 %v234_v40, %v79_v37  ;;  %v553_v24 = vadd.f32 %v552_v20, %v397_v15  ;;  %v3053_v15 = vld [vmem:[%s4757_s0 + $0x2b8] sm:$0xff]  ;;  %v414_v20 = vmul.f32 %v95_v38, %v95_v38 }
  0x7d   :  { %v236_v48 = vadd.f32 %v235_v44, %v80_v41  ;;  %v554_v28 = vadd.f32 %v553_v24, %v398_v19  ;;  %v3059_v19 = vld [vmem:[%s4757_s0 + $0x2c0] sm:$0xff]  ;;  %v415_v24 = vmul.f32 %v96_v42, %v96_v42 }
  0x7f   :  { %v237_v52 = vadd.f32 %v236_v48, %v81_v45  ;;  %v555_v32 = vadd.f32 %v554_v28, %v399_v23  ;;  %v3065_v23 = vld [vmem:[%s4757_s0 + $0x2c8] sm:$0xff]  ;;  %v416_v28 = vmul.f32 %v97_v46, %v97_v46 }
  0x81   :  { %v238_v56 = vadd.f32 %v237_v52, %v82_v49  ;;  %v556_v36 = vadd.f32 %v555_v32, %v400_v27  ;;  %v3071_v27 = vld [vmem:[%s4757_s0 + $0x2d0] sm:$0xff]  ;;  %v417_v32 = vmul.f32 %v3012_v50, %v3012_v50 }
  0x83   :  { %v239_v60 = vadd.f32 %v238_v56, %v83_v53  ;;  %v557_v40 = vadd.f32 %v556_v36, %v401_v31  ;;  %v3077_v31 = vld [vmem:[%s4757_s0 + $0x2d8] sm:$0xff]  ;;  %v418_v36 = vmul.f32 %v3017_v54, %v3017_v54 }
  0x85   :  { %v240_v1 = vadd.f32 %v239_v60, %v84_v57  ;;  %v558_v44 = vadd.f32 %v557_v40, %v402_v35  ;;  %v3085_v35 = vld [vmem:[%s4757_s0 + $0x2e0] sm:$0xff]  ;;  %v419_v40 = vmul.f32 %v3023_v58, %v3023_v58 }
  0x87   :  { %v241_v5 = vadd.f32 %v240_v1, %v85_v61  ;;  %v559_v48 = vadd.f32 %v558_v44, %v403_v39  ;;  %v3093_v39 = vld [vmem:[%s4757_s0 + $0x2e8] sm:$0xff]  ;;  %v420_v44 = vmul.f32 %v3029_v62, %v3029_v62 }
  0x89   :  { %v242_v9 = vadd.f32 %v241_v5, %v86_v2  ;;  %v560_v52 = vadd.f32 %v559_v48, %v404_v43  ;;  %v3101_v43 = vld [vmem:[%s4757_s0 + $0x2f0] sm:$0xff]  ;;  %v421_v48 = vmul.f32 %v3035_v3, %v3035_v3 }
  0x8b   :  { %v243_v13 = vadd.f32 %v242_v9, %v87_v6  ;;  %v561_v56 = vadd.f32 %v560_v52, %v405_v47  ;;  %v3109_v47 = vld [vmem:[%s4757_s0 + $0x2f8] sm:$0xff]  ;;  %v3117_v52 = vld [vmem:[%s4757_s0 + $0x300] sm:$0xff] }
  0x8d   :  { %v244_v17 = vadd.f32 %v243_v13, %v88_v10  ;;  %v562_v60 = vadd.f32 %v561_v56, %v406_v51 }
  0x8f   :  { %v245_v21 = vadd.f32 %v244_v17, %v89_v14  ;;  %v563_v1 = vadd.f32 %v562_v60, %v407_v55 }
  0x91   :  { %v246_v25 = vadd.f32 %v245_v21, %v90_v18  ;;  %v564_v5 = vadd.f32 %v563_v1, %v408_v59  ;;  %v423_v59 = vmul.f32 %v3047_v11, %v3047_v11  ;;  %v424_v1 = vmul.f32 %v3053_v15, %v3053_v15 }
  0x93   :  { %v247_v29 = vadd.f32 %v246_v25, %v91_v22  ;;  %v565_v9 = vadd.f32 %v564_v5, %v409_v63  ;;  %v3133_v63 = vld [vmem:[%s4757_s0 + $0x310] sm:$0xff]  ;;  %v3141_v5 = vld [vmem:[%s4757_s0 + $0x318] sm:$0xff] }
  0x95   :  { %v248_v33 = vadd.f32 %v247_v29, %v92_v26  ;;  %v566_v13 = vadd.f32 %v565_v9, %v410_v4 }
  0x97   :  { %v249_v37 = vadd.f32 %v248_v33, %v93_v30  ;;  %v567_v17 = vadd.f32 %v566_v13, %v411_v8 }
  0x99   :  { %v250_v41 = vadd.f32 %v249_v37, %v94_v34  ;;  %v568_v21 = vadd.f32 %v567_v17, %v412_v12  ;;  %v426_v12 = vmul.f32 %v3065_v23, %v3065_v23  ;;  %v427_v17 = vmul.f32 %v3071_v27, %v3071_v27 }
  0x9b   :  { %v251_v45 = vadd.f32 %v250_v41, %v95_v38  ;;  %v569_v25 = vadd.f32 %v568_v21, %v413_v16  ;;  %v3157_v16 = vld [vmem:[%s4757_s0 + $0x328] sm:$0xff]  ;;  %v3165_v21 = vld [vmem:[%s4757_s0 + $0x330] sm:$0xff] }
  0x9d   :  { %v252_v49 = vadd.f32 %v251_v45, %v96_v42  ;;  %v570_v29 = vadd.f32 %v569_v25, %v414_v20 }
  0x9f   :  { %v253_v53 = vadd.f32 %v252_v49, %v97_v46  ;;  %v571_v33 = vadd.f32 %v570_v29, %v415_v24 }
  0xa1   :  { %v254_v57 = vadd.f32 %v253_v53, %v3012_v50  ;;  %v572_v37 = vadd.f32 %v571_v33, %v416_v28  ;;  %v422_v53 = vmul.f32 %v3041_v7, %v3041_v7  ;;  %v429_v28 = vmul.f32 %v3085_v35, %v3085_v35 }
  0xa2   :  { %v430_v33 = vmul.f32 %v3093_v39, %v3093_v39 }
  0xa3   :  { %v255_v61 = vadd.f32 %v254_v57, %v3017_v54  ;;  %v573_v41 = vadd.f32 %v572_v37, %v417_v32  ;;  %v3125_v57 = vld [vmem:[%s4757_s0 + $0x308] sm:$0xff]  ;;  %v3181_v32 = vld [vmem:[%s4757_s0 + $0x340] sm:$0xff] }
  0xa4   :  { %v3189_v37 = vld [vmem:[%s4757_s0 + $0x348] sm:$0xff] }
  0xa5   :  { %v256_v2 = vadd.f32 %v255_v61, %v3023_v58  ;;  %v574_v45 = vadd.f32 %v573_v41, %v418_v36 }
  0xa7   :  { %v257_v6 = vadd.f32 %v256_v2, %v3029_v62  ;;  %v575_v49 = vadd.f32 %v574_v45, %v419_v40 }
  0xa9   :  { %v258_v10 = vadd.f32 %v257_v6, %v3035_v3  ;;  %v576_v55 = vadd.f32 %v575_v49, %v420_v44  ;;  %v425_v6 = vmul.f32 %v3059_v19, %v3059_v19  ;;  %v432_v44 = vmul.f32 %v3109_v47, %v3109_v47 }
  0xaa   :  { %v433_v49 = vmul.f32 %v3117_v52, %v3117_v52 }
  0xab   :  { %v259_v14 = vadd.f32 %v258_v10, %v3041_v7  ;;  %v577_v60 = vadd.f32 %v576_v55, %v421_v48  ;;  %v3149_v10 = vld [vmem:[%s4757_s0 + $0x320] sm:$0xff]  ;;  %v3205_v48 = vld [vmem:[%s4757_s0 + $0x358] sm:$0xff] }
  0xac   :  { %v3213_v55 = vld [vmem:[%s4757_s0 + $0x360] sm:$0xff] }
  0xad   :  { %v260_v18 = vadd.f32 %v259_v14, %v3047_v11  ;;  %v578_v2 = vadd.f32 %v577_v60, %v422_v53 }
  0xaf   :  { %v261_v22 = vadd.f32 %v260_v18, %v3053_v15  ;;  %v579_v8 = vadd.f32 %v578_v2, %v423_v59 }
  0xb1   :  { %v262_v26 = vadd.f32 %v261_v22, %v3059_v19  ;;  %v580_v13 = vadd.f32 %v579_v8, %v424_v1  ;;  %v428_v22 = vmul.f32 %v3077_v31, %v3077_v31  ;;  %v435_v1 = vmul.f32 %v3133_v63, %v3133_v63 }
  0xb2   :  { %v436_v8 = vmul.f32 %v3141_v5, %v3141_v5 }
  0xb3   :  { %v263_v30 = vadd.f32 %v262_v26, %v3065_v23  ;;  %v581_v18 = vadd.f32 %v580_v13, %v425_v6  ;;  %v3173_v26 = vld [vmem:[%s4757_s0 + $0x338] sm:$0xff]  ;;  %v3229_v6 = vld [vmem:[%s4757_s0 + $0x370] sm:$0xff] }
  0xb4   :  { %4765 = vst [vmem:[#allocation2_spill] sm:$0xff] %v3229_v6  ;;  %v3237_v13 = vld [vmem:[%s4757_s0 + $0x378] sm:$0xff] }
  0xb5   :  { %v264_v34 = vadd.f32 %v263_v30, %v3071_v27  ;;  %v582_v24 = vadd.f32 %v581_v18, %v426_v12  ;;  %4766 = vst [vmem:[#allocation3_spill] sm:$0xff] %v3237_v13 }
  0xb7   :  { %v265_v38 = vadd.f32 %v264_v34, %v3077_v31  ;;  %v583_v29 = vadd.f32 %v582_v24, %v427_v17 }
  0xb9   :  { %v266_v42 = vadd.f32 %v265_v38, %v3085_v35  ;;  %v584_v34 = vadd.f32 %v583_v29, %v428_v22  ;;  %v431_v38 = vmul.f32 %v3101_v43, %v3101_v43  ;;  %v438_v22 = vmul.f32 %v3157_v16, %v3157_v16 }
  0xba   :  { %v439_v29 = vmul.f32 %v3165_v21, %v3165_v21 }
  0xbb   :  { %v267_v46 = vadd.f32 %v266_v42, %v3093_v39  ;;  %v585_v40 = vadd.f32 %v584_v34, %v429_v28  ;;  %v3197_v42 = vld [vmem:[%s4757_s0 + $0x350] sm:$0xff]  ;;  %v131_v28 = vld [vmem:[%s4757_s0 + $0x388] sm:$0xff] }
  0xbc   :  { %v132_v34 = vld [vmem:[%s4757_s0 + $0x390] sm:$0xff] }
  0xbd   :  { %v268_v51 = vadd.f32 %v267_v46, %v3101_v43  ;;  %v586_v45 = vadd.f32 %v585_v40, %v430_v33 }
  0xbf   :  { %v269_v56 = vadd.f32 %v268_v51, %v3109_v47  ;;  %v587_v51 = vadd.f32 %v586_v45, %v431_v38 }
  0xc1   :  { %v270_v61 = vadd.f32 %v269_v56, %v3117_v52  ;;  %v434_v56 = vmul.f32 %v3125_v57, %v3125_v57  ;;  %v588_v59 = vadd.f32 %v587_v51, %v432_v44  ;;  %v441_v44 = vmul.f32 %v3181_v32, %v3181_v32 }
  0xc2   :  { %v442_v51 = vmul.f32 %v3189_v37, %v3189_v37 }
  0xc3   :  { %v271_v4 = vadd.f32 %v270_v61, %v3125_v57  ;;  %v3221_v61 = vld [vmem:[%s4757_s0 + $0x368] sm:$0xff]  ;;  %v589_v2 = vadd.f32 %v588_v59, %v433_v49  ;;  %v134_v49 = vld [vmem:[%s4757_s0 + $0x3a0] sm:$0xff] }
  0xc4   :  { %v135_v59 = vld [vmem:[%s4757_s0 + $0x3a8] sm:$0xff] }
  0xc5   :  { %v272_v9 = vadd.f32 %v271_v4, %v3133_v63 }
  0xc7   :  { %v273_v14 = vadd.f32 %v272_v9, %v3141_v5  ;;  %v590_v9 = vadd.f32 %v589_v2, %v434_v56 }
  0xc9   :  { %v274_v20 = vadd.f32 %v273_v14, %v3149_v10  ;;  %v437_v14 = vmul.f32 %v3149_v10, %v3149_v10  ;;  %v591_v17 = vadd.f32 %v590_v9, %v435_v1 }
  0xcb   :  { %v275_v25 = vadd.f32 %v274_v20, %v3157_v16  ;;  %v130_v20 = vld [vmem:[%s4757_s0 + $0x380] sm:$0xff]  ;;  %v592_v24 = vadd.f32 %v591_v17, %v436_v8  ;;  %v444_v8 = vmul.f32 %v3205_v48, %v3205_v48  ;;  %v445_v17 = vmul.f32 %v3213_v55, %v3213_v55 }
  0xcd   :  { %v276_v30 = vadd.f32 %v275_v25, %v3165_v21 }
  0xcf   :  { %v277_v36 = vadd.f32 %v276_v30, %v3173_v26  ;;  %v593_v30 = vadd.f32 %v592_v24, %v437_v14  ;;  %v137_v14 = vld [vmem:[%s4757_s0 + $0x3b8] sm:$0xff]  ;;  %v138_v24 = vld [vmem:[%s4757_s0 + $0x3c0] sm:$0xff] }
  0xd1   :  { %v278_v41 = vadd.f32 %v277_v36, %v3181_v32  ;;  %v440_v36 = vmul.f32 %v3173_v26, %v3173_v26  ;;  %v594_v38 = vadd.f32 %v593_v30, %v438_v22 }
  0xd3   :  { %v279_v46 = vadd.f32 %v278_v41, %v3189_v37  ;;  %v133_v41 = vld [vmem:[%s4757_s0 + $0x398] sm:$0xff]  ;;  %v595_v45 = vadd.f32 %v594_v38, %v439_v29 }
  0xd5   :  { %v280_v53 = vadd.f32 %v279_v46, %v3197_v42 }
  0xd7   :  { %v281_v60 = vadd.f32 %v280_v53, %v3205_v48  ;;  %v596_v53 = vadd.f32 %v595_v45, %v440_v36  ;;  %v447_v36 = vmul.f32 %v3229_v6, %v3229_v6  ;;  %v448_v45 = vmul.f32 %v3237_v13, %v3237_v13 }
  0xd9   :  { %v282_v4 = vadd.f32 %v281_v60, %v3213_v55  ;;  %v443_v60 = vmul.f32 %v3197_v42, %v3197_v42  ;;  %v597_v1 = vadd.f32 %v596_v53, %v441_v44  ;;  %v140_v44 = vld [vmem:[%s4757_s0 + $0x3d0] sm:$0xff]  ;;  %v141_v53 = vld [vmem:[%s4757_s0 + $0x3d8] sm:$0xff] }
  0xdb   :  { %v283_v12 = vadd.f32 %v282_v4, %v3221_v61  ;;  %v136_v4 = vld [vmem:[%s4757_s0 + $0x3b0] sm:$0xff]  ;;  %v598_v9 = vadd.f32 %v597_v1, %v442_v51 }
  0xdd   :  { %v284_v18 = vadd.f32 %v283_v12, %v3229_v6 }
  0xdf   :  { %v285_v25 = vadd.f32 %v284_v18, %v3237_v13  ;;  %v599_v18 = vadd.f32 %v598_v9, %v443_v60 }
  0xe1   :  { %v286_v33 = vadd.f32 %v285_v25, %v130_v20  ;;  %v446_v25 = vmul.f32 %v3221_v61, %v3221_v61  ;;  %v600_v29 = vadd.f32 %v599_v18, %v444_v8  ;;  %v450_v8 = vmul.f32 %v131_v28, %v131_v28 }
  0xe2   :  { %v451_v18 = vmul.f32 %v132_v34, %v132_v34 }
  0xe3   :  { %v287_v40 = vadd.f32 %v286_v33, %v131_v28  ;;  %v139_v33 = vld [vmem:[%s4757_s0 + $0x3c8] sm:$0xff]  ;;  %v601_v38 = vadd.f32 %v600_v29, %v445_v17  ;;  %v452_v29 = vmul.f32 %v133_v41, %v133_v41  ;;  %v145_v28 = vld [vmem:[%s4757_s0 + $0x3f8] sm:$0xff] }
  0xe4   :  { %v143_v17 = vld [vmem:[%s4757_s0 + $0x3e8] sm:$0xff] }
  0xe5   :  { %v288_v46 = vadd.f32 %v287_v40, %v132_v34  ;;  %v146_v34 = vld [vmem:[%s4757_s0 + $0x400] sm:$0xff] }
  0xe7   :  { %v289_v56 = vadd.f32 %v288_v46, %v133_v41  ;;  %v602_v46 = vadd.f32 %v601_v38, %v446_v25  ;;  %v453_v38 = vmul.f32 %v134_v49, %v134_v49  ;;  %v147_v41 = vld [vmem:[%s4757_s0 + $0x408] sm:$0xff] }
  0xe9   :  { %v290_v2 = vadd.f32 %v289_v56, %v134_v49  ;;  %v449_v56 = vmul.f32 %v130_v20, %v130_v20  ;;  %v603_v60 = vadd.f32 %v602_v46, %v447_v36  ;;  %v144_v20 = vld [vmem:[%s4757_s0 + $0x3f0] sm:$0xff]  ;;  %v454_v46 = vmul.f32 %v135_v59, %v135_v59 }
  0xea   :  { %v148_v49 = vld [vmem:[%s4757_s0 + $0x410] sm:$0xff] }
  0xeb   :  { %v291_v12 = vadd.f32 %v290_v2, %v135_v59  ;;  %v142_v2 = vld [vmem:[%s4757_s0 + $0x3e0] sm:$0xff]  ;;  %v604_v9 = vadd.f32 %v603_v60, %v448_v45  ;;  %v455_v60 = vmul.f32 %v136_v4, %v136_v4  ;;  %v149_v59 = vld [vmem:[%s4757_s0 + $0x418] sm:$0xff] }
  0xed   :  { %v292_v22 = vadd.f32 %v291_v12, %v136_v4  ;;  %v150_v4 = vld [vmem:[%s4757_s0 + $0x420] sm:$0xff] }
  0xef   :  { %v293_v30 = vadd.f32 %v292_v22, %v137_v14  ;;  %v605_v22 = vadd.f32 %v604_v9, %v449_v56  ;;  %v456_v9 = vmul.f32 %v137_v14, %v137_v14  ;;  %v151_v14 = vld [vmem:[%s4757_s0 + $0x428] sm:$0xff] }
  0xf1   :  { %v294_v40 = vadd.f32 %v293_v30, %v138_v24  ;;  %v606_v30 = vadd.f32 %v605_v22, %v450_v8  ;;  %v457_v22 = vmul.f32 %v138_v24, %v138_v24  ;;  %v152_v24 = vld [vmem:[%s4757_s0 + $0x430] sm:$0xff] }
  0xf3   :  { %v295_v51 = vadd.f32 %v294_v40, %v139_v33  ;;  %v607_v40 = vadd.f32 %v606_v30, %v451_v18  ;;  %v458_v30 = vmul.f32 %v139_v33, %v139_v33  ;;  %v153_v33 = vld [vmem:[%s4757_s0 + $0x438] sm:$0xff] }
  0xf5   :  { %v296_v1 = vadd.f32 %v295_v51, %v140_v44  ;;  %v608_v51 = vadd.f32 %v607_v40, %v452_v29  ;;  %v459_v40 = vmul.f32 %v140_v44, %v140_v44  ;;  %v154_v44 = vld [vmem:[%s4757_s0 + $0x440] sm:$0xff] }
  0xf7   :  { %v297_v12 = vadd.f32 %v296_v1, %v141_v53  ;;  %v609_v1 = vadd.f32 %v608_v51, %v453_v38  ;;  %v460_v51 = vmul.f32 %v141_v53, %v141_v53  ;;  %v155_v53 = vld [vmem:[%s4757_s0 + $0x448] sm:$0xff] }
  0xf9   :  { %v298_v25 = vadd.f32 %v297_v12, %v142_v2  ;;  %v610_v12 = vadd.f32 %v609_v1, %v454_v46  ;;  %v461_v1 = vmul.f32 %v142_v2, %v142_v2  ;;  %v156_v2 = vld [vmem:[%s4757_s0 + $0x450] sm:$0xff] }
  0xfb   :  { %v299_v36 = vadd.f32 %v298_v25, %v143_v17  ;;  %v611_v25 = vadd.f32 %v610_v12, %v455_v60  ;;  %v462_v12 = vmul.f32 %v143_v17, %v143_v17  ;;  %v157_v17 = vld [vmem:[%s4757_s0 + $0x458] sm:$0xff] }
  0xfd   :  { %v300_v45 = vadd.f32 %v299_v36, %v144_v20  ;;  %v612_v36 = vadd.f32 %v611_v25, %v456_v9  ;;  %v463_v25 = vmul.f32 %v144_v20, %v144_v20  ;;  %v158_v20 = vld [vmem:[%s4757_s0 + $0x460] sm:$0xff] }
  0xff   :  { %v301_v56 = vadd.f32 %v300_v45, %v145_v28  ;;  %v613_v45 = vadd.f32 %v612_v36, %v457_v22  ;;  %v464_v36 = vmul.f32 %v145_v28, %v145_v28  ;;  %v159_v28 = vld [vmem:[%s4757_s0 + $0x468] sm:$0xff] }
 0x101   :  { %v302_v8 = vadd.f32 %v301_v56, %v146_v34  ;;  %v614_v56 = vadd.f32 %v613_v45, %v458_v30  ;;  %v465_v45 = vmul.f32 %v146_v34, %v146_v34  ;;  %v160_v34 = vld [vmem:[%s4757_s0 + $0x470] sm:$0xff] }
 0x103   :  { %v303_v18 = vadd.f32 %v302_v8, %v147_v41  ;;  %v615_v8 = vadd.f32 %v614_v56, %v459_v40  ;;  %v466_v56 = vmul.f32 %v147_v41, %v147_v41  ;;  %v161_v41 = vld [vmem:[%s4757_s0 + $0x478] sm:$0xff] }
 0x105   :  { %v304_v29 = vadd.f32 %v303_v18, %v148_v49  ;;  %v616_v18 = vadd.f32 %v615_v8, %v460_v51  ;;  %v467_v8 = vmul.f32 %v148_v49, %v148_v49  ;;  %v162_v49 = vld [vmem:[%s4757_s0 + $0x480] sm:$0xff] }
 0x107   :  { %v305_v38 = vadd.f32 %v304_v29, %v149_v59  ;;  %v617_v29 = vadd.f32 %v616_v18, %v461_v1  ;;  %v468_v18 = vmul.f32 %v149_v59, %v149_v59  ;;  %v163_v59 = vld [vmem:[%s4757_s0 + $0x488] sm:$0xff] }
 0x109   :  { %v306_v46 = vadd.f32 %v305_v38, %v150_v4  ;;  %v618_v38 = vadd.f32 %v617_v29, %v462_v12  ;;  %v469_v29 = vmul.f32 %v150_v4, %v150_v4  ;;  %v164_v4 = vld [vmem:[%s4757_s0 + $0x490] sm:$0xff] }
 0x10b   :  { %v307_v60 = vadd.f32 %v306_v46, %v151_v14  ;;  %v619_v46 = vadd.f32 %v618_v38, %v463_v25  ;;  %v470_v38 = vmul.f32 %v151_v14, %v151_v14  ;;  %v165_v14 = vld [vmem:[%s4757_s0 + $0x498] sm:$0xff] }
 0x10d   :  { %v308_v9 = vadd.f32 %v307_v60, %v152_v24  ;;  %v620_v60 = vadd.f32 %v619_v46, %v464_v36  ;;  %v471_v46 = vmul.f32 %v152_v24, %v152_v24  ;;  %v166_v24 = vld [vmem:[%s4757_s0 + $0x4a0] sm:$0xff] }
 0x10f   :  { %v309_v22 = vadd.f32 %v308_v9, %v153_v33  ;;  %v621_v9 = vadd.f32 %v620_v60, %v465_v45  ;;  %v472_v60 = vmul.f32 %v153_v33, %v153_v33  ;;  %v167_v33 = vld [vmem:[%s4757_s0 + $0x4a8] sm:$0xff] }
 0x111   :  { %v310_v30 = vadd.f32 %v309_v22, %v154_v44  ;;  %v622_v22 = vadd.f32 %v621_v9, %v466_v56  ;;  %v473_v9 = vmul.f32 %v154_v44, %v154_v44  ;;  %v168_v44 = vld [vmem:[%s4757_s0 + $0x4b0] sm:$0xff] }
 0x113   :  { %v311_v40 = vadd.f32 %v310_v30, %v155_v53  ;;  %v623_v30 = vadd.f32 %v622_v22, %v467_v8  ;;  %v474_v22 = vmul.f32 %v155_v53, %v155_v53  ;;  %v169_v53 = vld [vmem:[%s4757_s0 + $0x4b8] sm:$0xff] }
 0x115   :  { %v312_v51 = vadd.f32 %v311_v40, %v156_v2  ;;  %v624_v40 = vadd.f32 %v623_v30, %v468_v18  ;;  %v475_v30 = vmul.f32 %v156_v2, %v156_v2  ;;  %v170_v2 = vld [vmem:[%s4757_s0 + $0x4c0] sm:$0xff] }
 0x117   :  { %v313_v1 = vadd.f32 %v312_v51, %v157_v17  ;;  %v625_v51 = vadd.f32 %v624_v40, %v469_v29  ;;  %v476_v40 = vmul.f32 %v157_v17, %v157_v17  ;;  %v171_v17 = vld [vmem:[%s4757_s0 + $0x4c8] sm:$0xff] }
 0x119   :  { %v314_v12 = vadd.f32 %v313_v1, %v158_v20  ;;  %v626_v1 = vadd.f32 %v625_v51, %v470_v38  ;;  %v477_v51 = vmul.f32 %v158_v20, %v158_v20  ;;  %v172_v20 = vld [vmem:[%s4757_s0 + $0x4d0] sm:$0xff] }
 0x11a   :  { %v491_v13 = vmul.f32 %v172_v20, %v172_v20 }
 0x11b   :  { %v315_v25 = vadd.f32 %v314_v12, %v159_v28  ;;  %v627_v12 = vadd.f32 %v626_v1, %v471_v46  ;;  %v478_v1 = vmul.f32 %v159_v28, %v159_v28  ;;  %v173_v28 = vld [vmem:[%s4757_s0 + $0x4d8] sm:$0xff] }
 0x11d   :  { %v316_v36 = vadd.f32 %v315_v25, %v160_v34  ;;  %v628_v25 = vadd.f32 %v627_v12, %v472_v60  ;;  %v479_v12 = vmul.f32 %v160_v34, %v160_v34  ;;  %v483_v34 = vmul.f32 %v164_v4, %v164_v4 }
 0x11f   :  { %v317_v45 = vadd.f32 %v316_v36, %v161_v41  ;;  %v629_v36 = vadd.f32 %v628_v25, %v473_v9  ;;  %v480_v25 = vmul.f32 %v161_v41, %v161_v41 }
 0x121   :  { %v318_v56 = vadd.f32 %v317_v45, %v162_v49  ;;  %v630_v45 = vadd.f32 %v629_v36, %v474_v22  ;;  %v481_v36 = vmul.f32 %v162_v49, %v162_v49 }
 0x123   :  { %v319_v8 = vadd.f32 %v318_v56, %v163_v59  ;;  %v631_v56 = vadd.f32 %v630_v45, %v475_v30  ;;  %v482_v45 = vmul.f32 %v163_v59, %v163_v59 }
 0x125   :  { %v320_v18 = vadd.f32 %v319_v8, %v164_v4  ;;  %v632_v8 = vadd.f32 %v631_v56, %v476_v40 }
 0x127   :  { %v321_v29 = vadd.f32 %v320_v18, %v165_v14  ;;  %v633_v18 = vadd.f32 %v632_v8, %v477_v51  ;;  %v484_v8 = vmul.f32 %v165_v14, %v165_v14  ;;  %v492_v14 = vmul.f32 %v173_v28, %v173_v28 }
 0x129   :  { %v322_v38 = vadd.f32 %v321_v29, %v166_v24  ;;  %v634_v29 = vadd.f32 %v633_v18, %v478_v1 }
 0x12b   :  { %v323_v46 = vadd.f32 %v322_v38, %v167_v33  ;;  %v635_v38 = vadd.f32 %v634_v29, %v479_v12  ;;  %v486_v12 = vmul.f32 %v167_v33, %v167_v33  ;;  %v487_v29 = vmul.f32 %v168_v44, %v168_v44 }
 0x12d   :  { %v324_v60 = vadd.f32 %v323_v46, %v168_v44  ;;  %v636_v46 = vadd.f32 %v635_v38, %v480_v25  ;;  %v489_v38 = vmul.f32 %v170_v2, %v170_v2 }
 0x12f   :  { %v325_v9 = vadd.f32 %v324_v60, %v169_v53  ;;  %v637_v51 = vadd.f32 %v636_v46, %v481_v36  ;;  %v174_v60 = vld [vmem:[%s4757_s0 + $0x4e0] sm:$0xff]  ;;  %v490_v36 = vmul.f32 %v171_v17, %v171_v17 }
 0x131   :  { %v326_v22 = vadd.f32 %v325_v9, %v170_v2  ;;  %v638_v41 = vadd.f32 %v637_v51, %v482_v45  ;;  %v485_v9 = vmul.f32 %v166_v24, %v166_v24  ;;  %v493_v24 = vmul.f32 %v174_v60, %v174_v60 }
 0x133   :  { %v327_v30 = vadd.f32 %v326_v22, %v171_v17  ;;  %v639_v49 = vadd.f32 %v638_v41, %v483_v34 }
 0x135   :  { %v328_v40 = vadd.f32 %v327_v30, %v172_v20  ;;  %v640_v18 = vadd.f32 %v639_v49, %v484_v8  ;;  %v488_v30 = vmul.f32 %v169_v53, %v169_v53 }
 0x137   :  { %v329_v56 = vadd.f32 %v328_v40, %v173_v28  ;;  %v641_v0 = vadd.f32 %v640_v18, %v485_v9 }
 0x139   :  { %v330_v1 = vadd.f32 %v329_v56, %v174_v60  ;;  %v642_v59 = vadd.f32 %v641_v0, %v486_v12 }
 0x13b   :  { %v331_v22 = vrot.slane %v330_v1, 4  ;;  %v643_v4 = vadd.f32 %v642_v59, %v487_v29 }
 0x13d   :  { %v332_v25 = vadd.f32 %v331_v22, %v330_v1  ;;  %v644_v40 = vadd.f32 %v643_v4, %v488_v30  ;;  %v664_v30 = vld [vmem:[%s4759_s2] sm:$0x1] }
 0x13e   :  { %v2573_v4 = vld [vmem:[%s4757_s0] sm:$0xff] }
 0x13f   :  { %v333_v46 = vrot.slane %v332_v25, 2  ;;  %v645_v6 = vadd.f32 %v644_v40, %v489_v38  ;;  %v2574_v40 = vld [vmem:[%s4757_s0 + $0x8] sm:$0xff] }
 0x141   :  { %v646_v45 = vadd.f32 %v645_v6, %v490_v36  ;;  %v334_v56 = vadd.f32 %v333_v46, %v332_v25  ;;  %v668_v6 = vlaneseq }
 0x143   :  { %v647_v34 = vadd.f32 %v646_v45, %v491_v13  ;;  %v335_v51 = vrot.slane %v334_v56, 1  ;;  %v669_v28 = vshrl.u32 %v668_v6, 7  ;;  %v660_v13 = vld [vmem:[%s4758_s1] sm:$0x1] }
 0x145   :  { %v648_v33 = vadd.f32 %v647_v34, %v492_v14  ;;  %v336_v41 = vadd.f32 %v335_v51, %v334_v56  ;;  %v670_v60 = vsub.s32 0, %v669_v28  ;;  %v2575_v56 = vld [vmem:[%s4757_s0 + $0x10] sm:$0xff]  ;;  %v2576_v34 = vld [vmem:[%s4757_s0 + $0x18] sm:$0xff]  ;;  %v2578_v28 = vld [vmem:[%s4757_s0 + $0x28] sm:$0xff] }
 0x147   :  { %v649_v8 = vadd.f32 %v648_v33, %v493_v24  ;;  %v656_v2 = vmul.f32 0.0008, %v336_v41 }
 0x149   :  { %v650_v44 = vrot.slane %v649_v8, 4  ;;  %v658_v49 = vmul.f32 %v656_v2, %v656_v2 }
 0x14b   :  { %v651_v53 = vadd.f32 %v650_v44, %v649_v8 }
 0x14d   :  { %v652_v0 = vrot.slane %v651_v53, 2 }
 0x14f   :  { %v653_v1 = vadd.f32 %v652_v0, %v651_v53 }
 0x151   :  { %v654_v9 = vrot.slane %v653_v1, 1 }
 0x153   :  { %v655_v17 = vadd.f32 %v654_v9, %v653_v1 }
 0x155   :  { %v657_v12 = vmul.f32 0.0008, %v655_v17 }
 0x157   :  { %v659_v20 = vsub.f32 %v657_v12, %v658_v49 }
 0x159   :  { %v661_v18 = vadd.f32 1e-05, %v659_v20 }
 0x15b   :  { %2571 = vrsqrt.f32 %v661_v18  ;;  %v2577_v18 = vld [vmem:[%s4757_s0 + $0x20] sm:$0xff] }
 0x168   :  { %v2572_v22 = vpop.eup %2571 }
 0x169   :  { %v663_v29 = vmul.f32 %v2572_v22, %v660_v13 }
 0x16b   :  { %v665_v59 = vmul.f32 %v663_v29, %v656_v2  ;;  %v3406_v25 = vrot.slane %v663_v29, %v670_v60 }
 0x16d   :  { %v666_v38 = vsub.f32 %v664_v30, %v665_v59  ;;  %v673_v36 = vmul.f32 %v2573_v4, %v3406_v25  ;;  %v674_v46 = vmul.f32 %v2574_v40, %v3406_v25  ;;  %v753_v14 = vmul.f32 %v3406_v25, %v3012_v50 }
 0x16e   :  { %v754_v45 = vmul.f32 %v3406_v25, %v3017_v54  ;;  %v675_v24 = vmul.f32 %v2575_v56, %v3406_v25  ;;  %v676_v33 = vmul.f32 %v2576_v34, %v3406_v25  ;;  %v755_v51 = vmul.f32 %v3406_v25, %v3023_v58 }
 0x16f   :  { %v3430_v8 = vrot.slane %v666_v38, %v670_v60  ;;  %v756_v50 = vmul.f32 %v3406_v25, %v3029_v62  ;;  %v677_v6 = vmul.f32 %v2577_v18, %v3406_v25  ;;  %v678_v13 = vmul.f32 %v2578_v28, %v3406_v25 }
 0x170   :  { %v757_v60 = vmul.f32 %v3406_v25, %v3035_v3  ;;  %v758_v22 = vmul.f32 %v3406_v25, %v3041_v7  ;;  %v4767_v4 = vmov 0.0   ;;  %v762_v28 = vmul.f32 %v3406_v25, %v3065_v23  ;;  %v2583_v23 = vld [vmem:[%s4757_s0 + $0x50] sm:$0xff] }
 0x171   :  { %v836_v54 = vadd.f32 %v3430_v8, %v673_v36  ;;  %v837_v44 = vadd.f32 %v3430_v8, %v674_v46  ;;  %v916_v41 = vadd.f32 %v3430_v8, %v753_v14  ;;  %v917_v53 = vadd.f32 %v3430_v8, %v754_v45 }
 0x172   :  { %v838_v0 = vadd.f32 %v3430_v8, %v675_v24  ;;  %v839_v1 = vadd.f32 %v3430_v8, %v676_v33  ;;  %v918_v2 = vadd.f32 %v3430_v8, %v755_v51  ;;  %v919_v58 = vadd.f32 %v3430_v8, %v756_v50  ;;  %v2579_v24 = vld [vmem:[%s4757_s0 + $0x30] sm:$0xff]  ;;  %v2580_v33 = vld [vmem:[%s4757_s0 + $0x38] sm:$0xff] }
 0x173   :  { %v993_v9 = vmax.f32 %v836_v54, 0.0  ;;  %v994_v17 = vmax.f32 %v837_v44, 0.0  ;;  %v1073_v49 = vmax.f32 %v916_v41, 0.0  ;;  %v1074_v62 = vmax.f32 %v917_v53, 0.0 }
 0x174   :  { %v995_v29 = vmax.f32 %v838_v0, 0.0  ;;  %v996_v30 = vmax.f32 %v839_v1, 0.0  ;;  %v1075_v59 = vmax.f32 %v918_v2, 0.0  ;;  %v1076_v38 = vmax.f32 %v919_v58, 0.0 }
 0x175   :  { %v1150_v12 = vpack.c.bf16 %v994_v17, %v993_v9  ;;  %v1190_v20 = vpack.c.bf16 %v1074_v62, %v1073_v49  ;;  %v840_v36 = vadd.f32 %v3430_v8, %v677_v6  ;;  %v841_v40 = vadd.f32 %v3430_v8, %v678_v13  ;;  %v2582_v62 = vld [vmem:[%s4757_s0 + $0x48] sm:$0xff] }
 0x176   :  { %v1151_v3 = vpack.c.bf16 %v996_v30, %v995_v29  ;;  %v1191_v46 = vpack.c.bf16 %v1076_v38, %v1075_v59  ;;  %v920_v7 = vadd.f32 %v3430_v8, %v757_v60  ;;  %v921_v14 = vadd.f32 %v3430_v8, %v758_v22 }
 0x177   :  { %2230 = vmatmul.mubr.bf16.vlgmr.msra.gmra.mxu0 %v1150_v12  ;;  %2390 = vmatmul.mubr.bf16.vlgmr.msra.gmra.mxu1 %v1190_v20  ;;  %v997_v45 = vmax.f32 %v840_v36, 0.0  ;;  %v998_v56 = vmax.f32 %v841_v40, 0.0  ;;  %v679_v34 = vmul.f32 %v2579_v24, %v3406_v25  ;;  %v680_v51 = vmul.f32 %v2580_v33, %v3406_v25  ;;  %v2584_v40 = vld [vmem:[%s4757_s0 + $0x58] sm:$0xff] }
 0x178   :  { %2233 = vmatprep.mubr.msk.bf16.mxu0 %vm2699_vm0, %v4767_v4  ;;  %2393 = vmatprep.mubr.msk.bf16.mxu1 %vm2699_vm0, %v4767_v4  ;;  %v1077_v50 = vmax.f32 %v920_v7, 0.0  ;;  %v1078_v54 = vmax.f32 %v921_v14, 0.0  ;;  %v759_v44 = vmul.f32 %v3406_v25, %v3047_v11  ;;  %v760_v41 = vmul.f32 %v3406_v25, %v3053_v15  ;;  %v2581_v15 = vld [vmem:[%s4757_s0 + $0x40] sm:$0xff] }
 0x179   :  { %v842_v53 = vadd.f32 %v3430_v8, %v679_v34  ;;  %v843_v0 = vadd.f32 %v3430_v8, %v680_v51  ;;  %v1152_v1 = vpack.c.bf16 %v998_v56, %v997_v45  ;;  %v681_v49 = vmul.f32 %v2581_v15, %v3406_v25 }
 0x17a   :  { %v1192_v2 = vpack.c.bf16 %v1078_v54, %v1077_v50  ;;  %v922_v58 = vadd.f32 %v3430_v8, %v759_v44  ;;  %v923_v9 = vadd.f32 %v3430_v8, %v760_v41  ;;  %v682_v12 = vmul.f32 %v2582_v62, %v3406_v25  ;;  %v2586_v41 = vld [vmem:[%s4757_s0 + $0x68] sm:$0xff] }
 0x17b   :  { %v999_v11 = vmax.f32 %v842_v53, 0.0  ;;  %v1000_v17 = vmax.f32 %v843_v0, 0.0  ;;  %v761_v6 = vmul.f32 %v3406_v25, %v3059_v19  ;;  %v844_v13 = vadd.f32 %v3430_v8, %v681_v49 }
 0x17c   :  { %v1079_v20 = vmax.f32 %v922_v58, 0.0  ;;  %v1080_v18 = vmax.f32 %v923_v9, 0.0  ;;  %v845_v60 = vadd.f32 %v3430_v8, %v682_v12  ;;  %v925_v59 = vadd.f32 %v3430_v8, %v762_v28 }
 0x17d   :  { %v1153_v22 = vpack.c.bf16 %v1000_v17, %v999_v11  ;;  %v924_v30 = vadd.f32 %v3430_v8, %v761_v6  ;;  %v1001_v19 = vmax.f32 %v844_v13, 0.0  ;;  %v683_v36 = vmul.f32 %v2583_v23, %v3406_v25 }
 0x17e   :  { %v1193_v29 = vpack.c.bf16 %v1080_v18, %v1079_v20  ;;  %v1002_v38 = vmax.f32 %v845_v60, 0.0  ;;  %v1082_v7 = vmax.f32 %v925_v59, 0.0  ;;  %v763_v14 = vmul.f32 %v3406_v25, %v3071_v27  ;;  %v2588_v18 = vld [vmem:[%s4757_s0 + $0x78] sm:$0xff] }
 0x17f   :  { %2234 = vmatmul.mubr.bf16.gmra.mxu0 %v1151_v3  ;;  %2394 = vmatmul.mubr.bf16.gmra.mxu1 %v1191_v46  ;;  %v684_v3 = vmul.f32 %v2584_v40, %v3406_v25  ;;  %v1081_v46 = vmax.f32 %v924_v30, 0.0  ;;  %v764_v45 = vmul.f32 %v3406_v25, %v3077_v31  ;;  %v846_v56 = vadd.f32 %v3430_v8, %v683_v36  ;;  %v2585_v31 = vld [vmem:[%s4757_s0 + $0x60] sm:$0xff] }
 0x180   :  { %2237 = vmatprep.mubr.msk.bf16.mxu0 %vm2699_vm0, %v4767_v4  ;;  %2397 = vmatprep.mubr.msk.bf16.mxu1 %vm2699_vm0, %v4767_v4  ;;  %v1154_v34 = vpack.c.bf16 %v1002_v38, %v1001_v19  ;;  %v926_v51 = vadd.f32 %v3430_v8, %v763_v14  ;;  %v685_v44 = vmul.f32 %v2585_v31, %v3406_v25 }
 0x181   :  { %v847_v24 = vadd.f32 %v3430_v8, %v684_v3  ;;  %v1194_v33 = vpack.c.bf16 %v1082_v7, %v1081_v46  ;;  %v927_v50 = vadd.f32 %v3430_v8, %v764_v45  ;;  %v1003_v27 = vmax.f32 %v846_v56, 0.0  ;;  %v2590_v3 = vld [vmem:[%s4757_s0 + $0x88] sm:$0xff] }
 0x182   :  { %v686_v53 = vmul.f32 %v2586_v41, %v3406_v25  ;;  %v1083_v0 = vmax.f32 %v926_v51, 0.0  ;;  %v766_v58 = vmul.f32 %v3406_v25, %v3093_v39  ;;  %v848_v9 = vadd.f32 %v3430_v8, %v685_v44  ;;  %v2587_v39 = vld [vmem:[%s4757_s0 + $0x70] sm:$0xff]  ;;  %v2592_v44 = vld [vmem:[%s4757_s0 + $0x98] sm:$0xff] }
 0x183   :  { %v1004_v54 = vmax.f32 %v847_v24, 0.0  ;;  %v687_v20 = vmul.f32 %v2587_v39, %v3406_v25  ;;  %v688_v6 = vmul.f32 %v2588_v18, %v3406_v25  ;;  %v767_v60 = vmul.f32 %v3406_v25, %v3101_v43 }
 0x184   :  { %v849_v11 = vadd.f32 %v3430_v8, %v686_v53  ;;  %v929_v62 = vadd.f32 %v3430_v8, %v766_v58  ;;  %v690_v46 = vmul.f32 %v2590_v3, %v3406_v25  ;;  %v769_v45 = vmul.f32 %v3406_v25, %v3117_v52 }
 0x185   :  { %v1155_v17 = vpack.c.bf16 %v1004_v54, %v1003_v27  ;;  %v851_v30 = vadd.f32 %v3430_v8, %v688_v6  ;;  %v930_v38 = vadd.f32 %v3430_v8, %v767_v60  ;;  %v770_v56 = vmul.f32 %v3406_v25, %v3125_v57  ;;  %v2591_v57 = vld [vmem:[%s4757_s0 + $0x90] sm:$0xff] }
 0x186   :  { %v1006_v12 = vmax.f32 %v849_v11, 0.0  ;;  %v1086_v13 = vmax.f32 %v929_v62, 0.0  ;;  %v691_v31 = vmul.f32 %v2591_v57, %v3406_v25  ;;  %v692_v41 = vmul.f32 %v2592_v44, %v3406_v25 }
 0x187   :  { %2238 = vmatmul.mubr.bf16.gmra.mxu0 %v1152_v1  ;;  %2398 = vmatmul.mubr.bf16.gmra.mxu1 %v1192_v2  ;;  %v1084_v1 = vmax.f32 %v927_v50, 0.0  ;;  %v765_v2 = vmul.f32 %v3406_v25, %v3085_v35  ;;  %v1005_v35 = vmax.f32 %v848_v9, 0.0  ;;  %v1008_v36 = vmax.f32 %v851_v30, 0.0 }
 0x188   :  { %2241 = vmatprep.mubr.msk.bf16.mxu0 %vm2699_vm0, %v4767_v4  ;;  %2401 = vmatprep.mubr.msk.bf16.mxu1 %vm2699_vm0, %v4767_v4  ;;  %v1087_v7 = vmax.f32 %v930_v38, 0.0  ;;  %v932_v50 = vadd.f32 %v3430_v8, %v769_v45  ;;  %v933_v27 = vadd.f32 %v3430_v8, %v770_v56  ;;  %v854_v58 = vadd.f32 %v3430_v8, %v691_v31 }
 0x189   :  { %v1195_v15 = vpack.c.bf16 %v1084_v1, %v1083_v0  ;;  %v928_v49 = vadd.f32 %v3430_v8, %v765_v2  ;;  %v1156_v59 = vpack.c.bf16 %v1006_v12, %v1005_v35  ;;  %v771_v1 = vmul.f32 %v3406_v25, %v3133_v63  ;;  %v2594_v12 = vld [vmem:[%s4757_s0 + $0xa8] sm:$0xff] }
 0x18a   :  { %v1089_v53 = vmax.f32 %v932_v50, 0.0  ;;  %v1090_v0 = vmax.f32 %v933_v27, 0.0  ;;  %v772_v2 = vmul.f32 %v3406_v25, %v3141_v5  ;;  %v855_v9 = vadd.f32 %v3430_v8, %v692_v41  ;;  %v2593_v5 = vld [vmem:[%s4757_s0 + $0xa0] sm:$0xff] }
 0x18b   :  { %v1085_v28 = vmax.f32 %v928_v49, 0.0  ;;  %v1011_v63 = vmax.f32 %v854_v58, 0.0  ;;  %v693_v35 = vmul.f32 %v2593_v5, %v3406_v25  ;;  %v694_v39 = vmul.f32 %v2594_v12, %v3406_v25 }
 0x18c   :  { %v935_v49 = vadd.f32 %v3430_v8, %v772_v2  ;;  %v1012_v62 = vmax.f32 %v855_v9, 0.0  ;;  %v773_v6 = vmul.f32 %v3406_v25, %v3149_v10  ;;  %v776_v3 = vmul.f32 %v3406_v25, %v3173_v26  ;;  %v2597_v26 = vld [vmem:[%s4757_s0 + $0xc0] sm:$0xff]  ;;  %v2600_v9 = vld [vmem:[%s4757_s0 + $0xd8] sm:$0xff] }
 0x18d   :  { %v1196_v19 = vpack.c.bf16 %v1086_v13, %v1085_v28  ;;  %v774_v28 = vmul.f32 %v3406_v25, %v3157_v16  ;;  %v856_v13 = vadd.f32 %v3430_v8, %v693_v35  ;;  %v857_v60 = vadd.f32 %v3430_v8, %v694_v39  ;;  %v2595_v16 = vld [vmem:[%s4757_s0 + $0xb0] sm:$0xff] }
 0x18e   :  { %v1092_v18 = vmax.f32 %v935_v49, 0.0  ;;  %v936_v30 = vadd.f32 %v3430_v8, %v773_v6  ;;  %v695_v38 = vmul.f32 %v2595_v16, %v3406_v25  ;;  %v778_v57 = vmul.f32 %v3406_v25, %v3189_v37  ;;  %v2599_v37 = vld [vmem:[%s4757_s0 + $0xd0] sm:$0xff] }
 0x18f   :  { %2242 = vmatmul.mubr.bf16.gmra.mxu0 %v1153_v22  ;;  %2402 = vmatmul.mubr.bf16.gmra.mxu1 %v1193_v29  ;;  %v768_v22 = vmul.f32 %v3406_v25, %v3109_v47  ;;  %v850_v29 = vadd.f32 %v3430_v8, %v687_v20  ;;  %v2589_v47 = vld [vmem:[%s4757_s0 + $0x80] sm:$0xff]  ;;  %v1013_v10 = vmax.f32 %v856_v13, 0.0  ;;  %v699_v58 = vmul.f32 %v2599_v37, %v3406_v25 }
 0x190   :  { %2245 = vmatprep.mubr.msk.bf16.mxu0 %vm2699_vm0, %v4767_v4  ;;  %2405 = vmatprep.mubr.msk.bf16.mxu1 %vm2699_vm0, %v4767_v4  ;;  %v689_v40 = vmul.f32 %v2589_v47, %v3406_v25  ;;  %v779_v49 = vmul.f32 %v3406_v25, %v3197_v42 }
 0x191   :  { %v931_v23 = vadd.f32 %v3430_v8, %v768_v22  ;;  %v1007_v43 = vmax.f32 %v850_v29, 0.0  ;;  %v1159_v22 = vpack.c.bf16 %v1012_v62, %v1011_v63  ;;  %v780_v63 = vmul.f32 %v3406_v25, %v3205_v48  ;;  %v2601_v48 = vld [vmem:[%s4757_s0 + $0xe0] sm:$0xff] }
 0x192   :  { %v852_v24 = vadd.f32 %v3430_v8, %v689_v40  ;;  %v775_v40 = vmul.f32 %v3406_v25, %v3165_v21  ;;  %v862_v62 = vadd.f32 %v3430_v8, %v699_v58  ;;  %v942_v39 = vadd.f32 %v3430_v8, %v779_v49 }
 0x193   :  { %v1088_v14 = vmax.f32 %v931_v23, 0.0  ;;  %v2596_v23 = vld [vmem:[%s4757_s0 + $0xb8] sm:$0xff]  ;;  %v701_v6 = vmul.f32 %v2601_v48, %v3406_v25 }
 0x194   :  { %v1009_v52 = vmax.f32 %v852_v24, 0.0  ;;  %v938_v56 = vadd.f32 %v3430_v8, %v775_v40  ;;  %v939_v24 = vadd.f32 %v3430_v8, %v776_v3  ;;  %v1019_v42 = vmax.f32 %v862_v62, 0.0 }
 0x195   :  { %v1197_v51 = vpack.c.bf16 %v1088_v14, %v1087_v7 }
 0x196   :  { %v1095_v27 = vmax.f32 %v938_v56, 0.0 }
 0x197   :  { %2246 = vmatmul.mubr.bf16.gmra.mxu0 %v1154_v34  ;;  %2406 = vmatmul.mubr.bf16.gmra.mxu1 %v1194_v33  ;;  %v853_v34 = vadd.f32 %v3430_v8, %v690_v46  ;;  %v1157_v33 = vpack.c.bf16 %v1008_v36, %v1007_v43  ;;  %v696_v43 = vmul.f32 %v2596_v23, %v3406_v25  ;;  %v1093_v36 = vmax.f32 %v936_v30, 0.0 }
 0x198   :  { %2249 = vmatprep.mubr.msk.bf16.mxu0 %vm2699_vm0, %v4767_v4  ;;  %2409 = vmatprep.mubr.msk.bf16.mxu1 %vm2699_vm0, %v4767_v4  ;;  %v858_v46 = vadd.f32 %v3430_v8, %v695_v38  ;;  %v782_v30 = vmul.f32 %v3406_v25, %v3221_v61  ;;  %v2603_v61 = vld [vmem:[%s4757_s0 + $0xf0] sm:$0xff] }
 0x199   :  { %v1010_v54 = vmax.f32 %v853_v34, 0.0  ;;  %v859_v7 = vadd.f32 %v3430_v8, %v696_v43 }
 0x19a   :  { %v1015_v21 = vmax.f32 %v858_v46, 0.0  ;;  %v945_v23 = vadd.f32 %v3430_v8, %v782_v30 }
 0x19b   :  { %v1158_v11 = vpack.c.bf16 %v1010_v54, %v1009_v52  ;;  %v1016_v34 = vmax.f32 %v859_v7, 0.0  ;;  %v1096_v52 = vmax.f32 %v939_v24, 0.0  ;;  %v777_v54 = vmul.f32 %v3406_v25, %v3181_v32  ;;  %v4768_v7 = vld [vmem:[#allocation2_spill] sm:$0xff] }
 0x19c   :  { %v1102_v46 = vmax.f32 %v945_v23, 0.0 }
 0x19d   :  { %v1161_v41 = vpack.c.bf16 %v1016_v34, %v1015_v21 }
 0x19f   :  { %2250 = vmatmul.mubr.bf16.gmra.mxu0 %v1155_v17  ;;  %2410 = vmatmul.mubr.bf16.gmra.mxu1 %v1195_v15  ;;  %v1198_v17 = vpack.c.bf16 %v1090_v0, %v1089_v53  ;;  %v934_v15 = vadd.f32 %v3430_v8, %v771_v1  ;;  %v1201_v53 = vpack.c.bf16 %v1096_v52, %v1095_v27  ;;  %v2605_v52 = vld [vmem:[%s4757_s0 + $0x100] sm:$0xff] }
 0x1a0   :  { %2253 = vmatprep.mubr.msk.bf16.mxu0 %vm2699_vm0, %v4767_v4  ;;  %2413 = vmatprep.mubr.msk.bf16.mxu1 %vm2699_vm0, %v4767_v4  ;;  %v940_v0 = vadd.f32 %v3430_v8, %v777_v54  ;;  %v941_v1 = vadd.f32 %v3430_v8, %v778_v57  ;;  %v705_v54 = vmul.f32 %v2605_v52, %v3406_v25  ;;  %v2606_v57 = vld [vmem:[%s4757_s0 + $0x108] sm:$0xff] }
 0x1a1   :  { %v1091_v20 = vmax.f32 %v934_v15, 0.0 }
 0x1a2   :  { %v1098_v15 = vmax.f32 %v941_v1, 0.0  ;;  %v2608_v1 = vld [vmem:[%s4757_s0 + $0x388] sm:$0xff] }
 0x1a3   :  { %v1199_v29 = vpack.c.bf16 %v1092_v18, %v1091_v20  ;;  %v943_v20 = vadd.f32 %v3430_v8, %v780_v63  ;;  %v2609_v63 = vld [vmem:[%s4757_s0 + $0x110] sm:$0xff] }
 0x1a4   :  { %v707_v62 = vmul.f32 %v2609_v63, %v3406_v25 }
 0x1a7   :  { %2254 = vmatmul.mubr.bf16.gmra.mxu0 %v1156_v59  ;;  %2414 = vmatmul.mubr.bf16.gmra.mxu1 %v1196_v19  ;;  %v937_v59 = vadd.f32 %v3430_v8, %v774_v28  ;;  %v1014_v19 = vmax.f32 %v857_v60, 0.0  ;;  %v2602_v28 = vld [vmem:[%s4757_s0 + $0xe8] sm:$0xff]  ;;  %v1099_v60 = vmax.f32 %v942_v39, 0.0 }
 0x1a8   :  { %2257 = vmatprep.mubr.msk.bf16.mxu0 %vm2699_vm0, %v4767_v4  ;;  %2417 = vmatprep.mubr.msk.bf16.mxu1 %vm2699_vm0, %v4767_v4  ;;  %v702_v13 = vmul.f32 %v2602_v28, %v3406_v25 }
 0x1a9   :  { %v1094_v47 = vmax.f32 %v937_v59, 0.0  ;;  %v1160_v14 = vpack.c.bf16 %v1014_v19, %v1013_v10  ;;  %v864_v59 = vadd.f32 %v3430_v8, %v701_v6  ;;  %v870_v6 = vadd.f32 %v3430_v8, %v707_v62  ;;  %v2624_v62 = vld [vmem:[%s4757_s0 + $0x3c8] sm:$0xff] }
 0x1aa   :  { %v865_v10 = vadd.f32 %v3430_v8, %v702_v13 }
 0x1ab   :  { %v1200_v45 = vpack.c.bf16 %v1094_v47, %v1093_v36  ;;  %v703_v36 = vmul.f32 %v2603_v61, %v3406_v25  ;;  %v2604_v47 = vld [vmem:[%s4757_s0 + $0xf8] sm:$0xff]  ;;  %v1027_v30 = vmax.f32 %v870_v6, 0.0 }
 0x1ac   :  { %v1022_v43 = vmax.f32 %v865_v10, 0.0  ;;  %v704_v40 = vmul.f32 %v2604_v47, %v3406_v25  ;;  %v2613_v10 = vld [vmem:[%s4757_s0 + $0x120] sm:$0xff] }
 0x1ad   :  { %v866_v24 = vadd.f32 %v3430_v8, %v703_v36  ;;  %v2616_v36 = vld [vmem:[%s4757_s0 + $0x3a8] sm:$0xff] }
 0x1ae   :  { %v867_v21 = vadd.f32 %v3430_v8, %v704_v40  ;;  %v790_v47 = vmul.f32 %v2616_v36, %v3406_v25 }
 0x1af   :  { %2258 = vmatmul.mubr.bf16.gmra.mxu0 %v1157_v33  ;;  %2418 = vmatmul.mubr.bf16.gmra.mxu1 %v1197_v51  ;;  %v697_v33 = vmul.f32 %v2597_v26, %v3406_v25  ;;  %v2598_v51 = vld [vmem:[%s4757_s0 + $0xc8] sm:$0xff] }
 0x1b0   :  { %2261 = vmatprep.mubr.msk.bf16.mxu0 %vm2699_vm0, %v4767_v4  ;;  %2421 = vmatprep.mubr.msk.bf16.mxu1 %vm2699_vm0, %v4767_v4  ;;  %v698_v50 = vmul.f32 %v2598_v51, %v3406_v25  ;;  %v1024_v27 = vmax.f32 %v867_v21, 0.0  ;;  %v2617_v21 = vld [vmem:[%s4757_s0 + $0x130] sm:$0xff] }
 0x1b1   :  { %v860_v31 = vadd.f32 %v3430_v8, %v697_v33 }
 0x1b2   :  { %v861_v44 = vadd.f32 %v3430_v8, %v698_v50  ;;  %v1023_v50 = vmax.f32 %v866_v24, 0.0 }
 0x1b3   :  { %v1017_v32 = vmax.f32 %v860_v31, 0.0  ;;  %v706_v31 = vmul.f32 %v2606_v57, %v3406_v25 }
 0x1b4   :  { %v1018_v2 = vmax.f32 %v861_v44, 0.0  ;;  %v1165_v58 = vpack.c.bf16 %v1024_v27, %v1023_v50  ;;  %v2619_v27 = vld [vmem:[%s4757_s0 + $0x3b0] sm:$0xff] }
 0x1b5   :  { %v869_v37 = vadd.f32 %v3430_v8, %v706_v31  ;;  %v791_v52 = vmul.f32 %v2619_v27, %v3406_v25 }
 0x1b6   :  { %v1162_v35 = vpack.c.bf16 %v1018_v2, %v1017_v32  ;;  %v786_v32 = vmul.f32 %v2608_v1, %v3406_v25  ;;  %v868_v2 = vadd.f32 %v3430_v8, %v705_v54  ;;  %v2620_v54 = vld [vmem:[%s4757_s0 + $0x3b8] sm:$0xff] }
 0x1b7   :  { %2262 = vmatmul.mubr.bf16.gmra.mxu0 %v1158_v11  ;;  %2422 = vmatmul.mubr.bf16.gmra.mxu1 %v1198_v17  ;;  %v700_v11 = vmul.f32 %v2600_v9, %v3406_v25  ;;  %v1097_v17 = vmax.f32 %v940_v0, 0.0  ;;  %v1026_v49 = vmax.f32 %v869_v37, 0.0  ;;  %v792_v57 = vmul.f32 %v2620_v54, %v3406_v25  ;;  %v2621_v37 = vld [vmem:[%s4757_s0 + $0x140] sm:$0xff] }
 0x1b8   :  { %2265 = vmatprep.mubr.msk.bf16.mxu0 %vm2699_vm0, %v4767_v4  ;;  %2425 = vmatprep.mubr.msk.bf16.mxu1 %vm2699_vm0, %v4767_v4 }
 0x1b9   :  { %v863_v5 = vadd.f32 %v3430_v8, %v700_v11  ;;  %v1202_v12 = vpack.c.bf16 %v1098_v15, %v1097_v17  ;;  %v949_v17 = vadd.f32 %v3430_v8, %v786_v32  ;;  %v1025_v15 = vmax.f32 %v868_v2, 0.0 }
 0x1ba   :  { %v955_v1 = vadd.f32 %v3430_v8, %v792_v57 }
 0x1bb   :  { %v1020_v18 = vmax.f32 %v863_v5, 0.0  ;;  %v2610_v5 = vld [vmem:[%s4757_s0 + $0x118] sm:$0xff]  ;;  %v1106_v39 = vmax.f32 %v949_v17, 0.0  ;;  %v1166_v13 = vpack.c.bf16 %v1026_v49, %v1025_v15  ;;  %v2623_v49 = vld [vmem:[%s4757_s0 + $0x3c0] sm:$0xff] }
 0x1bc   :  { %v1112_v15 = vmax.f32 %v955_v1, 0.0  ;;  %v793_v63 = vmul.f32 %v2623_v49, %v3406_v25 }
 0x1bd   :  { %v1163_v19 = vpack.c.bf16 %v1020_v18, %v1019_v42  ;;  %v2612_v18 = vld [vmem:[%s4757_s0 + $0x398] sm:$0xff] }
 0x1be   :  { %v788_v48 = vmul.f32 %v2612_v18, %v3406_v25 }
 0x1bf   :  { %2266 = vmatmul.mubr.bf16.gmra.mxu0 %v1159_v22  ;;  %2426 = vmatmul.mubr.bf16.gmra.mxu1 %v1199_v29  ;;  %v1100_v22 = vmax.f32 %v943_v20, 0.0  ;;  %v781_v29 = vmul.f32 %v3406_v25, %v3213_v55  ;;  %v1021_v55 = vmax.f32 %v864_v59, 0.0  ;;  %v2611_v20 = vld [vmem:[%s4757_s0 + $0x390] sm:$0xff] }
 0x1c0   :  { %2269 = vmatprep.mubr.msk.bf16.mxu0 %vm2699_vm0, %v4767_v4  ;;  %2429 = vmatprep.mubr.msk.bf16.mxu1 %vm2699_vm0, %v4767_v4  ;;  %v787_v42 = vmul.f32 %v2611_v20, %v3406_v25 }
 0x1c1   :  { %v1203_v16 = vpack.c.bf16 %v1100_v22, %v1099_v60  ;;  %v944_v38 = vadd.f32 %v3430_v8, %v781_v29  ;;  %v1164_v34 = vpack.c.bf16 %v1022_v43, %v1021_v55  ;;  %v951_v29 = vadd.f32 %v3430_v8, %v788_v48  ;;  %v2615_v43 = vld [vmem:[%s4757_s0 + $0x3a0] sm:$0xff] }
 0x1c2   :  { %v950_v22 = vadd.f32 %v3430_v8, %v787_v42  ;;  %v789_v61 = vmul.f32 %v2615_v43, %v3406_v25  ;;  %v956_v42 = vadd.f32 %v3430_v8, %v793_v63 }
 0x1c3   :  { %v1101_v3 = vmax.f32 %v944_v38, 0.0  ;;  %v1108_v55 = vmax.f32 %v951_v29, 0.0 }
 0x1c4   :  { %v1107_v23 = vmax.f32 %v950_v22, 0.0  ;;  %v1113_v29 = vmax.f32 %v956_v42, 0.0 }
 0x1c5   :  { %v1204_v26 = vpack.c.bf16 %v1102_v46, %v1101_v3 }
 0x1c7   :  { %2270 = vmatmul.mubr.bf16.gmra.mxu0 %v1160_v14  ;;  %2430 = vmatmul.mubr.bf16.gmra.mxu1 %v1200_v45  ;;  %v783_v14 = vmul.f32 %v3406_v25, %v4768_v7  ;;  %v4769_v45 = vld [vmem:[#allocation3_spill] sm:$0xff]  ;;  %v1207_v7 = vpack.c.bf16 %v1108_v55, %v1107_v23 }
 0x1c8   :  { %2273 = vmatprep.mubr.msk.bf16.mxu0 %vm2699_vm0, %v4767_v4  ;;  %2433 = vmatprep.mubr.msk.bf16.mxu1 %vm2699_vm0, %v4767_v4  ;;  %v784_v56 = vmul.f32 %v3406_v25, %v4769_v45  ;;  %v953_v45 = vadd.f32 %v3430_v8, %v790_v47 }
 0x1c9   :  { %v946_v33 = vadd.f32 %v3430_v8, %v783_v14  ;;  %v952_v14 = vadd.f32 %v3430_v8, %v789_v61 }
 0x1ca   :  { %v947_v51 = vadd.f32 %v3430_v8, %v784_v56  ;;  %v1110_v50 = vmax.f32 %v953_v45, 0.0 }
 0x1cb   :  { %v1103_v44 = vmax.f32 %v946_v33, 0.0 }
 0x1cf   :  { %2274 = vmatmul.mubr.bf16.gmra.mxu0 %v1161_v41  ;;  %2434 = vmatmul.mubr.bf16.gmra.mxu1 %v1201_v53  ;;  %v1104_v41 = vmax.f32 %v947_v51, 0.0  ;;  %v2607_v53 = vld [vmem:[%s4757_s0 + $0x380] sm:$0xff]  ;;  %v1109_v51 = vmax.f32 %v952_v14, 0.0 }
 0x1d0   :  { %2277 = vmatprep.mubr.msk.bf16.mxu0 %vm2699_vm0, %v4767_v4  ;;  %2437 = vmatprep.mubr.msk.bf16.mxu1 %vm2699_vm0, %v4767_v4  ;;  %v785_v0 = vmul.f32 %v2607_v53, %v3406_v25 }
 0x1d1   :  { %v1205_v9 = vpack.c.bf16 %v1104_v41, %v1103_v44  ;;  %v1208_v53 = vpack.c.bf16 %v1110_v50, %v1109_v51 }
 0x1d2   :  { %v948_v11 = vadd.f32 %v3430_v8, %v785_v0  ;;  %v954_v0 = vadd.f32 %v3430_v8, %v791_v52 }
 0x1d4   :  { %v1111_v17 = vmax.f32 %v954_v0, 0.0 }
 0x1d6   :  { %v1209_v20 = vpack.c.bf16 %v1112_v15, %v1111_v17 }
 0x1d7   :  { %2278 = vmatmul.mubr.bf16.gmra.mxu0 %v1162_v35  ;;  %2438 = vmatmul.mubr.bf16.gmra.mxu1 %v1202_v12  ;;  %v708_v35 = vmul.f32 %v2610_v5, %v3406_v25  ;;  %v1105_v12 = vmax.f32 %v948_v11, 0.0  ;;  %v794_v5 = vmul.f32 %v2624_v62, %v3406_v25 }
 0x1d8   :  { %2281 = vmatprep.mubr.msk.bf16.mxu0 %vm2699_vm0, %v4767_v4  ;;  %2441 = vmatprep.mubr.msk.bf16.mxu1 %vm2699_vm0, %v4767_v4 }
 0x1d9   :  { %v871_v28 = vadd.f32 %v3430_v8, %v708_v35  ;;  %v1206_v60 = vpack.c.bf16 %v1106_v39, %v1105_v12  ;;  %v957_v18 = vadd.f32 %v3430_v8, %v794_v5 }
 0x1db   :  { %v1028_v59 = vmax.f32 %v871_v28, 0.0  ;;  %v2625_v28 = vld [vmem:[%s4757_s0 + $0x150] sm:$0xff] }
 0x1dd   :  { %v1167_v46 = vpack.c.bf16 %v1028_v59, %v1027_v30  ;;  %v1114_v30 = vmax.f32 %v957_v18, 0.0  ;;  %v2627_v59 = vld [vmem:[%s4757_s0 + $0x3d0] sm:$0xff] }
 0x1df   :  { %2282 = vmatmul.mubr.bf16.gmra.mxu0 %v1163_v19  ;;  %2442 = vmatmul.mubr.bf16.gmra.mxu1 %v1203_v16  ;;  %v709_v19 = vmul.f32 %v2613_v10, %v3406_v25  ;;  %v2614_v16 = vld [vmem:[%s4757_s0 + $0x128] sm:$0xff]  ;;  %v795_v10 = vmul.f32 %v2627_v59, %v3406_v25  ;;  %v1210_v43 = vpack.c.bf16 %v1114_v30, %v1113_v29 }
 0x1e0   :  { %2285 = vmatprep.mubr.msk.bf16.mxu0 %vm2699_vm0, %v4767_v4  ;;  %2445 = vmatprep.mubr.msk.bf16.mxu1 %vm2699_vm0, %v4767_v4  ;;  %v710_v38 = vmul.f32 %v2614_v16, %v3406_v25 }
 0x1e1   :  { %v872_v40 = vadd.f32 %v3430_v8, %v709_v19  ;;  %v2628_v19 = vld [vmem:[%s4757_s0 + $0x3d8] sm:$0xff]  ;;  %v958_v61 = vadd.f32 %v3430_v8, %v795_v10 }
 0x1e2   :  { %v873_v3 = vadd.f32 %v3430_v8, %v710_v38  ;;  %v796_v16 = vmul.f32 %v2628_v19, %v3406_v25 }
 0x1e3   :  { %v1029_v56 = vmax.f32 %v872_v40, 0.0  ;;  %v1115_v45 = vmax.f32 %v958_v61, 0.0 }
 0x1e4   :  { %v1030_v24 = vmax.f32 %v873_v3, 0.0  ;;  %v959_v36 = vadd.f32 %v3430_v8, %v796_v16  ;;  %v2629_v3 = vld [vmem:[%s4757_s0 + $0x160] sm:$0xff] }
 0x1e6   :  { %v1168_v41 = vpack.c.bf16 %v1030_v24, %v1029_v56  ;;  %v1116_v56 = vmax.f32 %v959_v36, 0.0  ;;  %v2631_v24 = vld [vmem:[%s4757_s0 + $0x3e0] sm:$0xff] }
 0x1e7   :  { %2286 = vmatmul.mubr.bf16.gmra.mxu0 %v1164_v34  ;;  %2446 = vmatmul.mubr.bf16.gmra.mxu1 %v1204_v26  ;;  %v711_v34 = vmul.f32 %v2617_v21, %v3406_v25  ;;  %v2618_v26 = vld [vmem:[%s4757_s0 + $0x138] sm:$0xff]  ;;  %v797_v21 = vmul.f32 %v2631_v24, %v3406_v25 }
 0x1e8   :  { %2289 = vmatprep.mubr.msk.bf16.mxu0 %vm2699_vm0, %v4767_v4  ;;  %2449 = vmatprep.mubr.msk.bf16.mxu1 %vm2699_vm0, %v4767_v4  ;;  %v712_v33 = vmul.f32 %v2618_v26, %v3406_v25  ;;  %v1211_v27 = vpack.c.bf16 %v1116_v56, %v1115_v45 }
 0x1e9   :  { %v874_v31 = vadd.f32 %v3430_v8, %v711_v34  ;;  %v2632_v34 = vld [vmem:[%s4757_s0 + $0x3e8] sm:$0xff]  ;;  %v960_v52 = vadd.f32 %v3430_v8, %v797_v21 }
 0x1ea   :  { %v875_v44 = vadd.f32 %v3430_v8, %v712_v33  ;;  %v798_v26 = vmul.f32 %v2632_v34, %v3406_v25 }
 0x1eb   :  { %v1031_v32 = vmax.f32 %v874_v31, 0.0  ;;  %v1117_v1 = vmax.f32 %v960_v52, 0.0 }
 0x1ec   :  { %v1032_v2 = vmax.f32 %v875_v44, 0.0  ;;  %v961_v54 = vadd.f32 %v3430_v8, %v798_v26  ;;  %v2633_v44 = vld [vmem:[%s4757_s0 + $0x170] sm:$0xff] }
 0x1ee   :  { %v1169_v39 = vpack.c.bf16 %v1032_v2, %v1031_v32  ;;  %v1118_v32 = vmax.f32 %v961_v54, 0.0  ;;  %v2635_v2 = vld [vmem:[%s4757_s0 + $0x3f0] sm:$0xff] }
 0x1ef   :  { %2290 = vmatmul.mubr.bf16.gmra.mxu0 %v1165_v58  ;;  %2450 = vmatmul.mubr.bf16.gmra.mxu1 %v1205_v9  ;;  %v713_v58 = vmul.f32 %v2621_v37, %v3406_v25  ;;  %v2622_v9 = vld [vmem:[%s4757_s0 + $0x148] sm:$0xff]  ;;  %v799_v37 = vmul.f32 %v2635_v2, %v3406_v25 }
 0x1f0   :  { %2293 = vmatprep.mubr.msk.bf16.mxu0 %vm2699_vm0, %v4767_v4  ;;  %2453 = vmatprep.mubr.msk.bf16.mxu1 %vm2699_vm0, %v4767_v4  ;;  %v714_v11 = vmul.f32 %v2622_v9, %v3406_v25  ;;  %v1212_v49 = vpack.c.bf16 %v1118_v32, %v1117_v1 }
 0x1f1   :  { %v876_v35 = vadd.f32 %v3430_v8, %v713_v58  ;;  %v2636_v58 = vld [vmem:[%s4757_s0 + $0x3f8] sm:$0xff]  ;;  %v962_v63 = vadd.f32 %v3430_v8, %v799_v37 }
 0x1f2   :  { %v877_v12 = vadd.f32 %v3430_v8, %v714_v11  ;;  %v800_v9 = vmul.f32 %v2636_v58, %v3406_v25 }
 0x1f3   :  { %v1033_v48 = vmax.f32 %v876_v35, 0.0  ;;  %v1119_v18 = vmax.f32 %v962_v63, 0.0 }
 0x1f4   :  { %v1034_v6 = vmax.f32 %v877_v12, 0.0  ;;  %v963_v62 = vadd.f32 %v3430_v8, %v800_v9  ;;  %v2637_v12 = vld [vmem:[%s4757_s0 + $0x180] sm:$0xff] }
 0x1f6   :  { %v1170_v55 = vpack.c.bf16 %v1034_v6, %v1033_v48  ;;  %v1120_v48 = vmax.f32 %v963_v62, 0.0  ;;  %v2639_v6 = vld [vmem:[%s4757_s0 + $0x400] sm:$0xff] }
 0x1f7   :  { %2294 = vmatmul.mubr.bf16.gmra.mxu0 %v1166_v13  ;;  %2454 = vmatmul.mubr.bf16.gmra.mxu1 %v1206_v60  ;;  %v715_v13 = vmul.f32 %v2625_v28, %v3406_v25  ;;  %v2626_v60 = vld [vmem:[%s4757_s0 + $0x158] sm:$0xff]  ;;  %v801_v28 = vmul.f32 %v2639_v6, %v3406_v25 }
 0x1f8   :  { %2297 = vmatprep.mubr.msk.bf16.mxu0 %vm2699_vm0, %v4767_v4  ;;  %2457 = vmatprep.mubr.msk.bf16.mxu1 %vm2699_vm0, %v4767_v4  ;;  %v716_v22 = vmul.f32 %v2626_v60, %v3406_v25  ;;  %v1213_v59 = vpack.c.bf16 %v1120_v48, %v1119_v18 }
 0x1f9   :  { %v878_v38 = vadd.f32 %v3430_v8, %v715_v13  ;;  %v2640_v13 = vld [vmem:[%s4757_s0 + $0x408] sm:$0xff]  ;;  %v964_v10 = vadd.f32 %v3430_v8, %v801_v28 }
 0x1fa   :  { %v879_v23 = vadd.f32 %v3430_v8, %v716_v22  ;;  %v802_v60 = vmul.f32 %v2640_v13, %v3406_v25 }
 0x1fb   :  { %v1035_v47 = vmax.f32 %v878_v38, 0.0  ;;  %v1121_v36 = vmax.f32 %v964_v10, 0.0 }
 0x1fc   :  { %v1036_v40 = vmax.f32 %v879_v23, 0.0  ;;  %v965_v19 = vadd.f32 %v3430_v8, %v802_v60  ;;  %v2641_v23 = vld [vmem:[%s4757_s0 + $0x190] sm:$0xff] }
 0x1fd   :  { %v2651_v60 = vld [vmem:[%s4757_s0 + $0x430] sm:$0xff] }
 0x1fe   :  { %v1171_v50 = vpack.c.bf16 %v1036_v40, %v1035_v47  ;;  %v1122_v47 = vmax.f32 %v965_v19, 0.0  ;;  %v2643_v40 = vld [vmem:[%s4757_s0 + $0x410] sm:$0xff] }
 0x1ff   :  { %2298 = vmatmul.mubr.bf16.gmra.mxu0 %v1167_v46  ;;  %2458 = vmatmul.mubr.bf16.gmra.mxu1 %v1207_v7  ;;  %v717_v46 = vmul.f32 %v2629_v3, %v3406_v25  ;;  %v2630_v7 = vld [vmem:[%s4757_s0 + $0x168] sm:$0xff]  ;;  %v803_v3 = vmul.f32 %v2643_v40, %v3406_v25 }
 0x200   :  { %2301 = vmatprep.mubr.msk.bf16.mxu0 %vm2699_vm0, %v4767_v4  ;;  %2461 = vmatprep.mubr.msk.bf16.mxu1 %vm2699_vm0, %v4767_v4  ;;  %v718_v14 = vmul.f32 %v2630_v7, %v3406_v25  ;;  %v1214_v24 = vpack.c.bf16 %v1122_v47, %v1121_v36 }
 0x201   :  { %v880_v33 = vadd.f32 %v3430_v8, %v717_v46  ;;  %v2644_v46 = vld [vmem:[%s4757_s0 + $0x418] sm:$0xff]  ;;  %v966_v21 = vadd.f32 %v3430_v8, %v803_v3 }
 0x202   :  { %v881_v51 = vadd.f32 %v3430_v8, %v718_v14  ;;  %v804_v7 = vmul.f32 %v2644_v46, %v3406_v25 }
 0x203   :  { %v1037_v57 = vmax.f32 %v880_v33, 0.0 }
 0x204   :  { %v1038_v31 = vmax.f32 %v881_v51, 0.0  ;;  %v967_v34 = vadd.f32 %v3430_v8, %v804_v7  ;;  %v2645_v51 = vld [vmem:[%s4757_s0 + $0x1a0] sm:$0xff] }
 0x205   :  { %v2653_v7 = vld [vmem:[%s4757_s0 + $0x1c0] sm:$0xff] }
 0x206   :  { %v1172_v15 = vpack.c.bf16 %v1038_v31, %v1037_v57  ;;  %v1123_v31 = vmax.f32 %v966_v21, 0.0 }
 0x207   :  { %2302 = vmatmul.mubr.bf16.gmra.mxu0 %v1168_v41  ;;  %2462 = vmatmul.mubr.bf16.gmra.mxu1 %v1208_v53  ;;  %v719_v41 = vmul.f32 %v2633_v44, %v3406_v25  ;;  %v2634_v53 = vld [vmem:[%s4757_s0 + $0x178] sm:$0xff]  ;;  %v1124_v44 = vmax.f32 %v967_v34, 0.0 }
 0x208   :  { %2305 = vmatprep.mubr.msk.bf16.mxu0 %vm2699_vm0, %v4767_v4  ;;  %2465 = vmatprep.mubr.msk.bf16.mxu1 %vm2699_vm0, %v4767_v4  ;;  %v720_v0 = vmul.f32 %v2634_v53, %v3406_v25 }
 0x209   :  { %v882_v11 = vadd.f32 %v3430_v8, %v719_v41  ;;  %v2647_v41 = vld [vmem:[%s4757_s0 + $0x420] sm:$0xff] }
 0x20a   :  { %v883_v17 = vadd.f32 %v3430_v8, %v720_v0  ;;  %v805_v53 = vmul.f32 %v2647_v41, %v3406_v25  ;;  %v2648_v0 = vld [vmem:[%s4757_s0 + $0x428] sm:$0xff] }
 0x20b   :  { %v1039_v5 = vmax.f32 %v882_v11, 0.0  ;;  %v806_v1 = vmul.f32 %v2648_v0, %v3406_v25 }
 0x20c   :  { %v1040_v35 = vmax.f32 %v883_v17, 0.0 }
 0x20d   :  { %v969_v63 = vadd.f32 %v3430_v8, %v806_v1 }
 0x20e   :  { %v1173_v30 = vpack.c.bf16 %v1040_v35, %v1039_v5 }
 0x20f   :  { %2306 = vmatmul.mubr.bf16.gmra.mxu0 %v1169_v39  ;;  %2466 = vmatmul.mubr.bf16.gmra.mxu1 %v1209_v20  ;;  %v721_v39 = vmul.f32 %v2637_v12, %v3406_v25  ;;  %v2638_v20 = vld [vmem:[%s4757_s0 + $0x188] sm:$0xff]  ;;  %v1126_v13 = vmax.f32 %v969_v63, 0.0 }
 0x210   :  { %2309 = vmatprep.mubr.msk.bf16.mxu0 %vm2699_vm0, %v4767_v4  ;;  %2469 = vmatprep.mubr.msk.bf16.mxu1 %vm2699_vm0, %v4767_v4  ;;  %v722_v42 = vmul.f32 %v2638_v20, %v3406_v25 }
 0x211   :  { %v884_v22 = vadd.f32 %v3430_v8, %v721_v39  ;;  %v2649_v39 = vld [vmem:[%s4757_s0 + $0x1b0] sm:$0xff] }
 0x212   :  { %v885_v29 = vadd.f32 %v3430_v8, %v722_v42  ;;  %v727_v20 = vmul.f32 %v2649_v39, %v3406_v25  ;;  %v2650_v42 = vld [vmem:[%s4757_s0 + $0x1b8] sm:$0xff] }
 0x213   :  { %v1041_v16 = vmax.f32 %v884_v22, 0.0  ;;  %v728_v18 = vmul.f32 %v2650_v42, %v3406_v25  ;;  %v807_v22 = vmul.f32 %v2651_v60, %v3406_v25 }
 0x214   :  { %v1042_v38 = vmax.f32 %v885_v29, 0.0  ;;  %v2652_v29 = vld [vmem:[%s4757_s0 + $0x438] sm:$0xff]  ;;  %v890_v19 = vadd.f32 %v3430_v8, %v727_v20 }
 0x215   :  { %v2660_v20 = vld [vmem:[%s4757_s0 + $0x458] sm:$0xff] }
 0x216   :  { %v1174_v56 = vpack.c.bf16 %v1042_v38, %v1041_v16  ;;  %v891_v16 = vadd.f32 %v3430_v8, %v728_v18  ;;  %v1047_v3 = vmax.f32 %v890_v19, 0.0  ;;  %v812_v42 = vmul.f32 %v2660_v20, %v3406_v25 }
 0x217   :  { %2310 = vmatmul.mubr.bf16.gmra.mxu0 %v1170_v55  ;;  %2470 = vmatmul.mubr.bf16.gmra.mxu1 %v1210_v43  ;;  %v723_v55 = vmul.f32 %v2641_v23, %v3406_v25  ;;  %v2642_v43 = vld [vmem:[%s4757_s0 + $0x198] sm:$0xff] }
 0x218   :  { %2313 = vmatprep.mubr.msk.bf16.mxu0 %vm2699_vm0, %v4767_v4  ;;  %2473 = vmatprep.mubr.msk.bf16.mxu1 %vm2699_vm0, %v4767_v4  ;;  %v724_v61 = vmul.f32 %v2642_v43, %v3406_v25  ;;  %v1048_v46 = vmax.f32 %v891_v16, 0.0 }
 0x219   :  { %v886_v14 = vadd.f32 %v3430_v8, %v723_v55 }
 0x21a   :  { %v887_v45 = vadd.f32 %v3430_v8, %v724_v61  ;;  %v970_v61 = vadd.f32 %v3430_v8, %v807_v22 }
 0x21b   :  { %v1043_v26 = vmax.f32 %v886_v14, 0.0  ;;  %v729_v14 = vmul.f32 %v2653_v7, %v3406_v25 }
 0x21c   :  { %v1044_v33 = vmax.f32 %v887_v45, 0.0  ;;  %v2654_v45 = vld [vmem:[%s4757_s0 + $0x1c8] sm:$0xff]  ;;  %v1127_v34 = vmax.f32 %v970_v61, 0.0 }
 0x21e   :  { %v1175_v17 = vpack.c.bf16 %v1044_v33, %v1043_v26  ;;  %v2655_v33 = vld [vmem:[%s4757_s0 + $0x440] sm:$0xff] }
 0x21f   :  { %2314 = vmatmul.mubr.bf16.gmra.mxu0 %v1171_v50  ;;  %2474 = vmatmul.mubr.bf16.gmra.mxu1 %v1211_v27  ;;  %v725_v50 = vmul.f32 %v2645_v51, %v3406_v25  ;;  %v2646_v27 = vld [vmem:[%s4757_s0 + $0x1a8] sm:$0xff]  ;;  %v809_v51 = vmul.f32 %v2655_v33, %v3406_v25 }
 0x220   :  { %2317 = vmatprep.mubr.msk.bf16.mxu0 %vm2699_vm0, %v4767_v4  ;;  %2477 = vmatprep.mubr.msk.bf16.mxu1 %vm2699_vm0, %v4767_v4  ;;  %v726_v52 = vmul.f32 %v2646_v27, %v3406_v25 }
 0x221   :  { %v888_v37 = vadd.f32 %v3430_v8, %v725_v50  ;;  %v2656_v50 = vld [vmem:[%s4757_s0 + $0x448] sm:$0xff]  ;;  %v972_v1 = vadd.f32 %v3430_v8, %v809_v51 }
 0x222   :  { %v889_v58 = vadd.f32 %v3430_v8, %v726_v52  ;;  %v810_v27 = vmul.f32 %v2656_v50, %v3406_v25 }
 0x223   :  { %v1045_v35 = vmax.f32 %v888_v37, 0.0 }
 0x224   :  { %v1046_v12 = vmax.f32 %v889_v58, 0.0 }
 0x226   :  { %v1176_v55 = vpack.c.bf16 %v1046_v12, %v1045_v35  ;;  %v2659_v12 = vld [vmem:[%s4757_s0 + $0x450] sm:$0xff] }
 0x227   :  { %2318 = vmatmul.mubr.bf16.gmra.mxu0 %v1172_v15  ;;  %2478 = vmatmul.mubr.bf16.gmra.mxu1 %v1212_v49  ;;  %v1215_v15 = vpack.c.bf16 %v1124_v44, %v1123_v31  ;;  %v968_v49 = vadd.f32 %v3430_v8, %v805_v53  ;;  %v1177_v53 = vpack.c.bf16 %v1048_v46, %v1047_v3  ;;  %v2663_v46 = vld [vmem:[%s4757_s0 + $0x460] sm:$0xff] }
 0x228   :  { %2321 = vmatprep.mubr.msk.bf16.mxu0 %vm2699_vm0, %v4767_v4  ;;  %2481 = vmatprep.mubr.msk.bf16.mxu1 %vm2699_vm0, %v4767_v4  ;;  %v811_v39 = vmul.f32 %v2659_v12, %v3406_v25  ;;  %v813_v7 = vmul.f32 %v2663_v46, %v3406_v25 }
 0x229   :  { %v1125_v28 = vmax.f32 %v968_v49, 0.0 }
 0x22b   :  { %v1216_v43 = vpack.c.bf16 %v1126_v13, %v1125_v28 }
 0x22f   :  { %2322 = vmatmul.mubr.bf16.gmra.mxu0 %v1173_v30  ;;  %2482 = vmatmul.mubr.bf16.gmra.mxu1 %v1213_v59  ;;  %v808_v30 = vmul.f32 %v2652_v29, %v3406_v25 }
 0x230   :  { %2325 = vmatprep.mubr.msk.bf16.mxu0 %vm2699_vm0, %v4767_v4  ;;  %2485 = vmatprep.mubr.msk.bf16.mxu1 %vm2699_vm0, %v4767_v4 }
 0x231   :  { %v971_v36 = vadd.f32 %v3430_v8, %v808_v30  ;;  %v974_v30 = vadd.f32 %v3430_v8, %v811_v39 }
 0x233   :  { %v1128_v26 = vmax.f32 %v971_v36, 0.0 }
 0x235   :  { %v1217_v0 = vpack.c.bf16 %v1128_v26, %v1127_v34 }
 0x237   :  { %v1327_v54 = vpop.f32.mrf.mxu0  ;;  %2326 = vmatmul.mubr.bf16.gmra.mxu0 %v1174_v56  ;;  %v1647_v57 = vpop.f32.mrf.mxu1  ;;  %2486 = vmatmul.mubr.bf16.gmra.mxu1 %v1214_v24  ;;  %v730_v56 = vmul.f32 %v2654_v45, %v3406_v25 }
 0x238   :  { %1957 = vst [vmem:[%s4760_s4] sm:$0xff] %v1327_v54  ;;  %2037 = vst [vmem:[%s4760_s4 + $0x280] sm:$0xff] %v1647_v57  ;;  %2329 = vmatprep.mubr.msk.bf16.mxu0 %vm2699_vm0, %v4767_v4  ;;  %2489 = vmatprep.mubr.msk.bf16.mxu1 %vm2699_vm0, %v4767_v4  ;;  %v892_v57 = vadd.f32 %v3430_v8, %v729_v14  ;;  %v2664_v14 = vld [vmem:[%s4757_s0 + $0x468] sm:$0xff] }
 0x239   :  { %v2231_v32 = vpop.f32.mrf.mxu0  ;;  %v2391_v2 = vpop.f32.mrf.mxu1  ;;  %v893_v31 = vadd.f32 %v3430_v8, %v730_v56  ;;  %v814_v45 = vmul.f32 %v2664_v14, %v3406_v25 }
 0x23a   :  { %v973_v32 = vadd.f32 %v3430_v8, %v810_v27  ;;  %v1049_v58 = vmax.f32 %v892_v57, 0.0  ;;  %v976_v27 = vadd.f32 %v3430_v8, %v813_v7 }
 0x23b   :  { %v1330_v9 = vpop.f32.mrf.mxu0  ;;  %v1650_v11 = vpop.f32.mrf.mxu1 }
 0x23c   :  { %1958 = vst [vmem:[%s4760_s4 + $0x8] sm:$0xff] %v1330_v9  ;;  %2038 = vst [vmem:[%s4760_s4 + $0x288] sm:$0xff] %v1650_v11  ;;  %v1050_v9 = vmax.f32 %v893_v31, 0.0  ;;  %v2657_v11 = vld [vmem:[%s4757_s0 + $0x1d0] sm:$0xff]  ;;  %v1130_v35 = vmax.f32 %v973_v32, 0.0 }
 0x23d   :  { %v2232_v62 = vpop.f32.mrf.mxu0  ;;  %v2392_v5 = vpop.f32.mrf.mxu1 }
 0x23e   :  { %v1129_v5 = vmax.f32 %v972_v1, 0.0  ;;  %v1178_v22 = vpack.c.bf16 %v1050_v9, %v1049_v58  ;;  %v2667_v9 = vld [vmem:[%s4757_s0 + $0x470] sm:$0xff] }
 0x23f   :  { %v1335_v48 = vpop.f32.mrf.mxu0  ;;  %2330 = vmatmul.mubr.bf16.gmra.mxu0 %v1175_v17  ;;  %v1655_v6 = vpop.f32.mrf.mxu1  ;;  %2490 = vmatmul.mubr.bf16.gmra.mxu1 %v1215_v15  ;;  %v731_v17 = vmul.f32 %v2657_v11, %v3406_v25  ;;  %v2658_v15 = vld [vmem:[%s4757_s0 + $0x1d8] sm:$0xff]  ;;  %v815_v11 = vmul.f32 %v2667_v9, %v3406_v25 }
 0x240   :  { %1959 = vst [vmem:[%s4760_s4 + $0x10] sm:$0xff] %v1335_v48  ;;  %2039 = vst [vmem:[%s4760_s4 + $0x290] sm:$0xff] %v1655_v6  ;;  %2333 = vmatprep.mubr.msk.bf16.mxu0 %vm2699_vm0, %v4767_v4  ;;  %2493 = vmatprep.mubr.msk.bf16.mxu1 %vm2699_vm0, %v4767_v4  ;;  %v732_v49 = vmul.f32 %v2658_v15, %v3406_v25  ;;  %v1218_v29 = vpack.c.bf16 %v1130_v35, %v1129_v5 }
 0x241   :  { %v2235_v59 = vpop.f32.mrf.mxu0  ;;  %v2395_v10 = vpop.f32.mrf.mxu1  ;;  %v894_v6 = vadd.f32 %v3430_v8, %v731_v17  ;;  %v2668_v17 = vld [vmem:[%s4757_s0 + $0x478] sm:$0xff] }
 0x242   :  { %v895_v28 = vadd.f32 %v3430_v8, %v732_v49  ;;  %v975_v59 = vadd.f32 %v3430_v8, %v812_v42  ;;  %v816_v15 = vmul.f32 %v2668_v17, %v3406_v25  ;;  %v978_v42 = vadd.f32 %v3430_v8, %v815_v11 }
 0x243   :  { %v1338_v38 = vpop.f32.mrf.mxu0  ;;  %v1658_v23 = vpop.f32.mrf.mxu1  ;;  %v1051_v16 = vmax.f32 %v894_v6, 0.0 }
 0x244   :  { %1960 = vst [vmem:[%s4760_s4 + $0x18] sm:$0xff] %v1338_v38  ;;  %2040 = vst [vmem:[%s4760_s4 + $0x298] sm:$0xff] %v1658_v23  ;;  %v1052_v38 = vmax.f32 %v895_v28, 0.0  ;;  %v2661_v23 = vld [vmem:[%s4757_s0 + $0x1e0] sm:$0xff]  ;;  %v1132_v3 = vmax.f32 %v975_v59, 0.0 }
 0x245   :  { %v2236_v47 = vpop.f32.mrf.mxu0  ;;  %v2396_v40 = vpop.f32.mrf.mxu1 }
 0x246   :  { %v1131_v40 = vmax.f32 %v974_v30, 0.0  ;;  %v1179_v51 = vpack.c.bf16 %v1052_v38, %v1051_v16  ;;  %v2671_v38 = vld [vmem:[%s4757_s0 + $0x480] sm:$0xff] }
 0x247   :  { %v1343_v24 = vpop.f32.mrf.mxu0  ;;  %2334 = vmatmul.mubr.bf16.gmra.mxu0 %v1176_v55  ;;  %v1663_v21 = vpop.f32.mrf.mxu1  ;;  %2494 = vmatmul.mubr.bf16.gmra.mxu1 %v1216_v43  ;;  %v733_v55 = vmul.f32 %v2661_v23, %v3406_v25  ;;  %v2662_v43 = vld [vmem:[%s4757_s0 + $0x1e8] sm:$0xff]  ;;  %v817_v23 = vmul.f32 %v2671_v38, %v3406_v25 }
 0x248   :  { %1961 = vst [vmem:[%s4760_s4 + $0x20] sm:$0xff] %v1343_v24  ;;  %2041 = vst [vmem:[%s4760_s4 + $0x2a0] sm:$0xff] %v1663_v21  ;;  %2337 = vmatprep.mubr.msk.bf16.mxu0 %vm2699_vm0, %v4767_v4  ;;  %2497 = vmatprep.mubr.msk.bf16.mxu1 %vm2699_vm0, %v4767_v4  ;;  %v734_v61 = vmul.f32 %v2662_v43, %v3406_v25  ;;  %v1219_v50 = vpack.c.bf16 %v1132_v3, %v1131_v40 }
 0x249   :  { %v2239_v52 = vpop.f32.mrf.mxu0  ;;  %v2399_v54 = vpop.f32.mrf.mxu1  ;;  %v896_v21 = vadd.f32 %v3430_v8, %v733_v55  ;;  %v2672_v55 = vld [vmem:[%s4757_s0 + $0x488] sm:$0xff] }
 0x24a   :  { %v897_v34 = vadd.f32 %v3430_v8, %v734_v61  ;;  %v977_v52 = vadd.f32 %v3430_v8, %v814_v45  ;;  %v818_v43 = vmul.f32 %v2672_v55, %v3406_v25  ;;  %v980_v45 = vadd.f32 %v3430_v8, %v817_v23 }
 0x24b   :  { %v1346_v44 = vpop.f32.mrf.mxu0  ;;  %v1666_v41 = vpop.f32.mrf.mxu1  ;;  %v1053_v31 = vmax.f32 %v896_v21, 0.0 }
 0x24c   :  { %1962 = vst [vmem:[%s4760_s4 + $0x28] sm:$0xff] %v1346_v44  ;;  %2042 = vst [vmem:[%s4760_s4 + $0x2a8] sm:$0xff] %v1666_v41  ;;  %v1054_v44 = vmax.f32 %v897_v34, 0.0  ;;  %v2665_v41 = vld [vmem:[%s4757_s0 + $0x1f0] sm:$0xff]  ;;  %v1134_v58 = vmax.f32 %v977_v52, 0.0 }
 0x24d   :  { %v2240_v2 = vpop.f32.mrf.mxu0  ;;  %v2400_v37 = vpop.f32.mrf.mxu1 }
 0x24e   :  { %v1133_v37 = vmax.f32 %v976_v27, 0.0  ;;  %v1180_v39 = vpack.c.bf16 %v1054_v44, %v1053_v31  ;;  %v2675_v44 = vld [vmem:[%s4757_s0 + $0x490] sm:$0xff] }
 0x24f   :  { %v1351_v63 = vpop.f32.mrf.mxu0  ;;  %2338 = vmatmul.mubr.bf16.gmra.mxu0 %v1177_v53  ;;  %v1671_v62 = vpop.f32.mrf.mxu1  ;;  %2498 = vmatmul.mubr.bf16.gmra.mxu1 %v1217_v0  ;;  %v735_v53 = vmul.f32 %v2665_v41, %v3406_v25  ;;  %v2666_v0 = vld [vmem:[%s4757_s0 + $0x1f8] sm:$0xff]  ;;  %v819_v41 = vmul.f32 %v2675_v44, %v3406_v25 }
 0x250   :  { %1963 = vst [vmem:[%s4760_s4 + $0x30] sm:$0xff] %v1351_v63  ;;  %2043 = vst [vmem:[%s4760_s4 + $0x2b0] sm:$0xff] %v1671_v62  ;;  %2341 = vmatprep.mubr.msk.bf16.mxu0 %vm2699_vm0, %v4767_v4  ;;  %2501 = vmatprep.mubr.msk.bf16.mxu1 %vm2699_vm0, %v4767_v4  ;;  %v736_v1 = vmul.f32 %v2666_v0, %v3406_v25  ;;  %v1220_v20 = vpack.c.bf16 %v1134_v58, %v1133_v37 }
 0x251   :  { %v2243_v18 = vpop.f32.mrf.mxu0  ;;  %v2403_v48 = vpop.f32.mrf.mxu1  ;;  %v898_v62 = vadd.f32 %v3430_v8, %v735_v53  ;;  %v2676_v53 = vld [vmem:[%s4757_s0 + $0x498] sm:$0xff] }
 0x252   :  { %v899_v5 = vadd.f32 %v3430_v8, %v736_v1  ;;  %v979_v18 = vadd.f32 %v3430_v8, %v816_v15  ;;  %v820_v0 = vmul.f32 %v2676_v53, %v3406_v25  ;;  %v982_v15 = vadd.f32 %v3430_v8, %v819_v41 }
 0x253   :  { %v1354_v13 = vpop.f32.mrf.mxu0  ;;  %v1674_v60 = vpop.f32.mrf.mxu1  ;;  %v1055_v28 = vmax.f32 %v898_v62, 0.0 }
 0x254   :  { %1964 = vst [vmem:[%s4760_s4 + $0x38] sm:$0xff] %v1354_v13  ;;  %2044 = vst [vmem:[%s4760_s4 + $0x2b8] sm:$0xff] %v1674_v60  ;;  %v1056_v13 = vmax.f32 %v899_v5, 0.0  ;;  %v2669_v60 = vld [vmem:[%s4757_s0 + $0x200] sm:$0xff]  ;;  %v1136_v16 = vmax.f32 %v979_v18, 0.0 }
 0x255   :  { %v2244_v10 = vpop.f32.mrf.mxu0  ;;  %v2404_v19 = vpop.f32.mrf.mxu1 }
 0x256   :  { %v1135_v19 = vmax.f32 %v978_v42, 0.0  ;;  %v1181_v7 = vpack.c.bf16 %v1056_v13, %v1055_v28  ;;  %v2679_v13 = vld [vmem:[%s4757_s0 + $0x4a0] sm:$0xff] }
 0x257   :  { %v1359_v36 = vpop.f32.mrf.mxu0  ;;  %2342 = vmatmul.mubr.bf16.gmra.mxu0 %v1178_v22  ;;  %v1679_v47 = vpop.f32.mrf.mxu1  ;;  %2502 = vmatmul.mubr.bf16.gmra.mxu1 %v1218_v29  ;;  %v737_v22 = vmul.f32 %v2669_v60, %v3406_v25  ;;  %v2670_v29 = vld [vmem:[%s4757_s0 + $0x208] sm:$0xff]  ;;  %v821_v60 = vmul.f32 %v2679_v13, %v3406_v25 }
 0x258   :  { %1965 = vst [vmem:[%s4760_s4 + $0x40] sm:$0xff] %v1359_v36  ;;  %2045 = vst [vmem:[%s4760_s4 + $0x2c0] sm:$0xff] %v1679_v47  ;;  %2345 = vmatprep.mubr.msk.bf16.mxu0 %vm2699_vm0, %v4767_v4  ;;  %2505 = vmatprep.mubr.msk.bf16.mxu1 %vm2699_vm0, %v4767_v4  ;;  %v738_v30 = vmul.f32 %v2670_v29, %v3406_v25  ;;  %v1221_v14 = vpack.c.bf16 %v1136_v16, %v1135_v19 }
 0x259   :  { %v2247_v56 = vpop.f32.mrf.mxu0  ;;  %v2407_v24 = vpop.f32.mrf.mxu1  ;;  %v900_v47 = vadd.f32 %v3430_v8, %v737_v22  ;;  %v2680_v22 = vld [vmem:[%s4757_s0 + $0x4a8] sm:$0xff] }
 0x25a   :  { %v901_v40 = vadd.f32 %v3430_v8, %v738_v30  ;;  %v981_v56 = vadd.f32 %v3430_v8, %v818_v43  ;;  %v822_v29 = vmul.f32 %v2680_v22, %v3406_v25  ;;  %v984_v43 = vadd.f32 %v3430_v8, %v821_v60 }
 0x25b   :  { %v1362_v26 = vpop.f32.mrf.mxu0  ;;  %v1682_v33 = vpop.f32.mrf.mxu1  ;;  %v1057_v34 = vmax.f32 %v900_v47, 0.0 }
 0x25c   :  { %1966 = vst [vmem:[%s4760_s4 + $0x48] sm:$0xff] %v1362_v26  ;;  %2046 = vst [vmem:[%s4760_s4 + $0x2c8] sm:$0xff] %v1682_v33  ;;  %v1058_v26 = vmax.f32 %v901_v40, 0.0  ;;  %v2673_v33 = vld [vmem:[%s4757_s0 + $0x210] sm:$0xff]  ;;  %v1138_v31 = vmax.f32 %v981_v56, 0.0 }
 0x25d   :  { %v2248_v54 = vpop.f32.mrf.mxu0  ;;  %v2408_v57 = vpop.f32.mrf.mxu1 }
 0x25e   :  { %v1137_v57 = vmax.f32 %v980_v45, 0.0  ;;  %v1182_v11 = vpack.c.bf16 %v1058_v26, %v1057_v34  ;;  %v2683_v26 = vld [vmem:[%s4757_s0 + $0x4b0] sm:$0xff] }
 0x25f   :  { %v1367_v32 = vpop.f32.mrf.mxu0  ;;  %2346 = vmatmul.mubr.bf16.gmra.mxu0 %v1179_v51  ;;  %v1687_v2 = vpop.f32.mrf.mxu1  ;;  %2506 = vmatmul.mubr.bf16.gmra.mxu1 %v1219_v50  ;;  %v739_v51 = vmul.f32 %v2673_v33, %v3406_v25  ;;  %v2674_v50 = vld [vmem:[%s4757_s0 + $0x218] sm:$0xff]  ;;  %v823_v33 = vmul.f32 %v2683_v26, %v3406_v25 }
 0x260   :  { %1967 = vst [vmem:[%s4760_s4 + $0x50] sm:$0xff] %v1367_v32  ;;  %2047 = vst [vmem:[%s4760_s4 + $0x2d0] sm:$0xff] %v1687_v2  ;;  %2349 = vmatprep.mubr.msk.bf16.mxu0 %vm2699_vm0, %v4767_v4  ;;  %2509 = vmatprep.mubr.msk.bf16.mxu1 %vm2699_vm0, %v4767_v4  ;;  %v740_v27 = vmul.f32 %v2674_v50, %v3406_v25  ;;  %v1222_v17 = vpack.c.bf16 %v1138_v31, %v1137_v57 }
 0x261   :  { %v2251_v49 = vpop.f32.mrf.mxu0  ;;  %v2411_v63 = vpop.f32.mrf.mxu1  ;;  %v902_v2 = vadd.f32 %v3430_v8, %v739_v51  ;;  %v2684_v51 = vld [vmem:[%s4757_s0 + $0x4b8] sm:$0xff] }
 0x262   :  { %v903_v37 = vadd.f32 %v3430_v8, %v740_v27  ;;  %v983_v49 = vadd.f32 %v3430_v8, %v820_v0  ;;  %v824_v50 = vmul.f32 %v2684_v51, %v3406_v25  ;;  %v986_v0 = vadd.f32 %v3430_v8, %v823_v33 }
 0x263   :  { %v1370_v35 = vpop.f32.mrf.mxu0  ;;  %v1690_v12 = vpop.f32.mrf.mxu1  ;;  %v1059_v5 = vmax.f32 %v902_v2, 0.0 }
 0x264   :  { %1968 = vst [vmem:[%s4760_s4 + $0x58] sm:$0xff] %v1370_v35  ;;  %2048 = vst [vmem:[%s4760_s4 + $0x2d8] sm:$0xff] %v1690_v12  ;;  %v1060_v35 = vmax.f32 %v903_v37, 0.0  ;;  %v2677_v12 = vld [vmem:[%s4757_s0 + $0x220] sm:$0xff]  ;;  %v1140_v28 = vmax.f32 %v983_v49, 0.0 }
 0x265   :  { %v2252_v48 = vpop.f32.mrf.mxu0  ;;  %v2412_v6 = vpop.f32.mrf.mxu1 }
 0x266   :  { %v1139_v6 = vmax.f32 %v982_v15, 0.0  ;;  %v1183_v23 = vpack.c.bf16 %v1060_v35, %v1059_v5  ;;  %v2687_v35 = vld [vmem:[%s4757_s0 + $0x4c0] sm:$0xff] }
 0x267   :  { %v1375_v59 = vpop.f32.mrf.mxu0  ;;  %2350 = vmatmul.mubr.bf16.gmra.mxu0 %v1180_v39  ;;  %v1695_v10 = vpop.f32.mrf.mxu1  ;;  %2510 = vmatmul.mubr.bf16.gmra.mxu1 %v1220_v20  ;;  %v741_v39 = vmul.f32 %v2677_v12, %v3406_v25  ;;  %v2678_v20 = vld [vmem:[%s4757_s0 + $0x228] sm:$0xff]  ;;  %v825_v12 = vmul.f32 %v2687_v35, %v3406_v25 }
 0x268   :  { %1969 = vst [vmem:[%s4760_s4 + $0x60] sm:$0xff] %v1375_v59  ;;  %2049 = vst [vmem:[%s4760_s4 + $0x2e0] sm:$0xff] %v1695_v10  ;;  %2353 = vmatprep.mubr.msk.bf16.mxu0 %vm2699_vm0, %v4767_v4  ;;  %2513 = vmatprep.mubr.msk.bf16.mxu1 %vm2699_vm0, %v4767_v4  ;;  %v742_v42 = vmul.f32 %v2678_v20, %v3406_v25  ;;  %v1223_v55 = vpack.c.bf16 %v1140_v28, %v1139_v6 }
 0x269   :  { %v2255_v61 = vpop.f32.mrf.mxu0  ;;  %v2415_v36 = vpop.f32.mrf.mxu1  ;;  %v904_v10 = vadd.f32 %v3430_v8, %v741_v39  ;;  %v2688_v39 = vld [vmem:[%s4757_s0 + $0x4c8] sm:$0xff] }
 0x26a   :  { %v905_v19 = vadd.f32 %v3430_v8, %v742_v42  ;;  %v985_v61 = vadd.f32 %v3430_v8, %v822_v29  ;;  %v826_v20 = vmul.f32 %v2688_v39, %v3406_v25  ;;  %v988_v29 = vadd.f32 %v3430_v8, %v825_v12 }
 0x26b   :  { %v1378_v3 = vpop.f32.mrf.mxu0  ;;  %v1698_v46 = vpop.f32.mrf.mxu1  ;;  %v1061_v40 = vmax.f32 %v904_v10, 0.0 }
 0x26c   :  { %1970 = vst [vmem:[%s4760_s4 + $0x68] sm:$0xff] %v1378_v3  ;;  %2050 = vst [vmem:[%s4760_s4 + $0x2e8] sm:$0xff] %v1698_v46  ;;  %v1062_v3 = vmax.f32 %v905_v19, 0.0  ;;  %v2681_v46 = vld [vmem:[%s4757_s0 + $0x230] sm:$0xff]  ;;  %v1142_v34 = vmax.f32 %v985_v61, 0.0 }
 0x26d   :  { %v2256_v24 = vpop.f32.mrf.mxu0  ;;  %v2416_v21 = vpop.f32.mrf.mxu1 }
 0x26e   :  { %v1141_v21 = vmax.f32 %v984_v43, 0.0  ;;  %v1184_v41 = vpack.c.bf16 %v1062_v3, %v1061_v40  ;;  %v2691_v3 = vld [vmem:[%s4757_s0 + $0x4d0] sm:$0xff] }
 0x26f   :  { %v1383_v52 = vpop.f32.mrf.mxu0  ;;  %2354 = vmatmul.mubr.bf16.gmra.mxu0 %v1181_v7  ;;  %v1703_v54 = vpop.f32.mrf.mxu1  ;;  %2514 = vmatmul.mubr.bf16.gmra.mxu1 %v1221_v14  ;;  %v743_v7 = vmul.f32 %v2681_v46, %v3406_v25  ;;  %v2682_v14 = vld [vmem:[%s4757_s0 + $0x238] sm:$0xff]  ;;  %v827_v46 = vmul.f32 %v2691_v3, %v3406_v25 }
 0x270   :  { %1971 = vst [vmem:[%s4760_s4 + $0x70] sm:$0xff] %v1383_v52  ;;  %2051 = vst [vmem:[%s4760_s4 + $0x2f0] sm:$0xff] %v1703_v54  ;;  %2357 = vmatprep.mubr.msk.bf16.mxu0 %vm2699_vm0, %v4767_v4  ;;  %2517 = vmatprep.mubr.msk.bf16.mxu1 %vm2699_vm0, %v4767_v4  ;;  %v744_v45 = vmul.f32 %v2682_v14, %v3406_v25  ;;  %v1224_v53 = vpack.c.bf16 %v1142_v34, %v1141_v21 }
 0x271   :  { %v2259_v1 = vpop.f32.mrf.mxu0  ;;  %v2419_v32 = vpop.f32.mrf.mxu1  ;;  %v906_v54 = vadd.f32 %v3430_v8, %v743_v7  ;;  %v2692_v7 = vld [vmem:[%s4757_s0 + $0x4d8] sm:$0xff] }
 0x272   :  { %v907_v57 = vadd.f32 %v3430_v8, %v744_v45  ;;  %v987_v1 = vadd.f32 %v3430_v8, %v824_v50  ;;  %v828_v14 = vmul.f32 %v2692_v7, %v3406_v25  ;;  %v990_v50 = vadd.f32 %v3430_v8, %v827_v46 }
 0x273   :  { %v1386_v58 = vpop.f32.mrf.mxu0  ;;  %v1706_v9 = vpop.f32.mrf.mxu1  ;;  %v1063_v37 = vmax.f32 %v906_v54, 0.0 }
 0x274   :  { %1972 = vst [vmem:[%s4760_s4 + $0x78] sm:$0xff] %v1386_v58  ;;  %2052 = vst [vmem:[%s4760_s4 + $0x2f8] sm:$0xff] %v1706_v9  ;;  %v1064_v58 = vmax.f32 %v907_v57, 0.0  ;;  %v2685_v9 = vld [vmem:[%s4757_s0 + $0x240] sm:$0xff]  ;;  %v1144_v5 = vmax.f32 %v987_v1, 0.0  ;;  %v1147_v1 = vmax.f32 %v990_v50, 0.0 }
 0x275   :  { %v2260_v63 = vpop.f32.mrf.mxu0  ;;  %v2420_v62 = vpop.f32.mrf.mxu1 }
 0x276   :  { %v1143_v62 = vmax.f32 %v986_v0, 0.0  ;;  %v1185_v60 = vpack.c.bf16 %v1064_v58, %v1063_v37  ;;  %v2695_v58 = vld [vmem:[%s4757_s0 + $0x4e0] sm:$0xff] }
 0x277   :  { %v1391_v18 = vpop.f32.mrf.mxu0  ;;  %2358 = vmatmul.mubr.bf16.gmra.mxu0 %v1182_v11  ;;  %v1711_v48 = vpop.f32.mrf.mxu1  ;;  %2518 = vmatmul.mubr.bf16.gmra.mxu1 %v1222_v17  ;;  %v745_v11 = vmul.f32 %v2685_v9, %v3406_v25  ;;  %v2686_v17 = vld [vmem:[%s4757_s0 + $0x248] sm:$0xff]  ;;  %v829_v9 = vmul.f32 %v2695_v58, %v3406_v25 }
 0x278   :  { %1973 = vst [vmem:[%s4760_s4 + $0x80] sm:$0xff] %v1391_v18  ;;  %2053 = vst [vmem:[%s4760_s4 + $0x300] sm:$0xff] %v1711_v48  ;;  %2361 = vmatprep.mubr.msk.bf16.mxu0 %vm2699_vm0, %v4767_v4  ;;  %2521 = vmatprep.mubr.msk.bf16.mxu1 %vm2699_vm0, %v4767_v4  ;;  %v746_v15 = vmul.f32 %v2686_v17, %v3406_v25  ;;  %v1225_v22 = vpack.c.bf16 %v1144_v5, %v1143_v62 }
 0x279   :  { %v2263_v30 = vpop.f32.mrf.mxu0  ;;  %v2423_v59 = vpop.f32.mrf.mxu1  ;;  %v908_v48 = vadd.f32 %v3430_v8, %v745_v11  ;;  %v992_v12 = vadd.f32 %v3430_v8, %v829_v9 }
 0x27a   :  { %v909_v6 = vadd.f32 %v3430_v8, %v746_v15  ;;  %v989_v30 = vadd.f32 %v3430_v8, %v826_v20 }
 0x27b   :  { %v1394_v16 = vpop.f32.mrf.mxu0  ;;  %v1714_v38 = vpop.f32.mrf.mxu1  ;;  %v1065_v19 = vmax.f32 %v908_v48, 0.0 }
 0x27c   :  { %1974 = vst [vmem:[%s4760_s4 + $0x88] sm:$0xff] %v1394_v16  ;;  %2054 = vst [vmem:[%s4760_s4 + $0x308] sm:$0xff] %v1714_v38  ;;  %v1066_v16 = vmax.f32 %v909_v6, 0.0  ;;  %v2689_v38 = vld [vmem:[%s4757_s0 + $0x250] sm:$0xff]  ;;  %v1146_v40 = vmax.f32 %v989_v30, 0.0 }
 0x27d   :  { %v2264_v36 = vpop.f32.mrf.mxu0  ;;  %v2424_v47 = vpop.f32.mrf.mxu1 }
 0x27e   :  { %v1145_v47 = vmax.f32 %v988_v29, 0.0  ;;  %v1186_v33 = vpack.c.bf16 %v1066_v16, %v1065_v19 }
 0x27f   :  { %v1399_v56 = vpop.f32.mrf.mxu0  ;;  %2362 = vmatmul.mubr.bf16.gmra.mxu0 %v1183_v23  ;;  %v1719_v24 = vpop.f32.mrf.mxu1  ;;  %2522 = vmatmul.mubr.bf16.gmra.mxu1 %v1223_v55  ;;  %v747_v23 = vmul.f32 %v2689_v38, %v3406_v25  ;;  %v2690_v55 = vld [vmem:[%s4757_s0 + $0x258] sm:$0xff] }
 0x280   :  { %1975 = vst [vmem:[%s4760_s4 + $0x90] sm:$0xff] %v1399_v56  ;;  %2055 = vst [vmem:[%s4760_s4 + $0x310] sm:$0xff] %v1719_v24  ;;  %2365 = vmatprep.mubr.msk.bf16.mxu0 %vm2699_vm0, %v4767_v4  ;;  %2525 = vmatprep.mubr.msk.bf16.mxu1 %vm2699_vm0, %v4767_v4  ;;  %v748_v43 = vmul.f32 %v2690_v55, %v3406_v25  ;;  %v1226_v51 = vpack.c.bf16 %v1146_v40, %v1145_v47 }
 0x281   :  { %v2267_v27 = vpop.f32.mrf.mxu0  ;;  %v2427_v52 = vpop.f32.mrf.mxu1  ;;  %v910_v24 = vadd.f32 %v3430_v8, %v747_v23 }
 0x282   :  { %v911_v21 = vadd.f32 %v3430_v8, %v748_v43  ;;  %v991_v27 = vadd.f32 %v3430_v8, %v828_v14 }
 0x283   :  { %v1402_v31 = vpop.f32.mrf.mxu0  ;;  %v1722_v44 = vpop.f32.mrf.mxu1  ;;  %v1067_v57 = vmax.f32 %v910_v24, 0.0 }
 0x284   :  { %1976 = vst [vmem:[%s4760_s4 + $0x98] sm:$0xff] %v1402_v31  ;;  %2056 = vst [vmem:[%s4760_s4 + $0x318] sm:$0xff] %v1722_v44  ;;  %v1068_v31 = vmax.f32 %v911_v21, 0.0  ;;  %v2693_v44 = vld [vmem:[%s4757_s0 + $0x260] sm:$0xff] }
 0x285   :  { %v2268_v32 = vpop.f32.mrf.mxu0  ;;  %v2428_v2 = vpop.f32.mrf.mxu1 }
 0x286   :  { %v1148_v32 = vmax.f32 %v991_v27, 0.0  ;;  %v2694_v2 = vld [vmem:[%s4757_s0 + $0x268] sm:$0xff]  ;;  %v1187_v62 = vpack.c.bf16 %v1068_v31, %v1067_v57 }
 0x287   :  { %v1407_v49 = vpop.f32.mrf.mxu0  ;;  %2366 = vmatmul.mubr.bf16.gmra.mxu0 %v1184_v41  ;;  %v1727_v63 = vpop.f32.mrf.mxu1  ;;  %2526 = vmatmul.mubr.bf16.gmra.mxu1 %v1224_v53  ;;  %v749_v41 = vmul.f32 %v2693_v44, %v3406_v25  ;;  %v750_v37 = vmul.f32 %v2694_v2, %v3406_v25 }
 0x288   :  { %1977 = vst [vmem:[%s4760_s4 + $0xa0] sm:$0xff] %v1407_v49  ;;  %2057 = vst [vmem:[%s4760_s4 + $0x320] sm:$0xff] %v1727_v63  ;;  %2369 = vmatprep.mubr.msk.bf16.mxu0 %vm2699_vm0, %v4767_v4  ;;  %2529 = vmatprep.mubr.msk.bf16.mxu1 %vm2699_vm0, %v4767_v4  ;;  %v1227_v5 = vpack.c.bf16 %v1148_v32, %v1147_v1 }
 0x289   :  { %v2271_v42 = vpop.f32.mrf.mxu0  ;;  %v2431_v18 = vpop.f32.mrf.mxu1  ;;  %v912_v15 = vadd.f32 %v3430_v8, %v749_v41  ;;  %v913_v35 = vadd.f32 %v3430_v8, %v750_v37 }
 0x28b   :  { %v1410_v28 = vpop.f32.mrf.mxu0  ;;  %v1730_v13 = vpop.f32.mrf.mxu1  ;;  %v1069_v42 = vmax.f32 %v912_v15, 0.0  ;;  %v1070_v6 = vmax.f32 %v913_v35, 0.0 }
 0x28c   :  { %1978 = vst [vmem:[%s4760_s4 + $0xa8] sm:$0xff] %v1410_v28  ;;  %2058 = vst [vmem:[%s4760_s4 + $0x328] sm:$0xff] %v1730_v13  ;;  %v1149_v28 = vmax.f32 %v992_v12, 0.0  ;;  %v2696_v13 = vld [vmem:[%s4757_s0 + $0x270] sm:$0xff] }
 0x28d   :  { %v2272_v59 = vpop.f32.mrf.mxu0  ;;  %v2432_v10 = vpop.f32.mrf.mxu1  ;;  %v1188_v16 = vpack.c.bf16 %v1070_v6, %v1069_v42 }
 0x28f   :  { %v1415_v61 = vpop.f32.mrf.mxu0  ;;  %2370 = vmatmul.mubr.bf16.gmra.mxu0 %v1185_v60  ;;  %v1735_v36 = vpop.f32.mrf.mxu1  ;;  %2530 = vmatmul.mubr.bf16.gmra.mxu1 %v1225_v22  ;;  %v751_v60 = vmul.f32 %v2696_v13, %v3406_v25  ;;  %v2697_v22 = vld [vmem:[%s4757_s0 + $0x278] sm:$0xff] }
 0x290   :  { %1979 = vst [vmem:[%s4760_s4 + $0xb0] sm:$0xff] %v1415_v61  ;;  %2059 = vst [vmem:[%s4760_s4 + $0x330] sm:$0xff] %v1735_v36  ;;  %2373 = vmatprep.mubr.msk.bf16.mxu0 %vm2699_vm0, %v4767_v4  ;;  %2533 = vmatprep.mubr.msk.bf16.mxu1 %vm2699_vm0, %v4767_v4  ;;  %v752_v29 = vmul.f32 %v2697_v22, %v3406_v25  ;;  %v1228_v25 = vpack.c.bf16 %v1149_v28, %v1149_v28 }
 0x291   :  { %v2275_v45 = vpop.f32.mrf.mxu0  ;;  %v2435_v56 = vpop.f32.mrf.mxu1  ;;  %v914_v38 = vadd.f32 %v3430_v8, %v751_v60 }
 0x292   :  { %v915_v23 = vadd.f32 %v3430_v8, %v752_v29 }
 0x293   :  { %v1418_v34 = vpop.f32.mrf.mxu0  ;;  %v1738_v26 = vpop.f32.mrf.mxu1  ;;  %v1071_v47 = vmax.f32 %v914_v38, 0.0 }
 0x294   :  { %1980 = vst [vmem:[%s4760_s4 + $0xb8] sm:$0xff] %v1418_v34  ;;  %2060 = vst [vmem:[%s4760_s4 + $0x338] sm:$0xff] %v1738_v26  ;;  %v1072_v40 = vmax.f32 %v915_v23, 0.0 }
 0x295   :  { %v2276_v52 = vpop.f32.mrf.mxu0  ;;  %v2436_v54 = vpop.f32.mrf.mxu1 }
 0x296   :  { %v1189_v14 = vpack.c.bf16 %v1072_v40, %v1071_v47 }
 0x297   :  { %v1423_v53 = vpop.f32.mrf.mxu0  ;;  %2374 = vmatmul.mubr.bf16.gmra.mxu0 %v1186_v33  ;;  %v1743_v0 = vpop.f32.mrf.mxu1  ;;  %2534 = vmatmul.mubr.bf16.gmra.mxu1 %v1226_v51 }
 0x298   :  { %1981 = vst [vmem:[%s4760_s4 + $0xc0] sm:$0xff] %v1423_v53  ;;  %2061 = vst [vmem:[%s4760_s4 + $0x340] sm:$0xff] %v1743_v0  ;;  %2377 = vmatprep.mubr.msk.bf16.mxu0 %vm2699_vm0, %v4767_v4  ;;  %2537 = vmatprep.mubr.msk.bf16.mxu1 %vm2699_vm0, %v4767_v4 }
 0x299   :  { %v2279_v11 = vpop.f32.mrf.mxu0  ;;  %v2439_v17 = vpop.f32.mrf.mxu1 }
 0x29b   :  { %v1426_v49 = vpop.f32.mrf.mxu0  ;;  %v1746_v63 = vpop.f32.mrf.mxu1 }
 0x29c   :  { %1982 = vst [vmem:[%s4760_s4 + $0xc8] sm:$0xff] %v1426_v49  ;;  %2062 = vst [vmem:[%s4760_s4 + $0x348] sm:$0xff] %v1746_v63 }
 0x29d   :  { %v2280_v39 = vpop.f32.mrf.mxu0  ;;  %v2440_v20 = vpop.f32.mrf.mxu1 }
 0x29f   :  { %v1431_v18 = vpop.f32.mrf.mxu0  ;;  %2378 = vmatmul.mubr.bf16.gmra.mxu0 %v1187_v62  ;;  %v1751_v48 = vpop.f32.mrf.mxu1  ;;  %2538 = vmatmul.mubr.bf16.gmra.mxu1 %v1227_v5 }
 0x2a0   :  { %1983 = vst [vmem:[%s4760_s4 + $0xd0] sm:$0xff] %v1431_v18  ;;  %2063 = vst [vmem:[%s4760_s4 + $0x350] sm:$0xff] %v1751_v48  ;;  %2381 = vmatprep.mubr.msk.bf16.mxu0 %vm2699_vm0, %v4767_v4  ;;  %2541 = vmatprep.mubr.msk.bf16.mxu1 %vm2699_vm0, %v4767_v4 }
 0x2a1   :  { %v2283_v30 = vpop.f32.mrf.mxu0  ;;  %v2443_v59 = vpop.f32.mrf.mxu1 }
 0x2a3   :  { %v1434_v10 = vpop.f32.mrf.mxu0  ;;  %v1754_v19 = vpop.f32.mrf.mxu1 }
 0x2a4   :  { %1984 = vst [vmem:[%s4760_s4 + $0xd8] sm:$0xff] %v1434_v10  ;;  %2064 = vst [vmem:[%s4760_s4 + $0x358] sm:$0xff] %v1754_v19 }
 0x2a5   :  { %v2284_v55 = vpop.f32.mrf.mxu0  ;;  %v2444_v43 = vpop.f32.mrf.mxu1 }
 0x2a7   :  { %v1439_v61 = vpop.f32.mrf.mxu0  ;;  %2382 = vmatmul.mubr.bf16.gmra.mxu0 %v1188_v16  ;;  %v1759_v36 = vpop.f32.mrf.mxu1  ;;  %2542 = vmatmul.mubr.bf16.gmra.mxu1 %v1228_v25 }
 0x2a8   :  { %1985 = vst [vmem:[%s4760_s4 + $0xe0] sm:$0xff] %v1439_v61  ;;  %2065 = vst [vmem:[%s4760_s4 + $0x360] sm:$0xff] %v1759_v36  ;;  %2385 = vmatprep.mubr.msk.bf16.mxu0 %vm2699_vm0, %v4767_v4 }
 0x2a9   :  { %v2287_v8 = vpop.f32.mrf.mxu0  ;;  %v2447_v3 = vpop.f32.mrf.mxu1 }
 0x2ab   :  { %v1442_v46 = vpop.f32.mrf.mxu0  ;;  %v1762_v7 = vpop.f32.mrf.mxu1 }
 0x2ac   :  { %1986 = vst [vmem:[%s4760_s4 + $0xe8] sm:$0xff] %v1442_v46  ;;  %2066 = vst [vmem:[%s4760_s4 + $0x368] sm:$0xff] %v1762_v7 }
 0x2ad   :  { %v2288_v45 = vpop.f32.mrf.mxu0  ;;  %v2448_v56 = vpop.f32.mrf.mxu1 }
 0x2af   :  { %v1447_v24 = vpop.f32.mrf.mxu0  ;;  %2386 = vmatmul.mubr.bf16.gmra.mxu0 %v1189_v14  ;;  %v1767_v21 = vpop.f32.mrf.mxu1 }
 0x2b0   :  { %1987 = vst [vmem:[%s4760_s4 + $0xf0] sm:$0xff] %v1447_v24  ;;  %2067 = vst [vmem:[%s4760_s4 + $0x370] sm:$0xff] %v1767_v21 }
 0x2b1   :  { %v2291_v4 = vpop.f32.mrf.mxu0  ;;  %v2451_v34 = vpop.f32.mrf.mxu1 }
 0x2b3   :  { %v1450_v26 = vpop.f32.mrf.mxu0  ;;  %v1770_v33 = vpop.f32.mrf.mxu1 }
 0x2b4   :  { %1988 = vst [vmem:[%s4760_s4 + $0xf8] sm:$0xff] %v1450_v26  ;;  %2068 = vst [vmem:[%s4760_s4 + $0x378] sm:$0xff] %v1770_v33 }
 0x2b5   :  { %v2292_v51 = vpop.f32.mrf.mxu0  ;;  %v2452_v50 = vpop.f32.mrf.mxu1 }
 0x2b7   :  { %v1455_v27 = vpop.f32.mrf.mxu0  ;;  %v1775_v52 = vpop.f32.mrf.mxu1 }
 0x2b8   :  { %1989 = vst [vmem:[%s4760_s4 + $0x100] sm:$0xff] %v1455_v27  ;;  %2069 = vst [vmem:[%s4760_s4 + $0x380] sm:$0xff] %v1775_v52 }
 0x2b9   :  { %v2295_v54 = vpop.f32.mrf.mxu0  ;;  %v2455_v57 = vpop.f32.mrf.mxu1 }
 0x2bb   :  { %v1458_v31 = vpop.f32.mrf.mxu0  ;;  %v1778_v44 = vpop.f32.mrf.mxu1 }
 0x2bc   :  { %1990 = vst [vmem:[%s4760_s4 + $0x108] sm:$0xff] %v1458_v31  ;;  %2070 = vst [vmem:[%s4760_s4 + $0x388] sm:$0xff] %v1778_v44 }
 0x2bd   :  { %v2296_v41 = vpop.f32.mrf.mxu0  ;;  %v2456_v53 = vpop.f32.mrf.mxu1 }
 0x2bf   :  { %v1463_v0 = vpop.f32.mrf.mxu0  ;;  %v1783_v1 = vpop.f32.mrf.mxu1 }
 0x2c0   :  { %1991 = vst [vmem:[%s4760_s4 + $0x110] sm:$0xff] %v1463_v0  ;;  %2071 = vst [vmem:[%s4760_s4 + $0x390] sm:$0xff] %v1783_v1 }
 0x2c1   :  { %v2299_v32 = vpop.f32.mrf.mxu0  ;;  %v2459_v2 = vpop.f32.mrf.mxu1 }
 0x2c3   :  { %v1466_v37 = vpop.f32.mrf.mxu0  ;;  %v1786_v58 = vpop.f32.mrf.mxu1 }
 0x2c4   :  { %1992 = vst [vmem:[%s4760_s4 + $0x118] sm:$0xff] %v1466_v37  ;;  %2072 = vst [vmem:[%s4760_s4 + $0x398] sm:$0xff] %v1786_v58 }
 0x2c5   :  { %v2300_v9 = vpop.f32.mrf.mxu0  ;;  %v2460_v11 = vpop.f32.mrf.mxu1 }
 0x2c7   :  { %v1471_v17 = vpop.f32.mrf.mxu0  ;;  %v1791_v15 = vpop.f32.mrf.mxu1 }
 0x2c8   :  { %1993 = vst [vmem:[%s4760_s4 + $0x120] sm:$0xff] %v1471_v17  ;;  %2073 = vst [vmem:[%s4760_s4 + $0x3a0] sm:$0xff] %v1791_v15 }
 0x2c9   :  { %v2303_v49 = vpop.f32.mrf.mxu0  ;;  %v2463_v63 = vpop.f32.mrf.mxu1 }
 0x2cb   :  { %v1474_v62 = vpop.f32.mrf.mxu0  ;;  %v1794_v5 = vpop.f32.mrf.mxu1 }
 0x2cc   :  { %1994 = vst [vmem:[%s4760_s4 + $0x128] sm:$0xff] %v1474_v62  ;;  %2074 = vst [vmem:[%s4760_s4 + $0x3a8] sm:$0xff] %v1794_v5 }
 0x2cd   :  { %v2304_v35 = vpop.f32.mrf.mxu0  ;;  %v2464_v12 = vpop.f32.mrf.mxu1 }
 0x2cf   :  { %v1479_v39 = vpop.f32.mrf.mxu0  ;;  %v1799_v20 = vpop.f32.mrf.mxu1 }
 0x2d0   :  { %1995 = vst [vmem:[%s4760_s4 + $0x130] sm:$0xff] %v1479_v39  ;;  %2075 = vst [vmem:[%s4760_s4 + $0x3b0] sm:$0xff] %v1799_v20 }
 0x2d1   :  { %v2307_v42 = vpop.f32.mrf.mxu0  ;;  %v2467_v18 = vpop.f32.mrf.mxu1 }
 0x2d3   :  { %v1482_v48 = vpop.f32.mrf.mxu0  ;;  %v1802_v6 = vpop.f32.mrf.mxu1 }
 0x2d4   :  { %1996 = vst [vmem:[%s4760_s4 + $0x138] sm:$0xff] %v1482_v48  ;;  %2076 = vst [vmem:[%s4760_s4 + $0x3b8] sm:$0xff] %v1802_v6 }
 0x2d5   :  { %v2308_v28 = vpop.f32.mrf.mxu0  ;;  %v2468_v13 = vpop.f32.mrf.mxu1 }
 0x2d7   :  { %v1487_v60 = vpop.f32.mrf.mxu0  ;;  %v1807_v22 = vpop.f32.mrf.mxu1 }
 0x2d8   :  { %1997 = vst [vmem:[%s4760_s4 + $0x140] sm:$0xff] %v1487_v60  ;;  %2077 = vst [vmem:[%s4760_s4 + $0x3c0] sm:$0xff] %v1807_v22 }
 0x2d9   :  { %v2311_v29 = vpop.f32.mrf.mxu0  ;;  %v2471_v30 = vpop.f32.mrf.mxu1 }
 0x2db   :  { %v1490_v59 = vpop.f32.mrf.mxu0  ;;  %v1810_v10 = vpop.f32.mrf.mxu1 }
 0x2dc   :  { %1998 = vst [vmem:[%s4760_s4 + $0x148] sm:$0xff] %v1490_v59  ;;  %2078 = vst [vmem:[%s4760_s4 + $0x3c8] sm:$0xff] %v1810_v10 }
 0x2dd   :  { %v2312_v19 = vpop.f32.mrf.mxu0  ;;  %v2472_v16 = vpop.f32.mrf.mxu1 }
 0x2df   :  { %v1495_v25 = vpop.f32.mrf.mxu0  ;;  %v1815_v38 = vpop.f32.mrf.mxu1 }
 0x2e0   :  { %1999 = vst [vmem:[%s4760_s4 + $0x150] sm:$0xff] %v1495_v25  ;;  %2079 = vst [vmem:[%s4760_s4 + $0x3d0] sm:$0xff] %v1815_v38 }
 0x2e1   :  { %v2315_v23 = vpop.f32.mrf.mxu0  ;;  %v2475_v55 = vpop.f32.mrf.mxu1 }
 0x2e3   :  { %v1498_v43 = vpop.f32.mrf.mxu0  ;;  %v1818_v61 = vpop.f32.mrf.mxu1 }
 0x2e4   :  { %2000 = vst [vmem:[%s4760_s4 + $0x158] sm:$0xff] %v1498_v43  ;;  %2080 = vst [vmem:[%s4760_s4 + $0x3d8] sm:$0xff] %v1818_v61 }
 0x2e5   :  { %v2316_v36 = vpop.f32.mrf.mxu0  ;;  %v2476_v47 = vpop.f32.mrf.mxu1 }
 0x2e7   :  { %v1503_v40 = vpop.f32.mrf.mxu0  ;;  %v1823_v8 = vpop.f32.mrf.mxu1 }
 0x2e8   :  { %2001 = vst [vmem:[%s4760_s4 + $0x160] sm:$0xff] %v1503_v40  ;;  %2081 = vst [vmem:[%s4760_s4 + $0x3e0] sm:$0xff] %v1823_v8 }
 0x2e9   :  { %v2319_v3 = vpop.f32.mrf.mxu0  ;;  %v2479_v46 = vpop.f32.mrf.mxu1 }
 0x2eb   :  { %v1506_v7 = vpop.f32.mrf.mxu0  ;;  %v1826_v14 = vpop.f32.mrf.mxu1 }
 0x2ec   :  { %2002 = vst [vmem:[%s4760_s4 + $0x168] sm:$0xff] %v1506_v7  ;;  %2082 = vst [vmem:[%s4760_s4 + $0x3e8] sm:$0xff] %v1826_v14 }
 0x2ed   :  { %v2320_v45 = vpop.f32.mrf.mxu0  ;;  %v2480_v56 = vpop.f32.mrf.mxu1 }
 0x2ef   :  { %v1511_v24 = vpop.f32.mrf.mxu0  ;;  %v1831_v21 = vpop.f32.mrf.mxu1 }
 0x2f0   :  { %2003 = vst [vmem:[%s4760_s4 + $0x170] sm:$0xff] %v1511_v24  ;;  %2083 = vst [vmem:[%s4760_s4 + $0x3f0] sm:$0xff] %v1831_v21 }
 0x2f1   :  { %v2323_v4 = vpop.f32.mrf.mxu0  ;;  %v2483_v34 = vpop.f32.mrf.mxu1 }
 0x2f3   :  { %v1514_v26 = vpop.f32.mrf.mxu0  ;;  %v1834_v33 = vpop.f32.mrf.mxu1 }
 0x2f4   :  { %2004 = vst [vmem:[%s4760_s4 + $0x178] sm:$0xff] %v1514_v26  ;;  %2084 = vst [vmem:[%s4760_s4 + $0x3f8] sm:$0xff] %v1834_v33 }
 0x2f5   :  { %v2324_v51 = vpop.f32.mrf.mxu0  ;;  %v2484_v50 = vpop.f32.mrf.mxu1 }
 0x2f7   :  { %v1519_v27 = vpop.f32.mrf.mxu0  ;;  %v1839_v52 = vpop.f32.mrf.mxu1 }
 0x2f8   :  { %2005 = vst [vmem:[%s4760_s4 + $0x180] sm:$0xff] %v1519_v27  ;;  %2085 = vst [vmem:[%s4760_s4 + $0x400] sm:$0xff] %v1839_v52 }
 0x2f9   :  { %v2327_v54 = vpop.f32.mrf.mxu0  ;;  %v2487_v57 = vpop.f32.mrf.mxu1 }
 0x2fb   :  { %v1522_v31 = vpop.f32.mrf.mxu0  ;;  %v1842_v44 = vpop.f32.mrf.mxu1 }
 0x2fc   :  { %2006 = vst [vmem:[%s4760_s4 + $0x188] sm:$0xff] %v1522_v31  ;;  %2086 = vst [vmem:[%s4760_s4 + $0x408] sm:$0xff] %v1842_v44 }
 0x2fd   :  { %v2328_v41 = vpop.f32.mrf.mxu0  ;;  %v2488_v53 = vpop.f32.mrf.mxu1 }
 0x2ff   :  { %v1527_v0 = vpop.f32.mrf.mxu0  ;;  %v1847_v1 = vpop.f32.mrf.mxu1 }
 0x300   :  { %2007 = vst [vmem:[%s4760_s4 + $0x190] sm:$0xff] %v1527_v0  ;;  %2087 = vst [vmem:[%s4760_s4 + $0x410] sm:$0xff] %v1847_v1 }
 0x301   :  { %v2331_v32 = vpop.f32.mrf.mxu0  ;;  %v2491_v2 = vpop.f32.mrf.mxu1 }
 0x303   :  { %v1530_v37 = vpop.f32.mrf.mxu0  ;;  %v1850_v58 = vpop.f32.mrf.mxu1 }
 0x304   :  { %2008 = vst [vmem:[%s4760_s4 + $0x198] sm:$0xff] %v1530_v37  ;;  %2088 = vst [vmem:[%s4760_s4 + $0x418] sm:$0xff] %v1850_v58 }
 0x305   :  { %v2332_v9 = vpop.f32.mrf.mxu0  ;;  %v2492_v11 = vpop.f32.mrf.mxu1 }
 0x307   :  { %v1535_v17 = vpop.f32.mrf.mxu0  ;;  %v1855_v15 = vpop.f32.mrf.mxu1 }
 0x308   :  { %2009 = vst [vmem:[%s4760_s4 + $0x1a0] sm:$0xff] %v1535_v17  ;;  %2089 = vst [vmem:[%s4760_s4 + $0x420] sm:$0xff] %v1855_v15 }
 0x309   :  { %v2335_v49 = vpop.f32.mrf.mxu0  ;;  %v2495_v63 = vpop.f32.mrf.mxu1 }
 0x30b   :  { %v1538_v62 = vpop.f32.mrf.mxu0  ;;  %v1858_v5 = vpop.f32.mrf.mxu1 }
 0x30c   :  { %2010 = vst [vmem:[%s4760_s4 + $0x1a8] sm:$0xff] %v1538_v62  ;;  %2090 = vst [vmem:[%s4760_s4 + $0x428] sm:$0xff] %v1858_v5 }
 0x30d   :  { %v2336_v35 = vpop.f32.mrf.mxu0  ;;  %v2496_v12 = vpop.f32.mrf.mxu1 }
 0x30f   :  { %v1543_v39 = vpop.f32.mrf.mxu0  ;;  %v1863_v20 = vpop.f32.mrf.mxu1 }
 0x310   :  { %2011 = vst [vmem:[%s4760_s4 + $0x1b0] sm:$0xff] %v1543_v39  ;;  %2091 = vst [vmem:[%s4760_s4 + $0x430] sm:$0xff] %v1863_v20 }
 0x311   :  { %v2339_v42 = vpop.f32.mrf.mxu0  ;;  %v2499_v18 = vpop.f32.mrf.mxu1 }
 0x313   :  { %v1546_v48 = vpop.f32.mrf.mxu0  ;;  %v1866_v6 = vpop.f32.mrf.mxu1 }
 0x314   :  { %2012 = vst [vmem:[%s4760_s4 + $0x1b8] sm:$0xff] %v1546_v48  ;;  %2092 = vst [vmem:[%s4760_s4 + $0x438] sm:$0xff] %v1866_v6 }
 0x315   :  { %v2340_v28 = vpop.f32.mrf.mxu0  ;;  %v2500_v13 = vpop.f32.mrf.mxu1 }
 0x317   :  { %v1551_v60 = vpop.f32.mrf.mxu0  ;;  %v1871_v22 = vpop.f32.mrf.mxu1 }
 0x318   :  { %2013 = vst [vmem:[%s4760_s4 + $0x1c0] sm:$0xff] %v1551_v60  ;;  %2093 = vst [vmem:[%s4760_s4 + $0x440] sm:$0xff] %v1871_v22 }
 0x319   :  { %v2343_v29 = vpop.f32.mrf.mxu0  ;;  %v2503_v30 = vpop.f32.mrf.mxu1 }
 0x31b   :  { %v1554_v59 = vpop.f32.mrf.mxu0  ;;  %v1874_v10 = vpop.f32.mrf.mxu1 }
 0x31c   :  { %2014 = vst [vmem:[%s4760_s4 + $0x1c8] sm:$0xff] %v1554_v59  ;;  %2094 = vst [vmem:[%s4760_s4 + $0x448] sm:$0xff] %v1874_v10 }
 0x31d   :  { %v2344_v19 = vpop.f32.mrf.mxu0  ;;  %v2504_v16 = vpop.f32.mrf.mxu1 }
 0x31f   :  { %v1559_v25 = vpop.f32.mrf.mxu0  ;;  %v1879_v38 = vpop.f32.mrf.mxu1 }
 0x320   :  { %2015 = vst [vmem:[%s4760_s4 + $0x1d0] sm:$0xff] %v1559_v25  ;;  %2095 = vst [vmem:[%s4760_s4 + $0x450] sm:$0xff] %v1879_v38 }
 0x321   :  { %v2347_v23 = vpop.f32.mrf.mxu0  ;;  %v2507_v55 = vpop.f32.mrf.mxu1 }
 0x323   :  { %v1562_v43 = vpop.f32.mrf.mxu0  ;;  %v1882_v61 = vpop.f32.mrf.mxu1 }
 0x324   :  { %2016 = vst [vmem:[%s4760_s4 + $0x1d8] sm:$0xff] %v1562_v43  ;;  %2096 = vst [vmem:[%s4760_s4 + $0x458] sm:$0xff] %v1882_v61 }
 0x325   :  { %v2348_v36 = vpop.f32.mrf.mxu0  ;;  %v2508_v47 = vpop.f32.mrf.mxu1 }
 0x327   :  { %v1567_v40 = vpop.f32.mrf.mxu0  ;;  %v1887_v8 = vpop.f32.mrf.mxu1 }
 0x328   :  { %2017 = vst [vmem:[%s4760_s4 + $0x1e0] sm:$0xff] %v1567_v40  ;;  %2097 = vst [vmem:[%s4760_s4 + $0x460] sm:$0xff] %v1887_v8 }
 0x329   :  { %v2351_v3 = vpop.f32.mrf.mxu0  ;;  %v2511_v46 = vpop.f32.mrf.mxu1 }
 0x32b   :  { %v1570_v7 = vpop.f32.mrf.mxu0  ;;  %v1890_v14 = vpop.f32.mrf.mxu1 }
 0x32c   :  { %2018 = vst [vmem:[%s4760_s4 + $0x1e8] sm:$0xff] %v1570_v7  ;;  %2098 = vst [vmem:[%s4760_s4 + $0x468] sm:$0xff] %v1890_v14 }
 0x32d   :  { %v2352_v45 = vpop.f32.mrf.mxu0  ;;  %v2512_v56 = vpop.f32.mrf.mxu1 }
 0x32f   :  { %v1575_v24 = vpop.f32.mrf.mxu0  ;;  %v1895_v21 = vpop.f32.mrf.mxu1 }
 0x330   :  { %2019 = vst [vmem:[%s4760_s4 + $0x1f0] sm:$0xff] %v1575_v24  ;;  %2099 = vst [vmem:[%s4760_s4 + $0x470] sm:$0xff] %v1895_v21 }
 0x331   :  { %v2355_v4 = vpop.f32.mrf.mxu0  ;;  %v2515_v34 = vpop.f32.mrf.mxu1 }
 0x333   :  { %v1578_v26 = vpop.f32.mrf.mxu0  ;;  %v1898_v33 = vpop.f32.mrf.mxu1 }
 0x334   :  { %2020 = vst [vmem:[%s4760_s4 + $0x1f8] sm:$0xff] %v1578_v26  ;;  %2100 = vst [vmem:[%s4760_s4 + $0x478] sm:$0xff] %v1898_v33 }
 0x335   :  { %v2356_v51 = vpop.f32.mrf.mxu0  ;;  %v2516_v50 = vpop.f32.mrf.mxu1 }
 0x337   :  { %v1583_v27 = vpop.f32.mrf.mxu0  ;;  %v1903_v52 = vpop.f32.mrf.mxu1 }
 0x338   :  { %2021 = vst [vmem:[%s4760_s4 + $0x200] sm:$0xff] %v1583_v27  ;;  %2101 = vst [vmem:[%s4760_s4 + $0x480] sm:$0xff] %v1903_v52 }
 0x339   :  { %v2359_v54 = vpop.f32.mrf.mxu0  ;;  %v2519_v57 = vpop.f32.mrf.mxu1 }
 0x33b   :  { %v1586_v31 = vpop.f32.mrf.mxu0  ;;  %v1906_v44 = vpop.f32.mrf.mxu1 }
 0x33c   :  { %2022 = vst [vmem:[%s4760_s4 + $0x208] sm:$0xff] %v1586_v31  ;;  %2102 = vst [vmem:[%s4760_s4 + $0x488] sm:$0xff] %v1906_v44 }
 0x33d   :  { %v2360_v41 = vpop.f32.mrf.mxu0  ;;  %v2520_v53 = vpop.f32.mrf.mxu1 }
 0x33f   :  { %v1591_v0 = vpop.f32.mrf.mxu0  ;;  %v1911_v1 = vpop.f32.mrf.mxu1 }
 0x340   :  { %2023 = vst [vmem:[%s4760_s4 + $0x210] sm:$0xff] %v1591_v0  ;;  %2103 = vst [vmem:[%s4760_s4 + $0x490] sm:$0xff] %v1911_v1 }
 0x341   :  { %v2363_v32 = vpop.f32.mrf.mxu0  ;;  %v2523_v2 = vpop.f32.mrf.mxu1 }
 0x343   :  { %v1594_v37 = vpop.f32.mrf.mxu0  ;;  %v1914_v58 = vpop.f32.mrf.mxu1 }
 0x344   :  { %2024 = vst [vmem:[%s4760_s4 + $0x218] sm:$0xff] %v1594_v37  ;;  %2104 = vst [vmem:[%s4760_s4 + $0x498] sm:$0xff] %v1914_v58 }
 0x345   :  { %v2364_v9 = vpop.f32.mrf.mxu0  ;;  %v2524_v11 = vpop.f32.mrf.mxu1 }
 0x347   :  { %v1599_v17 = vpop.f32.mrf.mxu0  ;;  %v1919_v15 = vpop.f32.mrf.mxu1 }
 0x348   :  { %2025 = vst [vmem:[%s4760_s4 + $0x220] sm:$0xff] %v1599_v17  ;;  %2105 = vst [vmem:[%s4760_s4 + $0x4a0] sm:$0xff] %v1919_v15 }
 0x349   :  { %v2367_v49 = vpop.f32.mrf.mxu0  ;;  %v2527_v63 = vpop.f32.mrf.mxu1 }
 0x34b   :  { %v1602_v62 = vpop.f32.mrf.mxu0  ;;  %v1922_v5 = vpop.f32.mrf.mxu1 }
 0x34c   :  { %2026 = vst [vmem:[%s4760_s4 + $0x228] sm:$0xff] %v1602_v62  ;;  %2106 = vst [vmem:[%s4760_s4 + $0x4a8] sm:$0xff] %v1922_v5 }
 0x34d   :  { %v2368_v35 = vpop.f32.mrf.mxu0  ;;  %v2528_v12 = vpop.f32.mrf.mxu1 }
 0x34f   :  { %v1607_v39 = vpop.f32.mrf.mxu0  ;;  %v1927_v20 = vpop.f32.mrf.mxu1 }
 0x350   :  { %2027 = vst [vmem:[%s4760_s4 + $0x230] sm:$0xff] %v1607_v39  ;;  %2107 = vst [vmem:[%s4760_s4 + $0x4b0] sm:$0xff] %v1927_v20 }
 0x351   :  { %v2371_v42 = vpop.f32.mrf.mxu0  ;;  %v2531_v18 = vpop.f32.mrf.mxu1 }
 0x353   :  { %v1610_v48 = vpop.f32.mrf.mxu0  ;;  %v1930_v6 = vpop.f32.mrf.mxu1 }
 0x354   :  { %2028 = vst [vmem:[%s4760_s4 + $0x238] sm:$0xff] %v1610_v48  ;;  %2108 = vst [vmem:[%s4760_s4 + $0x4b8] sm:$0xff] %v1930_v6 }
 0x355   :  { %v2372_v28 = vpop.f32.mrf.mxu0  ;;  %v2532_v13 = vpop.f32.mrf.mxu1 }
 0x357   :  { %v1615_v60 = vpop.f32.mrf.mxu0  ;;  %v1935_v22 = vpop.f32.mrf.mxu1 }
 0x358   :  { %2029 = vst [vmem:[%s4760_s4 + $0x240] sm:$0xff] %v1615_v60  ;;  %2109 = vst [vmem:[%s4760_s4 + $0x4c0] sm:$0xff] %v1935_v22 }
 0x359   :  { %v2375_v29 = vpop.f32.mrf.mxu0  ;;  %v2535_v30 = vpop.f32.mrf.mxu1 }
 0x35b   :  { %v1618_v59 = vpop.f32.mrf.mxu0  ;;  %v1938_v10 = vpop.f32.mrf.mxu1 }
 0x35c   :  { %2030 = vst [vmem:[%s4760_s4 + $0x248] sm:$0xff] %v1618_v59  ;;  %2110 = vst [vmem:[%s4760_s4 + $0x4c8] sm:$0xff] %v1938_v10 }
 0x35d   :  { %v2376_v19 = vpop.f32.mrf.mxu0  ;;  %v2536_v16 = vpop.f32.mrf.mxu1 }
 0x35f   :  { %v1623_v25 = vpop.f32.mrf.mxu0  ;;  %v1943_v38 = vpop.f32.mrf.mxu1 }
 0x360   :  { %2031 = vst [vmem:[%s4760_s4 + $0x250] sm:$0xff] %v1623_v25  ;;  %2111 = vst [vmem:[%s4760_s4 + $0x4d0] sm:$0xff] %v1943_v38 }
 0x361   :  { %v2379_v23 = vpop.f32.mrf.mxu0  ;;  %v2539_v55 = vpop.f32.mrf.mxu1 }
 0x363   :  { %v1626_v43 = vpop.f32.mrf.mxu0  ;;  %v1946_v61 = vpop.f32.mrf.mxu1 }
 0x364   :  { %2032 = vst [vmem:[%s4760_s4 + $0x258] sm:$0xff] %v1626_v43  ;;  %2112 = vst [vmem:[%s4760_s4 + $0x4d8] sm:$0xff] %v1946_v61 }
 0x365   :  { %v2380_v36 = vpop.f32.mrf.mxu0  ;;  %v2540_v47 = vpop.f32.mrf.mxu1 }
 0x367   :  { %v1631_v40 = vpop.f32.mrf.mxu0  ;;  %v1951_v8 = vpop.f32.mrf.mxu1 }
 0x368   :  { %2033 = vst [vmem:[%s4760_s4 + $0x260] sm:$0xff] %v1631_v40  ;;  %2113 = vst [vmem:[%s4760_s4 + $0x4e0] sm:$0xff] %v1951_v8 }
 0x369   :  { %v2383_v3 = vpop.f32.mrf.mxu0  ;;  %v2543_v46 = vpop.f32.mrf.mxu1 }
 0x36b   :  { %v1634_v7 = vpop.f32.mrf.mxu0  ;;  %v1954_v14 = vpop.f32.mrf.mxu1 }
 0x36c   :  { %2034 = vst [vmem:[%s4760_s4 + $0x268] sm:$0xff] %v1634_v7 }
 0x36d   :  { %v2384_v45 = vpop.f32.mrf.mxu0  ;;  %v2544_v56 = vpop.f32.mrf.mxu1 }
 0x36f   :  { %v1639_v24 = vpop.f32.mrf.mxu0 }
 0x370   :  { %2035 = vst [vmem:[%s4760_s4 + $0x270] sm:$0xff] %v1639_v24 }
 0x371   :  { %v2387_v21 = vpop.f32.mrf.mxu0 }
 0x373   :  { %v1642_v4 = vpop.f32.mrf.mxu0 }
 0x374   :  { %2036 = vst [vmem:[%s4760_s4 + $0x278] sm:$0xff] %v1642_v4 }
 0x375   :  { %v2388_v34 = vpop.f32.mrf.mxu0 }

// kernel: shoobygen_forward.5
= control target key start
LH: loop header
LB: loop body
LE: loop exit
PB: predicated region body
PF: predicated region fallthrough
CT: control target
= control target key end

     0   :  { %s154_s0 = inlined_call_operand.vmem [shape: f32[96,128], index: 0, kind: input, shape index: {}]   ;;  %s155_s1 = inlined_call_operand.vmem [shape: f32[96,128], index: 1, kind: output, shape index: {}]  }
   0x1   :  { %v8_v0 = vld [vmem:[%s154_s0] sm:$0xff]  ;;  %v9_v1 = vld [vmem:[%s154_s0 + $0x8] sm:$0xff]  ;;  %v10_v2 = vld [vmem:[%s154_s0 + $0x10] sm:$0xff] }
   0x2   :  { %48 = vtanh.f32 %v8_v0  ;;  %v11_v3 = vld [vmem:[%s154_s0 + $0x18] sm:$0xff]  ;;  %v12_v4 = vld [vmem:[%s154_s0 + $0x20] sm:$0xff]  ;;  %v13_v5 = vld [vmem:[%s154_s0 + $0x28] sm:$0xff] }
   0x3   :  { %50 = vtanh.f32 %v9_v1  ;;  %v14_v6 = vld [vmem:[%s154_s0 + $0x30] sm:$0xff]  ;;  %v15_v7 = vld [vmem:[%s154_s0 + $0x38] sm:$0xff]  ;;  %v16_v8 = vld [vmem:[%s154_s0 + $0x40] sm:$0xff] }
   0x4   :  { %52 = vtanh.f32 %v10_v2  ;;  %v17_v9 = vld [vmem:[%s154_s0 + $0x48] sm:$0xff]  ;;  %v18_v10 = vld [vmem:[%s154_s0 + $0x50] sm:$0xff]  ;;  %v19_v11 = vld [vmem:[%s154_s0 + $0x58] sm:$0xff] }
   0x5   :  { %54 = vtanh.f32 %v11_v3 }
   0x6   :  { %56 = vtanh.f32 %v12_v4 }
   0x7   :  { %58 = vtanh.f32 %v13_v5 }
   0x8   :  { %60 = vtanh.f32 %v14_v6 }
   0x9   :  { %62 = vtanh.f32 %v15_v7 }
   0xa   :  { %64 = vtanh.f32 %v16_v8 }
   0xb   :  { %66 = vtanh.f32 %v17_v9 }
   0xc   :  { %68 = vtanh.f32 %v18_v10 }
   0xd   :  { %70 = vtanh.f32 %v19_v11 }
   0xf   :  { %v49_v12 = vpop.eup %48 }
  0x10   :  { %v51_v13 = vpop.eup %50  ;;  %32 = vst [vmem:[%s155_s1] sm:$0xff] %v49_v12 }
  0x11   :  { %v53_v14 = vpop.eup %52  ;;  %33 = vst [vmem:[%s155_s1 + $0x8] sm:$0xff] %v51_v13 }
  0x12   :  { %v55_v15 = vpop.eup %54  ;;  %34 = vst [vmem:[%s155_s1 + $0x10] sm:$0xff] %v53_v14 }
  0x13   :  { %v57_v16 = vpop.eup %56  ;;  %35 = vst [vmem:[%s155_s1 + $0x18] sm:$0xff] %v55_v15 }
  0x14   :  { %v59_v17 = vpop.eup %58  ;;  %36 = vst [vmem:[%s155_s1 + $0x20] sm:$0xff] %v57_v16 }
  0x15   :  { %v61_v18 = vpop.eup %60  ;;  %37 = vst [vmem:[%s155_s1 + $0x28] sm:$0xff] %v59_v17 }
  0x16   :  { %v63_v19 = vpop.eup %62  ;;  %38 = vst [vmem:[%s155_s1 + $0x30] sm:$0xff] %v61_v18 }
  0x17   :  { %v65_v20 = vpop.eup %64  ;;  %39 = vst [vmem:[%s155_s1 + $0x38] sm:$0xff] %v63_v19 }
  0x18   :  { %v67_v21 = vpop.eup %66  ;;  %40 = vst [vmem:[%s155_s1 + $0x40] sm:$0xff] %v65_v20 }
  0x19   :  { %v69_v22 = vpop.eup %68  ;;  %41 = vst [vmem:[%s155_s1 + $0x48] sm:$0xff] %v67_v21 }
  0x1a   :  { %v71_v23 = vpop.eup %70  ;;  %42 = vst [vmem:[%s155_s1 + $0x50] sm:$0xff] %v69_v22 }
  0x1b   :  { %43 = vst [vmem:[%s155_s1 + $0x58] sm:$0xff] %v71_v23 }

</bundles_post_ra>
